<compile_context>
chip_gen: v6e
topology: v6e:2x2x1
jax: 0.10.0
libtpu: 0.0.40
codegen_flags: <defaults>
</compile_context>

<pallas_src>
import functools

import numpy as np
import jax
import jax.numpy as jnp
from jax.experimental import pallas as pl
from jax.experimental.pallas import tpu as pltpu

TILE_B = 8     # batch rows per grid step (sublane aligned)
LANE = 128     # TPU lane width


def _round_up(n, m):
    return ((n + m - 1) // m) * m


# ----------------------------------------------------------------------------
# Fused Pallas kernel
# ----------------------------------------------------------------------------
def _rowmm(rows, w, b, *, relu, out_dtype):
    """concat(rows along lanes) @ w + b (f32 accumulate), optional ReLU."""
    x = rows[0] if len(rows) == 1 else jnp.concatenate(rows, axis=1)
    acc = jnp.dot(x.astype(w.dtype), w, preferred_element_type=jnp.float32)
    acc = acc + b
    if relu:
        acc = jnp.maximum(acc, 0.0)
    return acc.astype(out_dtype)


def _dueldqn_kernel(x_ref, w1_ref, b1_ref, w2_ref, b2_ref, w3_ref, b3_ref,
                    wh1_ref, bh1_ref, wh2_ref, bh2_ref, o_ref,
                    *, conv_cfg, n_actions):
    act = jnp.bfloat16

    # All H input rows of this batch tile: (TILE_B, W*C_pad) slabs with the
    # batch in sublanes and the (w, c) row pixels in lanes.
    rows = [x_ref[r] for r in range(x_ref.shape[0])]

    # Conv stack: each output row is one wide, lane-dense MXU matmul.
    for (ksz, stride, out_h), w_ref, b_ref in zip(
            conv_cfg,
            (w1_ref, w2_ref, w3_ref),
            (b1_ref, b2_ref, b3_ref)):
        w, b = w_ref[...], b_ref[...]
        rows = [
            _rowmm([rows[oy * stride + kh] for kh in range(ksz)], w, b,
                   relu=True, out_dtype=act)
            for oy in range(out_h)
        ]

    # Flattened conv features in the kernel's (h, w, c) lane-padded order; the
    # FC1 weight rows were permuted/padded at init time to match torch.Flatten.
    feat = rows[0] if len(rows) == 1 else jnp.concatenate(rows, axis=1)

    # Fused FC heads: [adv | val] share both matmuls; the dueling combine is
    # the store epilogue, so only the final (TILE_B, n_actions) tile is written.
    h1 = _rowmm([feat], wh1_ref[...], bh1_ref[...], relu=True, out_dtype=act)
    out2 = _rowmm([h1], wh2_ref[...], bh2_ref[...], relu=False,
                  out_dtype=jnp.float32)
    adv = out2[:, :n_actions]
    val = out2[:, n_actions:n_actions + 1]
    q = val + (adv - jnp.mean(adv, axis=1, keepdims=True))
    o_ref[...] = q.astype(o_ref.dtype)


# ----------------------------------------------------------------------------
# Forward wrapper (single pallas_call)
# ----------------------------------------------------------------------------
def dueldqn_forward(packed, x_nchw):
    """x_nchw: (B, C, H, W) -> Q-values (B, n_actions)."""
    B, C, H, W = x_nchw.shape
    n_actions = packed["n_actions"]

    bp = _round_up(B, TILE_B)
    x = x_nchw.astype(jnp.float32)                 # matches torch's x.float()
    if bp != B:
        x = jnp.pad(x, ((0, bp - B), (0, 0), (0, 0), (0, 0)))
    # NCHW -> (H, B, W, C) -> (H, B, W*C), lane-padded to a multiple of 128.
    x = jnp.transpose(x, (2, 0, 3, 1)).reshape(H, bp, W * C)
    pad = packed["in_row_pad"] - W * C
    if pad:
        x = jnp.pad(x, ((0, 0), (0, 0), (0, pad)))

    args = [x]
    in_specs = [pl.BlockSpec((H, TILE_B, x.shape[-1]), lambda i: (0, i, 0))]
    for w, b in packed["weights"]:                 # weights stay VMEM-resident
        in_specs.append(pl.BlockSpec(w.shape, lambda i: (0, 0)))
        in_specs.append(pl.BlockSpec(b.shape, lambda i: (0, 0)))
        args.extend((w, b))

    kernel = functools.partial(_dueldqn_kernel,
                               conv_cfg=packed["conv_cfg"],
                               n_actions=n_actions)
    q = pl.pallas_call(
        kernel,
        out_shape=jax.ShapeDtypeStruct((bp, n_actions), jnp.float32),
        grid=(bp // TILE_B,),
        in_specs=in_specs,
        out_specs=pl.BlockSpec((TILE_B, n_actions), lambda i: (i, 0)),
        compiler_params=pltpu.CompilerParams(
            dimension_semantics=("parallel",),      # batch axis across TCs (v7x)
            vmem_limit_bytes=32 * 1024 * 1024),
    )(*args)
    return q[:B]


# ----------------------------------------------------------------------------
# Parameter construction (deterministic, synthetic)
# ----------------------------------------------------------------------------
def _init_linear(key, fan_in, fan_out):
    kw_, kb_ = jax.random.split(key)
    bound = 1.0 / np.sqrt(fan_in)
    w = jax.random.uniform(kw_, (fan_in, fan_out), jnp.float32, -bound, bound)
    b = jax.random.uniform(kb_, (fan_out,), jnp.float32, -bound, bound)
    return w, b


def init_dense_params(key, in_channels, n_actions, H, W):
    """Synthetic parameters in a torch-equivalent dense layout.

    Conv weights are (KH, KW, IC, OC); real PyTorch weights (OC, IC, KH, KW)
    must be permuted with transpose(2, 3, 1, 0) before use.  FC1 weights are
    (conv_out_features, 256) with rows in torch's NCHW-flatten (c, h, w) order.
    """
    keys = jax.random.split(key, 7)
    conv_layers = [(in_channels, 32, 8, 4), (32, 64, 4, 2), (64, 64, 3, 1)]
    convs = []
    for k, (ic, oc, ksz, stride) in zip(keys[:3], conv_layers):
        wmat, b = _init_linear(k, ksz * ksz * ic, oc)
        convs.append((wmat.reshape(ksz, ksz, ic, oc), b, ksz, stride))

    def odim(n, k, s):
        return (n - k) // s + 1

    h1, w1 = odim(H, 8, 4), odim(W, 8, 4)
    h2, w2 = odim(h1, 4, 2), odim(w1, 4, 2)
    h3, w3 = odim(h2, 3, 1), odim(w2, 3, 1)
    feat_dim = 64 * h3 * w3
    return dict(convs=convs,
                fc_adv1=_init_linear(keys[3], feat_dim, 256),
                fc_adv2=_init_linear(keys[4], 256, n_actions),
                fc_val1=_init_linear(keys[5], feat_dim, 256),
                fc_val2=_init_linear(keys[6], 256, 1),
                spatial=((h1, w1), (h2, w2), (h3, w3)))


def _build_row_conv(w_dense, b, w_in, stride, ow, in_row_pad, out_row_pad):
    """Fold the im2col gather + lane padding for one conv into a row-matmul.

    Input row layout : (in_row_pad,)  index w*IC + ic (zeros beyond W_in*IC)
    Output row layout: (out_row_pad,) index ox*OC + oc (zeros beyond OW*OC)
    """
    kh, kw, ic, oc = w_dense.shape
    wd = np.asarray(w_dense, np.float32)
    wrow = np.zeros((kh * in_row_pad, out_row_pad), np.float32)
    for khi in range(kh):
        for kwi in range(kw):
            for ox in range(ow):
                r0 = khi * in_row_pad + (ox * stride + kwi) * ic
                wrow[r0:r0 + ic, ox * oc:(ox + 1) * oc] = wd[khi, kwi]
    brow = np.zeros((out_row_pad,), np.float32)
    brow[:ow * oc] = np.tile(np.asarray(b, np.float32), ow)
    return wrow, brow


def pack_params(dense, in_channels, n_actions, H, W):
    """Build the fused-kernel weights (bf16, im2col + head fusion folded in)."""
    (h1, w1), (h2, w2), (h3, w3) = dense["spatial"]
    widths_in = [W, w1, w2]
    ows = [w1, w2, w3]
    in_pads = [_round_up(wi * wd.shape[2], LANE)
               for wi, (wd, _, _, _) in zip(widths_in, dense["convs"])]
    out_pads = [_round_up(ow * wd.shape[3], LANE)
                for ow, (wd, _, _, _) in zip(ows, dense["convs"])]
    assert in_pads[1] == out_pads[0] and in_pads[2] == out_pads[1]

    weights = []
    for (wd, b, ksz, stride), wi, ow, ip, op in zip(
            dense["convs"], widths_in, ows, in_pads, out_pads):
        wrow, brow = _build_row_conv(wd, b, wi, stride, ow, ip, op)
        weights.append((jnp.asarray(wrow, jnp.bfloat16),
                        jnp.asarray(brow, jnp.float32).reshape(1, -1)))

    # FC1: fuse adv/val heads and permute rows from torch's NCHW flatten
    # order (c, h, w) to the kernel's lane-padded NHWC row layout.
    wa1 = np.asarray(dense["fc_adv1"][0], np.float32)
    wv1 = np.asarray(dense["fc_val1"][0], np.float32)
    ba1 = np.asarray(dense["fc_adv1"][1], np.float32)
    bv1 = np.asarray(dense["fc_val1"][1], np.float32)
    hidden = wa1.shape[1]
    oc3 = dense["convs"][2][0].shape[3]
    feat_pad = out_pads[2]
    wh1 = np.zeros((h3 * feat_pad, 2 * hidden), np.float32)
    for hh in range(h3):
        for ww in range(w3):
            for c in range(oc3):
                torch_idx = c * h3 * w3 + hh * w3 + ww
                kern_idx = hh * feat_pad + ww * oc3 + c
                wh1[kern_idx, :hidden] = wa1[torch_idx]
                wh1[kern_idx, hidden:] = wv1[torch_idx]
    bh1 = np.concatenate([ba1, bv1])

    # FC2: block-diagonal fusion -> columns [0:A] = adv, column A = val.
    wa2 = np.asarray(dense["fc_adv2"][0], np.float32)
    wv2 = np.asarray(dense["fc_val2"][0], np.float32)
    ba2 = np.asarray(dense["fc_adv2"][1], np.float32)
    bv2 = np.asarray(dense["fc_val2"][1], np.float32)
    wh2 = np.zeros((2 * hidden, n_actions + 1), np.float32)
    wh2[:hidden, :n_actions] = wa2
    wh2[hidden:, n_actions] = wv2[:, 0]
    bh2 = np.concatenate([ba2, bv2])

    weights.append((jnp.asarray(wh1, jnp.bfloat16),
                    jnp.asarray(bh1, jnp.float32).reshape(1, -1)))
    weights.append((jnp.asarray(wh2, jnp.bfloat16),
                    jnp.asarray(bh2, jnp.float32).reshape(1, -1)))

    conv_cfg = ((8, 4, h1), (4, 2, h2), (3, 1, h3))
    return dict(weights=weights, conv_cfg=conv_cfg,
                n_actions=n_actions, in_row_pad=in_pads[0])


# ----------------------------------------------------------------------------
# Pure-JAX f32 reference (matches the PyTorch module semantics)
# ----------------------------------------------------------------------------
def im2col_nhwc(x, kh, kw, stride):
    B, H, W, C = x.shape
    oh = (H - kh) // stride + 1
    ow = (W - kw) // stride + 1
    cols = []
    for i in range(kh):
        for j in range(kw):
            cols.append(x[:, i:i + stride * (oh - 1) + 1:stride,
                             j:j + stride * (ow - 1) + 1:stride, :])
    p = jnp.stack(cols, axis=3)
    return p.reshape(B * oh * ow, kh * kw * C), oh, ow


def reference_forward(dense, x_nchw):
    B = x_nchw.shape[0]
    x = jnp.transpose(x_nchw.astype(jnp.float32), (0, 2, 3, 1))
    for wd, b, ksz, stride in dense["convs"]:
        oc = wd.shape[-1]
        cols, oh, ow = im2col_nhwc(x, ksz, ksz, stride)
        y = jnp.maximum(cols @ wd.reshape(-1, oc) + b, 0.0)
        x = y.reshape(B, oh, ow, oc)
    feat = jnp.transpose(x, (0, 3, 1, 2)).reshape(B, -1)   # torch Flatten (NCHW)
    wa1, ba1 = dense["fc_adv1"]; wa2, ba2 = dense["fc_adv2"]
    wv1, bv1 = dense["fc_val1"]; wv2, bv2 = dense["fc_val2"]
    adv = jnp.maximum(feat @ wa1 + ba1, 0.0) @ wa2 + ba2
    val = jnp.maximum(feat @ wv1 + bv1, 0.0) @ wv2 + bv2
    return val + (adv - jnp.mean(adv, axis=1, keepdims=True))


if __name__ == "__main__":
    # Smallest spatial size the 8/4 -> 4/2 -> 3/1 conv stack supports:
    # 36 -> 8 -> 3 -> 1.
    B, C, H, W = 2, 4, 36, 36
    n_actions = 5

    key = jax.random.PRNGKey(0)
    k_params, k_x = jax.random.split(key)
    dense = init_dense_params(k_params, C, n_actions, H, W)
    packed = pack_params(dense, C, n_actions, H, W)
    x = jax.random.normal(k_x, (B, C, H, W), dtype=jnp.float32)

    fwd = jax.jit(lambda xin: dueldqn_forward(packed, xin))
    q = jax.block_until_ready(fwd(x))
    assert q.shape == (B, n_actions), q.shape

    # Loose tolerance: the kernel feeds the MXU bf16 (f32 accumulation).
    q_ref = reference_forward(dense, x)
    err = float(jnp.max(jnp.abs(q - q_ref)))
    assert jnp.allclose(q, q_ref, rtol=5e-2, atol=5e-2), err

    print("KERNEL_OK")
</pallas_src>

<mosaic_0001>
module attributes {stable_mosaic.version = 11 : i64} {
  func.func @_dueldqn_kernel(%arg0: i32, %arg1: memref<36x8x256xf32, #tpu.memory_space<vmem>>, %arg2: memref<2048x256xbf16, #tpu.memory_space<vmem>>, %arg3: memref<1x256xf32, #tpu.memory_space<vmem>>, %arg4: memref<1024x256xbf16, #tpu.memory_space<vmem>>, %arg5: memref<1x256xf32, #tpu.memory_space<vmem>>, %arg6: memref<768x128xbf16, #tpu.memory_space<vmem>>, %arg7: memref<1x128xf32, #tpu.memory_space<vmem>>, %arg8: memref<128x512xbf16, #tpu.memory_space<vmem>>, %arg9: memref<1x512xf32, #tpu.memory_space<vmem>>, %arg10: memref<512x6xbf16, #tpu.memory_space<vmem>>, %arg11: memref<1x6xf32, #tpu.memory_space<vmem>>, %arg12: memref<8x5xf32, #tpu.memory_space<vmem>>) attributes {dimension_semantics = [#tpu.dimension_semantics<parallel>], iteration_bounds = array<i64: 1>, scalar_prefetch = 0 : i64, scratch_operands = 0 : i64, tpu.core_type = #tpu.core_type<tc>, window_params = [{transform_indices = @transform_0, window_bounds = array<i64: 36, 8, 256>}, {pipeline_mode = #tpu.pipeline_mode<synchronous>, transform_indices = @transform_1, window_bounds = array<i64: 2048, 256>}, {pipeline_mode = #tpu.pipeline_mode<synchronous>, transform_indices = @transform_2, window_bounds = array<i64: 1, 256>}, {pipeline_mode = #tpu.pipeline_mode<synchronous>, transform_indices = @transform_3, window_bounds = array<i64: 1024, 256>}, {pipeline_mode = #tpu.pipeline_mode<synchronous>, transform_indices = @transform_4, window_bounds = array<i64: 1, 256>}, {pipeline_mode = #tpu.pipeline_mode<synchronous>, transform_indices = @transform_5, window_bounds = array<i64: 768, 128>}, {pipeline_mode = #tpu.pipeline_mode<synchronous>, transform_indices = @transform_6, window_bounds = array<i64: 1, 128>}, {pipeline_mode = #tpu.pipeline_mode<synchronous>, transform_indices = @transform_7, window_bounds = array<i64: 128, 512>}, {pipeline_mode = #tpu.pipeline_mode<synchronous>, transform_indices = @transform_8, window_bounds = array<i64: 1, 512>}, {pipeline_mode = #tpu.pipeline_mode<synchronous>, transform_indices = @transform_9, window_bounds = array<i64: 512, 6>}, {pipeline_mode = #tpu.pipeline_mode<synchronous>, transform_indices = @transform_10, window_bounds = array<i64: 1, 6>}, {transform_indices = @transform_11, window_bounds = array<i64: 8, 5>}]} {
    %c0 = arith.constant 0 : index
    %c0_0 = arith.constant 0 : index
    %c0_1 = arith.constant 0 : index
    %0 = vector.load %arg1[%c0, %c0_0, %c0_1] : memref<36x8x256xf32, #tpu.memory_space<vmem>>, vector<1x8x256xf32>
    %1 = vector.shape_cast %0 : vector<1x8x256xf32> to vector<8x256xf32>
    %c1 = arith.constant 1 : index
    %c0_2 = arith.constant 0 : index
    %c0_3 = arith.constant 0 : index
    %2 = vector.load %arg1[%c1, %c0_2, %c0_3] : memref<36x8x256xf32, #tpu.memory_space<vmem>>, vector<1x8x256xf32>
    %3 = vector.shape_cast %2 : vector<1x8x256xf32> to vector<8x256xf32>
    %c2 = arith.constant 2 : index
    %c0_4 = arith.constant 0 : index
    %c0_5 = arith.constant 0 : index
    %4 = vector.load %arg1[%c2, %c0_4, %c0_5] : memref<36x8x256xf32, #tpu.memory_space<vmem>>, vector<1x8x256xf32>
    %5 = vector.shape_cast %4 : vector<1x8x256xf32> to vector<8x256xf32>
    %c3 = arith.constant 3 : index
    %c0_6 = arith.constant 0 : index
    %c0_7 = arith.constant 0 : index
    %6 = vector.load %arg1[%c3, %c0_6, %c0_7] : memref<36x8x256xf32, #tpu.memory_space<vmem>>, vector<1x8x256xf32>
    %7 = vector.shape_cast %6 : vector<1x8x256xf32> to vector<8x256xf32>
    %c4 = arith.constant 4 : index
    %c0_8 = arith.constant 0 : index
    %c0_9 = arith.constant 0 : index
    %8 = vector.load %arg1[%c4, %c0_8, %c0_9] : memref<36x8x256xf32, #tpu.memory_space<vmem>>, vector<1x8x256xf32>
    %9 = vector.shape_cast %8 : vector<1x8x256xf32> to vector<8x256xf32>
    %c5 = arith.constant 5 : index
    %c0_10 = arith.constant 0 : index
    %c0_11 = arith.constant 0 : index
    %10 = vector.load %arg1[%c5, %c0_10, %c0_11] : memref<36x8x256xf32, #tpu.memory_space<vmem>>, vector<1x8x256xf32>
    %11 = vector.shape_cast %10 : vector<1x8x256xf32> to vector<8x256xf32>
    %c6 = arith.constant 6 : index
    %c0_12 = arith.constant 0 : index
    %c0_13 = arith.constant 0 : index
    %12 = vector.load %arg1[%c6, %c0_12, %c0_13] : memref<36x8x256xf32, #tpu.memory_space<vmem>>, vector<1x8x256xf32>
    %13 = vector.shape_cast %12 : vector<1x8x256xf32> to vector<8x256xf32>
    %c7 = arith.constant 7 : index
    %c0_14 = arith.constant 0 : index
    %c0_15 = arith.constant 0 : index
    %14 = vector.load %arg1[%c7, %c0_14, %c0_15] : memref<36x8x256xf32, #tpu.memory_space<vmem>>, vector<1x8x256xf32>
    %15 = vector.shape_cast %14 : vector<1x8x256xf32> to vector<8x256xf32>
    %c8 = arith.constant 8 : index
    %c0_16 = arith.constant 0 : index
    %c0_17 = arith.constant 0 : index
    %16 = vector.load %arg1[%c8, %c0_16, %c0_17] : memref<36x8x256xf32, #tpu.memory_space<vmem>>, vector<1x8x256xf32>
    %17 = vector.shape_cast %16 : vector<1x8x256xf32> to vector<8x256xf32>
    %c9 = arith.constant 9 : index
    %c0_18 = arith.constant 0 : index
    %c0_19 = arith.constant 0 : index
    %18 = vector.load %arg1[%c9, %c0_18, %c0_19] : memref<36x8x256xf32, #tpu.memory_space<vmem>>, vector<1x8x256xf32>
    %19 = vector.shape_cast %18 : vector<1x8x256xf32> to vector<8x256xf32>
    %c10 = arith.constant 10 : index
    %c0_20 = arith.constant 0 : index
    %c0_21 = arith.constant 0 : index
    %20 = vector.load %arg1[%c10, %c0_20, %c0_21] : memref<36x8x256xf32, #tpu.memory_space<vmem>>, vector<1x8x256xf32>
    %21 = vector.shape_cast %20 : vector<1x8x256xf32> to vector<8x256xf32>
    %c11 = arith.constant 11 : index
    %c0_22 = arith.constant 0 : index
    %c0_23 = arith.constant 0 : index
    %22 = vector.load %arg1[%c11, %c0_22, %c0_23] : memref<36x8x256xf32, #tpu.memory_space<vmem>>, vector<1x8x256xf32>
    %23 = vector.shape_cast %22 : vector<1x8x256xf32> to vector<8x256xf32>
    %c12 = arith.constant 12 : index
    %c0_24 = arith.constant 0 : index
    %c0_25 = arith.constant 0 : index
    %24 = vector.load %arg1[%c12, %c0_24, %c0_25] : memref<36x8x256xf32, #tpu.memory_space<vmem>>, vector<1x8x256xf32>
    %25 = vector.shape_cast %24 : vector<1x8x256xf32> to vector<8x256xf32>
    %c13 = arith.constant 13 : index
    %c0_26 = arith.constant 0 : index
    %c0_27 = arith.constant 0 : index
    %26 = vector.load %arg1[%c13, %c0_26, %c0_27] : memref<36x8x256xf32, #tpu.memory_space<vmem>>, vector<1x8x256xf32>
    %27 = vector.shape_cast %26 : vector<1x8x256xf32> to vector<8x256xf32>
    %c14 = arith.constant 14 : index
    %c0_28 = arith.constant 0 : index
    %c0_29 = arith.constant 0 : index
    %28 = vector.load %arg1[%c14, %c0_28, %c0_29] : memref<36x8x256xf32, #tpu.memory_space<vmem>>, vector<1x8x256xf32>
    %29 = vector.shape_cast %28 : vector<1x8x256xf32> to vector<8x256xf32>
    %c15 = arith.constant 15 : index
    %c0_30 = arith.constant 0 : index
    %c0_31 = arith.constant 0 : index
    %30 = vector.load %arg1[%c15, %c0_30, %c0_31] : memref<36x8x256xf32, #tpu.memory_space<vmem>>, vector<1x8x256xf32>
    %31 = vector.shape_cast %30 : vector<1x8x256xf32> to vector<8x256xf32>
    %c16 = arith.constant 16 : index
    %c0_32 = arith.constant 0 : index
    %c0_33 = arith.constant 0 : index
    %32 = vector.load %arg1[%c16, %c0_32, %c0_33] : memref<36x8x256xf32, #tpu.memory_space<vmem>>, vector<1x8x256xf32>
    %33 = vector.shape_cast %32 : vector<1x8x256xf32> to vector<8x256xf32>
    %c17 = arith.constant 17 : index
    %c0_34 = arith.constant 0 : index
    %c0_35 = arith.constant 0 : index
    %34 = vector.load %arg1[%c17, %c0_34, %c0_35] : memref<36x8x256xf32, #tpu.memory_space<vmem>>, vector<1x8x256xf32>
    %35 = vector.shape_cast %34 : vector<1x8x256xf32> to vector<8x256xf32>
    %c18 = arith.constant 18 : index
    %c0_36 = arith.constant 0 : index
    %c0_37 = arith.constant 0 : index
    %36 = vector.load %arg1[%c18, %c0_36, %c0_37] : memref<36x8x256xf32, #tpu.memory_space<vmem>>, vector<1x8x256xf32>
    %37 = vector.shape_cast %36 : vector<1x8x256xf32> to vector<8x256xf32>
    %c19 = arith.constant 19 : index
    %c0_38 = arith.constant 0 : index
    %c0_39 = arith.constant 0 : index
    %38 = vector.load %arg1[%c19, %c0_38, %c0_39] : memref<36x8x256xf32, #tpu.memory_space<vmem>>, vector<1x8x256xf32>
    %39 = vector.shape_cast %38 : vector<1x8x256xf32> to vector<8x256xf32>
    %c20 = arith.constant 20 : index
    %c0_40 = arith.constant 0 : index
    %c0_41 = arith.constant 0 : index
    %40 = vector.load %arg1[%c20, %c0_40, %c0_41] : memref<36x8x256xf32, #tpu.memory_space<vmem>>, vector<1x8x256xf32>
    %41 = vector.shape_cast %40 : vector<1x8x256xf32> to vector<8x256xf32>
    %c21 = arith.constant 21 : index
    %c0_42 = arith.constant 0 : index
    %c0_43 = arith.constant 0 : index
    %42 = vector.load %arg1[%c21, %c0_42, %c0_43] : memref<36x8x256xf32, #tpu.memory_space<vmem>>, vector<1x8x256xf32>
    %43 = vector.shape_cast %42 : vector<1x8x256xf32> to vector<8x256xf32>
    %c22 = arith.constant 22 : index
    %c0_44 = arith.constant 0 : index
    %c0_45 = arith.constant 0 : index
    %44 = vector.load %arg1[%c22, %c0_44, %c0_45] : memref<36x8x256xf32, #tpu.memory_space<vmem>>, vector<1x8x256xf32>
    %45 = vector.shape_cast %44 : vector<1x8x256xf32> to vector<8x256xf32>
    %c23 = arith.constant 23 : index
    %c0_46 = arith.constant 0 : index
    %c0_47 = arith.constant 0 : index
    %46 = vector.load %arg1[%c23, %c0_46, %c0_47] : memref<36x8x256xf32, #tpu.memory_space<vmem>>, vector<1x8x256xf32>
    %47 = vector.shape_cast %46 : vector<1x8x256xf32> to vector<8x256xf32>
    %c24 = arith.constant 24 : index
    %c0_48 = arith.constant 0 : index
    %c0_49 = arith.constant 0 : index
    %48 = vector.load %arg1[%c24, %c0_48, %c0_49] : memref<36x8x256xf32, #tpu.memory_space<vmem>>, vector<1x8x256xf32>
    %49 = vector.shape_cast %48 : vector<1x8x256xf32> to vector<8x256xf32>
    %c25 = arith.constant 25 : index
    %c0_50 = arith.constant 0 : index
    %c0_51 = arith.constant 0 : index
    %50 = vector.load %arg1[%c25, %c0_50, %c0_51] : memref<36x8x256xf32, #tpu.memory_space<vmem>>, vector<1x8x256xf32>
    %51 = vector.shape_cast %50 : vector<1x8x256xf32> to vector<8x256xf32>
    %c26 = arith.constant 26 : index
    %c0_52 = arith.constant 0 : index
    %c0_53 = arith.constant 0 : index
    %52 = vector.load %arg1[%c26, %c0_52, %c0_53] : memref<36x8x256xf32, #tpu.memory_space<vmem>>, vector<1x8x256xf32>
    %53 = vector.shape_cast %52 : vector<1x8x256xf32> to vector<8x256xf32>
    %c27 = arith.constant 27 : index
    %c0_54 = arith.constant 0 : index
    %c0_55 = arith.constant 0 : index
    %54 = vector.load %arg1[%c27, %c0_54, %c0_55] : memref<36x8x256xf32, #tpu.memory_space<vmem>>, vector<1x8x256xf32>
    %55 = vector.shape_cast %54 : vector<1x8x256xf32> to vector<8x256xf32>
    %c28 = arith.constant 28 : index
    %c0_56 = arith.constant 0 : index
    %c0_57 = arith.constant 0 : index
    %56 = vector.load %arg1[%c28, %c0_56, %c0_57] : memref<36x8x256xf32, #tpu.memory_space<vmem>>, vector<1x8x256xf32>
    %57 = vector.shape_cast %56 : vector<1x8x256xf32> to vector<8x256xf32>
    %c29 = arith.constant 29 : index
    %c0_58 = arith.constant 0 : index
    %c0_59 = arith.constant 0 : index
    %58 = vector.load %arg1[%c29, %c0_58, %c0_59] : memref<36x8x256xf32, #tpu.memory_space<vmem>>, vector<1x8x256xf32>
    %59 = vector.shape_cast %58 : vector<1x8x256xf32> to vector<8x256xf32>
    %c30 = arith.constant 30 : index
    %c0_60 = arith.constant 0 : index
    %c0_61 = arith.constant 0 : index
    %60 = vector.load %arg1[%c30, %c0_60, %c0_61] : memref<36x8x256xf32, #tpu.memory_space<vmem>>, vector<1x8x256xf32>
    %61 = vector.shape_cast %60 : vector<1x8x256xf32> to vector<8x256xf32>
    %c31 = arith.constant 31 : index
    %c0_62 = arith.constant 0 : index
    %c0_63 = arith.constant 0 : index
    %62 = vector.load %arg1[%c31, %c0_62, %c0_63] : memref<36x8x256xf32, #tpu.memory_space<vmem>>, vector<1x8x256xf32>
    %63 = vector.shape_cast %62 : vector<1x8x256xf32> to vector<8x256xf32>
    %c32 = arith.constant 32 : index
    %c0_64 = arith.constant 0 : index
    %c0_65 = arith.constant 0 : index
    %64 = vector.load %arg1[%c32, %c0_64, %c0_65] : memref<36x8x256xf32, #tpu.memory_space<vmem>>, vector<1x8x256xf32>
    %65 = vector.shape_cast %64 : vector<1x8x256xf32> to vector<8x256xf32>
    %c33 = arith.constant 33 : index
    %c0_66 = arith.constant 0 : index
    %c0_67 = arith.constant 0 : index
    %66 = vector.load %arg1[%c33, %c0_66, %c0_67] : memref<36x8x256xf32, #tpu.memory_space<vmem>>, vector<1x8x256xf32>
    %67 = vector.shape_cast %66 : vector<1x8x256xf32> to vector<8x256xf32>
    %c34 = arith.constant 34 : index
    %c0_68 = arith.constant 0 : index
    %c0_69 = arith.constant 0 : index
    %68 = vector.load %arg1[%c34, %c0_68, %c0_69] : memref<36x8x256xf32, #tpu.memory_space<vmem>>, vector<1x8x256xf32>
    %69 = vector.shape_cast %68 : vector<1x8x256xf32> to vector<8x256xf32>
    %c35 = arith.constant 35 : index
    %c0_70 = arith.constant 0 : index
    %c0_71 = arith.constant 0 : index
    %70 = vector.load %arg1[%c35, %c0_70, %c0_71] : memref<36x8x256xf32, #tpu.memory_space<vmem>>, vector<1x8x256xf32>
    %71 = vector.shape_cast %70 : vector<1x8x256xf32> to vector<8x256xf32>
    %c0_72 = arith.constant 0 : index
    %c0_73 = arith.constant 0 : index
    %72 = vector.load %arg2[%c0_72, %c0_73] : memref<2048x256xbf16, #tpu.memory_space<vmem>>, vector<2048x256xbf16>
    %c0_74 = arith.constant 0 : index
    %c0_75 = arith.constant 0 : index
    %73 = vector.load %arg3[%c0_74, %c0_75] : memref<1x256xf32, #tpu.memory_space<vmem>>, vector<1x256xf32>
    %74 = tpu.concatenate %1, %3, %5, %7, %9, %11, %13, %15 in 1 : vector<8x256xf32>, vector<8x256xf32>, vector<8x256xf32>, vector<8x256xf32>, vector<8x256xf32>, vector<8x256xf32>, vector<8x256xf32>, vector<8x256xf32> -> vector<8x2048xf32>
    %75 = arith.truncf %74 : vector<8x2048xf32> to vector<8x2048xbf16>
    %cst = arith.constant dense<0.000000e+00> : vector<8x256xf32>
    %76 = tpu.matmul %75, %72, %cst {dimension_numbers = #tpu.dot_dimension_numbers<[1], [0], [0], [1], [0, 0, 1, 1], [], []>} : vector<8x2048xbf16>, vector<2048x256xbf16>, vector<8x256xf32> -> vector<8x256xf32>
    %77 = vector.broadcast %73 : vector<1x256xf32> to vector<8x256xf32>
    %78 = arith.addf %76, %77 : vector<8x256xf32>
    %cst_76 = arith.constant 0.000000e+00 : f32
    %79 = vector.broadcast %cst_76 : f32 to vector<8x256xf32>
    %80 = arith.maximumf %78, %79 : vector<8x256xf32>
    %81 = arith.truncf %80 : vector<8x256xf32> to vector<8x256xbf16>
    %82 = tpu.concatenate %9, %11, %13, %15, %17, %19, %21, %23 in 1 : vector<8x256xf32>, vector<8x256xf32>, vector<8x256xf32>, vector<8x256xf32>, vector<8x256xf32>, vector<8x256xf32>, vector<8x256xf32>, vector<8x256xf32> -> vector<8x2048xf32>
    %83 = arith.truncf %82 : vector<8x2048xf32> to vector<8x2048xbf16>
    %cst_77 = arith.constant dense<0.000000e+00> : vector<8x256xf32>
    %84 = tpu.matmul %83, %72, %cst_77 {dimension_numbers = #tpu.dot_dimension_numbers<[1], [0], [0], [1], [0, 0, 1, 1], [], []>} : vector<8x2048xbf16>, vector<2048x256xbf16>, vector<8x256xf32> -> vector<8x256xf32>
    %85 = vector.broadcast %73 : vector<1x256xf32> to vector<8x256xf32>
    %86 = arith.addf %84, %85 : vector<8x256xf32>
    %cst_78 = arith.constant 0.000000e+00 : f32
    %87 = vector.broadcast %cst_78 : f32 to vector<8x256xf32>
    %88 = arith.maximumf %86, %87 : vector<8x256xf32>
    %89 = arith.truncf %88 : vector<8x256xf32> to vector<8x256xbf16>
    %90 = tpu.concatenate %17, %19, %21, %23, %25, %27, %29, %31 in 1 : vector<8x256xf32>, vector<8x256xf32>, vector<8x256xf32>, vector<8x256xf32>, vector<8x256xf32>, vector<8x256xf32>, vector<8x256xf32>, vector<8x256xf32> -> vector<8x2048xf32>
    %91 = arith.truncf %90 : vector<8x2048xf32> to vector<8x2048xbf16>
    %cst_79 = arith.constant dense<0.000000e+00> : vector<8x256xf32>
    %92 = tpu.matmul %91, %72, %cst_79 {dimension_numbers = #tpu.dot_dimension_numbers<[1], [0], [0], [1], [0, 0, 1, 1], [], []>} : vector<8x2048xbf16>, vector<2048x256xbf16>, vector<8x256xf32> -> vector<8x256xf32>
    %93 = vector.broadcast %73 : vector<1x256xf32> to vector<8x256xf32>
    %94 = arith.addf %92, %93 : vector<8x256xf32>
    %cst_80 = arith.constant 0.000000e+00 : f32
    %95 = vector.broadcast %cst_80 : f32 to vector<8x256xf32>
    %96 = arith.maximumf %94, %95 : vector<8x256xf32>
    %97 = arith.truncf %96 : vector<8x256xf32> to vector<8x256xbf16>
    %98 = tpu.concatenate %25, %27, %29, %31, %33, %35, %37, %39 in 1 : vector<8x256xf32>, vector<8x256xf32>, vector<8x256xf32>, vector<8x256xf32>, vector<8x256xf32>, vector<8x256xf32>, vector<8x256xf32>, vector<8x256xf32> -> vector<8x2048xf32>
    %99 = arith.truncf %98 : vector<8x2048xf32> to vector<8x2048xbf16>
    %cst_81 = arith.constant dense<0.000000e+00> : vector<8x256xf32>
    %100 = tpu.matmul %99, %72, %cst_81 {dimension_numbers = #tpu.dot_dimension_numbers<[1], [0], [0], [1], [0, 0, 1, 1], [], []>} : vector<8x2048xbf16>, vector<2048x256xbf16>, vector<8x256xf32> -> vector<8x256xf32>
    %101 = vector.broadcast %73 : vector<1x256xf32> to vector<8x256xf32>
    %102 = arith.addf %100, %101 : vector<8x256xf32>
    %cst_82 = arith.constant 0.000000e+00 : f32
    %103 = vector.broadcast %cst_82 : f32 to vector<8x256xf32>
    %104 = arith.maximumf %102, %103 : vector<8x256xf32>
    %105 = arith.truncf %104 : vector<8x256xf32> to vector<8x256xbf16>
    %106 = tpu.concatenate %33, %35, %37, %39, %41, %43, %45, %47 in 1 : vector<8x256xf32>, vector<8x256xf32>, vector<8x256xf32>, vector<8x256xf32>, vector<8x256xf32>, vector<8x256xf32>, vector<8x256xf32>, vector<8x256xf32> -> vector<8x2048xf32>
    %107 = arith.truncf %106 : vector<8x2048xf32> to vector<8x2048xbf16>
    %cst_83 = arith.constant dense<0.000000e+00> : vector<8x256xf32>
    %108 = tpu.matmul %107, %72, %cst_83 {dimension_numbers = #tpu.dot_dimension_numbers<[1], [0], [0], [1], [0, 0, 1, 1], [], []>} : vector<8x2048xbf16>, vector<2048x256xbf16>, vector<8x256xf32> -> vector<8x256xf32>
    %109 = vector.broadcast %73 : vector<1x256xf32> to vector<8x256xf32>
    %110 = arith.addf %108, %109 : vector<8x256xf32>
    %cst_84 = arith.constant 0.000000e+00 : f32
    %111 = vector.broadcast %cst_84 : f32 to vector<8x256xf32>
    %112 = arith.maximumf %110, %111 : vector<8x256xf32>
    %113 = arith.truncf %112 : vector<8x256xf32> to vector<8x256xbf16>
    %114 = tpu.concatenate %41, %43, %45, %47, %49, %51, %53, %55 in 1 : vector<8x256xf32>, vector<8x256xf32>, vector<8x256xf32>, vector<8x256xf32>, vector<8x256xf32>, vector<8x256xf32>, vector<8x256xf32>, vector<8x256xf32> -> vector<8x2048xf32>
    %115 = arith.truncf %114 : vector<8x2048xf32> to vector<8x2048xbf16>
    %cst_85 = arith.constant dense<0.000000e+00> : vector<8x256xf32>
    %116 = tpu.matmul %115, %72, %cst_85 {dimension_numbers = #tpu.dot_dimension_numbers<[1], [0], [0], [1], [0, 0, 1, 1], [], []>} : vector<8x2048xbf16>, vector<2048x256xbf16>, vector<8x256xf32> -> vector<8x256xf32>
    %117 = vector.broadcast %73 : vector<1x256xf32> to vector<8x256xf32>
    %118 = arith.addf %116, %117 : vector<8x256xf32>
    %cst_86 = arith.constant 0.000000e+00 : f32
    %119 = vector.broadcast %cst_86 : f32 to vector<8x256xf32>
    %120 = arith.maximumf %118, %119 : vector<8x256xf32>
    %121 = arith.truncf %120 : vector<8x256xf32> to vector<8x256xbf16>
    %122 = tpu.concatenate %49, %51, %53, %55, %57, %59, %61, %63 in 1 : vector<8x256xf32>, vector<8x256xf32>, vector<8x256xf32>, vector<8x256xf32>, vector<8x256xf32>, vector<8x256xf32>, vector<8x256xf32>, vector<8x256xf32> -> vector<8x2048xf32>
    %123 = arith.truncf %122 : vector<8x2048xf32> to vector<8x2048xbf16>
    %cst_87 = arith.constant dense<0.000000e+00> : vector<8x256xf32>
    %124 = tpu.matmul %123, %72, %cst_87 {dimension_numbers = #tpu.dot_dimension_numbers<[1], [0], [0], [1], [0, 0, 1, 1], [], []>} : vector<8x2048xbf16>, vector<2048x256xbf16>, vector<8x256xf32> -> vector<8x256xf32>
    %125 = vector.broadcast %73 : vector<1x256xf32> to vector<8x256xf32>
    %126 = arith.addf %124, %125 : vector<8x256xf32>
    %cst_88 = arith.constant 0.000000e+00 : f32
    %127 = vector.broadcast %cst_88 : f32 to vector<8x256xf32>
    %128 = arith.maximumf %126, %127 : vector<8x256xf32>
    %129 = arith.truncf %128 : vector<8x256xf32> to vector<8x256xbf16>
    %130 = tpu.concatenate %57, %59, %61, %63, %65, %67, %69, %71 in 1 : vector<8x256xf32>, vector<8x256xf32>, vector<8x256xf32>, vector<8x256xf32>, vector<8x256xf32>, vector<8x256xf32>, vector<8x256xf32>, vector<8x256xf32> -> vector<8x2048xf32>
    %131 = arith.truncf %130 : vector<8x2048xf32> to vector<8x2048xbf16>
    %cst_89 = arith.constant dense<0.000000e+00> : vector<8x256xf32>
    %132 = tpu.matmul %131, %72, %cst_89 {dimension_numbers = #tpu.dot_dimension_numbers<[1], [0], [0], [1], [0, 0, 1, 1], [], []>} : vector<8x2048xbf16>, vector<2048x256xbf16>, vector<8x256xf32> -> vector<8x256xf32>
    %133 = vector.broadcast %73 : vector<1x256xf32> to vector<8x256xf32>
    %134 = arith.addf %132, %133 : vector<8x256xf32>
    %cst_90 = arith.constant 0.000000e+00 : f32
    %135 = vector.broadcast %cst_90 : f32 to vector<8x256xf32>
    %136 = arith.maximumf %134, %135 : vector<8x256xf32>
    %137 = arith.truncf %136 : vector<8x256xf32> to vector<8x256xbf16>
    %c0_91 = arith.constant 0 : index
    %c0_92 = arith.constant 0 : index
    %138 = vector.load %arg4[%c0_91, %c0_92] : memref<1024x256xbf16, #tpu.memory_space<vmem>>, vector<1024x256xbf16>
    %c0_93 = arith.constant 0 : index
    %c0_94 = arith.constant 0 : index
    %139 = vector.load %arg5[%c0_93, %c0_94] : memref<1x256xf32, #tpu.memory_space<vmem>>, vector<1x256xf32>
    %140 = tpu.concatenate %81, %89, %97, %105 in 1 : vector<8x256xbf16>, vector<8x256xbf16>, vector<8x256xbf16>, vector<8x256xbf16> -> vector<8x1024xbf16>
    %cst_95 = arith.constant dense<0.000000e+00> : vector<8x256xf32>
    %141 = tpu.matmul %140, %138, %cst_95 {dimension_numbers = #tpu.dot_dimension_numbers<[1], [0], [0], [1], [0, 0, 1, 1], [], []>} : vector<8x1024xbf16>, vector<1024x256xbf16>, vector<8x256xf32> -> vector<8x256xf32>
    %142 = vector.broadcast %139 : vector<1x256xf32> to vector<8x256xf32>
    %143 = arith.addf %141, %142 : vector<8x256xf32>
    %cst_96 = arith.constant 0.000000e+00 : f32
    %144 = vector.broadcast %cst_96 : f32 to vector<8x256xf32>
    %145 = arith.maximumf %143, %144 : vector<8x256xf32>
    %146 = arith.truncf %145 : vector<8x256xf32> to vector<8x256xbf16>
    %147 = tpu.concatenate %97, %105, %113, %121 in 1 : vector<8x256xbf16>, vector<8x256xbf16>, vector<8x256xbf16>, vector<8x256xbf16> -> vector<8x1024xbf16>
    %cst_97 = arith.constant dense<0.000000e+00> : vector<8x256xf32>
    %148 = tpu.matmul %147, %138, %cst_97 {dimension_numbers = #tpu.dot_dimension_numbers<[1], [0], [0], [1], [0, 0, 1, 1], [], []>} : vector<8x1024xbf16>, vector<1024x256xbf16>, vector<8x256xf32> -> vector<8x256xf32>
    %149 = vector.broadcast %139 : vector<1x256xf32> to vector<8x256xf32>
    %150 = arith.addf %148, %149 : vector<8x256xf32>
    %cst_98 = arith.constant 0.000000e+00 : f32
    %151 = vector.broadcast %cst_98 : f32 to vector<8x256xf32>
    %152 = arith.maximumf %150, %151 : vector<8x256xf32>
    %153 = arith.truncf %152 : vector<8x256xf32> to vector<8x256xbf16>
    %154 = tpu.concatenate %113, %121, %129, %137 in 1 : vector<8x256xbf16>, vector<8x256xbf16>, vector<8x256xbf16>, vector<8x256xbf16> -> vector<8x1024xbf16>
    %cst_99 = arith.constant dense<0.000000e+00> : vector<8x256xf32>
    %155 = tpu.matmul %154, %138, %cst_99 {dimension_numbers = #tpu.dot_dimension_numbers<[1], [0], [0], [1], [0, 0, 1, 1], [], []>} : vector<8x1024xbf16>, vector<1024x256xbf16>, vector<8x256xf32> -> vector<8x256xf32>
    %156 = vector.broadcast %139 : vector<1x256xf32> to vector<8x256xf32>
    %157 = arith.addf %155, %156 : vector<8x256xf32>
    %cst_100 = arith.constant 0.000000e+00 : f32
    %158 = vector.broadcast %cst_100 : f32 to vector<8x256xf32>
    %159 = arith.maximumf %157, %158 : vector<8x256xf32>
    %160 = arith.truncf %159 : vector<8x256xf32> to vector<8x256xbf16>
    %c0_101 = arith.constant 0 : index
    %c0_102 = arith.constant 0 : index
    %161 = vector.load %arg6[%c0_101, %c0_102] : memref<768x128xbf16, #tpu.memory_space<vmem>>, vector<768x128xbf16>
    %c0_103 = arith.constant 0 : index
    %c0_104 = arith.constant 0 : index
    %162 = vector.load %arg7[%c0_103, %c0_104] : memref<1x128xf32, #tpu.memory_space<vmem>>, vector<1x128xf32>
    %163 = tpu.concatenate %146, %153, %160 in 1 : vector<8x256xbf16>, vector<8x256xbf16>, vector<8x256xbf16> -> vector<8x768xbf16>
    %cst_105 = arith.constant dense<0.000000e+00> : vector<8x128xf32>
    %164 = tpu.matmul %163, %161, %cst_105 {dimension_numbers = #tpu.dot_dimension_numbers<[1], [0], [0], [1], [0, 0, 1, 1], [], []>} : vector<8x768xbf16>, vector<768x128xbf16>, vector<8x128xf32> -> vector<8x128xf32>
    %165 = vector.broadcast %162 : vector<1x128xf32> to vector<8x128xf32>
    %166 = arith.addf %164, %165 : vector<8x128xf32>
    %cst_106 = arith.constant 0.000000e+00 : f32
    %167 = vector.broadcast %cst_106 : f32 to vector<8x128xf32>
    %168 = arith.maximumf %166, %167 : vector<8x128xf32>
    %169 = arith.truncf %168 : vector<8x128xf32> to vector<8x128xbf16>
    %c0_107 = arith.constant 0 : index
    %c0_108 = arith.constant 0 : index
    %170 = vector.load %arg8[%c0_107, %c0_108] : memref<128x512xbf16, #tpu.memory_space<vmem>>, vector<128x512xbf16>
    %c0_109 = arith.constant 0 : index
    %c0_110 = arith.constant 0 : index
    %171 = vector.load %arg9[%c0_109, %c0_110] : memref<1x512xf32, #tpu.memory_space<vmem>>, vector<1x512xf32>
    %cst_111 = arith.constant dense<0.000000e+00> : vector<8x512xf32>
    %172 = tpu.matmul %169, %170, %cst_111 {dimension_numbers = #tpu.dot_dimension_numbers<[1], [0], [0], [1], [0, 0, 1, 1], [], []>} : vector<8x128xbf16>, vector<128x512xbf16>, vector<8x512xf32> -> vector<8x512xf32>
    %173 = vector.broadcast %171 : vector<1x512xf32> to vector<8x512xf32>
    %174 = arith.addf %172, %173 : vector<8x512xf32>
    %cst_112 = arith.constant 0.000000e+00 : f32
    %175 = vector.broadcast %cst_112 : f32 to vector<8x512xf32>
    %176 = arith.maximumf %174, %175 : vector<8x512xf32>
    %177 = arith.truncf %176 : vector<8x512xf32> to vector<8x512xbf16>
    %c0_113 = arith.constant 0 : index
    %c0_114 = arith.constant 0 : index
    %178 = vector.load %arg10[%c0_113, %c0_114] : memref<512x6xbf16, #tpu.memory_space<vmem>>, vector<512x6xbf16>
    %c0_115 = arith.constant 0 : index
    %c0_116 = arith.constant 0 : index
    %179 = vector.load %arg11[%c0_115, %c0_116] : memref<1x6xf32, #tpu.memory_space<vmem>>, vector<1x6xf32>
    %cst_117 = arith.constant dense<0.000000e+00> : vector<8x6xf32>
    %180 = tpu.matmul %177, %178, %cst_117 {dimension_numbers = #tpu.dot_dimension_numbers<[1], [0], [0], [1], [0, 0, 1, 1], [], []>} : vector<8x512xbf16>, vector<512x6xbf16>, vector<8x6xf32> -> vector<8x6xf32>
    %181 = vector.broadcast %179 : vector<1x6xf32> to vector<8x6xf32>
    %182 = arith.addf %180, %181 : vector<8x6xf32>
    %183 = vector.extract_strided_slice %182 {offsets = [0, 0], sizes = [8, 5], strides = [1, 1]} : vector<8x6xf32> to vector<8x5xf32>
    %184 = vector.extract_strided_slice %182 {offsets = [0, 5], sizes = [8, 1], strides = [1, 1]} : vector<8x6xf32> to vector<8x1xf32>
    %cst_118 = arith.constant dense<0.000000e+00> : vector<8xf32>
    %185 = vector.multi_reduction <add>, %183, %cst_118 [1] : vector<8x5xf32> to vector<8xf32>
    %186 = vector.shape_cast %185 : vector<8xf32> to vector<8x1xf32>
    %cst_119 = arith.constant 5.000000e+00 : f32
    %187 = vector.broadcast %cst_119 : f32 to vector<8x1xf32>
    %188 = arith.divf %186, %187 : vector<8x1xf32>
    %189 = vector.broadcast %188 : vector<8x1xf32> to vector<8x5xf32>
    %190 = arith.subf %183, %189 : vector<8x5xf32>
    %191 = vector.broadcast %184 : vector<8x1xf32> to vector<8x5xf32>
    %192 = arith.addf %191, %190 : vector<8x5xf32>
    %c0_120 = arith.constant 0 : index
    %c0_121 = arith.constant 0 : index
    %193 = vector.load %arg12[%c0_120, %c0_121] : memref<8x5xf32, #tpu.memory_space<vmem>>, vector<8x5xf32>
    tpu.vector_store %arg12[%c0_120, %c0_121], %192 {strides = array<i32>} : memref<8x5xf32, #tpu.memory_space<vmem>>, vector<8x5xf32>,
    return
  }
  func.func @transform_0(%arg0: i32) -> (i32, i32, i32) {
    %c0_i32 = arith.constant 0 : i32
    %c0_i32_0 = arith.constant 0 : i32
    %c0_i32_1 = arith.constant 0 : i32
    return %c0_i32, %arg0, %c0_i32_0 : i32, i32, i32
  }
  func.func @transform_1(%arg0: i32) -> (i32, i32) {
    %c0_i32 = arith.constant 0 : i32
    %c0_i32_0 = arith.constant 0 : i32
    %c0_i32_1 = arith.constant 0 : i32
    return %c0_i32, %c0_i32_0 : i32, i32
  }
  func.func @transform_2(%arg0: i32) -> (i32, i32) {
    %c0_i32 = arith.constant 0 : i32
    %c0_i32_0 = arith.constant 0 : i32
    %c0_i32_1 = arith.constant 0 : i32
    return %c0_i32, %c0_i32_0 : i32, i32
  }
  func.func @transform_3(%arg0: i32) -> (i32, i32) {
    %c0_i32 = arith.constant 0 : i32
    %c0_i32_0 = arith.constant 0 : i32
    %c0_i32_1 = arith.constant 0 : i32
    return %c0_i32, %c0_i32_0 : i32, i32
  }
  func.func @transform_4(%arg0: i32) -> (i32, i32) {
    %c0_i32 = arith.constant 0 : i32
    %c0_i32_0 = arith.constant 0 : i32
    %c0_i32_1 = arith.constant 0 : i32
    return %c0_i32, %c0_i32_0 : i32, i32
  }
  func.func @transform_5(%arg0: i32) -> (i32, i32) {
    %c0_i32 = arith.constant 0 : i32
    %c0_i32_0 = arith.constant 0 : i32
    %c0_i32_1 = arith.constant 0 : i32
    return %c0_i32, %c0_i32_0 : i32, i32
  }
  func.func @transform_6(%arg0: i32) -> (i32, i32) {
    %c0_i32 = arith.constant 0 : i32
    %c0_i32_0 = arith.constant 0 : i32
    %c0_i32_1 = arith.constant 0 : i32
    return %c0_i32, %c0_i32_0 : i32, i32
  }
  func.func @transform_7(%arg0: i32) -> (i32, i32) {
    %c0_i32 = arith.constant 0 : i32
    %c0_i32_0 = arith.constant 0 : i32
    %c0_i32_1 = arith.constant 0 : i32
    return %c0_i32, %c0_i32_0 : i32, i32
  }
  func.func @transform_8(%arg0: i32) -> (i32, i32) {
    %c0_i32 = arith.constant 0 : i32
    %c0_i32_0 = arith.constant 0 : i32
    %c0_i32_1 = arith.constant 0 : i32
    return %c0_i32, %c0_i32_0 : i32, i32
  }
  func.func @transform_9(%arg0: i32) -> (i32, i32) {
    %c0_i32 = arith.constant 0 : i32
    %c0_i32_0 = arith.constant 0 : i32
    %c0_i32_1 = arith.constant 0 : i32
    return %c0_i32, %c0_i32_0 : i32, i32
  }
  func.func @transform_10(%arg0: i32) -> (i32, i32) {
    %c0_i32 = arith.constant 0 : i32
    %c0_i32_0 = arith.constant 0 : i32
    %c0_i32_1 = arith.constant 0 : i32
    return %c0_i32, %c0_i32_0 : i32, i32
  }
  func.func @transform_11(%arg0: i32) -> (i32, i32) {
    %c0_i32 = arith.constant 0 : i32
    %c0_i32_0 = arith.constant 0 : i32
    return %arg0, %c0_i32 : i32, i32
  }
}

</mosaic_0001>

<bundles_post_ra>
// kernel: _lambda_.1
= control target key start
LH: loop header
LB: loop body
LE: loop exit
PB: predicated region body
PF: predicated region fallthrough
CT: control target
= control target key end

     0   :  { %vm6866_vm0 = vcmask 39936   ;;  %s18475_s1 = inlined_call_operand.vmem [shape: bf16[2048,256], index: 1, kind: input, shape index: {}]   ;;  %s18476_s0 = inlined_call_operand.vmem [shape: f32[36,8,256], index: 0, kind: input, shape index: {}]   ;;  %s18477_s2 = inlined_call_operand.vmem [shape: f32[1,256], index: 2, kind: input, shape index: {}]   ;;  %s18478_s3 = inlined_call_operand.vmem [shape: bf16[1024,256], index: 3, kind: input, shape index: {}]   ;;  %s18479_s4 = inlined_call_operand.vmem [shape: f32[1,256], index: 4, kind: input, shape index: {}]   ;;  %s18480_s5 = inlined_call_operand.vmem [shape: bf16[768,128], index: 5, kind: input, shape index: {}]   ;;  %s18481_s7 = inlined_call_operand.vmem [shape: bf16[128,512], index: 7, kind: input, shape index: {}]   ;;  %s18482_s6 = inlined_call_operand.vmem [shape: f32[1,128], index: 6, kind: input, shape index: {}]   ;;  %s18483_s9 = inlined_call_operand.vmem [shape: bf16[512,6], index: 9, kind: input, shape index: {}]   ;;  %s18484_s8 = inlined_call_operand.vmem [shape: f32[1,512], index: 8, kind: input, shape index: {}]   ;;  %s18485_s10 = inlined_call_operand.vmem [shape: f32[1,6], index: 10, kind: input, shape index: {}]   ;;  %s18486_s11 = inlined_call_operand.vmem [shape: f32[8,5], index: 11, kind: output, shape index: {}]  }
   0x1   :  { %v7565_v0 = vld [vmem:[%s18475_s1 + $0x74] ss:$8 sps:$4 sm:$0xff]   ;;  %v7569_v2 = vld [vmem:[%s18475_s1 + $0x70] ss:$8 sps:$4 sm:$0xff]   ;;  %v7571_v4 = vld [vmem:[%s18475_s1 + $0x64] ss:$8 sps:$4 sm:$0xff]  }
   0x2   :  { %v7567_v1 = vld [vmem:[%s18475_s1 + $0x174] ss:$8 sps:$4 sm:$0xff]   ;;  %1710 = vmatprep.subr.bf16.mxu0 %v7565_v0  ;;  %v7570_v3 = vld [vmem:[%s18475_s1 + $0x170] ss:$8 sps:$4 sm:$0xff]   ;;  %v7573_v5 = vld [vmem:[%s18475_s1 + $0x164] ss:$8 sps:$4 sm:$0xff]  }
   0x3   :  { %1751 = vmatprep.subr.bf16.mxu1 %v7567_v1  ;;  %1711 = vmatpush1.bf16.msra.mxu0 %v7569_v2  ;;  %v7575_v6 = vld [vmem:[%s18475_s1 + $0x60] ss:$8 sps:$4 sm:$0xff]   ;;  %v7577_v8 = vld [vmem:[%s18475_s1 + $0x54] ss:$8 sps:$4 sm:$0xff]   ;;  %v7581_v10 = vld [vmem:[%s18475_s1 + $0x50] ss:$8 sps:$4 sm:$0xff]  }
   0x4   :  { %1752 = vmatpush1.bf16.msra.mxu1 %v7570_v3  ;;  %1712 = vmatprep.subr.bf16.mxu0 %v7571_v4  ;;  %v7576_v7 = vld [vmem:[%s18475_s1 + $0x160] ss:$8 sps:$4 sm:$0xff]   ;;  %v7579_v9 = vld [vmem:[%s18475_s1 + $0x154] ss:$8 sps:$4 sm:$0xff]   ;;  %v7582_v11 = vld [vmem:[%s18475_s1 + $0x150] ss:$8 sps:$4 sm:$0xff]  }
   0x5   :  { %1753 = vmatprep.subr.bf16.mxu1 %v7573_v5  ;;  %v7583_v12 = vld [vmem:[%s18475_s1 + $0x44] ss:$8 sps:$4 sm:$0xff]   ;;  %v7587_v14 = vld [vmem:[%s18475_s1 + $0x40] ss:$8 sps:$4 sm:$0xff]   ;;  %v7589_v16 = vld [vmem:[%s18475_s1 + $0x34] ss:$8 sps:$4 sm:$0xff]  }
   0x6   :  { %v7585_v13 = vld [vmem:[%s18475_s1 + $0x144] ss:$8 sps:$4 sm:$0xff]   ;;  %v7588_v15 = vld [vmem:[%s18475_s1 + $0x140] ss:$8 sps:$4 sm:$0xff]   ;;  %v7591_v17 = vld [vmem:[%s18475_s1 + $0x134] ss:$8 sps:$4 sm:$0xff]  }
   0x7   :  { %1713 = vmatpush1.bf16.msra.mxu0 %v7575_v6  ;;  %v7593_v18 = vld [vmem:[%s18475_s1 + $0x30] ss:$8 sps:$4 sm:$0xff]   ;;  %v7595_v20 = vld [vmem:[%s18475_s1 + $0x24] ss:$8 sps:$4 sm:$0xff]   ;;  %v7599_v22 = vld [vmem:[%s18475_s1 + $0x20] ss:$8 sps:$4 sm:$0xff]  }
   0x8   :  { %1754 = vmatpush1.bf16.msra.mxu1 %v7576_v7  ;;  %1714 = vmatprep.subr.bf16.mxu0 %v7577_v8  ;;  %v7594_v19 = vld [vmem:[%s18475_s1 + $0x130] ss:$8 sps:$4 sm:$0xff]   ;;  %v7597_v21 = vld [vmem:[%s18475_s1 + $0x124] ss:$8 sps:$4 sm:$0xff]   ;;  %v7600_v23 = vld [vmem:[%s18475_s1 + $0x120] ss:$8 sps:$4 sm:$0xff]  }
   0x9   :  { %1755 = vmatprep.subr.bf16.mxu1 %v7579_v9  ;;  %v7601_v24 = vld [vmem:[%s18475_s1 + $0x14] ss:$8 sps:$4 sm:$0xff]   ;;  %v7605_v26 = vld [vmem:[%s18475_s1 + $0x10] ss:$8 sps:$4 sm:$0xff]   ;;  %v7607_v28 = vld [vmem:[%s18475_s1 + $0x4] ss:$8 sps:$4 sm:$0xff]  }
   0xa   :  { %v7603_v25 = vld [vmem:[%s18475_s1 + $0x114] ss:$8 sps:$4 sm:$0xff]   ;;  %v7606_v27 = vld [vmem:[%s18475_s1 + $0x110] ss:$8 sps:$4 sm:$0xff]   ;;  %v7609_v29 = vld [vmem:[%s18475_s1 + $0x104] ss:$8 sps:$4 sm:$0xff]  }
   0xb   :  { %1715 = vmatpush1.bf16.msra.mxu0 %v7581_v10  ;;  %v7611_v30 = vld [vmem:[%s18475_s1] ss:$8 sps:$4 sm:$0xff]   ;;  %v7613_v32 = vld [vmem:[%s18475_s1 + $0xf4] ss:$8 sps:$4 sm:$0xff]   ;;  %v7617_v34 = vld [vmem:[%s18475_s1 + $0xf0] ss:$8 sps:$4 sm:$0xff]  }
   0xc   :  { %1756 = vmatpush1.bf16.msra.mxu1 %v7582_v11  ;;  %1716 = vmatprep.subr.bf16.mxu0 %v7583_v12  ;;  %v7612_v31 = vld [vmem:[%s18475_s1 + $0x100] ss:$8 sps:$4 sm:$0xff]   ;;  %v7615_v33 = vld [vmem:[%s18475_s1 + $0x1f4] ss:$8 sps:$4 sm:$0xff]   ;;  %v7618_v35 = vld [vmem:[%s18475_s1 + $0x1f0] ss:$8 sps:$4 sm:$0xff]  }
   0xd   :  { %1757 = vmatprep.subr.bf16.mxu1 %v7585_v13  ;;  %v7619_v36 = vld [vmem:[%s18475_s1 + $0xe4] ss:$8 sps:$4 sm:$0xff]   ;;  %v7623_v38 = vld [vmem:[%s18475_s1 + $0xe0] ss:$8 sps:$4 sm:$0xff]   ;;  %v7625_v40 = vld [vmem:[%s18475_s1 + $0xd4] ss:$8 sps:$4 sm:$0xff]  }
   0xe   :  { %v7621_v37 = vld [vmem:[%s18475_s1 + $0x1e4] ss:$8 sps:$4 sm:$0xff]   ;;  %v7624_v39 = vld [vmem:[%s18475_s1 + $0x1e0] ss:$8 sps:$4 sm:$0xff]   ;;  %v7627_v41 = vld [vmem:[%s18475_s1 + $0x1d4] ss:$8 sps:$4 sm:$0xff]  }
   0xf   :  { %1717 = vmatpush1.bf16.msra.mxu0 %v7587_v14  ;;  %v7629_v42 = vld [vmem:[%s18475_s1 + $0xd0] ss:$8 sps:$4 sm:$0xff]   ;;  %v7631_v44 = vld [vmem:[%s18475_s1 + $0xc4] ss:$8 sps:$4 sm:$0xff]   ;;  %v7635_v47 = vld [vmem:[%s18475_s1 + $0xc0] ss:$8 sps:$4 sm:$0xff]  }
  0x10   :  { %1758 = vmatpush1.bf16.msra.mxu1 %v7588_v15  ;;  %1718 = vmatprep.subr.bf16.mxu0 %v7589_v16  ;;  %v7630_v43 = vld [vmem:[%s18475_s1 + $0x1d0] ss:$8 sps:$4 sm:$0xff]   ;;  %v7633_v45 = vld [vmem:[%s18475_s1 + $0x1c4] ss:$8 sps:$4 sm:$0xff]   ;;  %v7636_v48 = vld [vmem:[%s18475_s1 + $0x1c0] ss:$8 sps:$4 sm:$0xff]  }
  0x11   :  { %1759 = vmatprep.subr.bf16.mxu1 %v7591_v17  ;;  %v40_v46 = vld [vmem:[%s18476_s0 + $0x8] sm:$0xff]  ;;  %v6885_v50 = vld [vmem:[%s18476_s0 + $0x18] sm:$0xff]  ;;  %v39_v4 = vld [vmem:[%s18476_s0] sm:$0xff] }
  0x12   :  { %v404_v49 = vpack.c.bf16 %v40_v46, %v40_v46  ;;  %v7637_v51 = vld [vmem:[%s18475_s1 + $0xb4] ss:$8 sps:$4 sm:$0xff]   ;;  %v406_v52 = vpack.c.bf16 %v6885_v50, %v6885_v50  ;;  %v7641_v54 = vld [vmem:[%s18475_s1 + $0xb0] ss:$8 sps:$4 sm:$0xff]   ;;  %v7643_v56 = vld [vmem:[%s18475_s1 + $0xa4] ss:$8 sps:$4 sm:$0xff]   ;;  %v403_v8 = vpack.c.bf16 %v39_v4, %v39_v4 }
  0x13   :  { %1719 = vmatpush1.bf16.msra.mxu0 %v7593_v18  ;;  %v7639_v53 = vld [vmem:[%s18475_s1 + $0x1b4] ss:$8 sps:$4 sm:$0xff]   ;;  %v7642_v55 = vld [vmem:[%s18475_s1 + $0x1b0] ss:$8 sps:$4 sm:$0xff]   ;;  %v7645_v57 = vld [vmem:[%s18475_s1 + $0x1a4] ss:$8 sps:$4 sm:$0xff]  }
  0x14   :  { %1760 = vmatpush1.bf16.msra.mxu1 %v7594_v19  ;;  %1720 = vmatprep.subr.bf16.mxu0 %v7595_v20  ;;  %v7647_v58 = vld [vmem:[%s18475_s1 + $0xa0] ss:$8 sps:$4 sm:$0xff]   ;;  %v7649_v60 = vld [vmem:[%s18475_s1 + $0x94] ss:$8 sps:$4 sm:$0xff]   ;;  %v7653_v62 = vld [vmem:[%s18475_s1 + $0x90] ss:$8 sps:$4 sm:$0xff]  }
  0x15   :  { %1761 = vmatprep.subr.bf16.mxu1 %v7597_v21  ;;  %1742 = vmatprep.mubr.bf16.mxu0 %v404_v49  ;;  %v7648_v59 = vld [vmem:[%s18475_s1 + $0x1a0] ss:$8 sps:$4 sm:$0xff]   ;;  %v7651_v61 = vld [vmem:[%s18475_s1 + $0x194] ss:$8 sps:$4 sm:$0xff]   ;;  %v7654_v63 = vld [vmem:[%s18475_s1 + $0x190] ss:$8 sps:$4 sm:$0xff]  }
  0x16   :  { %1783 = vmatprep.mubr.bf16.mxu1 %v406_v52  ;;  %v7655_v0 = vld [vmem:[%s18475_s1 + $0x84] ss:$8 sps:$4 sm:$0xff]   ;;  %v7659_v2 = vld [vmem:[%s18475_s1 + $0x80] ss:$8 sps:$4 sm:$0xff]   ;;  %v6884_v5 = vld [vmem:[%s18476_s0 + $0x10] sm:$0xff] }
  0x17   :  { %1721 = vmatpush1.bf16.msra.mxu0 %v7599_v22  ;;  %v7657_v1 = vld [vmem:[%s18475_s1 + $0x184] ss:$8 sps:$4 sm:$0xff]   ;;  %v7660_v3 = vld [vmem:[%s18475_s1 + $0x180] ss:$8 sps:$4 sm:$0xff]   ;;  %v7661_v6 = vld [vmem:[%s18475_s1 + $0x274] ss:$8 sps:$4 sm:$0xff]   ;;  %v405_v9 = vpack.c.bf16 %v6884_v5, %v6884_v5 }
  0x18   :  { %1762 = vmatpush1.bf16.msra.mxu1 %v7600_v23  ;;  %1722 = vmatprep.subr.bf16.mxu0 %v7601_v24  ;;  %v7663_v7 = vld [vmem:[%s18475_s1 + $0x374] ss:$8 sps:$4 sm:$0xff]   ;;  %v7665_v10 = vld [vmem:[%s18475_s1 + $0x270] ss:$8 sps:$4 sm:$0xff]   ;;  %v7667_v12 = vld [vmem:[%s18475_s1 + $0x264] ss:$8 sps:$4 sm:$0xff]  }
  0x19   :  { %1763 = vmatprep.subr.bf16.mxu1 %v7603_v25  ;;  %v7666_v11 = vld [vmem:[%s18475_s1 + $0x370] ss:$8 sps:$4 sm:$0xff]   ;;  %v7669_v13 = vld [vmem:[%s18475_s1 + $0x364] ss:$8 sps:$4 sm:$0xff]   ;;  %v7671_v14 = vld [vmem:[%s18475_s1 + $0x260] ss:$8 sps:$4 sm:$0xff]  }
  0x1a   :  { %v7672_v15 = vld [vmem:[%s18475_s1 + $0x360] ss:$8 sps:$4 sm:$0xff]   ;;  %v7673_v16 = vld [vmem:[%s18475_s1 + $0x254] ss:$8 sps:$4 sm:$0xff]   ;;  %v7677_v18 = vld [vmem:[%s18475_s1 + $0x250] ss:$8 sps:$4 sm:$0xff]  }
  0x1b   :  { %1723 = vmatpush1.bf16.msra.mxu0 %v7605_v26  ;;  %v7675_v17 = vld [vmem:[%s18475_s1 + $0x354] ss:$8 sps:$4 sm:$0xff]   ;;  %v7678_v19 = vld [vmem:[%s18475_s1 + $0x350] ss:$8 sps:$4 sm:$0xff]   ;;  %v7679_v20 = vld [vmem:[%s18475_s1 + $0x244] ss:$8 sps:$4 sm:$0xff]  }
  0x1c   :  { %1764 = vmatpush1.bf16.msra.mxu1 %v7606_v27  ;;  %1724 = vmatprep.subr.bf16.mxu0 %v7607_v28  ;;  %v7681_v21 = vld [vmem:[%s18475_s1 + $0x344] ss:$8 sps:$4 sm:$0xff]   ;;  %v7683_v22 = vld [vmem:[%s18475_s1 + $0x240] ss:$8 sps:$4 sm:$0xff]   ;;  %v7685_v24 = vld [vmem:[%s18475_s1 + $0x234] ss:$8 sps:$4 sm:$0xff]  }
  0x1d   :  { %1765 = vmatprep.subr.bf16.mxu1 %v7609_v29  ;;  %v7684_v23 = vld [vmem:[%s18475_s1 + $0x340] ss:$8 sps:$4 sm:$0xff]   ;;  %v7687_v25 = vld [vmem:[%s18475_s1 + $0x334] ss:$8 sps:$4 sm:$0xff]   ;;  %v7689_v26 = vld [vmem:[%s18475_s1 + $0x230] ss:$8 sps:$4 sm:$0xff]  }
  0x1e   :  { %v7690_v27 = vld [vmem:[%s18475_s1 + $0x330] ss:$8 sps:$4 sm:$0xff]   ;;  %v7691_v28 = vld [vmem:[%s18475_s1 + $0x224] ss:$8 sps:$4 sm:$0xff]   ;;  %v7719_v50 = vld [vmem:[%s18475_s1 + $0x2e0] ss:$8 sps:$4 sm:$0xff]  }
  0x1f   :  { %1725 = vmatpush1.bf16.msra.mxu0 %v7611_v30  ;;  %v7693_v29 = vld [vmem:[%s18475_s1 + $0x324] ss:$8 sps:$4 sm:$0xff]   ;;  %v7695_v30 = vld [vmem:[%s18475_s1 + $0x220] ss:$8 sps:$4 sm:$0xff]   ;;  %v7713_v46 = vld [vmem:[%s18475_s1 + $0x2f0] ss:$8 sps:$4 sm:$0xff]  }
  0x20   :  { %1766 = vmatpush1.bf16.msra.mxu1 %v7612_v31  ;;  %1726 = vmatprep.subr.bf16.mxu0 %v7613_v32  ;;  %v7696_v31 = vld [vmem:[%s18475_s1 + $0x320] ss:$8 sps:$4 sm:$0xff]   ;;  %v7697_v32 = vld [vmem:[%s18475_s1 + $0x214] ss:$8 sps:$4 sm:$0xff]   ;;  %v7717_v49 = vld [vmem:[%s18475_s1 + $0x3e4] ss:$8 sps:$4 sm:$0xff]  }
  0x21   :  { %1767 = vmatprep.subr.bf16.mxu1 %v7615_v33  ;;  %v7699_v33 = vld [vmem:[%s18475_s1 + $0x314] ss:$8 sps:$4 sm:$0xff]  }
  0x22   :  { %v7721_v52 = vld [vmem:[%s18475_s1 + $0x2d4] ss:$8 sps:$4 sm:$0xff]  }
  0x23   :  { %1727 = vmatpush2.bf16.msra.mxu0 %v7617_v34  ;;  %v6887_v34 = vld [vmem:[%s18476_s0 + $0x28] sm:$0xff]  ;;  %v7745_v4 = vld [vmem:[%s18475_s1 + $0x294] ss:$8 sps:$4 sm:$0xff]  }
  0x24   :  { %1768 = vmatpush2.bf16.msra.mxu1 %v7618_v35  ;;  %1728 = vmatprep.subr.bf16.mxu0 %v7619_v36  ;;  %v7701_v35 = vld [vmem:[%s18475_s1 + $0x210] ss:$8 sps:$4 sm:$0xff]   ;;  %v7747_v5 = vld [vmem:[%s18475_s1 + $0x394] ss:$8 sps:$4 sm:$0xff]  }
  0x25   :  { %1769 = vmatprep.subr.bf16.mxu1 %v7621_v37  ;;  %v7702_v36 = vld [vmem:[%s18475_s1 + $0x310] ss:$8 sps:$4 sm:$0xff]   ;;  %v408_v37 = vpack.c.bf16 %v6887_v34, %v6887_v34  ;;  %v9742_v34 = vld [vmem:[%s18475_s1 + $0x440] ss:$8 sps:$4 sm:$0xff]  }
  0x27   :  { %1729 = vmatpush2.bf16.msra.mxu0 %v7623_v38  ;;  %v6889_v38 = vld [vmem:[%s18476_s0 + $0x38] sm:$0xff] }
  0x28   :  { %1770 = vmatpush2.bf16.msra.mxu1 %v7624_v39  ;;  %1730 = vmatprep.subr.bf16.mxu0 %v7625_v40  ;;  %v7703_v39 = vld [vmem:[%s18475_s1 + $0x204] ss:$8 sps:$4 sm:$0xff]   ;;  %v410_v40 = vpack.c.bf16 %v6889_v38, %v6889_v38  ;;  %v9765_v38 = vld [vmem:[%s18475_s1 + $0x430] ss:$8 sps:$4 sm:$0xff]  }
  0x29   :  { %1771 = vmatprep.subr.bf16.mxu1 %v7627_v41  ;;  %v7705_v41 = vld [vmem:[%s18475_s1 + $0x304] ss:$8 sps:$4 sm:$0xff]  }
  0x2b   :  { %1731 = vmatpush2.bf16.msra.mxu0 %v7629_v42  ;;  %v7707_v42 = vld [vmem:[%s18475_s1 + $0x200] ss:$8 sps:$4 sm:$0xff]  }
  0x2c   :  { %1772 = vmatpush2.bf16.msra.mxu1 %v7630_v43  ;;  %1732 = vmatprep.subr.bf16.mxu0 %v7631_v44  ;;  %v7708_v43 = vld [vmem:[%s18475_s1 + $0x300] ss:$8 sps:$4 sm:$0xff]   ;;  %v7709_v44 = vld [vmem:[%s18475_s1 + $0x2f4] ss:$8 sps:$4 sm:$0xff]  }
  0x2d   :  { %1773 = vmatprep.subr.bf16.mxu1 %v7633_v45  ;;  %v7711_v45 = vld [vmem:[%s18475_s1 + $0x3f4] ss:$8 sps:$4 sm:$0xff]  }
  0x2f   :  { %1733 = vmatpush2.bf16.msra.mxu0 %v7635_v47  ;;  %v7714_v47 = vld [vmem:[%s18475_s1 + $0x3f0] ss:$8 sps:$4 sm:$0xff]  }
  0x30   :  { %1774 = vmatpush2.bf16.msra.mxu1 %v7636_v48  ;;  %1734 = vmatprep.subr.bf16.mxu0 %v7637_v51  ;;  %v7715_v48 = vld [vmem:[%s18475_s1 + $0x2e4] ss:$8 sps:$4 sm:$0xff]   ;;  %v7720_v51 = vld [vmem:[%s18475_s1 + $0x3e0] ss:$8 sps:$4 sm:$0xff]  }
  0x31   :  { %1775 = vmatprep.subr.bf16.mxu1 %v7639_v53  ;;  %v7723_v53 = vld [vmem:[%s18475_s1 + $0x3d4] ss:$8 sps:$4 sm:$0xff]  }
  0x33   :  { %1735 = vmatpush2.bf16.msra.mxu0 %v7641_v54  ;;  %v7725_v54 = vld [vmem:[%s18475_s1 + $0x2d0] ss:$8 sps:$4 sm:$0xff]  }
  0x34   :  { %1776 = vmatpush2.bf16.msra.mxu1 %v7642_v55  ;;  %1736 = vmatprep.subr.bf16.mxu0 %v7643_v56  ;;  %v7726_v55 = vld [vmem:[%s18475_s1 + $0x3d0] ss:$8 sps:$4 sm:$0xff]   ;;  %v7727_v56 = vld [vmem:[%s18475_s1 + $0x2c4] ss:$8 sps:$4 sm:$0xff]  }
  0x35   :  { %1777 = vmatprep.subr.bf16.mxu1 %v7645_v57  ;;  %v7729_v57 = vld [vmem:[%s18475_s1 + $0x3c4] ss:$8 sps:$4 sm:$0xff]  }
  0x37   :  { %1737 = vmatpush2.bf16.msra.mxu0 %v7647_v58  ;;  %v7731_v58 = vld [vmem:[%s18475_s1 + $0x2c0] ss:$8 sps:$4 sm:$0xff]  }
  0x38   :  { %1778 = vmatpush2.bf16.msra.mxu1 %v7648_v59  ;;  %1738 = vmatprep.subr.bf16.mxu0 %v7649_v60  ;;  %v7732_v59 = vld [vmem:[%s18475_s1 + $0x3c0] ss:$8 sps:$4 sm:$0xff]   ;;  %v7733_v60 = vld [vmem:[%s18475_s1 + $0x2b4] ss:$8 sps:$4 sm:$0xff]  }
  0x39   :  { %1779 = vmatprep.subr.bf16.mxu1 %v7651_v61  ;;  %v7735_v61 = vld [vmem:[%s18475_s1 + $0x3b4] ss:$8 sps:$4 sm:$0xff]  }
  0x3b   :  { %1739 = vmatpush2.bf16.msra.mxu0 %v7653_v62  ;;  %v7737_v62 = vld [vmem:[%s18475_s1 + $0x2b0] ss:$8 sps:$4 sm:$0xff]  }
  0x3c   :  { %1780 = vmatpush2.bf16.msra.mxu1 %v7654_v63  ;;  %1740 = vmatprep.subr.bf16.mxu0 %v7655_v0  ;;  %v7738_v63 = vld [vmem:[%s18475_s1 + $0x3b0] ss:$8 sps:$4 sm:$0xff]   ;;  %v7739_v0 = vld [vmem:[%s18475_s1 + $0x2a4] ss:$8 sps:$4 sm:$0xff]  }
  0x3d   :  { %1781 = vmatprep.subr.bf16.mxu1 %v7657_v1  ;;  %v7741_v1 = vld [vmem:[%s18475_s1 + $0x3a4] ss:$8 sps:$4 sm:$0xff]  }
  0x3f   :  { %1741 = vmatpush2.bf16.msra.mxu0 %v7659_v2  ;;  %v7743_v2 = vld [vmem:[%s18475_s1 + $0x2a0] ss:$8 sps:$4 sm:$0xff]  }
  0x40   :  { %1782 = vmatpush2.bf16.msra.mxu1 %v7660_v3  ;;  %1792 = vmatprep.subr.bf16.mxu0 %v7661_v6  ;;  %v7744_v3 = vld [vmem:[%s18475_s1 + $0x3a0] ss:$8 sps:$4 sm:$0xff]   ;;  %v7749_v6 = vld [vmem:[%s18475_s1 + $0x290] ss:$8 sps:$4 sm:$0xff]  }
  0x41   :  { %1833 = vmatprep.subr.bf16.mxu1 %v7663_v7  ;;  %v7750_v7 = vld [vmem:[%s18475_s1 + $0x390] ss:$8 sps:$4 sm:$0xff]  }
  0x42   :  { %1743 = vmatmul.mubr.bf16.vlgmr.msra.gmra.mxu0 %v403_v8  ;;  %v7751_v8 = vld [vmem:[%s18475_s1 + $0x284] ss:$8 sps:$4 sm:$0xff]  }
  0x43   :  { %1784 = vmatmul.mubr.bf16.vlgmr.msra.gmra.mxu1 %v405_v9  ;;  %1793 = vmatpush1.bf16.msra.mxu0 %v7665_v10  ;;  %v7753_v9 = vld [vmem:[%s18475_s1 + $0x384] ss:$8 sps:$4 sm:$0xff]   ;;  %v7755_v10 = vld [vmem:[%s18475_s1 + $0x280] ss:$8 sps:$4 sm:$0xff]  }
  0x44   :  { %1834 = vmatpush1.bf16.msra.mxu1 %v7666_v11  ;;  %1794 = vmatprep.subr.bf16.mxu0 %v7667_v12  ;;  %v7756_v11 = vld [vmem:[%s18475_s1 + $0x380] ss:$8 sps:$4 sm:$0xff]  }
  0x45   :  { %1835 = vmatprep.subr.bf16.mxu1 %v7669_v13  ;;  %1824 = vmatprep.mubr.bf16.mxu0 %v408_v37  ;;  %v6886_v12 = vld [vmem:[%s18476_s0 + $0x20] sm:$0xff]  ;;  %v6888_v13 = vld [vmem:[%s18476_s0 + $0x30] sm:$0xff] }
  0x46   :  { %1865 = vmatprep.mubr.bf16.mxu1 %v410_v40  ;;  %v9760_v37 = vld [vmem:[%s18475_s1 + $0x534] ss:$8 sps:$4 sm:$0xff]   ;;  %v9777_v40 = vld [vmem:[%s18475_s1 + $0x424] ss:$8 sps:$4 sm:$0xff]  }
  0x47   :  { %1795 = vmatpush1.bf16.msra.mxu0 %v7671_v14  ;;  %v7757_v14 = vld [vmem:[%s18475_s1 + $0x474] ss:$8 sps:$4 sm:$0xff]  }
  0x48   :  { %1836 = vmatpush1.bf16.msra.mxu1 %v7672_v15  ;;  %1796 = vmatprep.subr.bf16.mxu0 %v7673_v16  ;;  %v7759_v15 = vld [vmem:[%s18475_s1 + $0x574] ss:$8 sps:$4 sm:$0xff]   ;;  %v407_v16 = vpack.c.bf16 %v6886_v12, %v6886_v12 }
  0x49   :  { %1837 = vmatprep.subr.bf16.mxu1 %v7675_v17  ;;  %v409_v17 = vpack.c.bf16 %v6888_v13, %v6888_v13  ;;  %v9995_v12 = vld [vmem:[%s18475_s1 + $0x494] ss:$8 sps:$4 sm:$0xff]  }
  0x4a   :  { %19315 = vst [vmem:[#allocation3_spill] sm:$0xff] %v9995_v12  ;;  %v10000_v13 = vld [vmem:[%s18475_s1 + $0x594] ss:$8 sps:$4 sm:$0xff]  }
  0x4b   :  { %1797 = vmatpush1.bf16.msra.mxu0 %v7677_v18  ;;  %v7761_v18 = vld [vmem:[%s18475_s1 + $0x470] ss:$8 sps:$4 sm:$0xff]   ;;  %19316 = vst [vmem:[#allocation4_spill] sm:$0xff] %v10000_v13 }
  0x4c   :  { %1838 = vmatpush1.bf16.msra.mxu1 %v7678_v19  ;;  %1798 = vmatprep.subr.bf16.mxu0 %v7679_v20  ;;  %v7762_v19 = vld [vmem:[%s18475_s1 + $0x570] ss:$8 sps:$4 sm:$0xff]   ;;  %v7763_v20 = vld [vmem:[%s18475_s1 + $0x464] ss:$8 sps:$4 sm:$0xff]  }
  0x4d   :  { %1839 = vmatprep.subr.bf16.mxu1 %v7681_v21  ;;  %v7765_v21 = vld [vmem:[%s18475_s1 + $0x564] ss:$8 sps:$4 sm:$0xff]  }
  0x4f   :  { %1799 = vmatpush1.bf16.msra.mxu0 %v7683_v22  ;;  %v6891_v22 = vld [vmem:[%s18476_s0 + $0x48] sm:$0xff] }
  0x50   :  { %1840 = vmatpush1.bf16.msra.mxu1 %v7684_v23  ;;  %1800 = vmatprep.subr.bf16.mxu0 %v7685_v24  ;;  %v7767_v23 = vld [vmem:[%s18475_s1 + $0x460] ss:$8 sps:$4 sm:$0xff]  }
  0x51   :  { %1841 = vmatprep.subr.bf16.mxu1 %v7687_v25  ;;  %v7768_v24 = vld [vmem:[%s18475_s1 + $0x560] ss:$8 sps:$4 sm:$0xff]   ;;  %v9706_v25 = vpack.c.bf16 %v6891_v22, %v6891_v22  ;;  %v10049_v22 = vld [vmem:[%s18475_s1 + $0x674] ss:$8 sps:$4 sm:$0xff]  }
  0x52   :  { %19323 = vst [vmem:[#allocation11_spill] sm:$0xff] %v10049_v22 }
  0x53   :  { %1801 = vmatpush1.bf16.msra.mxu0 %v7689_v26  ;;  %v6893_v26 = vld [vmem:[%s18476_s0 + $0x58] sm:$0xff] }
  0x54   :  { %1842 = vmatpush1.bf16.msra.mxu1 %v7690_v27  ;;  %1802 = vmatprep.subr.bf16.mxu0 %v7691_v28  ;;  %v7769_v27 = vld [vmem:[%s18475_s1 + $0x454] ss:$8 sps:$4 sm:$0xff]   ;;  %v9714_v28 = vpack.c.bf16 %v6893_v26, %v6893_v26 }
  0x55   :  { %1843 = vmatprep.subr.bf16.mxu1 %v7693_v29  ;;  %v7771_v29 = vld [vmem:[%s18475_s1 + $0x554] ss:$8 sps:$4 sm:$0xff]  }
  0x57   :  { %1803 = vmatpush1.bf16.msra.mxu0 %v7695_v30  ;;  %v7773_v30 = vld [vmem:[%s18475_s1 + $0x450] ss:$8 sps:$4 sm:$0xff]  }
  0x58   :  { %1844 = vmatpush1.bf16.msra.mxu1 %v7696_v31  ;;  %1804 = vmatprep.subr.bf16.mxu0 %v7697_v32  ;;  %v9727_v31 = vld [vmem:[%s18475_s1 + $0x550] ss:$8 sps:$4 sm:$0xff]   ;;  %v9732_v32 = vld [vmem:[%s18475_s1 + $0x444] ss:$8 sps:$4 sm:$0xff]  }
  0x59   :  { %1845 = vmatprep.subr.bf16.mxu1 %v7699_v33  ;;  %v9737_v33 = vld [vmem:[%s18475_s1 + $0x544] ss:$8 sps:$4 sm:$0xff]  }
  0x5b   :  { %1805 = vmatpush1.bf16.msra.mxu0 %v7701_v35  ;;  %v9747_v35 = vld [vmem:[%s18475_s1 + $0x540] ss:$8 sps:$4 sm:$0xff]  }
  0x5c   :  { %1846 = vmatpush1.bf16.msra.mxu1 %v7702_v36  ;;  %1806 = vmatprep.subr.bf16.mxu0 %v7703_v39  ;;  %v9753_v36 = vld [vmem:[%s18475_s1 + $0x434] ss:$8 sps:$4 sm:$0xff]   ;;  %v9772_v39 = vld [vmem:[%s18475_s1 + $0x530] ss:$8 sps:$4 sm:$0xff]  }
  0x5d   :  { %1847 = vmatprep.subr.bf16.mxu1 %v7705_v41  ;;  %v9784_v41 = vld [vmem:[%s18475_s1 + $0x524] ss:$8 sps:$4 sm:$0xff]  }
  0x5f   :  { %1807 = vmatpush1.bf16.msra.mxu0 %v7707_v42  ;;  %v9789_v42 = vld [vmem:[%s18475_s1 + $0x420] ss:$8 sps:$4 sm:$0xff]  }
  0x60   :  { %1848 = vmatpush1.bf16.msra.mxu1 %v7708_v43  ;;  %1808 = vmatprep.subr.bf16.mxu0 %v7709_v44  ;;  %v9794_v43 = vld [vmem:[%s18475_s1 + $0x520] ss:$8 sps:$4 sm:$0xff]   ;;  %v9801_v44 = vld [vmem:[%s18475_s1 + $0x414] ss:$8 sps:$4 sm:$0xff]  }
  0x61   :  { %1849 = vmatprep.subr.bf16.mxu1 %v7711_v45  ;;  %v9808_v45 = vld [vmem:[%s18475_s1 + $0x514] ss:$8 sps:$4 sm:$0xff]  }
  0x63   :  { %1809 = vmatpush2.bf16.msra.mxu0 %v7713_v46  ;;  %v9813_v46 = vld [vmem:[%s18475_s1 + $0x410] ss:$8 sps:$4 sm:$0xff]  }
  0x64   :  { %1850 = vmatpush2.bf16.msra.mxu1 %v7714_v47  ;;  %1810 = vmatprep.subr.bf16.mxu0 %v7715_v48  ;;  %v9820_v47 = vld [vmem:[%s18475_s1 + $0x510] ss:$8 sps:$4 sm:$0xff]   ;;  %v9825_v48 = vld [vmem:[%s18475_s1 + $0x404] ss:$8 sps:$4 sm:$0xff]  }
  0x65   :  { %1851 = vmatprep.subr.bf16.mxu1 %v7717_v49  ;;  %v9832_v49 = vld [vmem:[%s18475_s1 + $0x504] ss:$8 sps:$4 sm:$0xff]  }
  0x67   :  { %1811 = vmatpush2.bf16.msra.mxu0 %v7719_v50  ;;  %v9837_v50 = vld [vmem:[%s18475_s1 + $0x400] ss:$8 sps:$4 sm:$0xff]  }
  0x68   :  { %1852 = vmatpush2.bf16.msra.mxu1 %v7720_v51  ;;  %1812 = vmatprep.subr.bf16.mxu0 %v7721_v52  ;;  %v9842_v51 = vld [vmem:[%s18475_s1 + $0x500] ss:$8 sps:$4 sm:$0xff]   ;;  %v9849_v52 = vld [vmem:[%s18475_s1 + $0x4f4] ss:$8 sps:$4 sm:$0xff]  }
  0x69   :  { %1853 = vmatprep.subr.bf16.mxu1 %v7723_v53  ;;  %v9856_v53 = vld [vmem:[%s18475_s1 + $0x5f4] ss:$8 sps:$4 sm:$0xff]  }
  0x6b   :  { %1813 = vmatpush2.bf16.msra.mxu0 %v7725_v54  ;;  %v9861_v54 = vld [vmem:[%s18475_s1 + $0x4f0] ss:$8 sps:$4 sm:$0xff]  }
  0x6c   :  { %1854 = vmatpush2.bf16.msra.mxu1 %v7726_v55  ;;  %1814 = vmatprep.subr.bf16.mxu0 %v7727_v56  ;;  %v9868_v55 = vld [vmem:[%s18475_s1 + $0x5f0] ss:$8 sps:$4 sm:$0xff]   ;;  %v9873_v56 = vld [vmem:[%s18475_s1 + $0x4e4] ss:$8 sps:$4 sm:$0xff]  }
  0x6d   :  { %1855 = vmatprep.subr.bf16.mxu1 %v7729_v57  ;;  %v9880_v57 = vld [vmem:[%s18475_s1 + $0x5e4] ss:$8 sps:$4 sm:$0xff]  }
  0x6f   :  { %1815 = vmatpush2.bf16.msra.mxu0 %v7731_v58  ;;  %v9885_v58 = vld [vmem:[%s18475_s1 + $0x4e0] ss:$8 sps:$4 sm:$0xff]  }
  0x70   :  { %1856 = vmatpush2.bf16.msra.mxu1 %v7732_v59  ;;  %1816 = vmatprep.subr.bf16.mxu0 %v7733_v60  ;;  %v9890_v59 = vld [vmem:[%s18475_s1 + $0x5e0] ss:$8 sps:$4 sm:$0xff]   ;;  %v9897_v60 = vld [vmem:[%s18475_s1 + $0x4d4] ss:$8 sps:$4 sm:$0xff]  }
  0x71   :  { %1857 = vmatprep.subr.bf16.mxu1 %v7735_v61  ;;  %v9904_v61 = vld [vmem:[%s18475_s1 + $0x5d4] ss:$8 sps:$4 sm:$0xff]  }
  0x73   :  { %1817 = vmatpush2.bf16.msra.mxu0 %v7737_v62  ;;  %v9909_v62 = vld [vmem:[%s18475_s1 + $0x4d0] ss:$8 sps:$4 sm:$0xff]  }
  0x74   :  { %1858 = vmatpush2.bf16.msra.mxu1 %v7738_v63  ;;  %1818 = vmatprep.subr.bf16.mxu0 %v7739_v0  ;;  %v9916_v63 = vld [vmem:[%s18475_s1 + $0x5d0] ss:$8 sps:$4 sm:$0xff]   ;;  %v9921_v0 = vld [vmem:[%s18475_s1 + $0x4c4] ss:$8 sps:$4 sm:$0xff]  }
  0x75   :  { %1859 = vmatprep.subr.bf16.mxu1 %v7741_v1  ;;  %v9928_v1 = vld [vmem:[%s18475_s1 + $0x5c4] ss:$8 sps:$4 sm:$0xff]  }
  0x77   :  { %1819 = vmatpush2.bf16.msra.mxu0 %v7743_v2  ;;  %v9933_v2 = vld [vmem:[%s18475_s1 + $0x4c0] ss:$8 sps:$4 sm:$0xff]  }
  0x78   :  { %1860 = vmatpush2.bf16.msra.mxu1 %v7744_v3  ;;  %1820 = vmatprep.subr.bf16.mxu0 %v7745_v4  ;;  %v9938_v3 = vld [vmem:[%s18475_s1 + $0x5c0] ss:$8 sps:$4 sm:$0xff]   ;;  %v9945_v4 = vld [vmem:[%s18475_s1 + $0x4b4] ss:$8 sps:$4 sm:$0xff]  }
  0x79   :  { %1861 = vmatprep.subr.bf16.mxu1 %v7747_v5  ;;  %v9952_v5 = vld [vmem:[%s18475_s1 + $0x5b4] ss:$8 sps:$4 sm:$0xff]  }
  0x7b   :  { %1821 = vmatpush2.bf16.msra.mxu0 %v7749_v6  ;;  %v9959_v6 = vld [vmem:[%s18475_s1 + $0x4b0] ss:$8 sps:$4 sm:$0xff]  }
  0x7c   :  { %1862 = vmatpush2.bf16.msra.mxu1 %v7750_v7  ;;  %1822 = vmatprep.subr.bf16.mxu0 %v7751_v8  ;;  %v9964_v7 = vld [vmem:[%s18475_s1 + $0x5b0] ss:$8 sps:$4 sm:$0xff]   ;;  %v9971_v8 = vld [vmem:[%s18475_s1 + $0x4a4] ss:$8 sps:$4 sm:$0xff]  }
  0x7d   :  { %1863 = vmatprep.subr.bf16.mxu1 %v7753_v9  ;;  %v9976_v9 = vld [vmem:[%s18475_s1 + $0x5a4] ss:$8 sps:$4 sm:$0xff]  }
  0x7f   :  { %1823 = vmatpush2.bf16.msra.mxu0 %v7755_v10  ;;  %v9983_v10 = vld [vmem:[%s18475_s1 + $0x4a0] ss:$8 sps:$4 sm:$0xff]  }
  0x80   :  { %1864 = vmatpush2.bf16.msra.mxu1 %v7756_v11  ;;  %1874 = vmatprep.subr.bf16.mxu0 %v7757_v14  ;;  %v9988_v11 = vld [vmem:[%s18475_s1 + $0x5a0] ss:$8 sps:$4 sm:$0xff]   ;;  %v10007_v14 = vld [vmem:[%s18475_s1 + $0x490] ss:$8 sps:$4 sm:$0xff]  }
  0x81   :  { %1915 = vmatprep.subr.bf16.mxu1 %v7759_v15  ;;  %19314 = vst [vmem:[#allocation2_spill] sm:$0xff] %v9988_v11  ;;  %19317 = vst [vmem:[#allocation5_spill] sm:$0xff] %v10007_v14  ;;  %v10012_v15 = vld [vmem:[%s18475_s1 + $0x590] ss:$8 sps:$4 sm:$0xff]  }
  0x82   :  { %1825 = vmatmul.mubr.bf16.vlgmr.msra.gmra.mxu0 %v407_v16  ;;  %19318 = vst [vmem:[#allocation6_spill] sm:$0xff] %v10012_v15  ;;  %v10019_v16 = vld [vmem:[%s18475_s1 + $0x484] ss:$8 sps:$4 sm:$0xff]  }
  0x83   :  { %1866 = vmatmul.mubr.bf16.vlgmr.msra.gmra.mxu1 %v409_v17  ;;  %1875 = vmatpush1.bf16.msra.mxu0 %v7761_v18  ;;  %19319 = vst [vmem:[#allocation7_spill] sm:$0xff] %v10019_v16  ;;  %v10024_v17 = vld [vmem:[%s18475_s1 + $0x584] ss:$8 sps:$4 sm:$0xff]   ;;  %v10029_v18 = vld [vmem:[%s18475_s1 + $0x480] ss:$8 sps:$4 sm:$0xff]  }
  0x84   :  { %1916 = vmatpush1.bf16.msra.mxu1 %v7762_v19  ;;  %1876 = vmatprep.subr.bf16.mxu0 %v7763_v20  ;;  %19320 = vst [vmem:[#allocation8_spill] sm:$0xff] %v10024_v17  ;;  %19321 = vst [vmem:[#allocation9_spill] sm:$0xff] %v10029_v18  ;;  %v10036_v19 = vld [vmem:[%s18475_s1 + $0x580] ss:$8 sps:$4 sm:$0xff]  }
  0x85   :  { %1917 = vmatprep.subr.bf16.mxu1 %v7765_v21  ;;  %1906 = vmatprep.mubr.bf16.mxu0 %v9706_v25  ;;  %19322 = vst [vmem:[#allocation10_spill] sm:$0xff] %v10036_v19  ;;  %v6890_v20 = vld [vmem:[%s18476_s0 + $0x40] sm:$0xff]  ;;  %v6892_v21 = vld [vmem:[%s18476_s0 + $0x50] sm:$0xff] }
  0x86   :  { %1947 = vmatprep.mubr.bf16.mxu1 %v9714_v28  ;;  %v10058_v26 = vpack.c.bf16 %v6892_v21, %v6892_v21  ;;  %v10083_v21 = vld [vmem:[%s18475_s1 + $0x664] ss:$8 sps:$4 sm:$0xff]  }
  0x87   :  { %1877 = vmatpush1.bf16.msra.mxu0 %v7767_v23  ;;  %v10054_v23 = vld [vmem:[%s18475_s1 + $0x774] ss:$8 sps:$4 sm:$0xff]   ;;  %19327 = vst [vmem:[#allocation15_spill] sm:$0xff] %v10083_v21 }
  0x88   :  { %1918 = vmatpush1.bf16.msra.mxu1 %v7768_v24  ;;  %1878 = vmatprep.subr.bf16.mxu0 %v7769_v27  ;;  %19324 = vst [vmem:[#allocation12_spill] sm:$0xff] %v10054_v23  ;;  %v10056_v24 = vpack.c.bf16 %v6890_v20, %v6890_v20  ;;  %v6895_v27 = vld [vmem:[%s18476_s0 + $0x68] sm:$0xff]  ;;  %v10076_v20 = vld [vmem:[%s18475_s1 + $0x770] ss:$8 sps:$4 sm:$0xff]  }
  0x89   :  { %1919 = vmatprep.subr.bf16.mxu1 %v7771_v29  ;;  %v6897_v29 = vld [vmem:[%s18476_s0 + $0x78] sm:$0xff]  ;;  %19326 = vst [vmem:[#allocation14_spill] sm:$0xff] %v10076_v20 }
  0x8b   :  { %1879 = vmatpush1.bf16.msra.mxu0 %v7773_v30  ;;  %v10071_v30 = vld [vmem:[%s18475_s1 + $0x670] ss:$8 sps:$4 sm:$0xff]  }
  0x8c   :  { %1920 = vmatpush1.bf16.msra.mxu1 %v9727_v31  ;;  %1880 = vmatprep.subr.bf16.mxu0 %v9732_v32  ;;  %19325 = vst [vmem:[#allocation13_spill] sm:$0xff] %v10071_v30 }
  0x8d   :  { %1921 = vmatprep.subr.bf16.mxu1 %v9737_v33 }
  0x8f   :  { %1881 = vmatpush1.bf16.msra.mxu0 %v9742_v34 }
  0x90   :  { %1922 = vmatpush1.bf16.msra.mxu1 %v9747_v35  ;;  %1882 = vmatprep.subr.bf16.mxu0 %v9753_v36 }
  0x91   :  { %1923 = vmatprep.subr.bf16.mxu1 %v9760_v37 }
  0x93   :  { %1883 = vmatpush1.bf16.msra.mxu0 %v9765_v38 }
  0x94   :  { %1924 = vmatpush1.bf16.msra.mxu1 %v9772_v39  ;;  %1884 = vmatprep.subr.bf16.mxu0 %v9777_v40 }
  0x95   :  { %1925 = vmatprep.subr.bf16.mxu1 %v9784_v41 }
  0x97   :  { %1885 = vmatpush1.bf16.msra.mxu0 %v9789_v42 }
  0x98   :  { %1926 = vmatpush1.bf16.msra.mxu1 %v9794_v43  ;;  %1886 = vmatprep.subr.bf16.mxu0 %v9801_v44 }
  0x99   :  { %1927 = vmatprep.subr.bf16.mxu1 %v9808_v45 }
  0x9b   :  { %1887 = vmatpush1.bf16.msra.mxu0 %v9813_v46 }
  0x9c   :  { %1928 = vmatpush1.bf16.msra.mxu1 %v9820_v47  ;;  %1888 = vmatprep.subr.bf16.mxu0 %v9825_v48 }
  0x9d   :  { %1929 = vmatprep.subr.bf16.mxu1 %v9832_v49 }
  0x9f   :  { %1889 = vmatpush1.bf16.msra.mxu0 %v9837_v50 }
  0xa0   :  { %1930 = vmatpush1.bf16.msra.mxu1 %v9842_v51  ;;  %1890 = vmatprep.subr.bf16.mxu0 %v9849_v52 }
  0xa1   :  { %1931 = vmatprep.subr.bf16.mxu1 %v9856_v53 }
  0xa3   :  { %1891 = vmatpush2.bf16.msra.mxu0 %v9861_v54 }
  0xa4   :  { %1932 = vmatpush2.bf16.msra.mxu1 %v9868_v55  ;;  %1892 = vmatprep.subr.bf16.mxu0 %v9873_v56 }
  0xa5   :  { %1933 = vmatprep.subr.bf16.mxu1 %v9880_v57 }
  0xa7   :  { %1893 = vmatpush2.bf16.msra.mxu0 %v9885_v58 }
  0xa8   :  { %1934 = vmatpush2.bf16.msra.mxu1 %v9890_v59  ;;  %1894 = vmatprep.subr.bf16.mxu0 %v9897_v60 }
  0xa9   :  { %1935 = vmatprep.subr.bf16.mxu1 %v9904_v61 }
  0xab   :  { %1895 = vmatpush2.bf16.msra.mxu0 %v9909_v62 }
  0xac   :  { %1936 = vmatpush2.bf16.msra.mxu1 %v9916_v63  ;;  %1896 = vmatprep.subr.bf16.mxu0 %v9921_v0 }
  0xad   :  { %1937 = vmatprep.subr.bf16.mxu1 %v9928_v1 }
  0xaf   :  { %1897 = vmatpush2.bf16.msra.mxu0 %v9933_v2 }
  0xb0   :  { %1938 = vmatpush2.bf16.msra.mxu1 %v9938_v3  ;;  %1898 = vmatprep.subr.bf16.mxu0 %v9945_v4 }
  0xb1   :  { %1939 = vmatprep.subr.bf16.mxu1 %v9952_v5 }
  0xb3   :  { %1899 = vmatpush2.bf16.msra.mxu0 %v9959_v6 }
  0xb4   :  { %1940 = vmatpush2.bf16.msra.mxu1 %v9964_v7  ;;  %1900 = vmatprep.subr.bf16.mxu0 %v9971_v8 }
  0xb5   :  { %1941 = vmatprep.subr.bf16.mxu1 %v9976_v9 }
  0xb7   :  { %1901 = vmatpush2.bf16.msra.mxu0 %v9983_v10 }
  0xb8   :  { %1942 = vmatpush2.bf16.msra.mxu1 %v9988_v11  ;;  %1902 = vmatprep.subr.bf16.mxu0 %v9995_v12 }
  0xb9   :  { %1943 = vmatprep.subr.bf16.mxu1 %v10000_v13 }
  0xbb   :  { %1903 = vmatpush2.bf16.msra.mxu0 %v10007_v14 }
  0xbc   :  { %1944 = vmatpush2.bf16.msra.mxu1 %v10012_v15  ;;  %1904 = vmatprep.subr.bf16.mxu0 %v10019_v16  ;;  %v10439_v16 = vld [vmem:[%s18475_s1 + $0x680] ss:$8 sps:$4 sm:$0xff]   ;;  %v6896_v15 = vld [vmem:[%s18476_s0 + $0x70] sm:$0xff] }
  0xbd   :  { %1945 = vmatprep.subr.bf16.mxu1 %v10024_v17  ;;  %v10092_v17 = vpack.c.bf16 %v6897_v29, %v6897_v29  ;;  %v10113_v29 = vld [vmem:[%s18475_s1 + $0x654] ss:$8 sps:$4 sm:$0xff]   ;;  %19386 = vst [vmem:[#allocation74_spill] sm:$0xff] %v10439_v16  ;;  %v10467_v13 = vpack.c.bf16 %v6896_v15, %v6896_v15 }
  0xbe   :  { %19331 = vst [vmem:[#allocation19_spill] sm:$0xff] %v10113_v29 }
  0xbf   :  { %1905 = vmatpush2.bf16.msra.mxu0 %v10029_v18  ;;  %v10090_v18 = vpack.c.bf16 %v6895_v27, %v6895_v27  ;;  %v10106_v27 = vld [vmem:[%s18475_s1 + $0x760] ss:$8 sps:$4 sm:$0xff]  }
  0xc0   :  { %1946 = vmatpush2.bf16.msra.mxu1 %v10036_v19  ;;  %1956 = vmatprep.subr.bf16.mxu0 %v10049_v22  ;;  %v10088_v19 = vld [vmem:[%s18475_s1 + $0x764] ss:$8 sps:$4 sm:$0xff]   ;;  %19330 = vst [vmem:[#allocation18_spill] sm:$0xff] %v10106_v27 }
  0xc1   :  { %1997 = vmatprep.subr.bf16.mxu1 %v10054_v23  ;;  %19328 = vst [vmem:[#allocation16_spill] sm:$0xff] %v10088_v19  ;;  %v10101_v23 = vld [vmem:[%s18475_s1 + $0x660] ss:$8 sps:$4 sm:$0xff]  }
  0xc2   :  { %1907 = vmatmul.mubr.bf16.vlgmr.msra.gmra.mxu0 %v10056_v24  ;;  %19329 = vst [vmem:[#allocation17_spill] sm:$0xff] %v10101_v23 }
  0xc3   :  { %1948 = vmatmul.mubr.bf16.vlgmr.msra.gmra.mxu1 %v10058_v26  ;;  %1957 = vmatpush1.bf16.msra.mxu0 %v10071_v30  ;;  %v420_v30 = vlaneseq }
  0xc4   :  { %1998 = vmatpush1.bf16.msra.mxu1 %v10076_v20  ;;  %1958 = vmatprep.subr.bf16.mxu0 %v10083_v21  ;;  %v10118_v20 = vld [vmem:[%s18475_s1 + $0x754] ss:$8 sps:$4 sm:$0xff]   ;;  %v10132_v21 = vld [vmem:[%s18475_s1 + $0x750] ss:$8 sps:$4 sm:$0xff]  }
  0xc5   :  { %1999 = vmatprep.subr.bf16.mxu1 %v10088_v19  ;;  %19332 = vst [vmem:[#allocation20_spill] sm:$0xff] %v10118_v20  ;;  %1988 = vmatprep.mubr.bf16.mxu0 %v10090_v18  ;;  %v10127_v19 = vld [vmem:[%s18475_s1 + $0x650] ss:$8 sps:$4 sm:$0xff]   ;;  %19334 = vst [vmem:[#allocation22_spill] sm:$0xff] %v10132_v21  ;;  %v10422_v22 = vshrl.u32 %v420_v30, 7 }
  0xc6   :  { %2029 = vmatprep.mubr.bf16.mxu1 %v10092_v17  ;;  %19333 = vst [vmem:[#allocation21_spill] sm:$0xff] %v10127_v19  ;;  %v10446_v30 = vld [vmem:[%s18475_s1 + $0x780] ss:$8 sps:$4 sm:$0xff]  }
  0xc7   :  { %1959 = vmatpush1.bf16.msra.mxu0 %v10101_v23  ;;  %v10139_v23 = vld [vmem:[%s18475_s1 + $0x644] ss:$8 sps:$4 sm:$0xff]   ;;  %19383 = vst [vmem:[#allocation71_spill] sm:$0xff] %v10422_v22  ;;  %19387 = vst [vmem:[#allocation75_spill] sm:$0xff] %v10446_v30 }
  0xc8   :  { %2000 = vmatpush1.bf16.msra.mxu1 %v10106_v27  ;;  %1960 = vmatprep.subr.bf16.mxu0 %v10113_v29  ;;  %19335 = vst [vmem:[#allocation23_spill] sm:$0xff] %v10139_v23  ;;  %v10144_v27 = vld [vmem:[%s18475_s1 + $0x744] ss:$8 sps:$4 sm:$0xff]   ;;  %v10151_v29 = vld [vmem:[%s18475_s1 + $0x640] ss:$8 sps:$4 sm:$0xff]  }
  0xc9   :  { %2001 = vmatprep.subr.bf16.mxu1 %v10118_v20  ;;  %19336 = vst [vmem:[#allocation24_spill] sm:$0xff] %v10144_v27  ;;  %19337 = vst [vmem:[#allocation25_spill] sm:$0xff] %v10151_v29  ;;  %v10156_v20 = vld [vmem:[%s18475_s1 + $0x740] ss:$8 sps:$4 sm:$0xff]  }
  0xca   :  { %19338 = vst [vmem:[#allocation26_spill] sm:$0xff] %v10156_v20 }
  0xcb   :  { %1961 = vmatpush1.bf16.msra.mxu0 %v10127_v19  ;;  %v10163_v19 = vld [vmem:[%s18475_s1 + $0x634] ss:$8 sps:$4 sm:$0xff]  }
  0xcc   :  { %2002 = vmatpush1.bf16.msra.mxu1 %v10132_v21  ;;  %1962 = vmatprep.subr.bf16.mxu0 %v10139_v23  ;;  %19339 = vst [vmem:[#allocation27_spill] sm:$0xff] %v10163_v19  ;;  %v10168_v21 = vld [vmem:[%s18475_s1 + $0x734] ss:$8 sps:$4 sm:$0xff]   ;;  %v10175_v23 = vld [vmem:[%s18475_s1 + $0x630] ss:$8 sps:$4 sm:$0xff]  }
  0xcd   :  { %2003 = vmatprep.subr.bf16.mxu1 %v10144_v27  ;;  %19340 = vst [vmem:[#allocation28_spill] sm:$0xff] %v10168_v21  ;;  %19341 = vst [vmem:[#allocation29_spill] sm:$0xff] %v10175_v23  ;;  %v10180_v27 = vld [vmem:[%s18475_s1 + $0x730] ss:$8 sps:$4 sm:$0xff]  }
  0xce   :  { %19342 = vst [vmem:[#allocation30_spill] sm:$0xff] %v10180_v27 }
  0xcf   :  { %1963 = vmatpush1.bf16.msra.mxu0 %v10151_v29  ;;  %v10187_v29 = vld [vmem:[%s18475_s1 + $0x624] ss:$8 sps:$4 sm:$0xff]  }
  0xd0   :  { %2004 = vmatpush1.bf16.msra.mxu1 %v10156_v20  ;;  %1964 = vmatprep.subr.bf16.mxu0 %v10163_v19  ;;  %19343 = vst [vmem:[#allocation31_spill] sm:$0xff] %v10187_v29  ;;  %v10192_v20 = vld [vmem:[%s18475_s1 + $0x724] ss:$8 sps:$4 sm:$0xff]   ;;  %v10199_v19 = vld [vmem:[%s18475_s1 + $0x620] ss:$8 sps:$4 sm:$0xff]  }
  0xd1   :  { %2005 = vmatprep.subr.bf16.mxu1 %v10168_v21  ;;  %19344 = vst [vmem:[#allocation32_spill] sm:$0xff] %v10192_v20  ;;  %19345 = vst [vmem:[#allocation33_spill] sm:$0xff] %v10199_v19  ;;  %v10204_v21 = vld [vmem:[%s18475_s1 + $0x720] ss:$8 sps:$4 sm:$0xff]  }
  0xd2   :  { %19346 = vst [vmem:[#allocation34_spill] sm:$0xff] %v10204_v21 }
  0xd3   :  { %1965 = vmatpush1.bf16.msra.mxu0 %v10175_v23  ;;  %v10211_v23 = vld [vmem:[%s18475_s1 + $0x614] ss:$8 sps:$4 sm:$0xff]  }
  0xd4   :  { %2006 = vmatpush1.bf16.msra.mxu1 %v10180_v27  ;;  %1966 = vmatprep.subr.bf16.mxu0 %v10187_v29  ;;  %19347 = vst [vmem:[#allocation35_spill] sm:$0xff] %v10211_v23  ;;  %v10216_v27 = vld [vmem:[%s18475_s1 + $0x714] ss:$8 sps:$4 sm:$0xff]   ;;  %v10223_v29 = vld [vmem:[%s18475_s1 + $0x610] ss:$8 sps:$4 sm:$0xff]  }
  0xd5   :  { %2007 = vmatprep.subr.bf16.mxu1 %v10192_v20  ;;  %19348 = vst [vmem:[#allocation36_spill] sm:$0xff] %v10216_v27  ;;  %19349 = vst [vmem:[#allocation37_spill] sm:$0xff] %v10223_v29  ;;  %v10228_v20 = vld [vmem:[%s18475_s1 + $0x710] ss:$8 sps:$4 sm:$0xff]  }
  0xd6   :  { %19350 = vst [vmem:[#allocation38_spill] sm:$0xff] %v10228_v20 }
  0xd7   :  { %1967 = vmatpush1.bf16.msra.mxu0 %v10199_v19  ;;  %v10235_v19 = vld [vmem:[%s18475_s1 + $0x604] ss:$8 sps:$4 sm:$0xff]  }
  0xd8   :  { %2008 = vmatpush1.bf16.msra.mxu1 %v10204_v21  ;;  %1968 = vmatprep.subr.bf16.mxu0 %v10211_v23  ;;  %19351 = vst [vmem:[#allocation39_spill] sm:$0xff] %v10235_v19  ;;  %v10240_v21 = vld [vmem:[%s18475_s1 + $0x704] ss:$8 sps:$4 sm:$0xff]   ;;  %v10247_v23 = vld [vmem:[%s18475_s1 + $0x600] ss:$8 sps:$4 sm:$0xff]  }
  0xd9   :  { %2009 = vmatprep.subr.bf16.mxu1 %v10216_v27  ;;  %19352 = vst [vmem:[#allocation40_spill] sm:$0xff] %v10240_v21  ;;  %19353 = vst [vmem:[#allocation41_spill] sm:$0xff] %v10247_v23  ;;  %v10252_v27 = vld [vmem:[%s18475_s1 + $0x700] ss:$8 sps:$4 sm:$0xff]  }
  0xda   :  { %19354 = vst [vmem:[#allocation42_spill] sm:$0xff] %v10252_v27 }
  0xdb   :  { %1969 = vmatpush1.bf16.msra.mxu0 %v10223_v29  ;;  %v10259_v29 = vld [vmem:[%s18475_s1 + $0x6f4] ss:$8 sps:$4 sm:$0xff]  }
  0xdc   :  { %2010 = vmatpush1.bf16.msra.mxu1 %v10228_v20  ;;  %1970 = vmatprep.subr.bf16.mxu0 %v10235_v19  ;;  %19355 = vst [vmem:[#allocation43_spill] sm:$0xff] %v10259_v29  ;;  %v10264_v20 = vld [vmem:[%s18475_s1 + $0x7f4] ss:$8 sps:$4 sm:$0xff]   ;;  %v10271_v19 = vld [vmem:[%s18475_s1 + $0x6f0] ss:$8 sps:$4 sm:$0xff]  }
  0xdd   :  { %2011 = vmatprep.subr.bf16.mxu1 %v10240_v21  ;;  %19356 = vst [vmem:[#allocation44_spill] sm:$0xff] %v10264_v20  ;;  %19357 = vst [vmem:[#allocation45_spill] sm:$0xff] %v10271_v19  ;;  %v10276_v21 = vld [vmem:[%s18475_s1 + $0x7f0] ss:$8 sps:$4 sm:$0xff]  }
  0xde   :  { %19358 = vst [vmem:[#allocation46_spill] sm:$0xff] %v10276_v21 }
  0xdf   :  { %1971 = vmatpush1.bf16.msra.mxu0 %v10247_v23  ;;  %v10283_v23 = vld [vmem:[%s18475_s1 + $0x6e4] ss:$8 sps:$4 sm:$0xff]  }
  0xe0   :  { %2012 = vmatpush1.bf16.msra.mxu1 %v10252_v27  ;;  %1972 = vmatprep.subr.bf16.mxu0 %v10259_v29  ;;  %19359 = vst [vmem:[#allocation47_spill] sm:$0xff] %v10283_v23  ;;  %v10288_v27 = vld [vmem:[%s18475_s1 + $0x7e4] ss:$8 sps:$4 sm:$0xff]   ;;  %v10295_v29 = vld [vmem:[%s18475_s1 + $0x6e0] ss:$8 sps:$4 sm:$0xff]  }
  0xe1   :  { %2013 = vmatprep.subr.bf16.mxu1 %v10264_v20  ;;  %19360 = vst [vmem:[#allocation48_spill] sm:$0xff] %v10288_v27  ;;  %19361 = vst [vmem:[#allocation49_spill] sm:$0xff] %v10295_v29  ;;  %v10300_v20 = vld [vmem:[%s18475_s1 + $0x7e0] ss:$8 sps:$4 sm:$0xff]  }
  0xe2   :  { %19362 = vst [vmem:[#allocation50_spill] sm:$0xff] %v10300_v20 }
  0xe3   :  { %1973 = vmatpush2.bf16.msra.mxu0 %v10271_v19  ;;  %v10307_v19 = vld [vmem:[%s18475_s1 + $0x6d4] ss:$8 sps:$4 sm:$0xff]  }
  0xe4   :  { %2014 = vmatpush2.bf16.msra.mxu1 %v10276_v21  ;;  %1974 = vmatprep.subr.bf16.mxu0 %v10283_v23  ;;  %19363 = vst [vmem:[#allocation51_spill] sm:$0xff] %v10307_v19  ;;  %v10312_v21 = vld [vmem:[%s18475_s1 + $0x7d4] ss:$8 sps:$4 sm:$0xff]   ;;  %v10319_v23 = vld [vmem:[%s18475_s1 + $0x6d0] ss:$8 sps:$4 sm:$0xff]  }
  0xe5   :  { %2015 = vmatprep.subr.bf16.mxu1 %v10288_v27  ;;  %19364 = vst [vmem:[#allocation52_spill] sm:$0xff] %v10312_v21  ;;  %19365 = vst [vmem:[#allocation53_spill] sm:$0xff] %v10319_v23  ;;  %v10324_v27 = vld [vmem:[%s18475_s1 + $0x7d0] ss:$8 sps:$4 sm:$0xff]  }
  0xe6   :  { %19366 = vst [vmem:[#allocation54_spill] sm:$0xff] %v10324_v27 }
  0xe7   :  { %1975 = vmatpush2.bf16.msra.mxu0 %v10295_v29  ;;  %v10331_v29 = vld [vmem:[%s18475_s1 + $0x6c4] ss:$8 sps:$4 sm:$0xff]  }
  0xe8   :  { %2016 = vmatpush2.bf16.msra.mxu1 %v10300_v20  ;;  %1976 = vmatprep.subr.bf16.mxu0 %v10307_v19  ;;  %19367 = vst [vmem:[#allocation55_spill] sm:$0xff] %v10331_v29  ;;  %v10336_v20 = vld [vmem:[%s18475_s1 + $0x7c4] ss:$8 sps:$4 sm:$0xff]   ;;  %v10343_v19 = vld [vmem:[%s18475_s1 + $0x6c0] ss:$8 sps:$4 sm:$0xff]  }
  0xe9   :  { %2017 = vmatprep.subr.bf16.mxu1 %v10312_v21  ;;  %19368 = vst [vmem:[#allocation56_spill] sm:$0xff] %v10336_v20  ;;  %19369 = vst [vmem:[#allocation57_spill] sm:$0xff] %v10343_v19  ;;  %v10348_v21 = vld [vmem:[%s18475_s1 + $0x7c0] ss:$8 sps:$4 sm:$0xff]  }
  0xea   :  { %19370 = vst [vmem:[#allocation58_spill] sm:$0xff] %v10348_v21 }
  0xeb   :  { %1977 = vmatpush2.bf16.msra.mxu0 %v10319_v23  ;;  %v10355_v23 = vld [vmem:[%s18475_s1 + $0x6b4] ss:$8 sps:$4 sm:$0xff]  }
  0xec   :  { %2018 = vmatpush2.bf16.msra.mxu1 %v10324_v27  ;;  %1978 = vmatprep.subr.bf16.mxu0 %v10331_v29  ;;  %19371 = vst [vmem:[#allocation59_spill] sm:$0xff] %v10355_v23  ;;  %v10360_v27 = vld [vmem:[%s18475_s1 + $0x7b4] ss:$8 sps:$4 sm:$0xff]   ;;  %v10367_v29 = vld [vmem:[%s18475_s1 + $0x6b0] ss:$8 sps:$4 sm:$0xff]  }
  0xed   :  { %2019 = vmatprep.subr.bf16.mxu1 %v10336_v20  ;;  %19372 = vst [vmem:[#allocation60_spill] sm:$0xff] %v10360_v27  ;;  %19373 = vst [vmem:[#allocation61_spill] sm:$0xff] %v10367_v29  ;;  %v10372_v20 = vld [vmem:[%s18475_s1 + $0x7b0] ss:$8 sps:$4 sm:$0xff]  }
  0xee   :  { %19374 = vst [vmem:[#allocation62_spill] sm:$0xff] %v10372_v20 }
  0xef   :  { %1979 = vmatpush2.bf16.msra.mxu0 %v10343_v19  ;;  %v10379_v19 = vld [vmem:[%s18475_s1 + $0x6a4] ss:$8 sps:$4 sm:$0xff]  }
  0xf0   :  { %2020 = vmatpush2.bf16.msra.mxu1 %v10348_v21  ;;  %1980 = vmatprep.subr.bf16.mxu0 %v10355_v23  ;;  %19375 = vst [vmem:[#allocation63_spill] sm:$0xff] %v10379_v19  ;;  %v10384_v21 = vld [vmem:[%s18475_s1 + $0x7a4] ss:$8 sps:$4 sm:$0xff]   ;;  %v10391_v23 = vld [vmem:[%s18475_s1 + $0x6a0] ss:$8 sps:$4 sm:$0xff]  }
  0xf1   :  { %2021 = vmatprep.subr.bf16.mxu1 %v10360_v27  ;;  %19376 = vst [vmem:[#allocation64_spill] sm:$0xff] %v10384_v21  ;;  %19377 = vst [vmem:[#allocation65_spill] sm:$0xff] %v10391_v23  ;;  %v10396_v27 = vld [vmem:[%s18475_s1 + $0x7a0] ss:$8 sps:$4 sm:$0xff]  }
  0xf2   :  { %19378 = vst [vmem:[#allocation66_spill] sm:$0xff] %v10396_v27 }
  0xf3   :  { %1981 = vmatpush2.bf16.msra.mxu0 %v10367_v29  ;;  %v10403_v29 = vld [vmem:[%s18475_s1 + $0x694] ss:$8 sps:$4 sm:$0xff]  }
  0xf4   :  { %2022 = vmatpush2.bf16.msra.mxu1 %v10372_v20  ;;  %1982 = vmatprep.subr.bf16.mxu0 %v10379_v19  ;;  %19379 = vst [vmem:[#allocation67_spill] sm:$0xff] %v10403_v29  ;;  %v10408_v20 = vld [vmem:[%s18475_s1 + $0x794] ss:$8 sps:$4 sm:$0xff]   ;;  %v10415_v19 = vld [vmem:[%s18475_s1 + $0x690] ss:$8 sps:$4 sm:$0xff]  }
  0xf5   :  { %2023 = vmatprep.subr.bf16.mxu1 %v10384_v21  ;;  %19380 = vst [vmem:[#allocation68_spill] sm:$0xff] %v10408_v20  ;;  %19381 = vst [vmem:[#allocation69_spill] sm:$0xff] %v10415_v19  ;;  %v10420_v21 = vld [vmem:[%s18475_s1 + $0x790] ss:$8 sps:$4 sm:$0xff]  }
  0xf6   :  { %19382 = vst [vmem:[#allocation70_spill] sm:$0xff] %v10420_v21 }
  0xf7   :  { %1983 = vmatpush2.bf16.msra.mxu0 %v10391_v23  ;;  %v10434_v23 = vld [vmem:[%s18475_s1 + $0x784] ss:$8 sps:$4 sm:$0xff]  }
  0xf8   :  { %2024 = vmatpush2.bf16.msra.mxu1 %v10396_v27  ;;  %1984 = vmatprep.subr.bf16.mxu0 %v10403_v29  ;;  %v10429_v27 = vld [vmem:[%s18475_s1 + $0x684] ss:$8 sps:$4 sm:$0xff]   ;;  %19385 = vst [vmem:[#allocation73_spill] sm:$0xff] %v10434_v23 }
  0xf9   :  { %2025 = vmatprep.subr.bf16.mxu1 %v10408_v20  ;;  %19384 = vst [vmem:[#allocation72_spill] sm:$0xff] %v10429_v27  ;;  %v10449_v20 = vsub.s32 0, %v10422_v22  ;;  %v6894_v29 = vld [vmem:[%s18476_s0 + $0x60] sm:$0xff] }
  0xfa   :  { %v10465_v14 = vpack.c.bf16 %v6894_v29, %v6894_v29  ;;  %v10483_v29 = vld [vmem:[%s18475_s1 + $0x174] ss:$8 sps:$4 sm:$0xff]  }
  0xfb   :  { %1985 = vmatpush2.bf16.msra.mxu0 %v10415_v19  ;;  %19388 = vst [vmem:[#allocation76_spill] sm:$0xff] %v10449_v20  ;;  %v10463_v19 = vsub.s32 1, %v10422_v22  ;;  %19392 = vst [vmem:[#allocation80_spill] sm:$0xff] %v10483_v29 }
  0xfc   :  { %2026 = vmatpush2.bf16.msra.mxu1 %v10420_v21  ;;  %1986 = vmatprep.subr.bf16.mxu0 %v10429_v27  ;;  %v402_v21 = vld [vmem:[%s18477_s2] sm:$0x3] }
  0xfd   :  { %2027 = vmatprep.subr.bf16.mxu1 %v10434_v23  ;;  %19389 = vst [vmem:[#allocation77_spill] sm:$0xff] %v10463_v19  ;;  %v10472_v12 = vrot.slane %v402_v21, %v10449_v20  ;;  %v10477_v23 = vld [vmem:[%s18475_s1 + $0x74] ss:$8 sps:$4 sm:$0xff]   ;;  %v10487_v15 = vrot.slane %v402_v21, %v10463_v19  ;;  %v10501_v21 = vld [vmem:[%s18475_s1 + $0x170] ss:$8 sps:$4 sm:$0xff]  }
  0xfe   :  { %19391 = vst [vmem:[#allocation79_spill] sm:$0xff] %v10477_v23  ;;  %19394 = vst [vmem:[#allocation82_spill] sm:$0xff] %v10501_v21 }
  0xff   :  { %1987 = vmatpush2.bf16.msra.mxu0 %v10439_v16  ;;  %19390 = vst [vmem:[#allocation78_spill] sm:$0xff] %v10472_v12 }
 0x100   :  { %2028 = vmatpush2.bf16.msra.mxu1 %v10446_v30  ;;  %2050 = vmatprep.subr.bf16.mxu0 %v10477_v23  ;;  %v10495_v23 = vld [vmem:[%s18475_s1 + $0x70] ss:$8 sps:$4 sm:$0xff]  }
 0x101   :  { %2091 = vmatprep.subr.bf16.mxu1 %v10483_v29  ;;  %19393 = vst [vmem:[#allocation81_spill] sm:$0xff] %v10495_v23 }
 0x102   :  { %v1744_v22 = vpop.f32.mrf.mxu0  ;;  %1989 = vmatmul.mubr.bf16.vlgmr.msra.gmra.mxu0 %v10465_v14 }
 0x103   :  { %v1785_v20 = vpop.f32.mrf.mxu1  ;;  %2030 = vmatmul.mubr.bf16.vlgmr.msra.gmra.mxu1 %v10467_v13  ;;  %v1745_v30 = vadd.f32 %v1744_v22, %v10472_v12  ;;  %2051 = vmatpush1.bf16.msra.mxu0 %v10495_v23  ;;  %v10507_v22 = vld [vmem:[%s18475_s1 + $0x64] ss:$8 sps:$4 sm:$0xff]  }
 0x104   :  { %2092 = vmatpush1.bf16.msra.mxu1 %v10501_v21  ;;  %v1746_v19 = vpop.f32.mrf.mxu0  ;;  %19395 = vst [vmem:[#allocation83_spill] sm:$0xff] %v10507_v22  ;;  %2052 = vmatprep.subr.bf16.mxu0 %v10507_v22  ;;  %v10513_v23 = vld [vmem:[%s18475_s1 + $0x164] ss:$8 sps:$4 sm:$0xff]   ;;  %v10526_v22 = vld [vmem:[%s18475_s1 + $0x60] ss:$8 sps:$4 sm:$0xff]  }
 0x105   :  { %v1787_v29 = vpop.f32.mrf.mxu1  ;;  %2093 = vmatprep.subr.bf16.mxu1 %v10513_v23  ;;  %v10516_v12 = vadd.f32 %v1785_v20, %v1745_v30  ;;  %v1747_v21 = vadd.f32 %v1746_v19, %v10487_v15  ;;  %2082 = vmatprep.mubr.bf16.mxu0 %v9706_v25  ;;  %v10532_v20 = vld [vmem:[%s18475_s1 + $0x160] ss:$8 sps:$4 sm:$0xff]   ;;  %v10544_v19 = vld [vmem:[%s18475_s1 + $0x154] ss:$8 sps:$4 sm:$0xff]   ;;  %v10556_v30 = vld [vmem:[%s18475_s1 + $0x150] ss:$8 sps:$4 sm:$0xff]  }
 0x106   :  { %2123 = vmatprep.mubr.bf16.mxu1 %v9714_v28  ;;  %v1748_v16 = vpop.f32.mrf.mxu0  ;;  %19397 = vst [vmem:[#allocation85_spill] sm:$0xff] %v10544_v19  ;;  %19399 = vst [vmem:[#allocation87_spill] sm:$0xff] %v10556_v30 }
 0x107   :  { %v1789_v27 = vpop.f32.mrf.mxu1  ;;  %v10521_v11 = vadd.f32 %v1787_v29, %v1747_v21  ;;  %2053 = vmatpush1.bf16.msra.mxu0 %v10526_v22  ;;  %v10538_v16 = vld [vmem:[%s18475_s1 + $0x54] ss:$8 sps:$4 sm:$0xff]   ;;  %v10562_v29 = vld [vmem:[%s18475_s1 + $0x44] ss:$8 sps:$4 sm:$0xff]  }
 0x108   :  { %2094 = vmatpush1.bf16.msra.mxu1 %v10532_v20  ;;  %v1749_v25 = vpop.f32.mrf.mxu0  ;;  %19396 = vst [vmem:[#allocation84_spill] sm:$0xff] %v10538_v16  ;;  %2054 = vmatprep.subr.bf16.mxu0 %v10538_v16  ;;  %v10550_v27 = vld [vmem:[%s18475_s1 + $0x50] ss:$8 sps:$4 sm:$0xff]   ;;  %19400 = vst [vmem:[#allocation88_spill] sm:$0xff] %v10562_v29  ;;  %v10568_v21 = vld [vmem:[%s18475_s1 + $0x144] ss:$8 sps:$4 sm:$0xff]  }
 0x109   :  { %v1790_v28 = vpop.f32.mrf.mxu1  ;;  %2095 = vmatprep.subr.bf16.mxu1 %v10544_v19  ;;  %19398 = vst [vmem:[#allocation86_spill] sm:$0xff] %v10550_v27  ;;  %19401 = vst [vmem:[#allocation89_spill] sm:$0xff] %v10568_v21  ;;  %v10574_v25 = vld [vmem:[%s18475_s1 + $0x40] ss:$8 sps:$4 sm:$0xff]  }
 0x10a   :  { %19402 = vst [vmem:[#allocation90_spill] sm:$0xff] %v10574_v25  ;;  %v10580_v28 = vld [vmem:[%s18475_s1 + $0x140] ss:$8 sps:$4 sm:$0xff]  }
 0x10b   :  { %2055 = vmatpush1.bf16.msra.mxu0 %v10550_v27  ;;  %19403 = vst [vmem:[#allocation91_spill] sm:$0xff] %v10580_v28  ;;  %v10889_v27 = vld [vmem:[%s18475_s1 + $0x270] ss:$8 sps:$4 sm:$0xff]  }
 0x10c   :  { %2096 = vmatpush1.bf16.msra.mxu1 %v10556_v30  ;;  %2056 = vmatprep.subr.bf16.mxu0 %v10562_v29  ;;  %v10586_v29 = vld [vmem:[%s18475_s1 + $0x34] ss:$8 sps:$4 sm:$0xff]   ;;  %19454 = vst [vmem:[#allocation142_spill] sm:$0xff] %v10889_v27 }
 0x10d   :  { %2097 = vmatprep.subr.bf16.mxu1 %v10568_v21  ;;  %19404 = vst [vmem:[#allocation92_spill] sm:$0xff] %v10586_v29  ;;  %v10592_v21 = vld [vmem:[%s18475_s1 + $0x134] ss:$8 sps:$4 sm:$0xff]  }
 0x10e   :  { %19405 = vst [vmem:[#allocation93_spill] sm:$0xff] %v10592_v21 }
 0x10f   :  { %2057 = vmatpush1.bf16.msra.mxu0 %v10574_v25  ;;  %v10598_v25 = vld [vmem:[%s18475_s1 + $0x30] ss:$8 sps:$4 sm:$0xff]  }
 0x110   :  { %2098 = vmatpush1.bf16.msra.mxu1 %v10580_v28  ;;  %2058 = vmatprep.subr.bf16.mxu0 %v10586_v29  ;;  %19406 = vst [vmem:[#allocation94_spill] sm:$0xff] %v10598_v25  ;;  %v10604_v28 = vld [vmem:[%s18475_s1 + $0x130] ss:$8 sps:$4 sm:$0xff]   ;;  %v10610_v29 = vld [vmem:[%s18475_s1 + $0x24] ss:$8 sps:$4 sm:$0xff]  }
 0x111   :  { %2099 = vmatprep.subr.bf16.mxu1 %v10592_v21  ;;  %19407 = vst [vmem:[#allocation95_spill] sm:$0xff] %v10604_v28  ;;  %19408 = vst [vmem:[#allocation96_spill] sm:$0xff] %v10610_v29  ;;  %v10616_v21 = vld [vmem:[%s18475_s1 + $0x124] ss:$8 sps:$4 sm:$0xff]  }
 0x112   :  { %19409 = vst [vmem:[#allocation97_spill] sm:$0xff] %v10616_v21 }
 0x113   :  { %2059 = vmatpush1.bf16.msra.mxu0 %v10598_v25  ;;  %v10622_v25 = vld [vmem:[%s18475_s1 + $0x20] ss:$8 sps:$4 sm:$0xff]  }
 0x114   :  { %2100 = vmatpush1.bf16.msra.mxu1 %v10604_v28  ;;  %2060 = vmatprep.subr.bf16.mxu0 %v10610_v29  ;;  %19410 = vst [vmem:[#allocation98_spill] sm:$0xff] %v10622_v25  ;;  %v10628_v28 = vld [vmem:[%s18475_s1 + $0x120] ss:$8 sps:$4 sm:$0xff]   ;;  %v10634_v29 = vld [vmem:[%s18475_s1 + $0x14] ss:$8 sps:$4 sm:$0xff]  }
 0x115   :  { %2101 = vmatprep.subr.bf16.mxu1 %v10616_v21  ;;  %19411 = vst [vmem:[#allocation99_spill] sm:$0xff] %v10628_v28  ;;  %19412 = vst [vmem:[#allocation100_spill] sm:$0xff] %v10634_v29  ;;  %v10640_v21 = vld [vmem:[%s18475_s1 + $0x114] ss:$8 sps:$4 sm:$0xff]  }
 0x116   :  { %19413 = vst [vmem:[#allocation101_spill] sm:$0xff] %v10640_v21 }
 0x117   :  { %2061 = vmatpush1.bf16.msra.mxu0 %v10622_v25  ;;  %v10646_v25 = vld [vmem:[%s18475_s1 + $0x10] ss:$8 sps:$4 sm:$0xff]  }
 0x118   :  { %2102 = vmatpush1.bf16.msra.mxu1 %v10628_v28  ;;  %2062 = vmatprep.subr.bf16.mxu0 %v10634_v29  ;;  %19414 = vst [vmem:[#allocation102_spill] sm:$0xff] %v10646_v25  ;;  %v10652_v28 = vld [vmem:[%s18475_s1 + $0x110] ss:$8 sps:$4 sm:$0xff]   ;;  %v10658_v29 = vld [vmem:[%s18475_s1 + $0x4] ss:$8 sps:$4 sm:$0xff]  }
 0x119   :  { %2103 = vmatprep.subr.bf16.mxu1 %v10640_v21  ;;  %19415 = vst [vmem:[#allocation103_spill] sm:$0xff] %v10652_v28  ;;  %19416 = vst [vmem:[#allocation104_spill] sm:$0xff] %v10658_v29  ;;  %v10664_v21 = vld [vmem:[%s18475_s1 + $0x104] ss:$8 sps:$4 sm:$0xff]  }
 0x11a   :  { %19417 = vst [vmem:[#allocation105_spill] sm:$0xff] %v10664_v21 }
 0x11b   :  { %2063 = vmatpush1.bf16.msra.mxu0 %v10646_v25  ;;  %v10670_v25 = vld [vmem:[%s18475_s1] ss:$8 sps:$4 sm:$0xff]  }
 0x11c   :  { %2104 = vmatpush1.bf16.msra.mxu1 %v10652_v28  ;;  %2064 = vmatprep.subr.bf16.mxu0 %v10658_v29  ;;  %19418 = vst [vmem:[#allocation106_spill] sm:$0xff] %v10670_v25  ;;  %v10676_v28 = vld [vmem:[%s18475_s1 + $0x100] ss:$8 sps:$4 sm:$0xff]   ;;  %v10682_v29 = vld [vmem:[%s18475_s1 + $0xf4] ss:$8 sps:$4 sm:$0xff]  }
 0x11d   :  { %2105 = vmatprep.subr.bf16.mxu1 %v10664_v21  ;;  %19419 = vst [vmem:[#allocation107_spill] sm:$0xff] %v10676_v28  ;;  %19420 = vst [vmem:[#allocation108_spill] sm:$0xff] %v10682_v29  ;;  %v10688_v21 = vld [vmem:[%s18475_s1 + $0x1f4] ss:$8 sps:$4 sm:$0xff]  }
 0x11e   :  { %19421 = vst [vmem:[#allocation109_spill] sm:$0xff] %v10688_v21 }
 0x11f   :  { %2065 = vmatpush1.bf16.msra.mxu0 %v10670_v25  ;;  %v10694_v25 = vld [vmem:[%s18475_s1 + $0xf0] ss:$8 sps:$4 sm:$0xff]  }
 0x120   :  { %2106 = vmatpush1.bf16.msra.mxu1 %v10676_v28  ;;  %2066 = vmatprep.subr.bf16.mxu0 %v10682_v29  ;;  %19422 = vst [vmem:[#allocation110_spill] sm:$0xff] %v10694_v25  ;;  %v10700_v28 = vld [vmem:[%s18475_s1 + $0x1f0] ss:$8 sps:$4 sm:$0xff]   ;;  %v10706_v29 = vld [vmem:[%s18475_s1 + $0xe4] ss:$8 sps:$4 sm:$0xff]  }
 0x121   :  { %2107 = vmatprep.subr.bf16.mxu1 %v10688_v21  ;;  %19423 = vst [vmem:[#allocation111_spill] sm:$0xff] %v10700_v28  ;;  %19424 = vst [vmem:[#allocation112_spill] sm:$0xff] %v10706_v29  ;;  %v10712_v21 = vld [vmem:[%s18475_s1 + $0x1e4] ss:$8 sps:$4 sm:$0xff]  }
 0x122   :  { %19425 = vst [vmem:[#allocation113_spill] sm:$0xff] %v10712_v21 }
 0x123   :  { %2067 = vmatpush2.bf16.msra.mxu0 %v10694_v25  ;;  %v10718_v25 = vld [vmem:[%s18475_s1 + $0xe0] ss:$8 sps:$4 sm:$0xff]  }
 0x124   :  { %2108 = vmatpush2.bf16.msra.mxu1 %v10700_v28  ;;  %2068 = vmatprep.subr.bf16.mxu0 %v10706_v29  ;;  %19426 = vst [vmem:[#allocation114_spill] sm:$0xff] %v10718_v25  ;;  %v10724_v28 = vld [vmem:[%s18475_s1 + $0x1e0] ss:$8 sps:$4 sm:$0xff]   ;;  %v10730_v29 = vld [vmem:[%s18475_s1 + $0xd4] ss:$8 sps:$4 sm:$0xff]  }
 0x125   :  { %2109 = vmatprep.subr.bf16.mxu1 %v10712_v21  ;;  %19427 = vst [vmem:[#allocation115_spill] sm:$0xff] %v10724_v28  ;;  %19428 = vst [vmem:[#allocation116_spill] sm:$0xff] %v10730_v29  ;;  %v10736_v21 = vld [vmem:[%s18475_s1 + $0x1d4] ss:$8 sps:$4 sm:$0xff]  }
 0x126   :  { %19429 = vst [vmem:[#allocation117_spill] sm:$0xff] %v10736_v21 }
 0x127   :  { %2069 = vmatpush2.bf16.msra.mxu0 %v10718_v25  ;;  %v10742_v25 = vld [vmem:[%s18475_s1 + $0xd0] ss:$8 sps:$4 sm:$0xff]  }
 0x128   :  { %2110 = vmatpush2.bf16.msra.mxu1 %v10724_v28  ;;  %2070 = vmatprep.subr.bf16.mxu0 %v10730_v29  ;;  %19430 = vst [vmem:[#allocation118_spill] sm:$0xff] %v10742_v25  ;;  %v10748_v28 = vld [vmem:[%s18475_s1 + $0x1d0] ss:$8 sps:$4 sm:$0xff]   ;;  %v10754_v29 = vld [vmem:[%s18475_s1 + $0xc4] ss:$8 sps:$4 sm:$0xff]  }
 0x129   :  { %2111 = vmatprep.subr.bf16.mxu1 %v10736_v21  ;;  %19431 = vst [vmem:[#allocation119_spill] sm:$0xff] %v10748_v28  ;;  %19432 = vst [vmem:[#allocation120_spill] sm:$0xff] %v10754_v29  ;;  %v10760_v21 = vld [vmem:[%s18475_s1 + $0x1c4] ss:$8 sps:$4 sm:$0xff]  }
 0x12a   :  { %19433 = vst [vmem:[#allocation121_spill] sm:$0xff] %v10760_v21 }
 0x12b   :  { %2071 = vmatpush2.bf16.msra.mxu0 %v10742_v25  ;;  %v10766_v25 = vld [vmem:[%s18475_s1 + $0xc0] ss:$8 sps:$4 sm:$0xff]  }
 0x12c   :  { %2112 = vmatpush2.bf16.msra.mxu1 %v10748_v28  ;;  %2072 = vmatprep.subr.bf16.mxu0 %v10754_v29  ;;  %19434 = vst [vmem:[#allocation122_spill] sm:$0xff] %v10766_v25  ;;  %v10772_v28 = vld [vmem:[%s18475_s1 + $0x1c0] ss:$8 sps:$4 sm:$0xff]   ;;  %v10778_v29 = vld [vmem:[%s18475_s1 + $0xb4] ss:$8 sps:$4 sm:$0xff]  }
 0x12d   :  { %2113 = vmatprep.subr.bf16.mxu1 %v10760_v21  ;;  %19435 = vst [vmem:[#allocation123_spill] sm:$0xff] %v10772_v28  ;;  %19436 = vst [vmem:[#allocation124_spill] sm:$0xff] %v10778_v29  ;;  %v10784_v21 = vld [vmem:[%s18475_s1 + $0x1b4] ss:$8 sps:$4 sm:$0xff]  }
 0x12e   :  { %19437 = vst [vmem:[#allocation125_spill] sm:$0xff] %v10784_v21 }
 0x12f   :  { %2073 = vmatpush2.bf16.msra.mxu0 %v10766_v25  ;;  %v10790_v25 = vld [vmem:[%s18475_s1 + $0xb0] ss:$8 sps:$4 sm:$0xff]  }
 0x130   :  { %2114 = vmatpush2.bf16.msra.mxu1 %v10772_v28  ;;  %2074 = vmatprep.subr.bf16.mxu0 %v10778_v29  ;;  %19438 = vst [vmem:[#allocation126_spill] sm:$0xff] %v10790_v25  ;;  %v10796_v28 = vld [vmem:[%s18475_s1 + $0x1b0] ss:$8 sps:$4 sm:$0xff]   ;;  %v10802_v29 = vld [vmem:[%s18475_s1 + $0xa4] ss:$8 sps:$4 sm:$0xff]  }
 0x131   :  { %2115 = vmatprep.subr.bf16.mxu1 %v10784_v21  ;;  %19439 = vst [vmem:[#allocation127_spill] sm:$0xff] %v10796_v28  ;;  %19440 = vst [vmem:[#allocation128_spill] sm:$0xff] %v10802_v29  ;;  %v10808_v21 = vld [vmem:[%s18475_s1 + $0x1a4] ss:$8 sps:$4 sm:$0xff]  }
 0x132   :  { %19441 = vst [vmem:[#allocation129_spill] sm:$0xff] %v10808_v21 }
 0x133   :  { %2075 = vmatpush2.bf16.msra.mxu0 %v10790_v25  ;;  %v10814_v25 = vld [vmem:[%s18475_s1 + $0xa0] ss:$8 sps:$4 sm:$0xff]  }
 0x134   :  { %2116 = vmatpush2.bf16.msra.mxu1 %v10796_v28  ;;  %2076 = vmatprep.subr.bf16.mxu0 %v10802_v29  ;;  %19442 = vst [vmem:[#allocation130_spill] sm:$0xff] %v10814_v25  ;;  %v10820_v28 = vld [vmem:[%s18475_s1 + $0x1a0] ss:$8 sps:$4 sm:$0xff]   ;;  %v10826_v29 = vld [vmem:[%s18475_s1 + $0x94] ss:$8 sps:$4 sm:$0xff]  }
 0x135   :  { %2117 = vmatprep.subr.bf16.mxu1 %v10808_v21  ;;  %19443 = vst [vmem:[#allocation131_spill] sm:$0xff] %v10820_v28  ;;  %19444 = vst [vmem:[#allocation132_spill] sm:$0xff] %v10826_v29  ;;  %v10832_v21 = vld [vmem:[%s18475_s1 + $0x194] ss:$8 sps:$4 sm:$0xff]  }
 0x136   :  { %19445 = vst [vmem:[#allocation133_spill] sm:$0xff] %v10832_v21 }
 0x137   :  { %2077 = vmatpush2.bf16.msra.mxu0 %v10814_v25  ;;  %v10838_v25 = vld [vmem:[%s18475_s1 + $0x90] ss:$8 sps:$4 sm:$0xff]  }
 0x138   :  { %2118 = vmatpush2.bf16.msra.mxu1 %v10820_v28  ;;  %2078 = vmatprep.subr.bf16.mxu0 %v10826_v29  ;;  %19446 = vst [vmem:[#allocation134_spill] sm:$0xff] %v10838_v25  ;;  %v10844_v28 = vld [vmem:[%s18475_s1 + $0x190] ss:$8 sps:$4 sm:$0xff]   ;;  %v10850_v29 = vld [vmem:[%s18475_s1 + $0x84] ss:$8 sps:$4 sm:$0xff]  }
 0x139   :  { %2119 = vmatprep.subr.bf16.mxu1 %v10832_v21  ;;  %19447 = vst [vmem:[#allocation135_spill] sm:$0xff] %v10844_v28  ;;  %19448 = vst [vmem:[#allocation136_spill] sm:$0xff] %v10850_v29  ;;  %v10856_v21 = vld [vmem:[%s18475_s1 + $0x184] ss:$8 sps:$4 sm:$0xff]  }
 0x13a   :  { %19449 = vst [vmem:[#allocation137_spill] sm:$0xff] %v10856_v21 }
 0x13b   :  { %2079 = vmatpush2.bf16.msra.mxu0 %v10838_v25  ;;  %v10862_v25 = vld [vmem:[%s18475_s1 + $0x80] ss:$8 sps:$4 sm:$0xff]  }
 0x13c   :  { %2120 = vmatpush2.bf16.msra.mxu1 %v10844_v28  ;;  %2080 = vmatprep.subr.bf16.mxu0 %v10850_v29  ;;  %19450 = vst [vmem:[#allocation138_spill] sm:$0xff] %v10862_v25  ;;  %v10868_v28 = vld [vmem:[%s18475_s1 + $0x180] ss:$8 sps:$4 sm:$0xff]   ;;  %v10874_v29 = vld [vmem:[%s18475_s1 + $0x274] ss:$8 sps:$4 sm:$0xff]  }
 0x13d   :  { %2121 = vmatprep.subr.bf16.mxu1 %v10856_v21  ;;  %19451 = vst [vmem:[#allocation139_spill] sm:$0xff] %v10868_v28  ;;  %19452 = vst [vmem:[#allocation140_spill] sm:$0xff] %v10874_v29  ;;  %v10880_v21 = vld [vmem:[%s18475_s1 + $0x374] ss:$8 sps:$4 sm:$0xff]  }
 0x13e   :  { %19453 = vst [vmem:[#allocation141_spill] sm:$0xff] %v10880_v21 }
 0x13f   :  { %2081 = vmatpush2.bf16.msra.mxu0 %v10862_v25 }
 0x140   :  { %2122 = vmatpush2.bf16.msra.mxu1 %v10868_v28  ;;  %2132 = vmatprep.subr.bf16.mxu0 %v10874_v29  ;;  %v10895_v29 = vld [vmem:[%s18475_s1 + $0x370] ss:$8 sps:$4 sm:$0xff]  }
 0x141   :  { %2173 = vmatprep.subr.bf16.mxu1 %v10880_v21  ;;  %19455 = vst [vmem:[#allocation143_spill] sm:$0xff] %v10895_v29 }
 0x142   :  { %v1826_v25 = vpop.f32.mrf.mxu0  ;;  %2083 = vmatmul.mubr.bf16.vlgmr.msra.gmra.mxu0 %v10056_v24 }
 0x143   :  { %v1867_v30 = vpop.f32.mrf.mxu1  ;;  %2124 = vmatmul.mubr.bf16.vlgmr.msra.gmra.mxu1 %v10058_v26  ;;  %v1827_v28 = vadd.f32 %v1826_v25, %v10516_v12  ;;  %2133 = vmatpush1.bf16.msra.mxu0 %v10889_v27  ;;  %v10901_v12 = vld [vmem:[%s18475_s1 + $0x264] ss:$8 sps:$4 sm:$0xff]  }
 0x144   :  { %2174 = vmatpush1.bf16.msra.mxu1 %v10895_v29  ;;  %v1828_v21 = vpop.f32.mrf.mxu0  ;;  %19456 = vst [vmem:[#allocation144_spill] sm:$0xff] %v10901_v12  ;;  %2134 = vmatprep.subr.bf16.mxu0 %v10901_v12  ;;  %v10907_v26 = vld [vmem:[%s18475_s1 + $0x364] ss:$8 sps:$4 sm:$0xff]   ;;  %v10920_v12 = vld [vmem:[%s18475_s1 + $0x260] ss:$8 sps:$4 sm:$0xff]  }
 0x145   :  { %v1869_v24 = vpop.f32.mrf.mxu1  ;;  %2175 = vmatprep.subr.bf16.mxu1 %v10907_v26  ;;  %v10910_v25 = vadd.f32 %v1867_v30, %v1827_v28  ;;  %v1829_v29 = vadd.f32 %v1828_v21, %v10521_v11  ;;  %2164 = vmatprep.mubr.bf16.mxu0 %v10090_v18  ;;  %v10926_v30 = vld [vmem:[%s18475_s1 + $0x360] ss:$8 sps:$4 sm:$0xff]   ;;  %v10932_v18 = vld [vmem:[%s18475_s1 + $0x254] ss:$8 sps:$4 sm:$0xff]   ;;  %v10956_v21 = vld [vmem:[%s18475_s1 + $0x244] ss:$8 sps:$4 sm:$0xff]  }
 0x146   :  { %2205 = vmatprep.mubr.bf16.mxu1 %v10092_v17  ;;  %v1830_v27 = vpop.f32.mrf.mxu0  ;;  %19457 = vst [vmem:[#allocation145_spill] sm:$0xff] %v10926_v30  ;;  %19458 = vst [vmem:[#allocation146_spill] sm:$0xff] %v10932_v18  ;;  %v10962_v28 = vld [vmem:[%s18475_s1 + $0x344] ss:$8 sps:$4 sm:$0xff]  }
 0x147   :  { %v1871_v19 = vpop.f32.mrf.mxu1  ;;  %v10915_v16 = vadd.f32 %v1869_v24, %v1829_v29  ;;  %2135 = vmatpush1.bf16.msra.mxu0 %v10920_v12  ;;  %v10944_v27 = vld [vmem:[%s18475_s1 + $0x250] ss:$8 sps:$4 sm:$0xff]   ;;  %19462 = vst [vmem:[#allocation150_spill] sm:$0xff] %v10956_v21  ;;  %19463 = vst [vmem:[#allocation151_spill] sm:$0xff] %v10962_v28  ;;  %v10968_v24 = vld [vmem:[%s18475_s1 + $0x240] ss:$8 sps:$4 sm:$0xff]  }
 0x148   :  { %2176 = vmatpush1.bf16.msra.mxu1 %v10926_v30  ;;  %v1831_v11 = vpop.f32.mrf.mxu0  ;;  %2136 = vmatprep.subr.bf16.mxu0 %v10932_v18  ;;  %v10938_v19 = vld [vmem:[%s18475_s1 + $0x354] ss:$8 sps:$4 sm:$0xff]   ;;  %19460 = vst [vmem:[#allocation148_spill] sm:$0xff] %v10944_v27  ;;  %v10950_v29 = vld [vmem:[%s18475_s1 + $0x350] ss:$8 sps:$4 sm:$0xff]   ;;  %19464 = vst [vmem:[#allocation152_spill] sm:$0xff] %v10968_v24 }
 0x149   :  { %v1872_v17 = vpop.f32.mrf.mxu1  ;;  %19459 = vst [vmem:[#allocation147_spill] sm:$0xff] %v10938_v19  ;;  %2177 = vmatprep.subr.bf16.mxu1 %v10938_v19  ;;  %19461 = vst [vmem:[#allocation149_spill] sm:$0xff] %v10950_v29  ;;  %v10974_v11 = vld [vmem:[%s18475_s1 + $0x340] ss:$8 sps:$4 sm:$0xff]  }
 0x14a   :  { %19465 = vst [vmem:[#allocation153_spill] sm:$0xff] %v10974_v11  ;;  %v10980_v17 = vld [vmem:[%s18475_s1 + $0x234] ss:$8 sps:$4 sm:$0xff]  }
 0x14b   :  { %2137 = vmatpush1.bf16.msra.mxu0 %v10944_v27  ;;  %19466 = vst [vmem:[#allocation154_spill] sm:$0xff] %v10980_v17 }
 0x14c   :  { %2178 = vmatpush1.bf16.msra.mxu1 %v10950_v29  ;;  %2138 = vmatprep.subr.bf16.mxu0 %v10956_v21  ;;  %v11262_v21 = vld [vmem:[%s18475_s1 + $0x280] ss:$8 sps:$4 sm:$0xff]   ;;  %v11280_v29 = vld [vmem:[%s18475_s1 + $0x574] ss:$8 sps:$4 sm:$0xff]  }
 0x14d   :  { %2179 = vmatprep.subr.bf16.mxu1 %v10962_v28  ;;  %v10986_v28 = vld [vmem:[%s18475_s1 + $0x334] ss:$8 sps:$4 sm:$0xff]   ;;  %19512 = vst [vmem:[#allocation200_spill] sm:$0xff] %v11262_v21  ;;  %19515 = vst [vmem:[#allocation203_spill] sm:$0xff] %v11280_v29 }
 0x14e   :  { %19467 = vst [vmem:[#allocation155_spill] sm:$0xff] %v10986_v28 }
 0x14f   :  { %2139 = vmatpush1.bf16.msra.mxu0 %v10968_v24  ;;  %v10992_v24 = vld [vmem:[%s18475_s1 + $0x230] ss:$8 sps:$4 sm:$0xff]  }
 0x150   :  { %2180 = vmatpush1.bf16.msra.mxu1 %v10974_v11  ;;  %2140 = vmatprep.subr.bf16.mxu0 %v10980_v17  ;;  %19468 = vst [vmem:[#allocation156_spill] sm:$0xff] %v10992_v24  ;;  %v10998_v11 = vld [vmem:[%s18475_s1 + $0x330] ss:$8 sps:$4 sm:$0xff]   ;;  %v11004_v17 = vld [vmem:[%s18475_s1 + $0x224] ss:$8 sps:$4 sm:$0xff]  }
 0x151   :  { %2181 = vmatprep.subr.bf16.mxu1 %v10986_v28  ;;  %19469 = vst [vmem:[#allocation157_spill] sm:$0xff] %v10998_v11  ;;  %19470 = vst [vmem:[#allocation158_spill] sm:$0xff] %v11004_v17  ;;  %v11010_v28 = vld [vmem:[%s18475_s1 + $0x324] ss:$8 sps:$4 sm:$0xff]  }
 0x152   :  { %19471 = vst [vmem:[#allocation159_spill] sm:$0xff] %v11010_v28 }
 0x153   :  { %2141 = vmatpush1.bf16.msra.mxu0 %v10992_v24  ;;  %v11016_v24 = vld [vmem:[%s18475_s1 + $0x220] ss:$8 sps:$4 sm:$0xff]  }
 0x154   :  { %2182 = vmatpush1.bf16.msra.mxu1 %v10998_v11  ;;  %2142 = vmatprep.subr.bf16.mxu0 %v11004_v17  ;;  %19472 = vst [vmem:[#allocation160_spill] sm:$0xff] %v11016_v24  ;;  %v11022_v11 = vld [vmem:[%s18475_s1 + $0x320] ss:$8 sps:$4 sm:$0xff]   ;;  %v11028_v17 = vld [vmem:[%s18475_s1 + $0x214] ss:$8 sps:$4 sm:$0xff]  }
 0x155   :  { %2183 = vmatprep.subr.bf16.mxu1 %v11010_v28  ;;  %19473 = vst [vmem:[#allocation161_spill] sm:$0xff] %v11022_v11  ;;  %19474 = vst [vmem:[#allocation162_spill] sm:$0xff] %v11028_v17  ;;  %v11034_v28 = vld [vmem:[%s18475_s1 + $0x314] ss:$8 sps:$4 sm:$0xff]  }
 0x156   :  { %19475 = vst [vmem:[#allocation163_spill] sm:$0xff] %v11034_v28 }
 0x157   :  { %2143 = vmatpush1.bf16.msra.mxu0 %v11016_v24  ;;  %v11040_v24 = vld [vmem:[%s18475_s1 + $0x210] ss:$8 sps:$4 sm:$0xff]  }
 0x158   :  { %2184 = vmatpush1.bf16.msra.mxu1 %v11022_v11  ;;  %2144 = vmatprep.subr.bf16.mxu0 %v11028_v17  ;;  %19476 = vst [vmem:[#allocation164_spill] sm:$0xff] %v11040_v24  ;;  %v11046_v11 = vld [vmem:[%s18475_s1 + $0x310] ss:$8 sps:$4 sm:$0xff]   ;;  %v11052_v17 = vld [vmem:[%s18475_s1 + $0x204] ss:$8 sps:$4 sm:$0xff]  }
 0x159   :  { %2185 = vmatprep.subr.bf16.mxu1 %v11034_v28  ;;  %19477 = vst [vmem:[#allocation165_spill] sm:$0xff] %v11046_v11  ;;  %19478 = vst [vmem:[#allocation166_spill] sm:$0xff] %v11052_v17  ;;  %v11058_v28 = vld [vmem:[%s18475_s1 + $0x304] ss:$8 sps:$4 sm:$0xff]  }
 0x15a   :  { %19479 = vst [vmem:[#allocation167_spill] sm:$0xff] %v11058_v28 }
 0x15b   :  { %2145 = vmatpush1.bf16.msra.mxu0 %v11040_v24  ;;  %v11064_v24 = vld [vmem:[%s18475_s1 + $0x200] ss:$8 sps:$4 sm:$0xff]  }
 0x15c   :  { %2186 = vmatpush1.bf16.msra.mxu1 %v11046_v11  ;;  %2146 = vmatprep.subr.bf16.mxu0 %v11052_v17  ;;  %19480 = vst [vmem:[#allocation168_spill] sm:$0xff] %v11064_v24  ;;  %v11070_v11 = vld [vmem:[%s18475_s1 + $0x300] ss:$8 sps:$4 sm:$0xff]   ;;  %v11076_v17 = vld [vmem:[%s18475_s1 + $0x2f4] ss:$8 sps:$4 sm:$0xff]  }
 0x15d   :  { %2187 = vmatprep.subr.bf16.mxu1 %v11058_v28  ;;  %19481 = vst [vmem:[#allocation169_spill] sm:$0xff] %v11070_v11  ;;  %19482 = vst [vmem:[#allocation170_spill] sm:$0xff] %v11076_v17  ;;  %v11082_v28 = vld [vmem:[%s18475_s1 + $0x3f4] ss:$8 sps:$4 sm:$0xff]  }
 0x15e   :  { %19483 = vst [vmem:[#allocation171_spill] sm:$0xff] %v11082_v28 }
 0x15f   :  { %2147 = vmatpush1.bf16.msra.mxu0 %v11064_v24  ;;  %v11088_v24 = vld [vmem:[%s18475_s1 + $0x2f0] ss:$8 sps:$4 sm:$0xff]  }
 0x160   :  { %2188 = vmatpush1.bf16.msra.mxu1 %v11070_v11  ;;  %2148 = vmatprep.subr.bf16.mxu0 %v11076_v17  ;;  %19484 = vst [vmem:[#allocation172_spill] sm:$0xff] %v11088_v24  ;;  %v11094_v11 = vld [vmem:[%s18475_s1 + $0x3f0] ss:$8 sps:$4 sm:$0xff]   ;;  %v11100_v17 = vld [vmem:[%s18475_s1 + $0x2e4] ss:$8 sps:$4 sm:$0xff]  }
 0x161   :  { %2189 = vmatprep.subr.bf16.mxu1 %v11082_v28  ;;  %19485 = vst [vmem:[#allocation173_spill] sm:$0xff] %v11094_v11  ;;  %19486 = vst [vmem:[#allocation174_spill] sm:$0xff] %v11100_v17  ;;  %v11106_v28 = vld [vmem:[%s18475_s1 + $0x3e4] ss:$8 sps:$4 sm:$0xff]  }
 0x162   :  { %19487 = vst [vmem:[#allocation175_spill] sm:$0xff] %v11106_v28 }
 0x163   :  { %2149 = vmatpush2.bf16.msra.mxu0 %v11088_v24  ;;  %v11112_v24 = vld [vmem:[%s18475_s1 + $0x2e0] ss:$8 sps:$4 sm:$0xff]  }
 0x164   :  { %2190 = vmatpush2.bf16.msra.mxu1 %v11094_v11  ;;  %2150 = vmatprep.subr.bf16.mxu0 %v11100_v17  ;;  %19488 = vst [vmem:[#allocation176_spill] sm:$0xff] %v11112_v24  ;;  %v11118_v11 = vld [vmem:[%s18475_s1 + $0x3e0] ss:$8 sps:$4 sm:$0xff]   ;;  %v11124_v17 = vld [vmem:[%s18475_s1 + $0x2d4] ss:$8 sps:$4 sm:$0xff]  }
 0x165   :  { %2191 = vmatprep.subr.bf16.mxu1 %v11106_v28  ;;  %19489 = vst [vmem:[#allocation177_spill] sm:$0xff] %v11118_v11  ;;  %19490 = vst [vmem:[#allocation178_spill] sm:$0xff] %v11124_v17  ;;  %v11130_v28 = vld [vmem:[%s18475_s1 + $0x3d4] ss:$8 sps:$4 sm:$0xff]  }
 0x166   :  { %19491 = vst [vmem:[#allocation179_spill] sm:$0xff] %v11130_v28 }
 0x167   :  { %2151 = vmatpush2.bf16.msra.mxu0 %v11112_v24  ;;  %v11136_v24 = vld [vmem:[%s18475_s1 + $0x2d0] ss:$8 sps:$4 sm:$0xff]  }
 0x168   :  { %2192 = vmatpush2.bf16.msra.mxu1 %v11118_v11  ;;  %2152 = vmatprep.subr.bf16.mxu0 %v11124_v17  ;;  %19492 = vst [vmem:[#allocation180_spill] sm:$0xff] %v11136_v24  ;;  %v11142_v11 = vld [vmem:[%s18475_s1 + $0x3d0] ss:$8 sps:$4 sm:$0xff]   ;;  %v11148_v17 = vld [vmem:[%s18475_s1 + $0x2c4] ss:$8 sps:$4 sm:$0xff]  }
 0x169   :  { %2193 = vmatprep.subr.bf16.mxu1 %v11130_v28  ;;  %19493 = vst [vmem:[#allocation181_spill] sm:$0xff] %v11142_v11  ;;  %19494 = vst [vmem:[#allocation182_spill] sm:$0xff] %v11148_v17  ;;  %v11154_v28 = vld [vmem:[%s18475_s1 + $0x3c4] ss:$8 sps:$4 sm:$0xff]  }
 0x16a   :  { %19495 = vst [vmem:[#allocation183_spill] sm:$0xff] %v11154_v28 }
 0x16b   :  { %2153 = vmatpush2.bf16.msra.mxu0 %v11136_v24  ;;  %v11160_v24 = vld [vmem:[%s18475_s1 + $0x2c0] ss:$8 sps:$4 sm:$0xff]  }
 0x16c   :  { %2194 = vmatpush2.bf16.msra.mxu1 %v11142_v11  ;;  %2154 = vmatprep.subr.bf16.mxu0 %v11148_v17  ;;  %19496 = vst [vmem:[#allocation184_spill] sm:$0xff] %v11160_v24  ;;  %v11166_v11 = vld [vmem:[%s18475_s1 + $0x3c0] ss:$8 sps:$4 sm:$0xff]   ;;  %v11172_v17 = vld [vmem:[%s18475_s1 + $0x2b4] ss:$8 sps:$4 sm:$0xff]  }
 0x16d   :  { %2195 = vmatprep.subr.bf16.mxu1 %v11154_v28  ;;  %19497 = vst [vmem:[#allocation185_spill] sm:$0xff] %v11166_v11  ;;  %19498 = vst [vmem:[#allocation186_spill] sm:$0xff] %v11172_v17  ;;  %v11178_v28 = vld [vmem:[%s18475_s1 + $0x3b4] ss:$8 sps:$4 sm:$0xff]  }
 0x16e   :  { %19499 = vst [vmem:[#allocation187_spill] sm:$0xff] %v11178_v28 }
 0x16f   :  { %2155 = vmatpush2.bf16.msra.mxu0 %v11160_v24  ;;  %v11184_v24 = vld [vmem:[%s18475_s1 + $0x2b0] ss:$8 sps:$4 sm:$0xff]  }
 0x170   :  { %2196 = vmatpush2.bf16.msra.mxu1 %v11166_v11  ;;  %2156 = vmatprep.subr.bf16.mxu0 %v11172_v17  ;;  %19500 = vst [vmem:[#allocation188_spill] sm:$0xff] %v11184_v24  ;;  %v11190_v11 = vld [vmem:[%s18475_s1 + $0x3b0] ss:$8 sps:$4 sm:$0xff]   ;;  %v11196_v17 = vld [vmem:[%s18475_s1 + $0x2a4] ss:$8 sps:$4 sm:$0xff]  }
 0x171   :  { %2197 = vmatprep.subr.bf16.mxu1 %v11178_v28  ;;  %19501 = vst [vmem:[#allocation189_spill] sm:$0xff] %v11190_v11  ;;  %19502 = vst [vmem:[#allocation190_spill] sm:$0xff] %v11196_v17  ;;  %v11202_v28 = vld [vmem:[%s18475_s1 + $0x3a4] ss:$8 sps:$4 sm:$0xff]  }
 0x172   :  { %19503 = vst [vmem:[#allocation191_spill] sm:$0xff] %v11202_v28 }
 0x173   :  { %2157 = vmatpush2.bf16.msra.mxu0 %v11184_v24  ;;  %v11208_v24 = vld [vmem:[%s18475_s1 + $0x2a0] ss:$8 sps:$4 sm:$0xff]  }
 0x174   :  { %2198 = vmatpush2.bf16.msra.mxu1 %v11190_v11  ;;  %2158 = vmatprep.subr.bf16.mxu0 %v11196_v17  ;;  %19504 = vst [vmem:[#allocation192_spill] sm:$0xff] %v11208_v24  ;;  %v11214_v11 = vld [vmem:[%s18475_s1 + $0x3a0] ss:$8 sps:$4 sm:$0xff]   ;;  %v11220_v17 = vld [vmem:[%s18475_s1 + $0x294] ss:$8 sps:$4 sm:$0xff]  }
 0x175   :  { %2199 = vmatprep.subr.bf16.mxu1 %v11202_v28  ;;  %19505 = vst [vmem:[#allocation193_spill] sm:$0xff] %v11214_v11  ;;  %19506 = vst [vmem:[#allocation194_spill] sm:$0xff] %v11220_v17  ;;  %v11226_v28 = vld [vmem:[%s18475_s1 + $0x394] ss:$8 sps:$4 sm:$0xff]  }
 0x176   :  { %19507 = vst [vmem:[#allocation195_spill] sm:$0xff] %v11226_v28 }
 0x177   :  { %2159 = vmatpush2.bf16.msra.mxu0 %v11208_v24  ;;  %v11232_v24 = vld [vmem:[%s18475_s1 + $0x290] ss:$8 sps:$4 sm:$0xff]  }
 0x178   :  { %2200 = vmatpush2.bf16.msra.mxu1 %v11214_v11  ;;  %2160 = vmatprep.subr.bf16.mxu0 %v11220_v17  ;;  %19508 = vst [vmem:[#allocation196_spill] sm:$0xff] %v11232_v24  ;;  %v11238_v11 = vld [vmem:[%s18475_s1 + $0x390] ss:$8 sps:$4 sm:$0xff]   ;;  %v11244_v17 = vld [vmem:[%s18475_s1 + $0x284] ss:$8 sps:$4 sm:$0xff]  }
 0x179   :  { %2201 = vmatprep.subr.bf16.mxu1 %v11226_v28  ;;  %19509 = vst [vmem:[#allocation197_spill] sm:$0xff] %v11238_v11  ;;  %19510 = vst [vmem:[#allocation198_spill] sm:$0xff] %v11244_v17  ;;  %v11250_v28 = vld [vmem:[%s18475_s1 + $0x384] ss:$8 sps:$4 sm:$0xff]  }
 0x17a   :  { %19511 = vst [vmem:[#allocation199_spill] sm:$0xff] %v11250_v28 }
 0x17b   :  { %2161 = vmatpush2.bf16.msra.mxu0 %v11232_v24  ;;  %v6899_v24 = vld [vmem:[%s18476_s0 + $0x88] sm:$0xff] }
 0x17c   :  { %2202 = vmatpush2.bf16.msra.mxu1 %v11238_v11  ;;  %2162 = vmatprep.subr.bf16.mxu0 %v11244_v17  ;;  %v6901_v11 = vld [vmem:[%s18476_s0 + $0x98] sm:$0xff]  ;;  %v11268_v17 = vld [vmem:[%s18475_s1 + $0x380] ss:$8 sps:$4 sm:$0xff]  }
 0x17d   :  { %2203 = vmatprep.subr.bf16.mxu1 %v11250_v28  ;;  %19513 = vst [vmem:[#allocation201_spill] sm:$0xff] %v11268_v17  ;;  %v11274_v28 = vld [vmem:[%s18475_s1 + $0x474] ss:$8 sps:$4 sm:$0xff]   ;;  %v11285_v27 = vpack.c.bf16 %v6901_v11, %v6901_v11 }
 0x17e   :  { %19514 = vst [vmem:[#allocation202_spill] sm:$0xff] %v11274_v28 }
 0x17f   :  { %2163 = vmatpush2.bf16.msra.mxu0 %v11262_v21  ;;  %v11283_v21 = vpack.c.bf16 %v6899_v24, %v6899_v24  ;;  %v11299_v24 = vld [vmem:[%s18475_s1 + $0x570] ss:$8 sps:$4 sm:$0xff]  }
 0x180   :  { %2204 = vmatpush2.bf16.msra.mxu1 %v11268_v17  ;;  %2214 = vmatprep.subr.bf16.mxu0 %v11274_v28  ;;  %v11293_v28 = vld [vmem:[%s18475_s1 + $0x470] ss:$8 sps:$4 sm:$0xff]   ;;  %19517 = vst [vmem:[#allocation205_spill] sm:$0xff] %v11299_v24 }
 0x181   :  { %2255 = vmatprep.subr.bf16.mxu1 %v11280_v29  ;;  %19516 = vst [vmem:[#allocation204_spill] sm:$0xff] %v11293_v28 }
 0x182   :  { %v1908_v19 = vpop.f32.mrf.mxu0  ;;  %2165 = vmatmul.mubr.bf16.vlgmr.msra.gmra.mxu0 %v10465_v14 }
 0x183   :  { %v1949_v17 = vpop.f32.mrf.mxu1  ;;  %2206 = vmatmul.mubr.bf16.vlgmr.msra.gmra.mxu1 %v10467_v13  ;;  %v1909_v18 = vadd.f32 %v1908_v19, %v10910_v25  ;;  %2215 = vmatpush1.bf16.msra.mxu0 %v11293_v28  ;;  %v11305_v13 = vld [vmem:[%s18475_s1 + $0x464] ss:$8 sps:$4 sm:$0xff]  }
 0x184   :  { %2256 = vmatpush1.bf16.msra.mxu1 %v11299_v24  ;;  %v1910_v11 = vpop.f32.mrf.mxu0  ;;  %19518 = vst [vmem:[#allocation206_spill] sm:$0xff] %v11305_v13  ;;  %2216 = vmatprep.subr.bf16.mxu0 %v11305_v13  ;;  %v11311_v25 = vld [vmem:[%s18475_s1 + $0x564] ss:$8 sps:$4 sm:$0xff]   ;;  %v11324_v13 = vld [vmem:[%s18475_s1 + $0x460] ss:$8 sps:$4 sm:$0xff]  }
 0x185   :  { %v1951_v14 = vpop.f32.mrf.mxu1  ;;  %2257 = vmatprep.subr.bf16.mxu1 %v11311_v25  ;;  %v11314_v19 = vadd.f32 %v1949_v17, %v1909_v18  ;;  %v1911_v24 = vadd.f32 %v1910_v11, %v10915_v16  ;;  %2246 = vmatprep.mubr.bf16.mxu0 %v11283_v21  ;;  %v11330_v18 = vld [vmem:[%s18475_s1 + $0x560] ss:$8 sps:$4 sm:$0xff]  }
 0x186   :  { %2287 = vmatprep.mubr.bf16.mxu1 %v11285_v27  ;;  %v1912_v28 = vpop.f32.mrf.mxu0  ;;  %v19546_v11 = vld [vmem:[#allocation27_spill] sm:$0xff] }
 0x187   :  { %v1953_v29 = vpop.f32.mrf.mxu1  ;;  %v11319_v30 = vadd.f32 %v1951_v14, %v1911_v24  ;;  %2217 = vmatpush1.bf16.msra.mxu0 %v11324_v13  ;;  %v11342_v28 = vld [vmem:[%s18475_s1 + $0x554] ss:$8 sps:$4 sm:$0xff]   ;;  %v11348_v24 = vld [vmem:[%s18475_s1 + $0x450] ss:$8 sps:$4 sm:$0xff]  }
 0x188   :  { %2258 = vmatpush1.bf16.msra.mxu1 %v11330_v18  ;;  %v1913_v16 = vpop.f32.mrf.mxu0  ;;  %v11336_v29 = vld [vmem:[%s18475_s1 + $0x454] ss:$8 sps:$4 sm:$0xff]  }
 0x189   :  { %v1954_v17 = vpop.f32.mrf.mxu1  ;;  %2218 = vmatprep.subr.bf16.mxu0 %v11336_v29  ;;  %2259 = vmatprep.subr.bf16.mxu1 %v11342_v28  ;;  %v19547_v14 = vld [vmem:[#allocation28_spill] sm:$0xff]  ;;  %v19549_v16 = vld [vmem:[#allocation30_spill] sm:$0xff] }
 0x18a   :  { %v19550_v17 = vld [vmem:[#allocation31_spill] sm:$0xff] }
 0x18b   :  { %2219 = vmatpush1.bf16.msra.mxu0 %v11348_v24 }
 0x18c   :  { %2260 = vmatpush1.bf16.msra.mxu1 %v9727_v31  ;;  %2220 = vmatprep.subr.bf16.mxu0 %v9732_v32  ;;  %v19519_v31 = vld [vmem:[#allocation2_spill] sm:$0xff]  ;;  %v19520_v32 = vld [vmem:[#allocation3_spill] sm:$0xff] }
 0x18d   :  { %2261 = vmatprep.subr.bf16.mxu1 %v9737_v33  ;;  %v19521_v33 = vld [vmem:[#allocation4_spill] sm:$0xff] }
 0x18f   :  { %2221 = vmatpush1.bf16.msra.mxu0 %v9742_v34  ;;  %v19522_v34 = vld [vmem:[#allocation5_spill] sm:$0xff] }
 0x190   :  { %2262 = vmatpush1.bf16.msra.mxu1 %v9747_v35  ;;  %2222 = vmatprep.subr.bf16.mxu0 %v9753_v36  ;;  %v19523_v35 = vld [vmem:[#allocation6_spill] sm:$0xff] }
 0x191   :  { %2263 = vmatprep.subr.bf16.mxu1 %v9760_v37  ;;  %v6898_v36 = vld [vmem:[%s18476_s0 + $0x80] sm:$0xff]  ;;  %v6900_v37 = vld [vmem:[%s18476_s0 + $0x90] sm:$0xff] }
 0x193   :  { %2223 = vmatpush1.bf16.msra.mxu0 %v9765_v38  ;;  %v19524_v38 = vld [vmem:[#allocation7_spill] sm:$0xff] }
 0x194   :  { %2264 = vmatpush1.bf16.msra.mxu1 %v9772_v39  ;;  %2224 = vmatprep.subr.bf16.mxu0 %v9777_v40  ;;  %v19525_v39 = vld [vmem:[#allocation8_spill] sm:$0xff]  ;;  %v11408_v40 = vpack.c.bf16 %v6898_v36, %v6898_v36  ;;  %v19556_v36 = vld [vmem:[#allocation37_spill] sm:$0xff] }
 0x195   :  { %2265 = vmatprep.subr.bf16.mxu1 %v9784_v41  ;;  %v11410_v41 = vpack.c.bf16 %v6900_v37, %v6900_v37  ;;  %v19557_v37 = vld [vmem:[#allocation38_spill] sm:$0xff] }
 0x197   :  { %2225 = vmatpush1.bf16.msra.mxu0 %v9789_v42  ;;  %v6903_v42 = vld [vmem:[%s18476_s0 + $0xa8] sm:$0xff] }
 0x198   :  { %2266 = vmatpush1.bf16.msra.mxu1 %v9794_v43  ;;  %2226 = vmatprep.subr.bf16.mxu0 %v9801_v44  ;;  %v6905_v43 = vld [vmem:[%s18476_s0 + $0xb8] sm:$0xff] }
 0x199   :  { %2267 = vmatprep.subr.bf16.mxu1 %v9808_v45  ;;  %v19526_v44 = vld [vmem:[#allocation9_spill] sm:$0xff]  ;;  %v19527_v45 = vld [vmem:[#allocation10_spill] sm:$0xff] }
 0x19b   :  { %2227 = vmatpush1.bf16.msra.mxu0 %v9813_v46  ;;  %v19528_v46 = vld [vmem:[#allocation11_spill] sm:$0xff] }
 0x19c   :  { %2268 = vmatpush1.bf16.msra.mxu1 %v9820_v47  ;;  %2228 = vmatprep.subr.bf16.mxu0 %v9825_v48  ;;  %v19529_v47 = vld [vmem:[#allocation12_spill] sm:$0xff]  ;;  %v11422_v48 = vpack.c.bf16 %v6903_v42, %v6903_v42  ;;  %v19560_v42 = vld [vmem:[#allocation41_spill] sm:$0xff] }
 0x19d   :  { %2269 = vmatprep.subr.bf16.mxu1 %v9832_v49  ;;  %v11424_v49 = vpack.c.bf16 %v6905_v43, %v6905_v43  ;;  %v19561_v43 = vld [vmem:[#allocation42_spill] sm:$0xff] }
 0x19f   :  { %2229 = vmatpush1.bf16.msra.mxu0 %v9837_v50 }
 0x1a0   :  { %2270 = vmatpush1.bf16.msra.mxu1 %v9842_v51  ;;  %2230 = vmatprep.subr.bf16.mxu0 %v9849_v52 }
 0x1a1   :  { %2271 = vmatprep.subr.bf16.mxu1 %v9856_v53  ;;  %v19530_v53 = vld [vmem:[#allocation13_spill] sm:$0xff] }
 0x1a3   :  { %2231 = vmatpush2.bf16.msra.mxu0 %v9861_v54  ;;  %v19531_v54 = vld [vmem:[#allocation14_spill] sm:$0xff] }
 0x1a4   :  { %2272 = vmatpush2.bf16.msra.mxu1 %v9868_v55  ;;  %2232 = vmatprep.subr.bf16.mxu0 %v9873_v56 }
 0x1a5   :  { %2273 = vmatprep.subr.bf16.mxu1 %v9880_v57  ;;  %v19532_v57 = vld [vmem:[#allocation15_spill] sm:$0xff] }
 0x1a7   :  { %2233 = vmatpush2.bf16.msra.mxu0 %v9885_v58  ;;  %v19533_v58 = vld [vmem:[#allocation16_spill] sm:$0xff] }
 0x1a8   :  { %2274 = vmatpush2.bf16.msra.mxu1 %v9890_v59  ;;  %2234 = vmatprep.subr.bf16.mxu0 %v9897_v60 }
 0x1a9   :  { %2275 = vmatprep.subr.bf16.mxu1 %v9904_v61 }
 0x1ab   :  { %2235 = vmatpush2.bf16.msra.mxu0 %v9909_v62 }
 0x1ac   :  { %2276 = vmatpush2.bf16.msra.mxu1 %v9916_v63  ;;  %2236 = vmatprep.subr.bf16.mxu0 %v9921_v0  ;;  %v19536_v0 = vld [vmem:[#allocation17_spill] sm:$0xff] }
 0x1ad   :  { %2277 = vmatprep.subr.bf16.mxu1 %v9928_v1  ;;  %v19537_v1 = vld [vmem:[#allocation18_spill] sm:$0xff] }
 0x1af   :  { %2237 = vmatpush2.bf16.msra.mxu0 %v9933_v2 }
 0x1b0   :  { %2278 = vmatpush2.bf16.msra.mxu1 %v9938_v3  ;;  %2238 = vmatprep.subr.bf16.mxu0 %v9945_v4  ;;  %v19538_v4 = vld [vmem:[#allocation19_spill] sm:$0xff] }
 0x1b1   :  { %2279 = vmatprep.subr.bf16.mxu1 %v9952_v5  ;;  %v19539_v5 = vld [vmem:[#allocation20_spill] sm:$0xff] }
 0x1b3   :  { %2239 = vmatpush2.bf16.msra.mxu0 %v9959_v6  ;;  %v19540_v6 = vld [vmem:[#allocation21_spill] sm:$0xff] }
 0x1b4   :  { %2280 = vmatpush2.bf16.msra.mxu1 %v9964_v7  ;;  %2240 = vmatprep.subr.bf16.mxu0 %v9971_v8  ;;  %v19541_v7 = vld [vmem:[#allocation22_spill] sm:$0xff]  ;;  %v19542_v8 = vld [vmem:[#allocation23_spill] sm:$0xff] }
 0x1b5   :  { %2281 = vmatprep.subr.bf16.mxu1 %v9976_v9  ;;  %v19543_v9 = vld [vmem:[#allocation24_spill] sm:$0xff] }
 0x1b7   :  { %2241 = vmatpush2.bf16.msra.mxu0 %v9983_v10  ;;  %v19544_v10 = vld [vmem:[#allocation25_spill] sm:$0xff] }
 0x1b8   :  { %2282 = vmatpush2.bf16.msra.mxu1 %v19519_v31  ;;  %2242 = vmatprep.subr.bf16.mxu0 %v19520_v32  ;;  %v19551_v31 = vld [vmem:[#allocation32_spill] sm:$0xff]  ;;  %v19552_v32 = vld [vmem:[#allocation33_spill] sm:$0xff] }
 0x1b9   :  { %2283 = vmatprep.subr.bf16.mxu1 %v19521_v33  ;;  %v19553_v33 = vld [vmem:[#allocation34_spill] sm:$0xff] }
 0x1bb   :  { %2243 = vmatpush2.bf16.msra.mxu0 %v19522_v34  ;;  %v19554_v34 = vld [vmem:[#allocation35_spill] sm:$0xff] }
 0x1bc   :  { %2284 = vmatpush2.bf16.msra.mxu1 %v19523_v35  ;;  %2244 = vmatprep.subr.bf16.mxu0 %v19524_v38  ;;  %v19555_v35 = vld [vmem:[#allocation36_spill] sm:$0xff]  ;;  %v19558_v38 = vld [vmem:[#allocation39_spill] sm:$0xff] }
 0x1bd   :  { %2285 = vmatprep.subr.bf16.mxu1 %v19525_v39  ;;  %v19559_v39 = vld [vmem:[#allocation40_spill] sm:$0xff] }
 0x1bf   :  { %2245 = vmatpush2.bf16.msra.mxu0 %v19526_v44  ;;  %v19562_v44 = vld [vmem:[#allocation43_spill] sm:$0xff] }
 0x1c0   :  { %2286 = vmatpush2.bf16.msra.mxu1 %v19527_v45  ;;  %2296 = vmatprep.subr.bf16.mxu0 %v19528_v46  ;;  %v19563_v45 = vld [vmem:[#allocation44_spill] sm:$0xff]  ;;  %v19564_v46 = vld [vmem:[#allocation45_spill] sm:$0xff] }
 0x1c1   :  { %2337 = vmatprep.subr.bf16.mxu1 %v19529_v47  ;;  %v19565_v47 = vld [vmem:[#allocation46_spill] sm:$0xff] }
 0x1c2   :  { %v1990_v50 = vpop.f32.mrf.mxu0  ;;  %2247 = vmatmul.mubr.bf16.vlgmr.msra.gmra.mxu0 %v11408_v40 }
 0x1c3   :  { %v2031_v51 = vpop.f32.mrf.mxu1  ;;  %2288 = vmatmul.mubr.bf16.vlgmr.msra.gmra.mxu1 %v11410_v41  ;;  %v1991_v52 = vadd.f32 %v1990_v50, %v11314_v19  ;;  %2297 = vmatpush1.bf16.msra.mxu0 %v19530_v53  ;;  %v19548_v19 = vld [vmem:[#allocation29_spill] sm:$0xff]  ;;  %v19566_v50 = vld [vmem:[#allocation47_spill] sm:$0xff]  ;;  %v19569_v53 = vld [vmem:[#allocation50_spill] sm:$0xff] }
 0x1c4   :  { %2338 = vmatpush1.bf16.msra.mxu1 %v19531_v54  ;;  %v1992_v55 = vpop.f32.mrf.mxu0  ;;  %2298 = vmatprep.subr.bf16.mxu0 %v19532_v57  ;;  %v19570_v54 = vld [vmem:[#allocation51_spill] sm:$0xff]  ;;  %v19573_v57 = vld [vmem:[#allocation54_spill] sm:$0xff] }
 0x1c5   :  { %v2033_v56 = vpop.f32.mrf.mxu1  ;;  %2339 = vmatprep.subr.bf16.mxu1 %v19533_v58  ;;  %v11433_v59 = vadd.f32 %v2031_v51, %v1991_v52  ;;  %v1993_v60 = vadd.f32 %v1992_v55, %v11319_v30  ;;  %2328 = vmatprep.mubr.bf16.mxu0 %v11422_v48  ;;  %v19545_v30 = vld [vmem:[#allocation26_spill] sm:$0xff]  ;;  %v19567_v51 = vld [vmem:[#allocation48_spill] sm:$0xff]  ;;  %v19568_v52 = vld [vmem:[#allocation49_spill] sm:$0xff] }
 0x1c6   :  { %2369 = vmatprep.mubr.bf16.mxu1 %v11424_v49  ;;  %v1994_v61 = vpop.f32.mrf.mxu0  ;;  %v19571_v55 = vld [vmem:[#allocation52_spill] sm:$0xff]  ;;  %v19574_v58 = vld [vmem:[#allocation55_spill] sm:$0xff] }
 0x1c7   :  { %19534 = vst [vmem:[#allocation2_spill] sm:$0xff] %v11433_v59  ;;  %v2035_v62 = vpop.f32.mrf.mxu1  ;;  %v11438_v63 = vadd.f32 %v2033_v56, %v1993_v60  ;;  %2299 = vmatpush1.bf16.msra.mxu0 %v19536_v0  ;;  %v19572_v56 = vld [vmem:[#allocation53_spill] sm:$0xff]  ;;  %v19575_v60 = vld [vmem:[#allocation56_spill] sm:$0xff]  ;;  %v19578_v0 = vld [vmem:[#allocation59_spill] sm:$0xff] }
 0x1c8   :  { %2340 = vmatpush1.bf16.msra.mxu1 %v19537_v1  ;;  %v1995_v2 = vpop.f32.mrf.mxu0  ;;  %2300 = vmatprep.subr.bf16.mxu0 %v19538_v4  ;;  %v19576_v61 = vld [vmem:[#allocation57_spill] sm:$0xff]  ;;  %v19577_v62 = vld [vmem:[#allocation58_spill] sm:$0xff]  ;;  %v19579_v1 = vld [vmem:[#allocation60_spill] sm:$0xff] }
 0x1c9   :  { %19535 = vst [vmem:[#allocation3_spill] sm:$0xff] %v11438_v63  ;;  %v2036_v3 = vpop.f32.mrf.mxu1  ;;  %2341 = vmatprep.subr.bf16.mxu1 %v19539_v5  ;;  %v19580_v2 = vld [vmem:[#allocation61_spill] sm:$0xff]  ;;  %v19582_v4 = vld [vmem:[#allocation63_spill] sm:$0xff]  ;;  %v19583_v5 = vld [vmem:[#allocation64_spill] sm:$0xff] }
 0x1ca   :  { %v19581_v3 = vld [vmem:[#allocation62_spill] sm:$0xff]  ;;  %v6913_v59 = vld [vmem:[%s18476_s0 + $0xf8] sm:$0xff] }
 0x1cb   :  { %2301 = vmatpush1.bf16.msra.mxu0 %v19540_v6  ;;  %v19584_v6 = vld [vmem:[#allocation65_spill] sm:$0xff]  ;;  %v12012_v63 = vld [vmem:[%s18475_s1 + $0x480] ss:$8 sps:$4 sm:$0xff]  }
 0x1cc   :  { %2342 = vmatpush1.bf16.msra.mxu1 %v19541_v7  ;;  %2302 = vmatprep.subr.bf16.mxu0 %v19542_v8  ;;  %v19585_v7 = vld [vmem:[#allocation66_spill] sm:$0xff]  ;;  %v19586_v8 = vld [vmem:[#allocation67_spill] sm:$0xff]  ;;  %19730 = vst [vmem:[#allocation11_spill] sm:$0xff] %v12012_v63 }
 0x1cd   :  { %2343 = vmatprep.subr.bf16.mxu1 %v19543_v9  ;;  %v19587_v9 = vld [vmem:[#allocation68_spill] sm:$0xff] }
 0x1cf   :  { %2303 = vmatpush1.bf16.msra.mxu0 %v19544_v10  ;;  %v19588_v10 = vld [vmem:[#allocation69_spill] sm:$0xff] }
 0x1d0   :  { %2344 = vmatpush1.bf16.msra.mxu1 %v19545_v30  ;;  %2304 = vmatprep.subr.bf16.mxu0 %v19546_v11  ;;  %v19589_v30 = vld [vmem:[#allocation70_spill] sm:$0xff] }
 0x1d1   :  { %2345 = vmatprep.subr.bf16.mxu1 %v19547_v14  ;;  %v6902_v11 = vld [vmem:[%s18476_s0 + $0xa0] sm:$0xff]  ;;  %v6904_v14 = vld [vmem:[%s18476_s0 + $0xb0] sm:$0xff] }
 0x1d3   :  { %2305 = vmatpush1.bf16.msra.mxu0 %v19548_v19  ;;  %v19590_v19 = vld [vmem:[#allocation72_spill] sm:$0xff] }
 0x1d4   :  { %2346 = vmatpush1.bf16.msra.mxu1 %v19549_v16  ;;  %2306 = vmatprep.subr.bf16.mxu0 %v19550_v17  ;;  %v19591_v16 = vld [vmem:[#allocation73_spill] sm:$0xff]  ;;  %v11502_v17 = vpack.c.bf16 %v6902_v11, %v6902_v11  ;;  %v19623_v11 = vld [vmem:[#allocation107_spill] sm:$0xff] }
 0x1d5   :  { %2347 = vmatprep.subr.bf16.mxu1 %v19551_v31  ;;  %v11504_v31 = vpack.c.bf16 %v6904_v14, %v6904_v14  ;;  %v19624_v14 = vld [vmem:[#allocation108_spill] sm:$0xff] }
 0x1d7   :  { %2307 = vmatpush1.bf16.msra.mxu0 %v19552_v32  ;;  %v19592_v32 = vld [vmem:[#allocation74_spill] sm:$0xff] }
 0x1d8   :  { %2348 = vmatpush1.bf16.msra.mxu1 %v19553_v33  ;;  %2308 = vmatprep.subr.bf16.mxu0 %v19554_v34  ;;  %v19593_v33 = vld [vmem:[#allocation75_spill] sm:$0xff] }
 0x1d9   :  { %2349 = vmatprep.subr.bf16.mxu1 %v19555_v35  ;;  %v19594_v34 = vld [vmem:[#allocation79_spill] sm:$0xff]  ;;  %v19595_v35 = vld [vmem:[#allocation80_spill] sm:$0xff] }
 0x1db   :  { %2309 = vmatpush1.bf16.msra.mxu0 %v19556_v36 }
 0x1dc   :  { %2350 = vmatpush1.bf16.msra.mxu1 %v19557_v37  ;;  %2310 = vmatprep.subr.bf16.mxu0 %v19558_v38  ;;  %v19596_v38 = vld [vmem:[#allocation78_spill] sm:$0xff] }
 0x1dd   :  { %2351 = vmatprep.subr.bf16.mxu1 %v19559_v39 }
 0x1df   :  { %2311 = vmatpush1.bf16.msra.mxu0 %v19560_v42  ;;  %v19597_v42 = vld [vmem:[#allocation81_spill] sm:$0xff] }
 0x1e0   :  { %2352 = vmatpush1.bf16.msra.mxu1 %v19561_v43  ;;  %2312 = vmatprep.subr.bf16.mxu0 %v19562_v44  ;;  %v19598_v43 = vld [vmem:[#allocation82_spill] sm:$0xff] }
 0x1e1   :  { %2353 = vmatprep.subr.bf16.mxu1 %v19563_v45 }
 0x1e3   :  { %2313 = vmatpush2.bf16.msra.mxu0 %v19564_v46  ;;  %v19599_v46 = vld [vmem:[#allocation83_spill] sm:$0xff] }
 0x1e4   :  { %2354 = vmatpush2.bf16.msra.mxu1 %v19565_v47  ;;  %2314 = vmatprep.subr.bf16.mxu0 %v19566_v50 }
 0x1e5   :  { %2355 = vmatprep.subr.bf16.mxu1 %v19567_v51 }
 0x1e7   :  { %2315 = vmatpush2.bf16.msra.mxu0 %v19568_v52 }
 0x1e8   :  { %2356 = vmatpush2.bf16.msra.mxu1 %v19569_v53  ;;  %2316 = vmatprep.subr.bf16.mxu0 %v19570_v54 }
 0x1e9   :  { %2357 = vmatprep.subr.bf16.mxu1 %v19571_v55 }
 0x1eb   :  { %2317 = vmatpush2.bf16.msra.mxu0 %v19572_v56  ;;  %v19600_v56 = vld [vmem:[#allocation84_spill] sm:$0xff] }
 0x1ec   :  { %2358 = vmatpush2.bf16.msra.mxu1 %v19573_v57  ;;  %2318 = vmatprep.subr.bf16.mxu0 %v19574_v58  ;;  %v19602_v57 = vld [vmem:[#allocation86_spill] sm:$0xff]  ;;  %v19603_v58 = vld [vmem:[#allocation87_spill] sm:$0xff] }
 0x1ed   :  { %2359 = vmatprep.subr.bf16.mxu1 %v19575_v60  ;;  %v19606_v60 = vld [vmem:[#allocation90_spill] sm:$0xff] }
 0x1ef   :  { %2319 = vmatpush2.bf16.msra.mxu0 %v19576_v61  ;;  %v19607_v61 = vld [vmem:[#allocation91_spill] sm:$0xff] }
 0x1f0   :  { %2360 = vmatpush2.bf16.msra.mxu1 %v19577_v62  ;;  %2320 = vmatprep.subr.bf16.mxu0 %v19578_v0  ;;  %v19610_v62 = vld [vmem:[#allocation94_spill] sm:$0xff]  ;;  %v19611_v0 = vld [vmem:[#allocation95_spill] sm:$0xff] }
 0x1f1   :  { %2361 = vmatprep.subr.bf16.mxu1 %v19579_v1  ;;  %v19612_v1 = vld [vmem:[#allocation96_spill] sm:$0xff] }
 0x1f3   :  { %2321 = vmatpush2.bf16.msra.mxu0 %v19580_v2  ;;  %v19613_v2 = vld [vmem:[#allocation97_spill] sm:$0xff] }
 0x1f4   :  { %2362 = vmatpush2.bf16.msra.mxu1 %v19581_v3  ;;  %2322 = vmatprep.subr.bf16.mxu0 %v19582_v4  ;;  %v19614_v3 = vld [vmem:[#allocation98_spill] sm:$0xff]  ;;  %v19615_v4 = vld [vmem:[#allocation99_spill] sm:$0xff] }
 0x1f5   :  { %2363 = vmatprep.subr.bf16.mxu1 %v19583_v5  ;;  %v19616_v5 = vld [vmem:[#allocation100_spill] sm:$0xff] }
 0x1f7   :  { %2323 = vmatpush2.bf16.msra.mxu0 %v19584_v6  ;;  %v19617_v6 = vld [vmem:[#allocation101_spill] sm:$0xff] }
 0x1f8   :  { %2364 = vmatpush2.bf16.msra.mxu1 %v19585_v7  ;;  %2324 = vmatprep.subr.bf16.mxu0 %v19586_v8  ;;  %v19618_v7 = vld [vmem:[#allocation102_spill] sm:$0xff]  ;;  %v19619_v8 = vld [vmem:[#allocation103_spill] sm:$0xff] }
 0x1f9   :  { %2365 = vmatprep.subr.bf16.mxu1 %v19587_v9  ;;  %v19620_v9 = vld [vmem:[#allocation104_spill] sm:$0xff] }
 0x1fb   :  { %2325 = vmatpush2.bf16.msra.mxu0 %v19588_v10  ;;  %v19621_v10 = vld [vmem:[#allocation105_spill] sm:$0xff] }
 0x1fc   :  { %2366 = vmatpush2.bf16.msra.mxu1 %v19589_v30  ;;  %2326 = vmatprep.subr.bf16.mxu0 %v19590_v19  ;;  %v19622_v30 = vld [vmem:[#allocation106_spill] sm:$0xff]  ;;  %v19625_v19 = vld [vmem:[#allocation109_spill] sm:$0xff] }
 0x1fd   :  { %2367 = vmatprep.subr.bf16.mxu1 %v19591_v16  ;;  %v19626_v16 = vld [vmem:[#allocation110_spill] sm:$0xff] }
 0x1ff   :  { %2327 = vmatpush2.bf16.msra.mxu0 %v19592_v32  ;;  %v19627_v32 = vld [vmem:[#allocation111_spill] sm:$0xff] }
 0x200   :  { %2368 = vmatpush2.bf16.msra.mxu1 %v19593_v33  ;;  %2390 = vmatprep.subr.bf16.mxu0 %v19594_v34  ;;  %v19628_v33 = vld [vmem:[#allocation112_spill] sm:$0xff]  ;;  %v19629_v34 = vld [vmem:[#allocation113_spill] sm:$0xff] }
 0x201   :  { %2431 = vmatprep.subr.bf16.mxu1 %v19595_v35  ;;  %v19630_v35 = vld [vmem:[#allocation114_spill] sm:$0xff] }
 0x202   :  { %v2084_v36 = vpop.f32.mrf.mxu0  ;;  %2329 = vmatmul.mubr.bf16.vlgmr.msra.gmra.mxu0 %v11502_v17 }
 0x203   :  { %v2125_v37 = vpop.f32.mrf.mxu1  ;;  %2370 = vmatmul.mubr.bf16.vlgmr.msra.gmra.mxu1 %v11504_v31  ;;  %v2085_v39 = vadd.f32 %v2084_v36, %v19596_v38  ;;  %2391 = vmatpush1.bf16.msra.mxu0 %v19597_v42  ;;  %v19631_v36 = vld [vmem:[#allocation115_spill] sm:$0xff]  ;;  %v19634_v42 = vld [vmem:[#allocation118_spill] sm:$0xff] }
 0x204   :  { %2432 = vmatpush1.bf16.msra.mxu1 %v19598_v43  ;;  %v2086_v44 = vpop.f32.mrf.mxu0  ;;  %2392 = vmatprep.subr.bf16.mxu0 %v19599_v46  ;;  %v19635_v43 = vld [vmem:[#allocation119_spill] sm:$0xff]  ;;  %v19638_v46 = vld [vmem:[#allocation122_spill] sm:$0xff] }
 0x205   :  { %v2127_v45 = vpop.f32.mrf.mxu1  ;;  %2433 = vmatprep.subr.bf16.mxu1 %v10513_v23  ;;  %v11517_v47 = vadd.f32 %v2125_v37, %v2085_v39  ;;  %v2087_v50 = vadd.f32 %v2086_v44, %v10487_v15  ;;  %2422 = vmatprep.mubr.bf16.mxu0 %v11283_v21  ;;  %v19601_v23 = vld [vmem:[#allocation85_spill] sm:$0xff]  ;;  %v19604_v21 = vld [vmem:[#allocation88_spill] sm:$0xff] }
 0x206   :  { %2463 = vmatprep.mubr.bf16.mxu1 %v11285_v27  ;;  %v2088_v51 = vpop.f32.mrf.mxu0  ;;  %v19605_v27 = vld [vmem:[#allocation89_spill] sm:$0xff]  ;;  %v19632_v37 = vld [vmem:[#allocation116_spill] sm:$0xff] }
 0x207   :  { %v2129_v52 = vpop.f32.mrf.mxu1  ;;  %v11522_v53 = vadd.f32 %v2127_v45, %v2087_v50  ;;  %2393 = vmatpush1.bf16.msra.mxu0 %v10526_v22  ;;  %v19608_v22 = vld [vmem:[#allocation92_spill] sm:$0xff]  ;;  %v19633_v39 = vld [vmem:[#allocation117_spill] sm:$0xff]  ;;  %v19639_v50 = vld [vmem:[#allocation123_spill] sm:$0xff] }
 0x208   :  { %2434 = vmatpush1.bf16.msra.mxu1 %v10532_v20  ;;  %v2089_v54 = vpop.f32.mrf.mxu0  ;;  %2394 = vmatprep.subr.bf16.mxu0 %v19600_v56  ;;  %v19609_v20 = vld [vmem:[#allocation93_spill] sm:$0xff]  ;;  %v19636_v44 = vld [vmem:[#allocation120_spill] sm:$0xff] }
 0x209   :  { %v2130_v55 = vpop.f32.mrf.mxu1  ;;  %2435 = vmatprep.subr.bf16.mxu1 %v19601_v23  ;;  %v19637_v45 = vld [vmem:[#allocation121_spill] sm:$0xff]  ;;  %v19640_v51 = vld [vmem:[#allocation124_spill] sm:$0xff]  ;;  %v19642_v54 = vld [vmem:[#allocation126_spill] sm:$0xff] }
 0x20a   :  { %v19641_v52 = vld [vmem:[#allocation125_spill] sm:$0xff]  ;;  %v19643_v55 = vld [vmem:[#allocation127_spill] sm:$0xff]  ;;  %v19644_v56 = vld [vmem:[#allocation128_spill] sm:$0xff] }
 0x20b   :  { %2395 = vmatpush1.bf16.msra.mxu0 %v19602_v57  ;;  %v19645_v23 = vld [vmem:[#allocation129_spill] sm:$0xff]  ;;  %v19646_v57 = vld [vmem:[#allocation130_spill] sm:$0xff] }
 0x20c   :  { %2436 = vmatpush1.bf16.msra.mxu1 %v19603_v58  ;;  %2396 = vmatprep.subr.bf16.mxu0 %v19604_v21  ;;  %v19647_v58 = vld [vmem:[#allocation131_spill] sm:$0xff]  ;;  %v19648_v21 = vld [vmem:[#allocation132_spill] sm:$0xff] }
 0x20d   :  { %2437 = vmatprep.subr.bf16.mxu1 %v19605_v27  ;;  %v19649_v27 = vld [vmem:[#allocation133_spill] sm:$0xff] }
 0x20f   :  { %2397 = vmatpush1.bf16.msra.mxu0 %v19606_v60  ;;  %v19650_v60 = vld [vmem:[#allocation134_spill] sm:$0xff] }
 0x210   :  { %2438 = vmatpush1.bf16.msra.mxu1 %v19607_v61  ;;  %2398 = vmatprep.subr.bf16.mxu0 %v19608_v22  ;;  %v19651_v61 = vld [vmem:[#allocation135_spill] sm:$0xff]  ;;  %v19652_v22 = vld [vmem:[#allocation136_spill] sm:$0xff] }
 0x211   :  { %2439 = vmatprep.subr.bf16.mxu1 %v19609_v20  ;;  %v19653_v20 = vld [vmem:[#allocation137_spill] sm:$0xff] }
 0x213   :  { %2399 = vmatpush1.bf16.msra.mxu0 %v19610_v62  ;;  %v19654_v62 = vld [vmem:[#allocation138_spill] sm:$0xff] }
 0x214   :  { %2440 = vmatpush1.bf16.msra.mxu1 %v19611_v0  ;;  %2400 = vmatprep.subr.bf16.mxu0 %v19612_v1  ;;  %v19655_v0 = vld [vmem:[#allocation139_spill] sm:$0xff]  ;;  %v19656_v1 = vld [vmem:[#allocation140_spill] sm:$0xff] }
 0x215   :  { %2441 = vmatprep.subr.bf16.mxu1 %v19613_v2  ;;  %v19657_v2 = vld [vmem:[#allocation141_spill] sm:$0xff] }
 0x217   :  { %2401 = vmatpush1.bf16.msra.mxu0 %v19614_v3 }
 0x218   :  { %2442 = vmatpush1.bf16.msra.mxu1 %v19615_v4  ;;  %2402 = vmatprep.subr.bf16.mxu0 %v19616_v5 }
 0x219   :  { %2443 = vmatprep.subr.bf16.mxu1 %v19617_v6  ;;  %v19658_v6 = vld [vmem:[#allocation142_spill] sm:$0xff] }
 0x21b   :  { %2403 = vmatpush1.bf16.msra.mxu0 %v19618_v7  ;;  %v19659_v7 = vld [vmem:[#allocation143_spill] sm:$0xff] }
 0x21c   :  { %2444 = vmatpush1.bf16.msra.mxu1 %v19619_v8  ;;  %2404 = vmatprep.subr.bf16.mxu0 %v19620_v9 }
 0x21d   :  { %2445 = vmatprep.subr.bf16.mxu1 %v19621_v10  ;;  %v19660_v10 = vld [vmem:[#allocation144_spill] sm:$0xff] }
 0x21f   :  { %2405 = vmatpush1.bf16.msra.mxu0 %v19622_v30 }
 0x220   :  { %2446 = vmatpush1.bf16.msra.mxu1 %v19623_v11  ;;  %2406 = vmatprep.subr.bf16.mxu0 %v19624_v14  ;;  %v19661_v14 = vld [vmem:[#allocation145_spill] sm:$0xff] }
 0x221   :  { %2447 = vmatprep.subr.bf16.mxu1 %v19625_v19 }
 0x223   :  { %2407 = vmatpush2.bf16.msra.mxu0 %v19626_v16 }
 0x224   :  { %2448 = vmatpush2.bf16.msra.mxu1 %v19627_v32  ;;  %2408 = vmatprep.subr.bf16.mxu0 %v19628_v33  ;;  %v19662_v32 = vld [vmem:[#allocation146_spill] sm:$0xff]  ;;  %v19664_v33 = vld [vmem:[#allocation148_spill] sm:$0xff] }
 0x225   :  { %2449 = vmatprep.subr.bf16.mxu1 %v19629_v34  ;;  %v19668_v34 = vld [vmem:[#allocation152_spill] sm:$0xff] }
 0x227   :  { %2409 = vmatpush2.bf16.msra.mxu0 %v19630_v35  ;;  %v19669_v35 = vld [vmem:[#allocation153_spill] sm:$0xff] }
 0x228   :  { %2450 = vmatpush2.bf16.msra.mxu1 %v19631_v36  ;;  %2410 = vmatprep.subr.bf16.mxu0 %v19632_v37  ;;  %v19671_v36 = vld [vmem:[#allocation155_spill] sm:$0xff]  ;;  %v19672_v37 = vld [vmem:[#allocation156_spill] sm:$0xff] }
 0x229   :  { %2451 = vmatprep.subr.bf16.mxu1 %v19633_v39  ;;  %v19673_v39 = vld [vmem:[#allocation157_spill] sm:$0xff] }
 0x22b   :  { %2411 = vmatpush2.bf16.msra.mxu0 %v19634_v42  ;;  %v19674_v42 = vld [vmem:[#allocation158_spill] sm:$0xff] }
 0x22c   :  { %2452 = vmatpush2.bf16.msra.mxu1 %v19635_v43  ;;  %2412 = vmatprep.subr.bf16.mxu0 %v19636_v44  ;;  %v19675_v43 = vld [vmem:[#allocation159_spill] sm:$0xff]  ;;  %v19676_v44 = vld [vmem:[#allocation160_spill] sm:$0xff] }
 0x22d   :  { %2453 = vmatprep.subr.bf16.mxu1 %v19637_v45  ;;  %v19677_v45 = vld [vmem:[#allocation161_spill] sm:$0xff] }
 0x22f   :  { %2413 = vmatpush2.bf16.msra.mxu0 %v19638_v46  ;;  %v19678_v46 = vld [vmem:[#allocation162_spill] sm:$0xff] }
 0x230   :  { %2454 = vmatpush2.bf16.msra.mxu1 %v19639_v50  ;;  %2414 = vmatprep.subr.bf16.mxu0 %v19640_v51  ;;  %v19679_v50 = vld [vmem:[#allocation163_spill] sm:$0xff]  ;;  %v19680_v51 = vld [vmem:[#allocation164_spill] sm:$0xff] }
 0x231   :  { %2455 = vmatprep.subr.bf16.mxu1 %v19641_v52  ;;  %v19681_v52 = vld [vmem:[#allocation165_spill] sm:$0xff] }
 0x233   :  { %2415 = vmatpush2.bf16.msra.mxu0 %v19642_v54  ;;  %v19682_v54 = vld [vmem:[#allocation166_spill] sm:$0xff] }
 0x234   :  { %2456 = vmatpush2.bf16.msra.mxu1 %v19643_v55  ;;  %2416 = vmatprep.subr.bf16.mxu0 %v19644_v56  ;;  %v19683_v55 = vld [vmem:[#allocation167_spill] sm:$0xff]  ;;  %v19684_v56 = vld [vmem:[#allocation168_spill] sm:$0xff] }
 0x235   :  { %2457 = vmatprep.subr.bf16.mxu1 %v19645_v23  ;;  %v19685_v23 = vld [vmem:[#allocation169_spill] sm:$0xff] }
 0x237   :  { %2417 = vmatpush2.bf16.msra.mxu0 %v19646_v57  ;;  %v19686_v57 = vld [vmem:[#allocation170_spill] sm:$0xff] }
 0x238   :  { %2458 = vmatpush2.bf16.msra.mxu1 %v19647_v58  ;;  %2418 = vmatprep.subr.bf16.mxu0 %v19648_v21  ;;  %v19687_v58 = vld [vmem:[#allocation171_spill] sm:$0xff]  ;;  %v19688_v21 = vld [vmem:[#allocation172_spill] sm:$0xff] }
 0x239   :  { %2459 = vmatprep.subr.bf16.mxu1 %v19649_v27  ;;  %v19689_v27 = vld [vmem:[#allocation173_spill] sm:$0xff] }
 0x23b   :  { %2419 = vmatpush2.bf16.msra.mxu0 %v19650_v60  ;;  %v19690_v60 = vld [vmem:[#allocation174_spill] sm:$0xff] }
 0x23c   :  { %2460 = vmatpush2.bf16.msra.mxu1 %v19651_v61  ;;  %2420 = vmatprep.subr.bf16.mxu0 %v19652_v22  ;;  %v19691_v61 = vld [vmem:[#allocation175_spill] sm:$0xff]  ;;  %v19692_v22 = vld [vmem:[#allocation176_spill] sm:$0xff] }
 0x23d   :  { %2461 = vmatprep.subr.bf16.mxu1 %v19653_v20  ;;  %v19693_v20 = vld [vmem:[#allocation177_spill] sm:$0xff] }
 0x23f   :  { %2421 = vmatpush2.bf16.msra.mxu0 %v19654_v62  ;;  %v19694_v62 = vld [vmem:[#allocation178_spill] sm:$0xff] }
 0x240   :  { %2462 = vmatpush2.bf16.msra.mxu1 %v19655_v0  ;;  %2472 = vmatprep.subr.bf16.mxu0 %v19656_v1  ;;  %v19695_v0 = vld [vmem:[#allocation179_spill] sm:$0xff]  ;;  %v19696_v1 = vld [vmem:[#allocation180_spill] sm:$0xff] }
 0x241   :  { %2513 = vmatprep.subr.bf16.mxu1 %v19657_v2  ;;  %v19697_v2 = vld [vmem:[#allocation181_spill] sm:$0xff] }
 0x242   :  { %v2166_v3 = vpop.f32.mrf.mxu0  ;;  %2423 = vmatmul.mubr.bf16.vlgmr.msra.gmra.mxu0 %v11408_v40 }
 0x243   :  { %v2207_v4 = vpop.f32.mrf.mxu1  ;;  %2464 = vmatmul.mubr.bf16.vlgmr.msra.gmra.mxu1 %v11410_v41  ;;  %v2167_v5 = vadd.f32 %v2166_v3, %v11517_v47  ;;  %2473 = vmatpush1.bf16.msra.mxu0 %v19658_v6  ;;  %v19698_v3 = vld [vmem:[#allocation182_spill] sm:$0xff]  ;;  %v19701_v6 = vld [vmem:[#allocation185_spill] sm:$0xff] }
 0x244   :  { %2514 = vmatpush1.bf16.msra.mxu1 %v19659_v7  ;;  %v2168_v8 = vpop.f32.mrf.mxu0  ;;  %2474 = vmatprep.subr.bf16.mxu0 %v19660_v10  ;;  %v19702_v7 = vld [vmem:[#allocation186_spill] sm:$0xff]  ;;  %v19705_v10 = vld [vmem:[#allocation189_spill] sm:$0xff] }
 0x245   :  { %v2209_v9 = vpop.f32.mrf.mxu1  ;;  %2515 = vmatprep.subr.bf16.mxu1 %v10907_v26  ;;  %v11591_v30 = vadd.f32 %v2207_v4, %v2167_v5  ;;  %v2169_v11 = vadd.f32 %v2168_v8, %v11522_v53  ;;  %2504 = vmatprep.mubr.bf16.mxu0 %v11422_v48  ;;  %v19663_v26 = vld [vmem:[#allocation147_spill] sm:$0xff]  ;;  %v19665_v53 = vld [vmem:[#allocation149_spill] sm:$0xff]  ;;  %v19666_v48 = vld [vmem:[#allocation150_spill] sm:$0xff] }
 0x246   :  { %2545 = vmatprep.mubr.bf16.mxu1 %v11424_v49  ;;  %v2170_v40 = vpop.f32.mrf.mxu0  ;;  %v19667_v49 = vld [vmem:[#allocation151_spill] sm:$0xff]  ;;  %v19700_v5 = vld [vmem:[#allocation184_spill] sm:$0xff] }
 0x247   :  { %v2211_v41 = vpop.f32.mrf.mxu1  ;;  %v11596_v47 = vadd.f32 %v2209_v9, %v2169_v11  ;;  %2475 = vmatpush1.bf16.msra.mxu0 %v10920_v12  ;;  %v19670_v12 = vld [vmem:[#allocation154_spill] sm:$0xff]  ;;  %v19699_v4 = vld [vmem:[#allocation183_spill] sm:$0xff]  ;;  %v19704_v9 = vld [vmem:[#allocation188_spill] sm:$0xff] }
 0x248   :  { %2516 = vmatpush1.bf16.msra.mxu1 %v19661_v14  ;;  %v2171_v19 = vpop.f32.mrf.mxu0  ;;  %2476 = vmatprep.subr.bf16.mxu0 %v19662_v32  ;;  %v19703_v8 = vld [vmem:[#allocation187_spill] sm:$0xff]  ;;  %v19706_v11 = vld [vmem:[#allocation190_spill] sm:$0xff]  ;;  %v19708_v41 = vld [vmem:[#allocation192_spill] sm:$0xff] }
 0x249   :  { %v2212_v16 = vpop.f32.mrf.mxu1  ;;  %2517 = vmatprep.subr.bf16.mxu1 %v19663_v26  ;;  %v19707_v40 = vld [vmem:[#allocation191_spill] sm:$0xff]  ;;  %v19709_v14 = vld [vmem:[#allocation193_spill] sm:$0xff]  ;;  %v19710_v19 = vld [vmem:[#allocation194_spill] sm:$0xff] }
 0x24a   :  { %v19711_v16 = vld [vmem:[#allocation195_spill] sm:$0xff]  ;;  %v19712_v32 = vld [vmem:[#allocation196_spill] sm:$0xff]  ;;  %v19713_v26 = vld [vmem:[#allocation197_spill] sm:$0xff] }
 0x24b   :  { %2477 = vmatpush1.bf16.msra.mxu0 %v19664_v33  ;;  %v19714_v33 = vld [vmem:[#allocation198_spill] sm:$0xff] }
 0x24c   :  { %2518 = vmatpush1.bf16.msra.mxu1 %v19665_v53  ;;  %2478 = vmatprep.subr.bf16.mxu0 %v19666_v48  ;;  %v19715_v53 = vld [vmem:[#allocation199_spill] sm:$0xff] }
 0x24d   :  { %2519 = vmatprep.subr.bf16.mxu1 %v19667_v49  ;;  %v6907_v48 = vld [vmem:[%s18476_s0 + $0xc8] sm:$0xff]  ;;  %v6909_v49 = vld [vmem:[%s18476_s0 + $0xd8] sm:$0xff] }
 0x24f   :  { %2479 = vmatpush1.bf16.msra.mxu0 %v19668_v34  ;;  %v19716_v34 = vld [vmem:[#allocation200_spill] sm:$0xff] }
 0x250   :  { %2520 = vmatpush1.bf16.msra.mxu1 %v19669_v35  ;;  %2480 = vmatprep.subr.bf16.mxu0 %v19670_v12  ;;  %v19717_v35 = vld [vmem:[#allocation201_spill] sm:$0xff]  ;;  %v19718_v12 = vld [vmem:[#allocation202_spill] sm:$0xff] }
 0x251   :  { %2521 = vmatprep.subr.bf16.mxu1 %v19671_v36  ;;  %v19719_v36 = vld [vmem:[#allocation203_spill] sm:$0xff] }
 0x253   :  { %2481 = vmatpush1.bf16.msra.mxu0 %v19672_v37  ;;  %v11664_v37 = vpack.c.bf16 %v6907_v48, %v6907_v48  ;;  %v11912_v48 = vld [vmem:[%s18475_s1 + $0x4b4] ss:$8 sps:$4 sm:$0xff]  }
 0x254   :  { %2522 = vmatpush1.bf16.msra.mxu1 %v19673_v39  ;;  %2482 = vmatprep.subr.bf16.mxu0 %v19674_v42  ;;  %v11666_v39 = vpack.c.bf16 %v6909_v49, %v6909_v49  ;;  %v11918_v49 = vld [vmem:[%s18475_s1 + $0x5b4] ss:$8 sps:$4 sm:$0xff]  }
 0x255   :  { %2523 = vmatprep.subr.bf16.mxu1 %v19675_v43 }
 0x257   :  { %2483 = vmatpush1.bf16.msra.mxu0 %v19676_v44 }
 0x258   :  { %2524 = vmatpush1.bf16.msra.mxu1 %v19677_v45  ;;  %2484 = vmatprep.subr.bf16.mxu0 %v19678_v46  ;;  %v19720_v45 = vld [vmem:[#allocation204_spill] sm:$0xff]  ;;  %v19721_v46 = vld [vmem:[#allocation205_spill] sm:$0xff] }
 0x259   :  { %2525 = vmatprep.subr.bf16.mxu1 %v19679_v50 }
 0x25b   :  { %2485 = vmatpush1.bf16.msra.mxu0 %v19680_v51 }
 0x25c   :  { %2526 = vmatpush1.bf16.msra.mxu1 %v19681_v52  ;;  %2486 = vmatprep.subr.bf16.mxu0 %v19682_v54  ;;  %v19722_v52 = vld [vmem:[#allocation206_spill] sm:$0xff] }
 0x25d   :  { %2527 = vmatprep.subr.bf16.mxu1 %v19683_v55 }
 0x25f   :  { %2487 = vmatpush1.bf16.msra.mxu0 %v19684_v56 }
 0x260   :  { %2528 = vmatpush1.bf16.msra.mxu1 %v19685_v23  ;;  %2488 = vmatprep.subr.bf16.mxu0 %v19686_v57  ;;  %v11732_v57 = vld [vmem:[%s18475_s1 + $0x430] ss:$8 sps:$4 sm:$0xff]  }
 0x261   :  { %2529 = vmatprep.subr.bf16.mxu1 %v19687_v58  ;;  %v11738_v58 = vld [vmem:[%s18475_s1 + $0x530] ss:$8 sps:$4 sm:$0xff]  }
 0x263   :  { %2489 = vmatpush2.bf16.msra.mxu0 %v19688_v21  ;;  %v11744_v21 = vld [vmem:[%s18475_s1 + $0x424] ss:$8 sps:$4 sm:$0xff]  }
 0x264   :  { %2530 = vmatpush2.bf16.msra.mxu1 %v19689_v27  ;;  %2490 = vmatprep.subr.bf16.mxu0 %v19690_v60  ;;  %v11750_v27 = vld [vmem:[%s18475_s1 + $0x524] ss:$8 sps:$4 sm:$0xff]   ;;  %v11756_v60 = vld [vmem:[%s18475_s1 + $0x420] ss:$8 sps:$4 sm:$0xff]  }
 0x265   :  { %2531 = vmatprep.subr.bf16.mxu1 %v19691_v61  ;;  %v11762_v61 = vld [vmem:[%s18475_s1 + $0x520] ss:$8 sps:$4 sm:$0xff]  }
 0x267   :  { %2491 = vmatpush2.bf16.msra.mxu0 %v19692_v22  ;;  %v11768_v22 = vld [vmem:[%s18475_s1 + $0x414] ss:$8 sps:$4 sm:$0xff]  }
 0x268   :  { %2532 = vmatpush2.bf16.msra.mxu1 %v19693_v20  ;;  %2492 = vmatprep.subr.bf16.mxu0 %v19694_v62  ;;  %v11774_v20 = vld [vmem:[%s18475_s1 + $0x514] ss:$8 sps:$4 sm:$0xff]   ;;  %v11780_v62 = vld [vmem:[%s18475_s1 + $0x410] ss:$8 sps:$4 sm:$0xff]  }
 0x269   :  { %2533 = vmatprep.subr.bf16.mxu1 %v19695_v0  ;;  %v11786_v0 = vld [vmem:[%s18475_s1 + $0x510] ss:$8 sps:$4 sm:$0xff]  }
 0x26b   :  { %2493 = vmatpush2.bf16.msra.mxu0 %v19696_v1  ;;  %v11792_v1 = vld [vmem:[%s18475_s1 + $0x404] ss:$8 sps:$4 sm:$0xff]  }
 0x26c   :  { %2534 = vmatpush2.bf16.msra.mxu1 %v19697_v2  ;;  %2494 = vmatprep.subr.bf16.mxu0 %v19698_v3  ;;  %v11798_v2 = vld [vmem:[%s18475_s1 + $0x504] ss:$8 sps:$4 sm:$0xff]   ;;  %v11804_v3 = vld [vmem:[%s18475_s1 + $0x400] ss:$8 sps:$4 sm:$0xff]  }
 0x26d   :  { %2535 = vmatprep.subr.bf16.mxu1 %v19699_v4  ;;  %v11810_v4 = vld [vmem:[%s18475_s1 + $0x500] ss:$8 sps:$4 sm:$0xff]  }
 0x26f   :  { %2495 = vmatpush2.bf16.msra.mxu0 %v19700_v5  ;;  %v11816_v5 = vld [vmem:[%s18475_s1 + $0x4f4] ss:$8 sps:$4 sm:$0xff]  }
 0x270   :  { %2536 = vmatpush2.bf16.msra.mxu1 %v19701_v6  ;;  %2496 = vmatprep.subr.bf16.mxu0 %v19702_v7  ;;  %v11822_v6 = vld [vmem:[%s18475_s1 + $0x5f4] ss:$8 sps:$4 sm:$0xff]   ;;  %v11828_v7 = vld [vmem:[%s18475_s1 + $0x4f0] ss:$8 sps:$4 sm:$0xff]  }
 0x271   :  { %2537 = vmatprep.subr.bf16.mxu1 %v19703_v8  ;;  %v11834_v8 = vld [vmem:[%s18475_s1 + $0x5f0] ss:$8 sps:$4 sm:$0xff]  }
 0x273   :  { %2497 = vmatpush2.bf16.msra.mxu0 %v19704_v9  ;;  %v11840_v9 = vld [vmem:[%s18475_s1 + $0x4e4] ss:$8 sps:$4 sm:$0xff]  }
 0x274   :  { %2538 = vmatpush2.bf16.msra.mxu1 %v19705_v10  ;;  %2498 = vmatprep.subr.bf16.mxu0 %v19706_v11  ;;  %v11846_v10 = vld [vmem:[%s18475_s1 + $0x5e4] ss:$8 sps:$4 sm:$0xff]   ;;  %v11852_v11 = vld [vmem:[%s18475_s1 + $0x4e0] ss:$8 sps:$4 sm:$0xff]  }
 0x275   :  { %2539 = vmatprep.subr.bf16.mxu1 %v19707_v40  ;;  %v11858_v40 = vld [vmem:[%s18475_s1 + $0x5e0] ss:$8 sps:$4 sm:$0xff]  }
 0x277   :  { %2499 = vmatpush2.bf16.msra.mxu0 %v19708_v41  ;;  %v11864_v41 = vld [vmem:[%s18475_s1 + $0x4d4] ss:$8 sps:$4 sm:$0xff]  }
 0x278   :  { %2540 = vmatpush2.bf16.msra.mxu1 %v19709_v14  ;;  %2500 = vmatprep.subr.bf16.mxu0 %v19710_v19  ;;  %v11870_v14 = vld [vmem:[%s18475_s1 + $0x5d4] ss:$8 sps:$4 sm:$0xff]   ;;  %v11876_v19 = vld [vmem:[%s18475_s1 + $0x4d0] ss:$8 sps:$4 sm:$0xff]  }
 0x279   :  { %2541 = vmatprep.subr.bf16.mxu1 %v19711_v16  ;;  %v11882_v16 = vld [vmem:[%s18475_s1 + $0x5d0] ss:$8 sps:$4 sm:$0xff]  }
 0x27b   :  { %2501 = vmatpush2.bf16.msra.mxu0 %v19712_v32  ;;  %v11888_v32 = vld [vmem:[%s18475_s1 + $0x4c4] ss:$8 sps:$4 sm:$0xff]  }
 0x27c   :  { %2542 = vmatpush2.bf16.msra.mxu1 %v19713_v26  ;;  %2502 = vmatprep.subr.bf16.mxu0 %v19714_v33  ;;  %v11894_v26 = vld [vmem:[%s18475_s1 + $0x5c4] ss:$8 sps:$4 sm:$0xff]   ;;  %v11900_v33 = vld [vmem:[%s18475_s1 + $0x4c0] ss:$8 sps:$4 sm:$0xff]  }
 0x27d   :  { %2543 = vmatprep.subr.bf16.mxu1 %v19715_v53  ;;  %v11906_v53 = vld [vmem:[%s18475_s1 + $0x5c0] ss:$8 sps:$4 sm:$0xff]  }
 0x27f   :  { %2503 = vmatpush2.bf16.msra.mxu0 %v19716_v34  ;;  %v11924_v34 = vld [vmem:[%s18475_s1 + $0x4b0] ss:$8 sps:$4 sm:$0xff]  }
 0x280   :  { %2544 = vmatpush2.bf16.msra.mxu1 %v19717_v35  ;;  %2554 = vmatprep.subr.bf16.mxu0 %v19718_v12  ;;  %v11930_v35 = vld [vmem:[%s18475_s1 + $0x5b0] ss:$8 sps:$4 sm:$0xff]   ;;  %v11936_v12 = vld [vmem:[%s18475_s1 + $0x4a4] ss:$8 sps:$4 sm:$0xff]  }
 0x281   :  { %2595 = vmatprep.subr.bf16.mxu1 %v19719_v36  ;;  %v11942_v36 = vld [vmem:[%s18475_s1 + $0x5a4] ss:$8 sps:$4 sm:$0xff]  }
 0x282   :  { %v2248_v42 = vpop.f32.mrf.mxu0  ;;  %2505 = vmatmul.mubr.bf16.vlgmr.msra.gmra.mxu0 %v11502_v17 }
 0x283   :  { %v2289_v43 = vpop.f32.mrf.mxu1  ;;  %2546 = vmatmul.mubr.bf16.vlgmr.msra.gmra.mxu1 %v11504_v31  ;;  %v2249_v44 = vadd.f32 %v2248_v42, %v11591_v30  ;;  %2555 = vmatpush1.bf16.msra.mxu0 %v19720_v45  ;;  %v11948_v42 = vld [vmem:[%s18475_s1 + $0x4a0] ss:$8 sps:$4 sm:$0xff]   ;;  %v11966_v45 = vld [vmem:[%s18475_s1 + $0x594] ss:$8 sps:$4 sm:$0xff]  }
 0x284   :  { %2596 = vmatpush1.bf16.msra.mxu1 %v19721_v46  ;;  %v2250_v50 = vpop.f32.mrf.mxu0  ;;  %2556 = vmatprep.subr.bf16.mxu0 %v19722_v52  ;;  %19725 = vst [vmem:[#allocation6_spill] sm:$0xff] %v11966_v45  ;;  %v11972_v46 = vld [vmem:[%s18475_s1 + $0x490] ss:$8 sps:$4 sm:$0xff]  }
 0x285   :  { %v2291_v51 = vpop.f32.mrf.mxu1  ;;  %2597 = vmatprep.subr.bf16.mxu1 %v11311_v25  ;;  %v11675_v54 = vadd.f32 %v2289_v43, %v2249_v44  ;;  %v2251_v55 = vadd.f32 %v2250_v50, %v11596_v47  ;;  %2586 = vmatprep.mubr.bf16.mxu0 %v11664_v37  ;;  %v11690_v25 = vld [vmem:[%s18475_s1 + $0x550] ss:$8 sps:$4 sm:$0xff]   ;;  %v11726_v47 = vld [vmem:[%s18475_s1 + $0x534] ss:$8 sps:$4 sm:$0xff]   ;;  %v11954_v43 = vld [vmem:[%s18475_s1 + $0x5a0] ss:$8 sps:$4 sm:$0xff]  }
 0x286   :  { %2627 = vmatprep.mubr.bf16.mxu1 %v11666_v39  ;;  %v2252_v17 = vpop.f32.mrf.mxu0  ;;  %19723 = vst [vmem:[#allocation4_spill] sm:$0xff] %v11954_v43  ;;  %v11960_v44 = vld [vmem:[%s18475_s1 + $0x494] ss:$8 sps:$4 sm:$0xff]   ;;  %19726 = vst [vmem:[#allocation7_spill] sm:$0xff] %v11972_v46  ;;  %v11978_v50 = vld [vmem:[%s18475_s1 + $0x590] ss:$8 sps:$4 sm:$0xff]  }
 0x287   :  { %v2293_v31 = vpop.f32.mrf.mxu1  ;;  %v11680_v30 = vadd.f32 %v2291_v51, %v2251_v55  ;;  %2557 = vmatpush1.bf16.msra.mxu0 %v11324_v13  ;;  %v11696_v13 = vld [vmem:[%s18475_s1 + $0x444] ss:$8 sps:$4 sm:$0xff]   ;;  %19724 = vst [vmem:[#allocation5_spill] sm:$0xff] %v11960_v44  ;;  %19727 = vst [vmem:[#allocation8_spill] sm:$0xff] %v11978_v50  ;;  %v6908_v52 = vld [vmem:[%s18476_s0 + $0xd0] sm:$0xff] }
 0x288   :  { %2598 = vmatpush1.bf16.msra.mxu1 %v11330_v18  ;;  %v2253_v56 = vpop.f32.mrf.mxu0  ;;  %2558 = vmatprep.subr.bf16.mxu0 %v11336_v29  ;;  %v11702_v18 = vld [vmem:[%s18475_s1 + $0x544] ss:$8 sps:$4 sm:$0xff]   ;;  %v11708_v29 = vld [vmem:[%s18475_s1 + $0x440] ss:$8 sps:$4 sm:$0xff]  }
 0x289   :  { %v2294_v23 = vpop.f32.mrf.mxu1  ;;  %2599 = vmatprep.subr.bf16.mxu1 %v11342_v28  ;;  %v11714_v28 = vld [vmem:[%s18475_s1 + $0x540] ss:$8 sps:$4 sm:$0xff]   ;;  %v11990_v55 = vld [vmem:[%s18475_s1 + $0x484] ss:$8 sps:$4 sm:$0xff]   ;;  %v12001_v56 = vpack.c.bf16 %v6908_v52, %v6908_v52  ;;  %v12024_v52 = vld [vmem:[%s18475_s1 + $0x674] ss:$8 sps:$4 sm:$0xff]  }
 0x28a   :  { %v6906_v51 = vld [vmem:[%s18476_s0 + $0xc0] sm:$0xff]  ;;  %19728 = vst [vmem:[#allocation9_spill] sm:$0xff] %v11990_v55  ;;  %v6911_v23 = vld [vmem:[%s18476_s0 + $0xe8] sm:$0xff]  ;;  %19732 = vst [vmem:[#allocation13_spill] sm:$0xff] %v12024_v52 }
 0x28b   :  { %2559 = vmatpush1.bf16.msra.mxu0 %v11348_v24  ;;  %v11720_v24 = vld [vmem:[%s18475_s1 + $0x434] ss:$8 sps:$4 sm:$0xff]   ;;  %v11996_v17 = vld [vmem:[%s18475_s1 + $0x584] ss:$8 sps:$4 sm:$0xff]   ;;  %v11999_v31 = vpack.c.bf16 %v6906_v51, %v6906_v51  ;;  %v12018_v51 = vld [vmem:[%s18475_s1 + $0x580] ss:$8 sps:$4 sm:$0xff]  }
 0x28c   :  { %2600 = vmatpush1.bf16.msra.mxu1 %v11690_v25  ;;  %2560 = vmatprep.subr.bf16.mxu0 %v11696_v13  ;;  %19729 = vst [vmem:[#allocation10_spill] sm:$0xff] %v11996_v17  ;;  %19731 = vst [vmem:[#allocation12_spill] sm:$0xff] %v12018_v51 }
 0x28d   :  { %2601 = vmatprep.subr.bf16.mxu1 %v11702_v18 }
 0x28f   :  { %2561 = vmatpush1.bf16.msra.mxu0 %v11708_v29 }
 0x290   :  { %2602 = vmatpush1.bf16.msra.mxu1 %v11714_v28  ;;  %2562 = vmatprep.subr.bf16.mxu0 %v11720_v24 }
 0x291   :  { %2603 = vmatprep.subr.bf16.mxu1 %v11726_v47 }
 0x293   :  { %2563 = vmatpush1.bf16.msra.mxu0 %v11732_v57 }
 0x294   :  { %2604 = vmatpush1.bf16.msra.mxu1 %v11738_v58  ;;  %2564 = vmatprep.subr.bf16.mxu0 %v11744_v21 }
 0x295   :  { %2605 = vmatprep.subr.bf16.mxu1 %v11750_v27 }
 0x297   :  { %2565 = vmatpush1.bf16.msra.mxu0 %v11756_v60 }
 0x298   :  { %2606 = vmatpush1.bf16.msra.mxu1 %v11762_v61  ;;  %2566 = vmatprep.subr.bf16.mxu0 %v11768_v22 }
 0x299   :  { %2607 = vmatprep.subr.bf16.mxu1 %v11774_v20 }
 0x29b   :  { %2567 = vmatpush1.bf16.msra.mxu0 %v11780_v62 }
 0x29c   :  { %2608 = vmatpush1.bf16.msra.mxu1 %v11786_v0  ;;  %2568 = vmatprep.subr.bf16.mxu0 %v11792_v1 }
 0x29d   :  { %2609 = vmatprep.subr.bf16.mxu1 %v11798_v2 }
 0x29f   :  { %2569 = vmatpush1.bf16.msra.mxu0 %v11804_v3 }
 0x2a0   :  { %2610 = vmatpush1.bf16.msra.mxu1 %v11810_v4  ;;  %2570 = vmatprep.subr.bf16.mxu0 %v11816_v5 }
 0x2a1   :  { %2611 = vmatprep.subr.bf16.mxu1 %v11822_v6 }
 0x2a3   :  { %2571 = vmatpush2.bf16.msra.mxu0 %v11828_v7 }
 0x2a4   :  { %2612 = vmatpush2.bf16.msra.mxu1 %v11834_v8  ;;  %2572 = vmatprep.subr.bf16.mxu0 %v11840_v9 }
 0x2a5   :  { %2613 = vmatprep.subr.bf16.mxu1 %v11846_v10 }
 0x2a7   :  { %2573 = vmatpush2.bf16.msra.mxu0 %v11852_v11 }
 0x2a8   :  { %2614 = vmatpush2.bf16.msra.mxu1 %v11858_v40  ;;  %2574 = vmatprep.subr.bf16.mxu0 %v11864_v41 }
 0x2a9   :  { %2615 = vmatprep.subr.bf16.mxu1 %v11870_v14 }
 0x2ab   :  { %2575 = vmatpush2.bf16.msra.mxu0 %v11876_v19 }
 0x2ac   :  { %2616 = vmatpush2.bf16.msra.mxu1 %v11882_v16  ;;  %2576 = vmatprep.subr.bf16.mxu0 %v11888_v32 }
 0x2ad   :  { %2617 = vmatprep.subr.bf16.mxu1 %v11894_v26 }
 0x2af   :  { %2577 = vmatpush2.bf16.msra.mxu0 %v11900_v33 }
 0x2b0   :  { %2618 = vmatpush2.bf16.msra.mxu1 %v11906_v53  ;;  %2578 = vmatprep.subr.bf16.mxu0 %v11912_v48 }
 0x2b1   :  { %2619 = vmatprep.subr.bf16.mxu1 %v11918_v49 }
 0x2b3   :  { %2579 = vmatpush2.bf16.msra.mxu0 %v11924_v34 }
 0x2b4   :  { %2620 = vmatpush2.bf16.msra.mxu1 %v11930_v35  ;;  %2580 = vmatprep.subr.bf16.mxu0 %v11936_v12 }
 0x2b5   :  { %2621 = vmatprep.subr.bf16.mxu1 %v11942_v36 }
 0x2b7   :  { %2581 = vmatpush2.bf16.msra.mxu0 %v11948_v42 }
 0x2b8   :  { %2622 = vmatpush2.bf16.msra.mxu1 %v11954_v43  ;;  %2582 = vmatprep.subr.bf16.mxu0 %v11960_v44 }
 0x2b9   :  { %2623 = vmatprep.subr.bf16.mxu1 %v11966_v45 }
 0x2bb   :  { %2583 = vmatpush2.bf16.msra.mxu0 %v11972_v46 }
 0x2bc   :  { %2624 = vmatpush2.bf16.msra.mxu1 %v11978_v50  ;;  %2584 = vmatprep.subr.bf16.mxu0 %v11990_v55  ;;  %v12035_v55 = vpack.c.bf16 %v6913_v59, %v6913_v59  ;;  %v12049_v59 = vld [vmem:[%s18475_s1 + $0x770] ss:$8 sps:$4 sm:$0xff]  }
 0x2bd   :  { %2625 = vmatprep.subr.bf16.mxu1 %v11996_v17  ;;  %v12030_v17 = vld [vmem:[%s18475_s1 + $0x774] ss:$8 sps:$4 sm:$0xff]   ;;  %19735 = vst [vmem:[#allocation16_spill] sm:$0xff] %v12049_v59 }
 0x2be   :  { %19733 = vst [vmem:[#allocation14_spill] sm:$0xff] %v12030_v17 }
 0x2bf   :  { %2585 = vmatpush2.bf16.msra.mxu0 %v12012_v63  ;;  %v12033_v63 = vpack.c.bf16 %v6911_v23, %v6911_v23 }
 0x2c0   :  { %2626 = vmatpush2.bf16.msra.mxu1 %v12018_v51  ;;  %2636 = vmatprep.subr.bf16.mxu0 %v12024_v52  ;;  %v12043_v52 = vld [vmem:[%s18475_s1 + $0x670] ss:$8 sps:$4 sm:$0xff]  }
 0x2c1   :  { %2677 = vmatprep.subr.bf16.mxu1 %v12030_v17  ;;  %19734 = vst [vmem:[#allocation15_spill] sm:$0xff] %v12043_v52 }
 0x2c2   :  { %v2330_v50 = vpop.f32.mrf.mxu0  ;;  %2587 = vmatmul.mubr.bf16.vlgmr.msra.gmra.mxu0 %v11999_v31 }
 0x2c3   :  { %v2371_v51 = vpop.f32.mrf.mxu1  ;;  %2628 = vmatmul.mubr.bf16.vlgmr.msra.gmra.mxu1 %v12001_v56  ;;  %v2331_v46 = vadd.f32 %v2330_v50, %v11675_v54  ;;  %2637 = vmatpush1.bf16.msra.mxu0 %v12043_v52  ;;  %v12055_v54 = vld [vmem:[%s18475_s1 + $0x664] ss:$8 sps:$4 sm:$0xff]  }
 0x2c4   :  { %2678 = vmatpush1.bf16.msra.mxu1 %v12049_v59  ;;  %v2332_v23 = vpop.f32.mrf.mxu0  ;;  %19736 = vst [vmem:[#allocation17_spill] sm:$0xff] %v12055_v54  ;;  %2638 = vmatprep.subr.bf16.mxu0 %v12055_v54  ;;  %v12061_v50 = vld [vmem:[%s18475_s1 + $0x764] ss:$8 sps:$4 sm:$0xff]   ;;  %v12074_v54 = vld [vmem:[%s18475_s1 + $0x660] ss:$8 sps:$4 sm:$0xff]  }
 0x2c5   :  { %v2373_v17 = vpop.f32.mrf.mxu1  ;;  %19737 = vst [vmem:[#allocation18_spill] sm:$0xff] %v12061_v50  ;;  %2679 = vmatprep.subr.bf16.mxu1 %v12061_v50  ;;  %v12064_v52 = vadd.f32 %v2371_v51, %v2331_v46  ;;  %v2333_v59 = vadd.f32 %v2332_v23, %v11680_v30  ;;  %2668 = vmatprep.mubr.bf16.mxu0 %v12033_v63  ;;  %19740 = vst [vmem:[#allocation21_spill] sm:$0xff] %v12074_v54  ;;  %v12080_v46 = vld [vmem:[%s18475_s1 + $0x760] ss:$8 sps:$4 sm:$0xff]   ;;  %v12110_v23 = vld [vmem:[%s18475_s1 + $0x644] ss:$8 sps:$4 sm:$0xff]  }
 0x2c6   :  { %2709 = vmatprep.mubr.bf16.mxu1 %v12035_v55  ;;  %v2334_v45 = vpop.f32.mrf.mxu0  ;;  %19741 = vst [vmem:[#allocation22_spill] sm:$0xff] %v12080_v46  ;;  %19746 = vst [vmem:[#allocation27_spill] sm:$0xff] %v12110_v23 }
 0x2c7   :  { %19738 = vst [vmem:[#allocation19_spill] sm:$0xff] %v12064_v52  ;;  %v2375_v44 = vpop.f32.mrf.mxu1  ;;  %v12069_v43 = vadd.f32 %v2373_v17, %v2333_v59  ;;  %2639 = vmatpush1.bf16.msra.mxu0 %v12074_v54  ;;  %v12092_v45 = vld [vmem:[%s18475_s1 + $0x754] ss:$8 sps:$4 sm:$0xff]   ;;  %v12098_v17 = vld [vmem:[%s18475_s1 + $0x650] ss:$8 sps:$4 sm:$0xff]  }
 0x2c8   :  { %2680 = vmatpush1.bf16.msra.mxu1 %v12080_v46  ;;  %v2335_v30 = vpop.f32.mrf.mxu0  ;;  %v12086_v44 = vld [vmem:[%s18475_s1 + $0x654] ss:$8 sps:$4 sm:$0xff]   ;;  %19743 = vst [vmem:[#allocation24_spill] sm:$0xff] %v12092_v45  ;;  %19744 = vst [vmem:[#allocation25_spill] sm:$0xff] %v12098_v17  ;;  %v12104_v59 = vld [vmem:[%s18475_s1 + $0x750] ss:$8 sps:$4 sm:$0xff]  }
 0x2c9   :  { %19739 = vst [vmem:[#allocation20_spill] sm:$0xff] %v12069_v43  ;;  %v2376_v51 = vpop.f32.mrf.mxu1  ;;  %19742 = vst [vmem:[#allocation23_spill] sm:$0xff] %v12086_v44  ;;  %2640 = vmatprep.subr.bf16.mxu0 %v12086_v44  ;;  %2681 = vmatprep.subr.bf16.mxu1 %v12092_v45  ;;  %v12116_v30 = vld [vmem:[%s18475_s1 + $0x744] ss:$8 sps:$4 sm:$0xff]   ;;  %v12128_v52 = vld [vmem:[%s18475_s1 + $0x740] ss:$8 sps:$4 sm:$0xff]  }
 0x2ca   :  { %19745 = vst [vmem:[#allocation26_spill] sm:$0xff] %v12104_v59  ;;  %19747 = vst [vmem:[#allocation28_spill] sm:$0xff] %v12116_v30  ;;  %v12122_v51 = vld [vmem:[%s18475_s1 + $0x640] ss:$8 sps:$4 sm:$0xff]   ;;  %v12134_v43 = vld [vmem:[%s18475_s1 + $0x634] ss:$8 sps:$4 sm:$0xff]  }
 0x2cb   :  { %2641 = vmatpush1.bf16.msra.mxu0 %v12098_v17  ;;  %19748 = vst [vmem:[#allocation29_spill] sm:$0xff] %v12122_v51  ;;  %19749 = vst [vmem:[#allocation30_spill] sm:$0xff] %v12128_v52  ;;  %v12420_v17 = vld [vmem:[%s18475_s1 + $0x680] ss:$8 sps:$4 sm:$0xff]   ;;  %v12447_v45 = vld [vmem:[%s18475_s1 + $0x70] ss:$8 sps:$4 sm:$0xff]  }
 0x2cc   :  { %2682 = vmatpush1.bf16.msra.mxu1 %v12104_v59  ;;  %2642 = vmatprep.subr.bf16.mxu0 %v12110_v23  ;;  %19750 = vst [vmem:[#allocation31_spill] sm:$0xff] %v12134_v43  ;;  %v12404_v23 = vld [vmem:[%s18475_s1 + $0x684] ss:$8 sps:$4 sm:$0xff]   ;;  %19796 = vst [vmem:[#allocation81_spill] sm:$0xff] %v12420_v17 }
 0x2cd   :  { %2683 = vmatprep.subr.bf16.mxu1 %v12116_v30  ;;  %v12140_v30 = vld [vmem:[%s18475_s1 + $0x734] ss:$8 sps:$4 sm:$0xff]   ;;  %19794 = vst [vmem:[#allocation79_spill] sm:$0xff] %v12404_v23  ;;  %19800 = vst [vmem:[#allocation85_spill] sm:$0xff] %v12447_v45 }
 0x2ce   :  { %19751 = vst [vmem:[#allocation32_spill] sm:$0xff] %v12140_v30 }
 0x2cf   :  { %2643 = vmatpush1.bf16.msra.mxu0 %v12122_v51  ;;  %v12146_v51 = vld [vmem:[%s18475_s1 + $0x630] ss:$8 sps:$4 sm:$0xff]  }
 0x2d0   :  { %2684 = vmatpush1.bf16.msra.mxu1 %v12128_v52  ;;  %2644 = vmatprep.subr.bf16.mxu0 %v12134_v43  ;;  %19752 = vst [vmem:[#allocation33_spill] sm:$0xff] %v12146_v51  ;;  %v12152_v52 = vld [vmem:[%s18475_s1 + $0x730] ss:$8 sps:$4 sm:$0xff]   ;;  %v12158_v43 = vld [vmem:[%s18475_s1 + $0x624] ss:$8 sps:$4 sm:$0xff]  }
 0x2d1   :  { %2685 = vmatprep.subr.bf16.mxu1 %v12140_v30  ;;  %19753 = vst [vmem:[#allocation34_spill] sm:$0xff] %v12152_v52  ;;  %19754 = vst [vmem:[#allocation35_spill] sm:$0xff] %v12158_v43  ;;  %v12164_v30 = vld [vmem:[%s18475_s1 + $0x724] ss:$8 sps:$4 sm:$0xff]  }
 0x2d2   :  { %19755 = vst [vmem:[#allocation36_spill] sm:$0xff] %v12164_v30 }
 0x2d3   :  { %2645 = vmatpush1.bf16.msra.mxu0 %v12146_v51  ;;  %v12170_v51 = vld [vmem:[%s18475_s1 + $0x620] ss:$8 sps:$4 sm:$0xff]  }
 0x2d4   :  { %2686 = vmatpush1.bf16.msra.mxu1 %v12152_v52  ;;  %2646 = vmatprep.subr.bf16.mxu0 %v12158_v43  ;;  %19756 = vst [vmem:[#allocation37_spill] sm:$0xff] %v12170_v51  ;;  %v12176_v52 = vld [vmem:[%s18475_s1 + $0x720] ss:$8 sps:$4 sm:$0xff]   ;;  %v12182_v43 = vld [vmem:[%s18475_s1 + $0x614] ss:$8 sps:$4 sm:$0xff]  }
 0x2d5   :  { %2687 = vmatprep.subr.bf16.mxu1 %v12164_v30  ;;  %19757 = vst [vmem:[#allocation38_spill] sm:$0xff] %v12176_v52  ;;  %19758 = vst [vmem:[#allocation39_spill] sm:$0xff] %v12182_v43  ;;  %v12188_v30 = vld [vmem:[%s18475_s1 + $0x714] ss:$8 sps:$4 sm:$0xff]  }
 0x2d6   :  { %19759 = vst [vmem:[#allocation40_spill] sm:$0xff] %v12188_v30 }
 0x2d7   :  { %2647 = vmatpush1.bf16.msra.mxu0 %v12170_v51  ;;  %v12194_v51 = vld [vmem:[%s18475_s1 + $0x610] ss:$8 sps:$4 sm:$0xff]  }
 0x2d8   :  { %2688 = vmatpush1.bf16.msra.mxu1 %v12176_v52  ;;  %2648 = vmatprep.subr.bf16.mxu0 %v12182_v43  ;;  %19760 = vst [vmem:[#allocation41_spill] sm:$0xff] %v12194_v51  ;;  %v12200_v52 = vld [vmem:[%s18475_s1 + $0x710] ss:$8 sps:$4 sm:$0xff]   ;;  %v12206_v43 = vld [vmem:[%s18475_s1 + $0x604] ss:$8 sps:$4 sm:$0xff]  }
 0x2d9   :  { %2689 = vmatprep.subr.bf16.mxu1 %v12188_v30  ;;  %19761 = vst [vmem:[#allocation42_spill] sm:$0xff] %v12200_v52  ;;  %19762 = vst [vmem:[#allocation43_spill] sm:$0xff] %v12206_v43  ;;  %v12212_v30 = vld [vmem:[%s18475_s1 + $0x704] ss:$8 sps:$4 sm:$0xff]  }
 0x2da   :  { %19763 = vst [vmem:[#allocation44_spill] sm:$0xff] %v12212_v30 }
 0x2db   :  { %2649 = vmatpush1.bf16.msra.mxu0 %v12194_v51  ;;  %v12218_v51 = vld [vmem:[%s18475_s1 + $0x600] ss:$8 sps:$4 sm:$0xff]  }
 0x2dc   :  { %2690 = vmatpush1.bf16.msra.mxu1 %v12200_v52  ;;  %2650 = vmatprep.subr.bf16.mxu0 %v12206_v43  ;;  %19764 = vst [vmem:[#allocation45_spill] sm:$0xff] %v12218_v51  ;;  %v12224_v52 = vld [vmem:[%s18475_s1 + $0x700] ss:$8 sps:$4 sm:$0xff]   ;;  %v12230_v43 = vld [vmem:[%s18475_s1 + $0x6f4] ss:$8 sps:$4 sm:$0xff]  }
 0x2dd   :  { %2691 = vmatprep.subr.bf16.mxu1 %v12212_v30  ;;  %19765 = vst [vmem:[#allocation46_spill] sm:$0xff] %v12224_v52  ;;  %19766 = vst [vmem:[#allocation47_spill] sm:$0xff] %v12230_v43  ;;  %v12236_v30 = vld [vmem:[%s18475_s1 + $0x7f4] ss:$8 sps:$4 sm:$0xff]  }
 0x2de   :  { %19767 = vst [vmem:[#allocation48_spill] sm:$0xff] %v12236_v30 }
 0x2df   :  { %2651 = vmatpush1.bf16.msra.mxu0 %v12218_v51  ;;  %v12242_v51 = vld [vmem:[%s18475_s1 + $0x6f0] ss:$8 sps:$4 sm:$0xff]  }
 0x2e0   :  { %2692 = vmatpush1.bf16.msra.mxu1 %v12224_v52  ;;  %2652 = vmatprep.subr.bf16.mxu0 %v12230_v43  ;;  %19768 = vst [vmem:[#allocation49_spill] sm:$0xff] %v12242_v51  ;;  %v12248_v52 = vld [vmem:[%s18475_s1 + $0x7f0] ss:$8 sps:$4 sm:$0xff]   ;;  %v12254_v43 = vld [vmem:[%s18475_s1 + $0x6e4] ss:$8 sps:$4 sm:$0xff]  }
 0x2e1   :  { %2693 = vmatprep.subr.bf16.mxu1 %v12236_v30  ;;  %19769 = vst [vmem:[#allocation50_spill] sm:$0xff] %v12248_v52  ;;  %19770 = vst [vmem:[#allocation51_spill] sm:$0xff] %v12254_v43  ;;  %v12260_v30 = vld [vmem:[%s18475_s1 + $0x7e4] ss:$8 sps:$4 sm:$0xff]  }
 0x2e2   :  { %19771 = vst [vmem:[#allocation52_spill] sm:$0xff] %v12260_v30 }
 0x2e3   :  { %2653 = vmatpush2.bf16.msra.mxu0 %v12242_v51  ;;  %v12266_v51 = vld [vmem:[%s18475_s1 + $0x6e0] ss:$8 sps:$4 sm:$0xff]  }
 0x2e4   :  { %2694 = vmatpush2.bf16.msra.mxu1 %v12248_v52  ;;  %2654 = vmatprep.subr.bf16.mxu0 %v12254_v43  ;;  %19772 = vst [vmem:[#allocation53_spill] sm:$0xff] %v12266_v51  ;;  %v12272_v52 = vld [vmem:[%s18475_s1 + $0x7e0] ss:$8 sps:$4 sm:$0xff]   ;;  %v12278_v43 = vld [vmem:[%s18475_s1 + $0x6d4] ss:$8 sps:$4 sm:$0xff]  }
 0x2e5   :  { %2695 = vmatprep.subr.bf16.mxu1 %v12260_v30  ;;  %19773 = vst [vmem:[#allocation54_spill] sm:$0xff] %v12272_v52  ;;  %19774 = vst [vmem:[#allocation55_spill] sm:$0xff] %v12278_v43  ;;  %v12284_v30 = vld [vmem:[%s18475_s1 + $0x7d4] ss:$8 sps:$4 sm:$0xff]  }
 0x2e6   :  { %19775 = vst [vmem:[#allocation56_spill] sm:$0xff] %v12284_v30 }
 0x2e7   :  { %2655 = vmatpush2.bf16.msra.mxu0 %v12266_v51  ;;  %v12290_v51 = vld [vmem:[%s18475_s1 + $0x6d0] ss:$8 sps:$4 sm:$0xff]  }
 0x2e8   :  { %2696 = vmatpush2.bf16.msra.mxu1 %v12272_v52  ;;  %2656 = vmatprep.subr.bf16.mxu0 %v12278_v43  ;;  %19776 = vst [vmem:[#allocation57_spill] sm:$0xff] %v12290_v51  ;;  %v12296_v52 = vld [vmem:[%s18475_s1 + $0x7d0] ss:$8 sps:$4 sm:$0xff]   ;;  %v12302_v43 = vld [vmem:[%s18475_s1 + $0x6c4] ss:$8 sps:$4 sm:$0xff]  }
 0x2e9   :  { %2697 = vmatprep.subr.bf16.mxu1 %v12284_v30  ;;  %19777 = vst [vmem:[#allocation58_spill] sm:$0xff] %v12296_v52  ;;  %19778 = vst [vmem:[#allocation59_spill] sm:$0xff] %v12302_v43  ;;  %v12308_v30 = vld [vmem:[%s18475_s1 + $0x7c4] ss:$8 sps:$4 sm:$0xff]  }
 0x2ea   :  { %19779 = vst [vmem:[#allocation60_spill] sm:$0xff] %v12308_v30 }
 0x2eb   :  { %2657 = vmatpush2.bf16.msra.mxu0 %v12290_v51  ;;  %v12314_v51 = vld [vmem:[%s18475_s1 + $0x6c0] ss:$8 sps:$4 sm:$0xff]  }
 0x2ec   :  { %2698 = vmatpush2.bf16.msra.mxu1 %v12296_v52  ;;  %2658 = vmatprep.subr.bf16.mxu0 %v12302_v43  ;;  %19780 = vst [vmem:[#allocation61_spill] sm:$0xff] %v12314_v51  ;;  %v12320_v52 = vld [vmem:[%s18475_s1 + $0x7c0] ss:$8 sps:$4 sm:$0xff]   ;;  %v12326_v43 = vld [vmem:[%s18475_s1 + $0x6b4] ss:$8 sps:$4 sm:$0xff]  }
 0x2ed   :  { %2699 = vmatprep.subr.bf16.mxu1 %v12308_v30  ;;  %19781 = vst [vmem:[#allocation62_spill] sm:$0xff] %v12320_v52  ;;  %19782 = vst [vmem:[#allocation63_spill] sm:$0xff] %v12326_v43  ;;  %v12332_v30 = vld [vmem:[%s18475_s1 + $0x7b4] ss:$8 sps:$4 sm:$0xff]  }
 0x2ee   :  { %19783 = vst [vmem:[#allocation64_spill] sm:$0xff] %v12332_v30 }
 0x2ef   :  { %2659 = vmatpush2.bf16.msra.mxu0 %v12314_v51  ;;  %v12338_v51 = vld [vmem:[%s18475_s1 + $0x6b0] ss:$8 sps:$4 sm:$0xff]  }
 0x2f0   :  { %2700 = vmatpush2.bf16.msra.mxu1 %v12320_v52  ;;  %2660 = vmatprep.subr.bf16.mxu0 %v12326_v43  ;;  %19784 = vst [vmem:[#allocation65_spill] sm:$0xff] %v12338_v51  ;;  %v12344_v52 = vld [vmem:[%s18475_s1 + $0x7b0] ss:$8 sps:$4 sm:$0xff]   ;;  %v12350_v43 = vld [vmem:[%s18475_s1 + $0x6a4] ss:$8 sps:$4 sm:$0xff]  }
 0x2f1   :  { %2701 = vmatprep.subr.bf16.mxu1 %v12332_v30  ;;  %19785 = vst [vmem:[#allocation66_spill] sm:$0xff] %v12344_v52  ;;  %19786 = vst [vmem:[#allocation67_spill] sm:$0xff] %v12350_v43  ;;  %v12356_v30 = vld [vmem:[%s18475_s1 + $0x7a4] ss:$8 sps:$4 sm:$0xff]  }
 0x2f2   :  { %19787 = vst [vmem:[#allocation68_spill] sm:$0xff] %v12356_v30 }
 0x2f3   :  { %2661 = vmatpush2.bf16.msra.mxu0 %v12338_v51  ;;  %v12362_v51 = vld [vmem:[%s18475_s1 + $0x6a0] ss:$8 sps:$4 sm:$0xff]  }
 0x2f4   :  { %2702 = vmatpush2.bf16.msra.mxu1 %v12344_v52  ;;  %2662 = vmatprep.subr.bf16.mxu0 %v12350_v43  ;;  %19788 = vst [vmem:[#allocation69_spill] sm:$0xff] %v12362_v51  ;;  %v12368_v52 = vld [vmem:[%s18475_s1 + $0x7a0] ss:$8 sps:$4 sm:$0xff]   ;;  %v12374_v43 = vld [vmem:[%s18475_s1 + $0x694] ss:$8 sps:$4 sm:$0xff]  }
 0x2f5   :  { %2703 = vmatprep.subr.bf16.mxu1 %v12356_v30  ;;  %19789 = vst [vmem:[#allocation70_spill] sm:$0xff] %v12368_v52  ;;  %19790 = vst [vmem:[#allocation72_spill] sm:$0xff] %v12374_v43  ;;  %v12380_v30 = vld [vmem:[%s18475_s1 + $0x794] ss:$8 sps:$4 sm:$0xff]  }
 0x2f6   :  { %19791 = vst [vmem:[#allocation73_spill] sm:$0xff] %v12380_v30 }
 0x2f7   :  { %2663 = vmatpush2.bf16.msra.mxu0 %v12362_v51  ;;  %v12386_v51 = vld [vmem:[%s18475_s1 + $0x690] ss:$8 sps:$4 sm:$0xff]  }
 0x2f8   :  { %2704 = vmatpush2.bf16.msra.mxu1 %v12368_v52  ;;  %2664 = vmatprep.subr.bf16.mxu0 %v12374_v43  ;;  %19792 = vst [vmem:[#allocation74_spill] sm:$0xff] %v12386_v51  ;;  %v12392_v52 = vld [vmem:[%s18475_s1 + $0x790] ss:$8 sps:$4 sm:$0xff]   ;;  %v6910_v43 = vld [vmem:[%s18476_s0 + $0xe0] sm:$0xff] }
 0x2f9   :  { %2705 = vmatprep.subr.bf16.mxu1 %v12380_v30  ;;  %19793 = vst [vmem:[#allocation75_spill] sm:$0xff] %v12392_v52  ;;  %v6912_v30 = vld [vmem:[%s18476_s0 + $0xf0] sm:$0xff] }
 0x2fa   :  { %v12415_v59 = vpack.c.bf16 %v6912_v30, %v6912_v30  ;;  %v12438_v30 = vld [vmem:[%s18475_s1 + $0x174] ss:$8 sps:$4 sm:$0xff]  }
 0x2fb   :  { %2665 = vmatpush2.bf16.msra.mxu0 %v12386_v51  ;;  %v12410_v51 = vld [vmem:[%s18475_s1 + $0x784] ss:$8 sps:$4 sm:$0xff]   ;;  %19799 = vst [vmem:[#allocation84_spill] sm:$0xff] %v12438_v30 }
 0x2fc   :  { %2706 = vmatpush2.bf16.msra.mxu1 %v12392_v52  ;;  %2666 = vmatprep.subr.bf16.mxu0 %v12404_v23  ;;  %19795 = vst [vmem:[#allocation80_spill] sm:$0xff] %v12410_v51  ;;  %v12413_v52 = vpack.c.bf16 %v6910_v43, %v6910_v43  ;;  %v12426_v23 = vld [vmem:[%s18475_s1 + $0x780] ss:$8 sps:$4 sm:$0xff]   ;;  %v12432_v43 = vld [vmem:[%s18475_s1 + $0x74] ss:$8 sps:$4 sm:$0xff]  }
 0x2fd   :  { %2707 = vmatprep.subr.bf16.mxu1 %v12410_v51  ;;  %19797 = vst [vmem:[#allocation82_spill] sm:$0xff] %v12426_v23  ;;  %19798 = vst [vmem:[#allocation83_spill] sm:$0xff] %v12432_v43 }
 0x2ff   :  { %2667 = vmatpush2.bf16.msra.mxu0 %v12420_v17 }
 0x300   :  { %2708 = vmatpush2.bf16.msra.mxu1 %v12426_v23  ;;  %2730 = vmatprep.subr.bf16.mxu0 %v12432_v43  ;;  %v12453_v43 = vld [vmem:[%s18475_s1 + $0x170] ss:$8 sps:$4 sm:$0xff]  }
 0x301   :  { %2771 = vmatprep.subr.bf16.mxu1 %v12438_v30  ;;  %19801 = vst [vmem:[#allocation86_spill] sm:$0xff] %v12453_v43 }
 0x302   :  { %v2424_v17 = vpop.f32.mrf.mxu0  ;;  %2669 = vmatmul.mubr.bf16.vlgmr.msra.gmra.mxu0 %v12413_v52 }
 0x303   :  { %v2465_v51 = vpop.f32.mrf.mxu1  ;;  %2710 = vmatmul.mubr.bf16.vlgmr.msra.gmra.mxu1 %v12415_v59  ;;  %v2425_v23 = vadd.f32 %v2424_v17, %v19596_v38  ;;  %2731 = vmatpush1.bf16.msra.mxu0 %v12447_v45  ;;  %v12459_v17 = vld [vmem:[%s18475_s1 + $0x64] ss:$8 sps:$4 sm:$0xff]  }
 0x304   :  { %2772 = vmatpush1.bf16.msra.mxu1 %v12453_v43  ;;  %v2426_v30 = vpop.f32.mrf.mxu0  ;;  %19802 = vst [vmem:[#allocation87_spill] sm:$0xff] %v12459_v17  ;;  %2732 = vmatprep.subr.bf16.mxu0 %v12459_v17  ;;  %v12465_v45 = vld [vmem:[%s18475_s1 + $0x164] ss:$8 sps:$4 sm:$0xff]   ;;  %v12478_v17 = vld [vmem:[%s18475_s1 + $0x60] ss:$8 sps:$4 sm:$0xff]  }
 0x305   :  { %v2467_v44 = vpop.f32.mrf.mxu1  ;;  %2773 = vmatprep.subr.bf16.mxu1 %v12465_v45  ;;  %v12468_v38 = vadd.f32 %v2465_v51, %v2425_v23  ;;  %v2427_v43 = vadd.f32 %v2426_v30, %v10487_v15  ;;  %2762 = vmatprep.mubr.bf16.mxu0 %v11664_v37  ;;  %v12484_v23 = vld [vmem:[%s18475_s1 + $0x160] ss:$8 sps:$4 sm:$0xff]   ;;  %v12508_v51 = vld [vmem:[%s18475_s1 + $0x150] ss:$8 sps:$4 sm:$0xff]   ;;  %v12520_v30 = vld [vmem:[%s18475_s1 + $0x144] ss:$8 sps:$4 sm:$0xff]  }
 0x306   :  { %2803 = vmatprep.mubr.bf16.mxu1 %v11666_v39  ;;  %v2428_v46 = vpop.f32.mrf.mxu0  ;;  %19806 = vst [vmem:[#allocation91_spill] sm:$0xff] %v12508_v51  ;;  %19808 = vst [vmem:[#allocation93_spill] sm:$0xff] %v12520_v30 }
 0x307   :  { %v2469_v54 = vpop.f32.mrf.mxu1  ;;  %v12473_v50 = vadd.f32 %v2467_v44, %v2427_v43  ;;  %2733 = vmatpush1.bf16.msra.mxu0 %v12478_v17  ;;  %v12496_v46 = vld [vmem:[%s18475_s1 + $0x154] ss:$8 sps:$4 sm:$0xff]   ;;  %v12502_v44 = vld [vmem:[%s18475_s1 + $0x50] ss:$8 sps:$4 sm:$0xff]   ;;  %v12514_v43 = vld [vmem:[%s18475_s1 + $0x44] ss:$8 sps:$4 sm:$0xff]  }
 0x308   :  { %2774 = vmatpush1.bf16.msra.mxu1 %v12484_v23  ;;  %v2429_v37 = vpop.f32.mrf.mxu0  ;;  %v12490_v54 = vld [vmem:[%s18475_s1 + $0x54] ss:$8 sps:$4 sm:$0xff]   ;;  %19804 = vst [vmem:[#allocation89_spill] sm:$0xff] %v12496_v46  ;;  %19805 = vst [vmem:[#allocation90_spill] sm:$0xff] %v12502_v44 }
 0x309   :  { %v2470_v39 = vpop.f32.mrf.mxu1  ;;  %19803 = vst [vmem:[#allocation88_spill] sm:$0xff] %v12490_v54  ;;  %2734 = vmatprep.subr.bf16.mxu0 %v12490_v54  ;;  %2775 = vmatprep.subr.bf16.mxu1 %v12496_v46  ;;  %19807 = vst [vmem:[#allocation92_spill] sm:$0xff] %v12514_v43  ;;  %v12526_v37 = vld [vmem:[%s18475_s1 + $0x40] ss:$8 sps:$4 sm:$0xff]  }
 0x30a   :  { %19809 = vst [vmem:[#allocation94_spill] sm:$0xff] %v12526_v37  ;;  %v12532_v39 = vld [vmem:[%s18475_s1 + $0x140] ss:$8 sps:$4 sm:$0xff]  }
 0x30b   :  { %2735 = vmatpush1.bf16.msra.mxu0 %v12502_v44  ;;  %19810 = vst [vmem:[#allocation95_spill] sm:$0xff] %v12532_v39  ;;  %v12841_v44 = vld [vmem:[%s18475_s1 + $0x270] ss:$8 sps:$4 sm:$0xff]  }
 0x30c   :  { %2776 = vmatpush1.bf16.msra.mxu1 %v12508_v51  ;;  %2736 = vmatprep.subr.bf16.mxu0 %v12514_v43  ;;  %v12538_v43 = vld [vmem:[%s18475_s1 + $0x34] ss:$8 sps:$4 sm:$0xff]   ;;  %19861 = vst [vmem:[#allocation146_spill] sm:$0xff] %v12841_v44 }
 0x30d   :  { %2777 = vmatprep.subr.bf16.mxu1 %v12520_v30  ;;  %19811 = vst [vmem:[#allocation96_spill] sm:$0xff] %v12538_v43  ;;  %v12544_v30 = vld [vmem:[%s18475_s1 + $0x134] ss:$8 sps:$4 sm:$0xff]  }
 0x30e   :  { %19812 = vst [vmem:[#allocation97_spill] sm:$0xff] %v12544_v30 }
 0x30f   :  { %2737 = vmatpush1.bf16.msra.mxu0 %v12526_v37  ;;  %v12550_v37 = vld [vmem:[%s18475_s1 + $0x30] ss:$8 sps:$4 sm:$0xff]  }
 0x310   :  { %2778 = vmatpush1.bf16.msra.mxu1 %v12532_v39  ;;  %2738 = vmatprep.subr.bf16.mxu0 %v12538_v43  ;;  %19813 = vst [vmem:[#allocation98_spill] sm:$0xff] %v12550_v37  ;;  %v12556_v39 = vld [vmem:[%s18475_s1 + $0x130] ss:$8 sps:$4 sm:$0xff]   ;;  %v12562_v43 = vld [vmem:[%s18475_s1 + $0x24] ss:$8 sps:$4 sm:$0xff]  }
 0x311   :  { %2779 = vmatprep.subr.bf16.mxu1 %v12544_v30  ;;  %19814 = vst [vmem:[#allocation99_spill] sm:$0xff] %v12556_v39  ;;  %19815 = vst [vmem:[#allocation100_spill] sm:$0xff] %v12562_v43  ;;  %v12568_v30 = vld [vmem:[%s18475_s1 + $0x124] ss:$8 sps:$4 sm:$0xff]  }
 0x312   :  { %19816 = vst [vmem:[#allocation101_spill] sm:$0xff] %v12568_v30 }
 0x313   :  { %2739 = vmatpush1.bf16.msra.mxu0 %v12550_v37  ;;  %v12574_v37 = vld [vmem:[%s18475_s1 + $0x20] ss:$8 sps:$4 sm:$0xff]  }
 0x314   :  { %2780 = vmatpush1.bf16.msra.mxu1 %v12556_v39  ;;  %2740 = vmatprep.subr.bf16.mxu0 %v12562_v43  ;;  %19817 = vst [vmem:[#allocation102_spill] sm:$0xff] %v12574_v37  ;;  %v12580_v39 = vld [vmem:[%s18475_s1 + $0x120] ss:$8 sps:$4 sm:$0xff]   ;;  %v12586_v43 = vld [vmem:[%s18475_s1 + $0x14] ss:$8 sps:$4 sm:$0xff]  }
 0x315   :  { %2781 = vmatprep.subr.bf16.mxu1 %v12568_v30  ;;  %19818 = vst [vmem:[#allocation103_spill] sm:$0xff] %v12580_v39  ;;  %19819 = vst [vmem:[#allocation104_spill] sm:$0xff] %v12586_v43  ;;  %v12592_v30 = vld [vmem:[%s18475_s1 + $0x114] ss:$8 sps:$4 sm:$0xff]  }
 0x316   :  { %19820 = vst [vmem:[#allocation105_spill] sm:$0xff] %v12592_v30 }
 0x317   :  { %2741 = vmatpush1.bf16.msra.mxu0 %v12574_v37  ;;  %v12598_v37 = vld [vmem:[%s18475_s1 + $0x10] ss:$8 sps:$4 sm:$0xff]  }
 0x318   :  { %2782 = vmatpush1.bf16.msra.mxu1 %v12580_v39  ;;  %2742 = vmatprep.subr.bf16.mxu0 %v12586_v43  ;;  %19821 = vst [vmem:[#allocation106_spill] sm:$0xff] %v12598_v37  ;;  %v12604_v39 = vld [vmem:[%s18475_s1 + $0x110] ss:$8 sps:$4 sm:$0xff]   ;;  %v12610_v43 = vld [vmem:[%s18475_s1 + $0x4] ss:$8 sps:$4 sm:$0xff]  }
 0x319   :  { %2783 = vmatprep.subr.bf16.mxu1 %v12592_v30  ;;  %19822 = vst [vmem:[#allocation107_spill] sm:$0xff] %v12604_v39  ;;  %19823 = vst [vmem:[#allocation108_spill] sm:$0xff] %v12610_v43  ;;  %v12616_v30 = vld [vmem:[%s18475_s1 + $0x104] ss:$8 sps:$4 sm:$0xff]  }
 0x31a   :  { %19824 = vst [vmem:[#allocation109_spill] sm:$0xff] %v12616_v30 }
 0x31b   :  { %2743 = vmatpush1.bf16.msra.mxu0 %v12598_v37  ;;  %v12622_v37 = vld [vmem:[%s18475_s1] ss:$8 sps:$4 sm:$0xff]  }
 0x31c   :  { %2784 = vmatpush1.bf16.msra.mxu1 %v12604_v39  ;;  %2744 = vmatprep.subr.bf16.mxu0 %v12610_v43  ;;  %19825 = vst [vmem:[#allocation110_spill] sm:$0xff] %v12622_v37  ;;  %v12628_v39 = vld [vmem:[%s18475_s1 + $0x100] ss:$8 sps:$4 sm:$0xff]   ;;  %v12634_v43 = vld [vmem:[%s18475_s1 + $0xf4] ss:$8 sps:$4 sm:$0xff]  }
 0x31d   :  { %2785 = vmatprep.subr.bf16.mxu1 %v12616_v30  ;;  %19826 = vst [vmem:[#allocation111_spill] sm:$0xff] %v12628_v39  ;;  %19827 = vst [vmem:[#allocation112_spill] sm:$0xff] %v12634_v43  ;;  %v12640_v30 = vld [vmem:[%s18475_s1 + $0x1f4] ss:$8 sps:$4 sm:$0xff]  }
 0x31e   :  { %19828 = vst [vmem:[#allocation113_spill] sm:$0xff] %v12640_v30 }
 0x31f   :  { %2745 = vmatpush1.bf16.msra.mxu0 %v12622_v37  ;;  %v12646_v37 = vld [vmem:[%s18475_s1 + $0xf0] ss:$8 sps:$4 sm:$0xff]  }
 0x320   :  { %2786 = vmatpush1.bf16.msra.mxu1 %v12628_v39  ;;  %2746 = vmatprep.subr.bf16.mxu0 %v12634_v43  ;;  %19829 = vst [vmem:[#allocation114_spill] sm:$0xff] %v12646_v37  ;;  %v12652_v39 = vld [vmem:[%s18475_s1 + $0x1f0] ss:$8 sps:$4 sm:$0xff]   ;;  %v12658_v43 = vld [vmem:[%s18475_s1 + $0xe4] ss:$8 sps:$4 sm:$0xff]  }
 0x321   :  { %2787 = vmatprep.subr.bf16.mxu1 %v12640_v30  ;;  %19830 = vst [vmem:[#allocation115_spill] sm:$0xff] %v12652_v39  ;;  %19831 = vst [vmem:[#allocation116_spill] sm:$0xff] %v12658_v43  ;;  %v12664_v30 = vld [vmem:[%s18475_s1 + $0x1e4] ss:$8 sps:$4 sm:$0xff]  }
 0x322   :  { %19832 = vst [vmem:[#allocation117_spill] sm:$0xff] %v12664_v30 }
 0x323   :  { %2747 = vmatpush2.bf16.msra.mxu0 %v12646_v37  ;;  %v12670_v37 = vld [vmem:[%s18475_s1 + $0xe0] ss:$8 sps:$4 sm:$0xff]  }
 0x324   :  { %2788 = vmatpush2.bf16.msra.mxu1 %v12652_v39  ;;  %2748 = vmatprep.subr.bf16.mxu0 %v12658_v43  ;;  %19833 = vst [vmem:[#allocation118_spill] sm:$0xff] %v12670_v37  ;;  %v12676_v39 = vld [vmem:[%s18475_s1 + $0x1e0] ss:$8 sps:$4 sm:$0xff]   ;;  %v12682_v43 = vld [vmem:[%s18475_s1 + $0xd4] ss:$8 sps:$4 sm:$0xff]  }
 0x325   :  { %2789 = vmatprep.subr.bf16.mxu1 %v12664_v30  ;;  %19834 = vst [vmem:[#allocation119_spill] sm:$0xff] %v12676_v39  ;;  %19835 = vst [vmem:[#allocation120_spill] sm:$0xff] %v12682_v43  ;;  %v12688_v30 = vld [vmem:[%s18475_s1 + $0x1d4] ss:$8 sps:$4 sm:$0xff]  }
 0x326   :  { %19836 = vst [vmem:[#allocation121_spill] sm:$0xff] %v12688_v30 }
 0x327   :  { %2749 = vmatpush2.bf16.msra.mxu0 %v12670_v37  ;;  %v12694_v37 = vld [vmem:[%s18475_s1 + $0xd0] ss:$8 sps:$4 sm:$0xff]  }
 0x328   :  { %2790 = vmatpush2.bf16.msra.mxu1 %v12676_v39  ;;  %2750 = vmatprep.subr.bf16.mxu0 %v12682_v43  ;;  %19837 = vst [vmem:[#allocation122_spill] sm:$0xff] %v12694_v37  ;;  %v12700_v39 = vld [vmem:[%s18475_s1 + $0x1d0] ss:$8 sps:$4 sm:$0xff]   ;;  %v12706_v43 = vld [vmem:[%s18475_s1 + $0xc4] ss:$8 sps:$4 sm:$0xff]  }
 0x329   :  { %2791 = vmatprep.subr.bf16.mxu1 %v12688_v30  ;;  %19838 = vst [vmem:[#allocation123_spill] sm:$0xff] %v12700_v39  ;;  %19839 = vst [vmem:[#allocation124_spill] sm:$0xff] %v12706_v43  ;;  %v12712_v30 = vld [vmem:[%s18475_s1 + $0x1c4] ss:$8 sps:$4 sm:$0xff]  }
 0x32a   :  { %19840 = vst [vmem:[#allocation125_spill] sm:$0xff] %v12712_v30 }
 0x32b   :  { %2751 = vmatpush2.bf16.msra.mxu0 %v12694_v37  ;;  %v12718_v37 = vld [vmem:[%s18475_s1 + $0xc0] ss:$8 sps:$4 sm:$0xff]  }
 0x32c   :  { %2792 = vmatpush2.bf16.msra.mxu1 %v12700_v39  ;;  %2752 = vmatprep.subr.bf16.mxu0 %v12706_v43  ;;  %19841 = vst [vmem:[#allocation126_spill] sm:$0xff] %v12718_v37  ;;  %v12724_v39 = vld [vmem:[%s18475_s1 + $0x1c0] ss:$8 sps:$4 sm:$0xff]   ;;  %v12730_v43 = vld [vmem:[%s18475_s1 + $0xb4] ss:$8 sps:$4 sm:$0xff]  }
 0x32d   :  { %2793 = vmatprep.subr.bf16.mxu1 %v12712_v30  ;;  %19842 = vst [vmem:[#allocation127_spill] sm:$0xff] %v12724_v39  ;;  %19843 = vst [vmem:[#allocation128_spill] sm:$0xff] %v12730_v43  ;;  %v12736_v30 = vld [vmem:[%s18475_s1 + $0x1b4] ss:$8 sps:$4 sm:$0xff]  }
 0x32e   :  { %19844 = vst [vmem:[#allocation129_spill] sm:$0xff] %v12736_v30 }
 0x32f   :  { %2753 = vmatpush2.bf16.msra.mxu0 %v12718_v37  ;;  %v12742_v37 = vld [vmem:[%s18475_s1 + $0xb0] ss:$8 sps:$4 sm:$0xff]  }
 0x330   :  { %2794 = vmatpush2.bf16.msra.mxu1 %v12724_v39  ;;  %2754 = vmatprep.subr.bf16.mxu0 %v12730_v43  ;;  %19845 = vst [vmem:[#allocation130_spill] sm:$0xff] %v12742_v37  ;;  %v12748_v39 = vld [vmem:[%s18475_s1 + $0x1b0] ss:$8 sps:$4 sm:$0xff]   ;;  %v12754_v43 = vld [vmem:[%s18475_s1 + $0xa4] ss:$8 sps:$4 sm:$0xff]  }
 0x331   :  { %2795 = vmatprep.subr.bf16.mxu1 %v12736_v30  ;;  %19846 = vst [vmem:[#allocation131_spill] sm:$0xff] %v12748_v39  ;;  %19847 = vst [vmem:[#allocation132_spill] sm:$0xff] %v12754_v43  ;;  %v12760_v30 = vld [vmem:[%s18475_s1 + $0x1a4] ss:$8 sps:$4 sm:$0xff]  }
 0x332   :  { %19848 = vst [vmem:[#allocation133_spill] sm:$0xff] %v12760_v30 }
 0x333   :  { %2755 = vmatpush2.bf16.msra.mxu0 %v12742_v37  ;;  %v12766_v37 = vld [vmem:[%s18475_s1 + $0xa0] ss:$8 sps:$4 sm:$0xff]  }
 0x334   :  { %2796 = vmatpush2.bf16.msra.mxu1 %v12748_v39  ;;  %2756 = vmatprep.subr.bf16.mxu0 %v12754_v43  ;;  %19849 = vst [vmem:[#allocation134_spill] sm:$0xff] %v12766_v37  ;;  %v12772_v39 = vld [vmem:[%s18475_s1 + $0x1a0] ss:$8 sps:$4 sm:$0xff]   ;;  %v12778_v43 = vld [vmem:[%s18475_s1 + $0x94] ss:$8 sps:$4 sm:$0xff]  }
 0x335   :  { %2797 = vmatprep.subr.bf16.mxu1 %v12760_v30  ;;  %19850 = vst [vmem:[#allocation135_spill] sm:$0xff] %v12772_v39  ;;  %19851 = vst [vmem:[#allocation136_spill] sm:$0xff] %v12778_v43  ;;  %v12784_v30 = vld [vmem:[%s18475_s1 + $0x194] ss:$8 sps:$4 sm:$0xff]  }
 0x336   :  { %19852 = vst [vmem:[#allocation137_spill] sm:$0xff] %v12784_v30 }
 0x337   :  { %2757 = vmatpush2.bf16.msra.mxu0 %v12766_v37  ;;  %v12790_v37 = vld [vmem:[%s18475_s1 + $0x90] ss:$8 sps:$4 sm:$0xff]  }
 0x338   :  { %2798 = vmatpush2.bf16.msra.mxu1 %v12772_v39  ;;  %2758 = vmatprep.subr.bf16.mxu0 %v12778_v43  ;;  %19853 = vst [vmem:[#allocation138_spill] sm:$0xff] %v12790_v37  ;;  %v12796_v39 = vld [vmem:[%s18475_s1 + $0x190] ss:$8 sps:$4 sm:$0xff]   ;;  %v12802_v43 = vld [vmem:[%s18475_s1 + $0x84] ss:$8 sps:$4 sm:$0xff]  }
 0x339   :  { %2799 = vmatprep.subr.bf16.mxu1 %v12784_v30  ;;  %19854 = vst [vmem:[#allocation139_spill] sm:$0xff] %v12796_v39  ;;  %19855 = vst [vmem:[#allocation140_spill] sm:$0xff] %v12802_v43  ;;  %v12808_v30 = vld [vmem:[%s18475_s1 + $0x184] ss:$8 sps:$4 sm:$0xff]  }
 0x33a   :  { %19856 = vst [vmem:[#allocation141_spill] sm:$0xff] %v12808_v30 }
 0x33b   :  { %2759 = vmatpush2.bf16.msra.mxu0 %v12790_v37  ;;  %v12814_v37 = vld [vmem:[%s18475_s1 + $0x80] ss:$8 sps:$4 sm:$0xff]  }
 0x33c   :  { %2800 = vmatpush2.bf16.msra.mxu1 %v12796_v39  ;;  %2760 = vmatprep.subr.bf16.mxu0 %v12802_v43  ;;  %19857 = vst [vmem:[#allocation142_spill] sm:$0xff] %v12814_v37  ;;  %v12820_v39 = vld [vmem:[%s18475_s1 + $0x180] ss:$8 sps:$4 sm:$0xff]   ;;  %v12826_v43 = vld [vmem:[%s18475_s1 + $0x274] ss:$8 sps:$4 sm:$0xff]  }
 0x33d   :  { %2801 = vmatprep.subr.bf16.mxu1 %v12808_v30  ;;  %19858 = vst [vmem:[#allocation143_spill] sm:$0xff] %v12820_v39  ;;  %19859 = vst [vmem:[#allocation144_spill] sm:$0xff] %v12826_v43  ;;  %v12832_v30 = vld [vmem:[%s18475_s1 + $0x374] ss:$8 sps:$4 sm:$0xff]  }
 0x33e   :  { %19860 = vst [vmem:[#allocation145_spill] sm:$0xff] %v12832_v30 }
 0x33f   :  { %2761 = vmatpush2.bf16.msra.mxu0 %v12814_v37 }
 0x340   :  { %2802 = vmatpush2.bf16.msra.mxu1 %v12820_v39  ;;  %2812 = vmatprep.subr.bf16.mxu0 %v12826_v43  ;;  %v12847_v43 = vld [vmem:[%s18475_s1 + $0x370] ss:$8 sps:$4 sm:$0xff]  }
 0x341   :  { %2853 = vmatprep.subr.bf16.mxu1 %v12832_v30  ;;  %19862 = vst [vmem:[#allocation147_spill] sm:$0xff] %v12847_v43 }
 0x342   :  { %v2506_v37 = vpop.f32.mrf.mxu0  ;;  %2763 = vmatmul.mubr.bf16.vlgmr.msra.gmra.mxu0 %v11999_v31 }
 0x343   :  { %v2547_v51 = vpop.f32.mrf.mxu1  ;;  %2804 = vmatmul.mubr.bf16.vlgmr.msra.gmra.mxu1 %v12001_v56  ;;  %v2507_v39 = vadd.f32 %v2506_v37, %v12468_v38  ;;  %2813 = vmatpush1.bf16.msra.mxu0 %v12841_v44  ;;  %v12853_v38 = vld [vmem:[%s18475_s1 + $0x264] ss:$8 sps:$4 sm:$0xff]  }
 0x344   :  { %2854 = vmatpush1.bf16.msra.mxu1 %v12847_v43  ;;  %v2508_v30 = vpop.f32.mrf.mxu0  ;;  %19863 = vst [vmem:[#allocation148_spill] sm:$0xff] %v12853_v38  ;;  %2814 = vmatprep.subr.bf16.mxu0 %v12853_v38  ;;  %v12859_v56 = vld [vmem:[%s18475_s1 + $0x364] ss:$8 sps:$4 sm:$0xff]   ;;  %v12872_v38 = vld [vmem:[%s18475_s1 + $0x260] ss:$8 sps:$4 sm:$0xff]  }
 0x345   :  { %v2549_v31 = vpop.f32.mrf.mxu1  ;;  %2855 = vmatprep.subr.bf16.mxu1 %v12859_v56  ;;  %v12862_v37 = vadd.f32 %v2547_v51, %v2507_v39  ;;  %v2509_v43 = vadd.f32 %v2508_v30, %v12473_v50  ;;  %2844 = vmatprep.mubr.bf16.mxu0 %v12033_v63  ;;  %v12878_v51 = vld [vmem:[%s18475_s1 + $0x360] ss:$8 sps:$4 sm:$0xff]   ;;  %v12884_v50 = vld [vmem:[%s18475_s1 + $0x254] ss:$8 sps:$4 sm:$0xff]   ;;  %v12908_v30 = vld [vmem:[%s18475_s1 + $0x244] ss:$8 sps:$4 sm:$0xff]  }
 0x346   :  { %2885 = vmatprep.mubr.bf16.mxu1 %v12035_v55  ;;  %v2510_v44 = vpop.f32.mrf.mxu0  ;;  %19864 = vst [vmem:[#allocation149_spill] sm:$0xff] %v12878_v51  ;;  %19865 = vst [vmem:[#allocation150_spill] sm:$0xff] %v12884_v50  ;;  %v12914_v39 = vld [vmem:[%s18475_s1 + $0x344] ss:$8 sps:$4 sm:$0xff]  }
 0x347   :  { %v2551_v46 = vpop.f32.mrf.mxu1  ;;  %v12867_v54 = vadd.f32 %v2549_v31, %v2509_v43  ;;  %2815 = vmatpush1.bf16.msra.mxu0 %v12872_v38  ;;  %v12896_v44 = vld [vmem:[%s18475_s1 + $0x250] ss:$8 sps:$4 sm:$0xff]   ;;  %19869 = vst [vmem:[#allocation154_spill] sm:$0xff] %v12908_v30  ;;  %19870 = vst [vmem:[#allocation155_spill] sm:$0xff] %v12914_v39  ;;  %v12920_v31 = vld [vmem:[%s18475_s1 + $0x240] ss:$8 sps:$4 sm:$0xff]  }
 0x348   :  { %2856 = vmatpush1.bf16.msra.mxu1 %v12878_v51  ;;  %v2511_v63 = vpop.f32.mrf.mxu0  ;;  %2816 = vmatprep.subr.bf16.mxu0 %v12884_v50  ;;  %v12890_v46 = vld [vmem:[%s18475_s1 + $0x354] ss:$8 sps:$4 sm:$0xff]   ;;  %19867 = vst [vmem:[#allocation152_spill] sm:$0xff] %v12896_v44  ;;  %v12902_v43 = vld [vmem:[%s18475_s1 + $0x350] ss:$8 sps:$4 sm:$0xff]   ;;  %19871 = vst [vmem:[#allocation156_spill] sm:$0xff] %v12920_v31 }
 0x349   :  { %v2552_v55 = vpop.f32.mrf.mxu1  ;;  %19866 = vst [vmem:[#allocation151_spill] sm:$0xff] %v12890_v46  ;;  %2857 = vmatprep.subr.bf16.mxu1 %v12890_v46  ;;  %19868 = vst [vmem:[#allocation153_spill] sm:$0xff] %v12902_v43  ;;  %v12926_v63 = vld [vmem:[%s18475_s1 + $0x340] ss:$8 sps:$4 sm:$0xff]  }
 0x34a   :  { %19872 = vst [vmem:[#allocation157_spill] sm:$0xff] %v12926_v63  ;;  %v12932_v55 = vld [vmem:[%s18475_s1 + $0x234] ss:$8 sps:$4 sm:$0xff]  }
 0x34b   :  { %2817 = vmatpush1.bf16.msra.mxu0 %v12896_v44  ;;  %19873 = vst [vmem:[#allocation158_spill] sm:$0xff] %v12932_v55 }
 0x34c   :  { %2858 = vmatpush1.bf16.msra.mxu1 %v12902_v43  ;;  %2818 = vmatprep.subr.bf16.mxu0 %v12908_v30  ;;  %v13214_v30 = vld [vmem:[%s18475_s1 + $0x280] ss:$8 sps:$4 sm:$0xff]   ;;  %v13232_v43 = vld [vmem:[%s18475_s1 + $0x574] ss:$8 sps:$4 sm:$0xff]  }
 0x34d   :  { %2859 = vmatprep.subr.bf16.mxu1 %v12914_v39  ;;  %v12938_v39 = vld [vmem:[%s18475_s1 + $0x334] ss:$8 sps:$4 sm:$0xff]   ;;  %19919 = vst [vmem:[#allocation204_spill] sm:$0xff] %v13214_v30  ;;  %19922 = vst [vmem:[#allocation207_spill] sm:$0xff] %v13232_v43 }
 0x34e   :  { %19874 = vst [vmem:[#allocation159_spill] sm:$0xff] %v12938_v39 }
 0x34f   :  { %2819 = vmatpush1.bf16.msra.mxu0 %v12920_v31  ;;  %v12944_v31 = vld [vmem:[%s18475_s1 + $0x230] ss:$8 sps:$4 sm:$0xff]  }
 0x350   :  { %2860 = vmatpush1.bf16.msra.mxu1 %v12926_v63  ;;  %2820 = vmatprep.subr.bf16.mxu0 %v12932_v55  ;;  %19875 = vst [vmem:[#allocation160_spill] sm:$0xff] %v12944_v31  ;;  %v12950_v63 = vld [vmem:[%s18475_s1 + $0x330] ss:$8 sps:$4 sm:$0xff]   ;;  %v12956_v55 = vld [vmem:[%s18475_s1 + $0x224] ss:$8 sps:$4 sm:$0xff]  }
 0x351   :  { %2861 = vmatprep.subr.bf16.mxu1 %v12938_v39  ;;  %19876 = vst [vmem:[#allocation161_spill] sm:$0xff] %v12950_v63  ;;  %19877 = vst [vmem:[#allocation162_spill] sm:$0xff] %v12956_v55  ;;  %v12962_v39 = vld [vmem:[%s18475_s1 + $0x324] ss:$8 sps:$4 sm:$0xff]  }
 0x352   :  { %19878 = vst [vmem:[#allocation163_spill] sm:$0xff] %v12962_v39 }
 0x353   :  { %2821 = vmatpush1.bf16.msra.mxu0 %v12944_v31  ;;  %v12968_v31 = vld [vmem:[%s18475_s1 + $0x220] ss:$8 sps:$4 sm:$0xff]  }
 0x354   :  { %2862 = vmatpush1.bf16.msra.mxu1 %v12950_v63  ;;  %2822 = vmatprep.subr.bf16.mxu0 %v12956_v55  ;;  %19879 = vst [vmem:[#allocation164_spill] sm:$0xff] %v12968_v31  ;;  %v12974_v63 = vld [vmem:[%s18475_s1 + $0x320] ss:$8 sps:$4 sm:$0xff]   ;;  %v12980_v55 = vld [vmem:[%s18475_s1 + $0x214] ss:$8 sps:$4 sm:$0xff]  }
 0x355   :  { %2863 = vmatprep.subr.bf16.mxu1 %v12962_v39  ;;  %19880 = vst [vmem:[#allocation165_spill] sm:$0xff] %v12974_v63  ;;  %19881 = vst [vmem:[#allocation166_spill] sm:$0xff] %v12980_v55  ;;  %v12986_v39 = vld [vmem:[%s18475_s1 + $0x314] ss:$8 sps:$4 sm:$0xff]  }
 0x356   :  { %19882 = vst [vmem:[#allocation167_spill] sm:$0xff] %v12986_v39 }
 0x357   :  { %2823 = vmatpush1.bf16.msra.mxu0 %v12968_v31  ;;  %v12992_v31 = vld [vmem:[%s18475_s1 + $0x210] ss:$8 sps:$4 sm:$0xff]  }
 0x358   :  { %2864 = vmatpush1.bf16.msra.mxu1 %v12974_v63  ;;  %2824 = vmatprep.subr.bf16.mxu0 %v12980_v55  ;;  %19883 = vst [vmem:[#allocation168_spill] sm:$0xff] %v12992_v31  ;;  %v12998_v63 = vld [vmem:[%s18475_s1 + $0x310] ss:$8 sps:$4 sm:$0xff]   ;;  %v13004_v55 = vld [vmem:[%s18475_s1 + $0x204] ss:$8 sps:$4 sm:$0xff]  }
 0x359   :  { %2865 = vmatprep.subr.bf16.mxu1 %v12986_v39  ;;  %19884 = vst [vmem:[#allocation169_spill] sm:$0xff] %v12998_v63  ;;  %19885 = vst [vmem:[#allocation170_spill] sm:$0xff] %v13004_v55  ;;  %v13010_v39 = vld [vmem:[%s18475_s1 + $0x304] ss:$8 sps:$4 sm:$0xff]  }
 0x35a   :  { %19886 = vst [vmem:[#allocation171_spill] sm:$0xff] %v13010_v39 }
 0x35b   :  { %2825 = vmatpush1.bf16.msra.mxu0 %v12992_v31  ;;  %v13016_v31 = vld [vmem:[%s18475_s1 + $0x200] ss:$8 sps:$4 sm:$0xff]  }
 0x35c   :  { %2866 = vmatpush1.bf16.msra.mxu1 %v12998_v63  ;;  %2826 = vmatprep.subr.bf16.mxu0 %v13004_v55  ;;  %19887 = vst [vmem:[#allocation172_spill] sm:$0xff] %v13016_v31  ;;  %v13022_v63 = vld [vmem:[%s18475_s1 + $0x300] ss:$8 sps:$4 sm:$0xff]   ;;  %v13028_v55 = vld [vmem:[%s18475_s1 + $0x2f4] ss:$8 sps:$4 sm:$0xff]  }
 0x35d   :  { %2867 = vmatprep.subr.bf16.mxu1 %v13010_v39  ;;  %19888 = vst [vmem:[#allocation173_spill] sm:$0xff] %v13022_v63  ;;  %19889 = vst [vmem:[#allocation174_spill] sm:$0xff] %v13028_v55  ;;  %v13034_v39 = vld [vmem:[%s18475_s1 + $0x3f4] ss:$8 sps:$4 sm:$0xff]  }
 0x35e   :  { %19890 = vst [vmem:[#allocation175_spill] sm:$0xff] %v13034_v39 }
 0x35f   :  { %2827 = vmatpush1.bf16.msra.mxu0 %v13016_v31  ;;  %v13040_v31 = vld [vmem:[%s18475_s1 + $0x2f0] ss:$8 sps:$4 sm:$0xff]  }
 0x360   :  { %2868 = vmatpush1.bf16.msra.mxu1 %v13022_v63  ;;  %2828 = vmatprep.subr.bf16.mxu0 %v13028_v55  ;;  %19891 = vst [vmem:[#allocation176_spill] sm:$0xff] %v13040_v31  ;;  %v13046_v63 = vld [vmem:[%s18475_s1 + $0x3f0] ss:$8 sps:$4 sm:$0xff]   ;;  %v13052_v55 = vld [vmem:[%s18475_s1 + $0x2e4] ss:$8 sps:$4 sm:$0xff]  }
 0x361   :  { %2869 = vmatprep.subr.bf16.mxu1 %v13034_v39  ;;  %19892 = vst [vmem:[#allocation177_spill] sm:$0xff] %v13046_v63  ;;  %19893 = vst [vmem:[#allocation178_spill] sm:$0xff] %v13052_v55  ;;  %v13058_v39 = vld [vmem:[%s18475_s1 + $0x3e4] ss:$8 sps:$4 sm:$0xff]  }
 0x362   :  { %19894 = vst [vmem:[#allocation179_spill] sm:$0xff] %v13058_v39 }
 0x363   :  { %2829 = vmatpush2.bf16.msra.mxu0 %v13040_v31  ;;  %v13064_v31 = vld [vmem:[%s18475_s1 + $0x2e0] ss:$8 sps:$4 sm:$0xff]  }
 0x364   :  { %2870 = vmatpush2.bf16.msra.mxu1 %v13046_v63  ;;  %2830 = vmatprep.subr.bf16.mxu0 %v13052_v55  ;;  %19895 = vst [vmem:[#allocation180_spill] sm:$0xff] %v13064_v31  ;;  %v13070_v63 = vld [vmem:[%s18475_s1 + $0x3e0] ss:$8 sps:$4 sm:$0xff]   ;;  %v13076_v55 = vld [vmem:[%s18475_s1 + $0x2d4] ss:$8 sps:$4 sm:$0xff]  }
 0x365   :  { %2871 = vmatprep.subr.bf16.mxu1 %v13058_v39  ;;  %19896 = vst [vmem:[#allocation181_spill] sm:$0xff] %v13070_v63  ;;  %19897 = vst [vmem:[#allocation182_spill] sm:$0xff] %v13076_v55  ;;  %v13082_v39 = vld [vmem:[%s18475_s1 + $0x3d4] ss:$8 sps:$4 sm:$0xff]  }
 0x366   :  { %19898 = vst [vmem:[#allocation183_spill] sm:$0xff] %v13082_v39 }
 0x367   :  { %2831 = vmatpush2.bf16.msra.mxu0 %v13064_v31  ;;  %v13088_v31 = vld [vmem:[%s18475_s1 + $0x2d0] ss:$8 sps:$4 sm:$0xff]  }
 0x368   :  { %2872 = vmatpush2.bf16.msra.mxu1 %v13070_v63  ;;  %2832 = vmatprep.subr.bf16.mxu0 %v13076_v55  ;;  %19899 = vst [vmem:[#allocation184_spill] sm:$0xff] %v13088_v31  ;;  %v13094_v63 = vld [vmem:[%s18475_s1 + $0x3d0] ss:$8 sps:$4 sm:$0xff]   ;;  %v13100_v55 = vld [vmem:[%s18475_s1 + $0x2c4] ss:$8 sps:$4 sm:$0xff]  }
 0x369   :  { %2873 = vmatprep.subr.bf16.mxu1 %v13082_v39  ;;  %19900 = vst [vmem:[#allocation185_spill] sm:$0xff] %v13094_v63  ;;  %19901 = vst [vmem:[#allocation186_spill] sm:$0xff] %v13100_v55  ;;  %v13106_v39 = vld [vmem:[%s18475_s1 + $0x3c4] ss:$8 sps:$4 sm:$0xff]  }
 0x36a   :  { %19902 = vst [vmem:[#allocation187_spill] sm:$0xff] %v13106_v39 }
 0x36b   :  { %2833 = vmatpush2.bf16.msra.mxu0 %v13088_v31  ;;  %v13112_v31 = vld [vmem:[%s18475_s1 + $0x2c0] ss:$8 sps:$4 sm:$0xff]  }
 0x36c   :  { %2874 = vmatpush2.bf16.msra.mxu1 %v13094_v63  ;;  %2834 = vmatprep.subr.bf16.mxu0 %v13100_v55  ;;  %19903 = vst [vmem:[#allocation188_spill] sm:$0xff] %v13112_v31  ;;  %v13118_v63 = vld [vmem:[%s18475_s1 + $0x3c0] ss:$8 sps:$4 sm:$0xff]   ;;  %v13124_v55 = vld [vmem:[%s18475_s1 + $0x2b4] ss:$8 sps:$4 sm:$0xff]  }
 0x36d   :  { %2875 = vmatprep.subr.bf16.mxu1 %v13106_v39  ;;  %19904 = vst [vmem:[#allocation189_spill] sm:$0xff] %v13118_v63  ;;  %19905 = vst [vmem:[#allocation190_spill] sm:$0xff] %v13124_v55  ;;  %v13130_v39 = vld [vmem:[%s18475_s1 + $0x3b4] ss:$8 sps:$4 sm:$0xff]  }
 0x36e   :  { %19906 = vst [vmem:[#allocation191_spill] sm:$0xff] %v13130_v39 }
 0x36f   :  { %2835 = vmatpush2.bf16.msra.mxu0 %v13112_v31  ;;  %v13136_v31 = vld [vmem:[%s18475_s1 + $0x2b0] ss:$8 sps:$4 sm:$0xff]  }
 0x370   :  { %2876 = vmatpush2.bf16.msra.mxu1 %v13118_v63  ;;  %2836 = vmatprep.subr.bf16.mxu0 %v13124_v55  ;;  %19907 = vst [vmem:[#allocation192_spill] sm:$0xff] %v13136_v31  ;;  %v13142_v63 = vld [vmem:[%s18475_s1 + $0x3b0] ss:$8 sps:$4 sm:$0xff]   ;;  %v13148_v55 = vld [vmem:[%s18475_s1 + $0x2a4] ss:$8 sps:$4 sm:$0xff]  }
 0x371   :  { %2877 = vmatprep.subr.bf16.mxu1 %v13130_v39  ;;  %19908 = vst [vmem:[#allocation193_spill] sm:$0xff] %v13142_v63  ;;  %19909 = vst [vmem:[#allocation194_spill] sm:$0xff] %v13148_v55  ;;  %v13154_v39 = vld [vmem:[%s18475_s1 + $0x3a4] ss:$8 sps:$4 sm:$0xff]  }
 0x372   :  { %19910 = vst [vmem:[#allocation195_spill] sm:$0xff] %v13154_v39 }
 0x373   :  { %2837 = vmatpush2.bf16.msra.mxu0 %v13136_v31  ;;  %v13160_v31 = vld [vmem:[%s18475_s1 + $0x2a0] ss:$8 sps:$4 sm:$0xff]  }
 0x374   :  { %2878 = vmatpush2.bf16.msra.mxu1 %v13142_v63  ;;  %2838 = vmatprep.subr.bf16.mxu0 %v13148_v55  ;;  %19911 = vst [vmem:[#allocation196_spill] sm:$0xff] %v13160_v31  ;;  %v13166_v63 = vld [vmem:[%s18475_s1 + $0x3a0] ss:$8 sps:$4 sm:$0xff]   ;;  %v13172_v55 = vld [vmem:[%s18475_s1 + $0x294] ss:$8 sps:$4 sm:$0xff]  }
 0x375   :  { %2879 = vmatprep.subr.bf16.mxu1 %v13154_v39  ;;  %19912 = vst [vmem:[#allocation197_spill] sm:$0xff] %v13166_v63  ;;  %19913 = vst [vmem:[#allocation198_spill] sm:$0xff] %v13172_v55  ;;  %v13178_v39 = vld [vmem:[%s18475_s1 + $0x394] ss:$8 sps:$4 sm:$0xff]  }
 0x376   :  { %19914 = vst [vmem:[#allocation199_spill] sm:$0xff] %v13178_v39 }
 0x377   :  { %2839 = vmatpush2.bf16.msra.mxu0 %v13160_v31  ;;  %v13184_v31 = vld [vmem:[%s18475_s1 + $0x290] ss:$8 sps:$4 sm:$0xff]  }
 0x378   :  { %2880 = vmatpush2.bf16.msra.mxu1 %v13166_v63  ;;  %2840 = vmatprep.subr.bf16.mxu0 %v13172_v55  ;;  %19915 = vst [vmem:[#allocation200_spill] sm:$0xff] %v13184_v31  ;;  %v13190_v63 = vld [vmem:[%s18475_s1 + $0x390] ss:$8 sps:$4 sm:$0xff]   ;;  %v13196_v55 = vld [vmem:[%s18475_s1 + $0x284] ss:$8 sps:$4 sm:$0xff]  }
 0x379   :  { %2881 = vmatprep.subr.bf16.mxu1 %v13178_v39  ;;  %19916 = vst [vmem:[#allocation201_spill] sm:$0xff] %v13190_v63  ;;  %19917 = vst [vmem:[#allocation202_spill] sm:$0xff] %v13196_v55  ;;  %v13202_v39 = vld [vmem:[%s18475_s1 + $0x384] ss:$8 sps:$4 sm:$0xff]  }
 0x37a   :  { %19918 = vst [vmem:[#allocation203_spill] sm:$0xff] %v13202_v39 }
 0x37b   :  { %2841 = vmatpush2.bf16.msra.mxu0 %v13184_v31  ;;  %v6915_v31 = vld [vmem:[%s18476_s0 + $0x108] sm:$0xff] }
 0x37c   :  { %2882 = vmatpush2.bf16.msra.mxu1 %v13190_v63  ;;  %2842 = vmatprep.subr.bf16.mxu0 %v13196_v55  ;;  %v6917_v63 = vld [vmem:[%s18476_s0 + $0x118] sm:$0xff]  ;;  %v13220_v55 = vld [vmem:[%s18475_s1 + $0x380] ss:$8 sps:$4 sm:$0xff]  }
 0x37d   :  { %2883 = vmatprep.subr.bf16.mxu1 %v13202_v39  ;;  %19920 = vst [vmem:[#allocation205_spill] sm:$0xff] %v13220_v55  ;;  %v13226_v39 = vld [vmem:[%s18475_s1 + $0x474] ss:$8 sps:$4 sm:$0xff]   ;;  %v13237_v44 = vpack.c.bf16 %v6917_v63, %v6917_v63 }
 0x37e   :  { %19921 = vst [vmem:[#allocation206_spill] sm:$0xff] %v13226_v39 }
 0x37f   :  { %2843 = vmatpush2.bf16.msra.mxu0 %v13214_v30  ;;  %v13235_v30 = vpack.c.bf16 %v6915_v31, %v6915_v31  ;;  %v13251_v31 = vld [vmem:[%s18475_s1 + $0x570] ss:$8 sps:$4 sm:$0xff]  }
 0x380   :  { %2884 = vmatpush2.bf16.msra.mxu1 %v13220_v55  ;;  %2894 = vmatprep.subr.bf16.mxu0 %v13226_v39  ;;  %v13245_v39 = vld [vmem:[%s18475_s1 + $0x470] ss:$8 sps:$4 sm:$0xff]   ;;  %19924 = vst [vmem:[#allocation209_spill] sm:$0xff] %v13251_v31 }
 0x381   :  { %2935 = vmatprep.subr.bf16.mxu1 %v13232_v43  ;;  %19923 = vst [vmem:[#allocation208_spill] sm:$0xff] %v13245_v39 }
 0x382   :  { %v2588_v46 = vpop.f32.mrf.mxu0  ;;  %2845 = vmatmul.mubr.bf16.vlgmr.msra.gmra.mxu0 %v12413_v52 }
 0x383   :  { %v2629_v55 = vpop.f32.mrf.mxu1  ;;  %2886 = vmatmul.mubr.bf16.vlgmr.msra.gmra.mxu1 %v12415_v59  ;;  %v2589_v50 = vadd.f32 %v2588_v46, %v12862_v37  ;;  %2895 = vmatpush1.bf16.msra.mxu0 %v13245_v39  ;;  %v13257_v59 = vld [vmem:[%s18475_s1 + $0x464] ss:$8 sps:$4 sm:$0xff]  }
 0x384   :  { %2936 = vmatpush1.bf16.msra.mxu1 %v13251_v31  ;;  %v2590_v63 = vpop.f32.mrf.mxu0  ;;  %19925 = vst [vmem:[#allocation210_spill] sm:$0xff] %v13257_v59  ;;  %2896 = vmatprep.subr.bf16.mxu0 %v13257_v59  ;;  %v13263_v37 = vld [vmem:[%s18475_s1 + $0x564] ss:$8 sps:$4 sm:$0xff]   ;;  %v13276_v59 = vld [vmem:[%s18475_s1 + $0x460] ss:$8 sps:$4 sm:$0xff]  }
 0x385   :  { %v2631_v52 = vpop.f32.mrf.mxu1  ;;  %2937 = vmatprep.subr.bf16.mxu1 %v13263_v37  ;;  %v13266_v46 = vadd.f32 %v2629_v55, %v2589_v50  ;;  %v2591_v31 = vadd.f32 %v2590_v63, %v12867_v54  ;;  %2926 = vmatprep.mubr.bf16.mxu0 %v13235_v30  ;;  %v13282_v50 = vld [vmem:[%s18475_s1 + $0x560] ss:$8 sps:$4 sm:$0xff]  }
 0x386   :  { %2967 = vmatprep.mubr.bf16.mxu1 %v13237_v44  ;;  %v2592_v39 = vpop.f32.mrf.mxu0  ;;  %v19953_v63 = vld [vmem:[#allocation31_spill] sm:$0xff] }
 0x387   :  { %v2633_v43 = vpop.f32.mrf.mxu1  ;;  %v13271_v51 = vadd.f32 %v2631_v52, %v2591_v31  ;;  %2897 = vmatpush1.bf16.msra.mxu0 %v13276_v59  ;;  %v13294_v39 = vld [vmem:[%s18475_s1 + $0x554] ss:$8 sps:$4 sm:$0xff]   ;;  %v13300_v31 = vld [vmem:[%s18475_s1 + $0x450] ss:$8 sps:$4 sm:$0xff]  }
 0x388   :  { %2938 = vmatpush1.bf16.msra.mxu1 %v13282_v50  ;;  %v2593_v54 = vpop.f32.mrf.mxu0  ;;  %v13288_v43 = vld [vmem:[%s18475_s1 + $0x454] ss:$8 sps:$4 sm:$0xff]  }
 0x389   :  { %v2634_v55 = vpop.f32.mrf.mxu1  ;;  %2898 = vmatprep.subr.bf16.mxu0 %v13288_v43  ;;  %2939 = vmatprep.subr.bf16.mxu1 %v13294_v39  ;;  %v19954_v52 = vld [vmem:[#allocation32_spill] sm:$0xff]  ;;  %v19956_v54 = vld [vmem:[#allocation34_spill] sm:$0xff] }
 0x38a   :  { %v19957_v55 = vld [vmem:[#allocation35_spill] sm:$0xff] }
 0x38b   :  { %2899 = vmatpush1.bf16.msra.mxu0 %v13300_v31 }
 0x38c   :  { %2940 = vmatpush1.bf16.msra.mxu1 %v11690_v25  ;;  %2900 = vmatprep.subr.bf16.mxu0 %v11696_v13  ;;  %v19926_v25 = vld [vmem:[#allocation4_spill] sm:$0xff]  ;;  %v19927_v13 = vld [vmem:[#allocation5_spill] sm:$0xff] }
 0x38d   :  { %2941 = vmatprep.subr.bf16.mxu1 %v11702_v18  ;;  %v19928_v18 = vld [vmem:[#allocation6_spill] sm:$0xff] }
 0x38f   :  { %2901 = vmatpush1.bf16.msra.mxu0 %v11708_v29  ;;  %v19929_v29 = vld [vmem:[#allocation7_spill] sm:$0xff] }
 0x390   :  { %2942 = vmatpush1.bf16.msra.mxu1 %v11714_v28  ;;  %2902 = vmatprep.subr.bf16.mxu0 %v11720_v24  ;;  %v19930_v28 = vld [vmem:[#allocation8_spill] sm:$0xff]  ;;  %v6914_v24 = vld [vmem:[%s18476_s0 + $0x100] sm:$0xff] }
 0x391   :  { %2943 = vmatprep.subr.bf16.mxu1 %v11726_v47  ;;  %v6916_v47 = vld [vmem:[%s18476_s0 + $0x110] sm:$0xff] }
 0x393   :  { %2903 = vmatpush1.bf16.msra.mxu0 %v11732_v57  ;;  %v19931_v57 = vld [vmem:[#allocation9_spill] sm:$0xff] }
 0x394   :  { %2944 = vmatpush1.bf16.msra.mxu1 %v11738_v58  ;;  %2904 = vmatprep.subr.bf16.mxu0 %v11744_v21  ;;  %v19932_v58 = vld [vmem:[#allocation10_spill] sm:$0xff]  ;;  %v13360_v21 = vpack.c.bf16 %v6914_v24, %v6914_v24  ;;  %v19963_v24 = vld [vmem:[#allocation41_spill] sm:$0xff] }
 0x395   :  { %2945 = vmatprep.subr.bf16.mxu1 %v11750_v27  ;;  %v13362_v27 = vpack.c.bf16 %v6916_v47, %v6916_v47  ;;  %v19964_v47 = vld [vmem:[#allocation42_spill] sm:$0xff] }
 0x397   :  { %2905 = vmatpush1.bf16.msra.mxu0 %v11756_v60  ;;  %v6919_v60 = vld [vmem:[%s18476_s0 + $0x128] sm:$0xff] }
 0x398   :  { %2946 = vmatpush1.bf16.msra.mxu1 %v11762_v61  ;;  %2906 = vmatprep.subr.bf16.mxu0 %v11768_v22  ;;  %v6921_v61 = vld [vmem:[%s18476_s0 + $0x138] sm:$0xff]  ;;  %v19933_v22 = vld [vmem:[#allocation11_spill] sm:$0xff] }
 0x399   :  { %2947 = vmatprep.subr.bf16.mxu1 %v11774_v20  ;;  %v19934_v20 = vld [vmem:[#allocation12_spill] sm:$0xff] }
 0x39b   :  { %2907 = vmatpush1.bf16.msra.mxu0 %v11780_v62  ;;  %v19935_v62 = vld [vmem:[#allocation13_spill] sm:$0xff] }
 0x39c   :  { %2948 = vmatpush1.bf16.msra.mxu1 %v11786_v0  ;;  %2908 = vmatprep.subr.bf16.mxu0 %v11792_v1  ;;  %v19936_v0 = vld [vmem:[#allocation14_spill] sm:$0xff]  ;;  %v13374_v1 = vpack.c.bf16 %v6919_v60, %v6919_v60  ;;  %v19967_v60 = vld [vmem:[#allocation45_spill] sm:$0xff] }
 0x39d   :  { %2949 = vmatprep.subr.bf16.mxu1 %v11798_v2  ;;  %v13376_v2 = vpack.c.bf16 %v6921_v61, %v6921_v61  ;;  %v19968_v61 = vld [vmem:[#allocation46_spill] sm:$0xff] }
 0x39f   :  { %2909 = vmatpush1.bf16.msra.mxu0 %v11804_v3 }
 0x3a0   :  { %2950 = vmatpush1.bf16.msra.mxu1 %v11810_v4  ;;  %2910 = vmatprep.subr.bf16.mxu0 %v11816_v5 }
 0x3a1   :  { %2951 = vmatprep.subr.bf16.mxu1 %v11822_v6  ;;  %v19937_v6 = vld [vmem:[#allocation15_spill] sm:$0xff] }
 0x3a3   :  { %2911 = vmatpush2.bf16.msra.mxu0 %v11828_v7  ;;  %v19938_v7 = vld [vmem:[#allocation16_spill] sm:$0xff] }
 0x3a4   :  { %2952 = vmatpush2.bf16.msra.mxu1 %v11834_v8  ;;  %2912 = vmatprep.subr.bf16.mxu0 %v11840_v9 }
 0x3a5   :  { %2953 = vmatprep.subr.bf16.mxu1 %v11846_v10  ;;  %v19939_v10 = vld [vmem:[#allocation17_spill] sm:$0xff] }
 0x3a7   :  { %2913 = vmatpush2.bf16.msra.mxu0 %v11852_v11  ;;  %v19940_v11 = vld [vmem:[#allocation18_spill] sm:$0xff] }
 0x3a8   :  { %2954 = vmatpush2.bf16.msra.mxu1 %v11858_v40  ;;  %2914 = vmatprep.subr.bf16.mxu0 %v11864_v41 }
 0x3a9   :  { %2955 = vmatprep.subr.bf16.mxu1 %v11870_v14 }
 0x3ab   :  { %2915 = vmatpush2.bf16.msra.mxu0 %v11876_v19 }
 0x3ac   :  { %2956 = vmatpush2.bf16.msra.mxu1 %v11882_v16  ;;  %2916 = vmatprep.subr.bf16.mxu0 %v11888_v32  ;;  %v19943_v32 = vld [vmem:[#allocation21_spill] sm:$0xff] }
 0x3ad   :  { %2957 = vmatprep.subr.bf16.mxu1 %v11894_v26  ;;  %v19944_v26 = vld [vmem:[#allocation22_spill] sm:$0xff] }
 0x3af   :  { %2917 = vmatpush2.bf16.msra.mxu0 %v11900_v33 }
 0x3b0   :  { %2958 = vmatpush2.bf16.msra.mxu1 %v11906_v53  ;;  %2918 = vmatprep.subr.bf16.mxu0 %v11912_v48  ;;  %v19945_v48 = vld [vmem:[#allocation23_spill] sm:$0xff] }
 0x3b1   :  { %2959 = vmatprep.subr.bf16.mxu1 %v11918_v49  ;;  %v19946_v49 = vld [vmem:[#allocation24_spill] sm:$0xff] }
 0x3b3   :  { %2919 = vmatpush2.bf16.msra.mxu0 %v11924_v34  ;;  %v19947_v34 = vld [vmem:[#allocation25_spill] sm:$0xff] }
 0x3b4   :  { %2960 = vmatpush2.bf16.msra.mxu1 %v11930_v35  ;;  %2920 = vmatprep.subr.bf16.mxu0 %v11936_v12  ;;  %v19948_v35 = vld [vmem:[#allocation26_spill] sm:$0xff]  ;;  %v19949_v12 = vld [vmem:[#allocation27_spill] sm:$0xff] }
 0x3b5   :  { %2961 = vmatprep.subr.bf16.mxu1 %v11942_v36  ;;  %v19950_v36 = vld [vmem:[#allocation28_spill] sm:$0xff] }
 0x3b7   :  { %2921 = vmatpush2.bf16.msra.mxu0 %v11948_v42  ;;  %v19951_v42 = vld [vmem:[#allocation29_spill] sm:$0xff] }
 0x3b8   :  { %2962 = vmatpush2.bf16.msra.mxu1 %v19926_v25  ;;  %2922 = vmatprep.subr.bf16.mxu0 %v19927_v13  ;;  %v19958_v25 = vld [vmem:[#allocation36_spill] sm:$0xff]  ;;  %v19959_v13 = vld [vmem:[#allocation37_spill] sm:$0xff] }
 0x3b9   :  { %2963 = vmatprep.subr.bf16.mxu1 %v19928_v18  ;;  %v19960_v18 = vld [vmem:[#allocation38_spill] sm:$0xff] }
 0x3bb   :  { %2923 = vmatpush2.bf16.msra.mxu0 %v19929_v29  ;;  %v19961_v29 = vld [vmem:[#allocation39_spill] sm:$0xff] }
 0x3bc   :  { %2964 = vmatpush2.bf16.msra.mxu1 %v19930_v28  ;;  %2924 = vmatprep.subr.bf16.mxu0 %v19931_v57  ;;  %v19962_v28 = vld [vmem:[#allocation40_spill] sm:$0xff]  ;;  %v19965_v57 = vld [vmem:[#allocation43_spill] sm:$0xff] }
 0x3bd   :  { %2965 = vmatprep.subr.bf16.mxu1 %v19932_v58  ;;  %v19966_v58 = vld [vmem:[#allocation44_spill] sm:$0xff] }
 0x3bf   :  { %2925 = vmatpush2.bf16.msra.mxu0 %v19933_v22  ;;  %v19969_v22 = vld [vmem:[#allocation47_spill] sm:$0xff] }
 0x3c0   :  { %2966 = vmatpush2.bf16.msra.mxu1 %v19934_v20  ;;  %2976 = vmatprep.subr.bf16.mxu0 %v19935_v62  ;;  %v19970_v20 = vld [vmem:[#allocation48_spill] sm:$0xff]  ;;  %v19971_v62 = vld [vmem:[#allocation49_spill] sm:$0xff] }
 0x3c1   :  { %3017 = vmatprep.subr.bf16.mxu1 %v19936_v0  ;;  %v19972_v0 = vld [vmem:[#allocation50_spill] sm:$0xff] }
 0x3c2   :  { %v2670_v3 = vpop.f32.mrf.mxu0  ;;  %2927 = vmatmul.mubr.bf16.vlgmr.msra.gmra.mxu0 %v13360_v21 }
 0x3c3   :  { %v2711_v4 = vpop.f32.mrf.mxu1  ;;  %2968 = vmatmul.mubr.bf16.vlgmr.msra.gmra.mxu1 %v13362_v27  ;;  %v2671_v5 = vadd.f32 %v2670_v3, %v13266_v46  ;;  %2977 = vmatpush1.bf16.msra.mxu0 %v19937_v6  ;;  %v19955_v46 = vld [vmem:[#allocation33_spill] sm:$0xff]  ;;  %v19973_v3 = vld [vmem:[#allocation51_spill] sm:$0xff]  ;;  %v19976_v6 = vld [vmem:[#allocation54_spill] sm:$0xff] }
 0x3c4   :  { %3018 = vmatpush1.bf16.msra.mxu1 %v19938_v7  ;;  %v2672_v8 = vpop.f32.mrf.mxu0  ;;  %2978 = vmatprep.subr.bf16.mxu0 %v19939_v10  ;;  %v19977_v7 = vld [vmem:[#allocation55_spill] sm:$0xff]  ;;  %v19980_v10 = vld [vmem:[#allocation58_spill] sm:$0xff] }
 0x3c5   :  { %v2713_v9 = vpop.f32.mrf.mxu1  ;;  %3019 = vmatprep.subr.bf16.mxu1 %v19940_v11  ;;  %v13385_v40 = vadd.f32 %v2711_v4, %v2671_v5  ;;  %v2673_v41 = vadd.f32 %v2672_v8, %v13271_v51  ;;  %3008 = vmatprep.mubr.bf16.mxu0 %v13374_v1  ;;  %v19952_v51 = vld [vmem:[#allocation30_spill] sm:$0xff]  ;;  %v19974_v4 = vld [vmem:[#allocation52_spill] sm:$0xff]  ;;  %v19975_v5 = vld [vmem:[#allocation53_spill] sm:$0xff] }
 0x3c6   :  { %3049 = vmatprep.mubr.bf16.mxu1 %v13376_v2  ;;  %v2674_v14 = vpop.f32.mrf.mxu0  ;;  %v19978_v8 = vld [vmem:[#allocation56_spill] sm:$0xff]  ;;  %v19981_v11 = vld [vmem:[#allocation59_spill] sm:$0xff] }
 0x3c7   :  { %19941 = vst [vmem:[#allocation4_spill] sm:$0xff] %v13385_v40  ;;  %v2715_v19 = vpop.f32.mrf.mxu1  ;;  %v13390_v16 = vadd.f32 %v2713_v9, %v2673_v41  ;;  %2979 = vmatpush1.bf16.msra.mxu0 %v19943_v32  ;;  %v19979_v9 = vld [vmem:[#allocation57_spill] sm:$0xff]  ;;  %v19982_v41 = vld [vmem:[#allocation60_spill] sm:$0xff]  ;;  %v19985_v32 = vld [vmem:[#allocation63_spill] sm:$0xff] }
 0x3c8   :  { %3020 = vmatpush1.bf16.msra.mxu1 %v19944_v26  ;;  %v2675_v33 = vpop.f32.mrf.mxu0  ;;  %2980 = vmatprep.subr.bf16.mxu0 %v19945_v48  ;;  %v19983_v14 = vld [vmem:[#allocation61_spill] sm:$0xff]  ;;  %v19984_v19 = vld [vmem:[#allocation62_spill] sm:$0xff]  ;;  %v19986_v26 = vld [vmem:[#allocation64_spill] sm:$0xff] }
 0x3c9   :  { %19942 = vst [vmem:[#allocation5_spill] sm:$0xff] %v13390_v16  ;;  %v2716_v53 = vpop.f32.mrf.mxu1  ;;  %3021 = vmatprep.subr.bf16.mxu1 %v19946_v49  ;;  %v19987_v33 = vld [vmem:[#allocation65_spill] sm:$0xff]  ;;  %v19989_v48 = vld [vmem:[#allocation67_spill] sm:$0xff]  ;;  %v19990_v49 = vld [vmem:[#allocation68_spill] sm:$0xff] }
 0x3ca   :  { %v19988_v53 = vld [vmem:[#allocation66_spill] sm:$0xff]  ;;  %v6929_v40 = vld [vmem:[%s18476_s0 + $0x178] sm:$0xff] }
 0x3cb   :  { %2981 = vmatpush1.bf16.msra.mxu0 %v19947_v34  ;;  %v19991_v34 = vld [vmem:[#allocation69_spill] sm:$0xff]  ;;  %v13964_v16 = vld [vmem:[%s18475_s1 + $0x480] ss:$8 sps:$4 sm:$0xff]  }
 0x3cc   :  { %3022 = vmatpush1.bf16.msra.mxu1 %v19948_v35  ;;  %2982 = vmatprep.subr.bf16.mxu0 %v19949_v12  ;;  %v19992_v35 = vld [vmem:[#allocation70_spill] sm:$0xff]  ;;  %v19993_v12 = vld [vmem:[#allocation72_spill] sm:$0xff]  ;;  %20137 = vst [vmem:[#allocation13_spill] sm:$0xff] %v13964_v16 }
 0x3cd   :  { %3023 = vmatprep.subr.bf16.mxu1 %v19950_v36  ;;  %v19994_v36 = vld [vmem:[#allocation73_spill] sm:$0xff] }
 0x3cf   :  { %2983 = vmatpush1.bf16.msra.mxu0 %v19951_v42  ;;  %v19995_v42 = vld [vmem:[#allocation74_spill] sm:$0xff] }
 0x3d0   :  { %3024 = vmatpush1.bf16.msra.mxu1 %v19952_v51  ;;  %2984 = vmatprep.subr.bf16.mxu0 %v19953_v63  ;;  %v19996_v51 = vld [vmem:[#allocation75_spill] sm:$0xff]  ;;  %v6918_v63 = vld [vmem:[%s18476_s0 + $0x120] sm:$0xff] }
 0x3d1   :  { %3025 = vmatprep.subr.bf16.mxu1 %v19954_v52  ;;  %v6920_v52 = vld [vmem:[%s18476_s0 + $0x130] sm:$0xff] }
 0x3d3   :  { %2985 = vmatpush1.bf16.msra.mxu0 %v19955_v46  ;;  %v19997_v46 = vld [vmem:[#allocation79_spill] sm:$0xff] }
 0x3d4   :  { %3026 = vmatpush1.bf16.msra.mxu1 %v19956_v54  ;;  %2986 = vmatprep.subr.bf16.mxu0 %v19957_v55  ;;  %v19998_v54 = vld [vmem:[#allocation80_spill] sm:$0xff]  ;;  %v13454_v55 = vpack.c.bf16 %v6918_v63, %v6918_v63  ;;  %v20030_v63 = vld [vmem:[#allocation111_spill] sm:$0xff] }
 0x3d5   :  { %3027 = vmatprep.subr.bf16.mxu1 %v19958_v25  ;;  %v13456_v25 = vpack.c.bf16 %v6920_v52, %v6920_v52  ;;  %v20031_v52 = vld [vmem:[#allocation112_spill] sm:$0xff] }
 0x3d7   :  { %2987 = vmatpush1.bf16.msra.mxu0 %v19959_v13  ;;  %v19999_v13 = vld [vmem:[#allocation81_spill] sm:$0xff] }
 0x3d8   :  { %3028 = vmatpush1.bf16.msra.mxu1 %v19960_v18  ;;  %2988 = vmatprep.subr.bf16.mxu0 %v19961_v29  ;;  %v20000_v18 = vld [vmem:[#allocation82_spill] sm:$0xff]  ;;  %v20001_v29 = vld [vmem:[#allocation83_spill] sm:$0xff] }
 0x3d9   :  { %3029 = vmatprep.subr.bf16.mxu1 %v19962_v28  ;;  %v20002_v28 = vld [vmem:[#allocation84_spill] sm:$0xff] }
 0x3db   :  { %2989 = vmatpush1.bf16.msra.mxu0 %v19963_v24 }
 0x3dc   :  { %3030 = vmatpush1.bf16.msra.mxu1 %v19964_v47  ;;  %2990 = vmatprep.subr.bf16.mxu0 %v19965_v57  ;;  %v20003_v57 = vld [vmem:[#allocation78_spill] sm:$0xff] }
 0x3dd   :  { %3031 = vmatprep.subr.bf16.mxu1 %v19966_v58 }
 0x3df   :  { %2991 = vmatpush1.bf16.msra.mxu0 %v19967_v60  ;;  %v20004_v60 = vld [vmem:[#allocation85_spill] sm:$0xff] }
 0x3e0   :  { %3032 = vmatpush1.bf16.msra.mxu1 %v19968_v61  ;;  %2992 = vmatprep.subr.bf16.mxu0 %v19969_v22  ;;  %v20005_v61 = vld [vmem:[#allocation86_spill] sm:$0xff] }
 0x3e1   :  { %3033 = vmatprep.subr.bf16.mxu1 %v19970_v20 }
 0x3e3   :  { %2993 = vmatpush2.bf16.msra.mxu0 %v19971_v62  ;;  %v20006_v62 = vld [vmem:[#allocation87_spill] sm:$0xff] }
 0x3e4   :  { %3034 = vmatpush2.bf16.msra.mxu1 %v19972_v0  ;;  %2994 = vmatprep.subr.bf16.mxu0 %v19973_v3 }
 0x3e5   :  { %3035 = vmatprep.subr.bf16.mxu1 %v19974_v4 }
 0x3e7   :  { %2995 = vmatpush2.bf16.msra.mxu0 %v19975_v5 }
 0x3e8   :  { %3036 = vmatpush2.bf16.msra.mxu1 %v19976_v6  ;;  %2996 = vmatprep.subr.bf16.mxu0 %v19977_v7 }
 0x3e9   :  { %3037 = vmatprep.subr.bf16.mxu1 %v19978_v8 }
 0x3eb   :  { %2997 = vmatpush2.bf16.msra.mxu0 %v19979_v9  ;;  %v20007_v9 = vld [vmem:[#allocation88_spill] sm:$0xff] }
 0x3ec   :  { %3038 = vmatpush2.bf16.msra.mxu1 %v19980_v10  ;;  %2998 = vmatprep.subr.bf16.mxu0 %v19981_v11  ;;  %v20009_v10 = vld [vmem:[#allocation90_spill] sm:$0xff]  ;;  %v20010_v11 = vld [vmem:[#allocation91_spill] sm:$0xff] }
 0x3ed   :  { %3039 = vmatprep.subr.bf16.mxu1 %v19982_v41  ;;  %v20013_v41 = vld [vmem:[#allocation94_spill] sm:$0xff] }
 0x3ef   :  { %2999 = vmatpush2.bf16.msra.mxu0 %v19983_v14  ;;  %v20014_v14 = vld [vmem:[#allocation95_spill] sm:$0xff] }
 0x3f0   :  { %3040 = vmatpush2.bf16.msra.mxu1 %v19984_v19  ;;  %3000 = vmatprep.subr.bf16.mxu0 %v19985_v32  ;;  %v20017_v19 = vld [vmem:[#allocation98_spill] sm:$0xff]  ;;  %v20018_v32 = vld [vmem:[#allocation99_spill] sm:$0xff] }
 0x3f1   :  { %3041 = vmatprep.subr.bf16.mxu1 %v19986_v26  ;;  %v20019_v26 = vld [vmem:[#allocation100_spill] sm:$0xff] }
 0x3f3   :  { %3001 = vmatpush2.bf16.msra.mxu0 %v19987_v33  ;;  %v20020_v33 = vld [vmem:[#allocation101_spill] sm:$0xff] }
 0x3f4   :  { %3042 = vmatpush2.bf16.msra.mxu1 %v19988_v53  ;;  %3002 = vmatprep.subr.bf16.mxu0 %v19989_v48  ;;  %v20021_v53 = vld [vmem:[#allocation102_spill] sm:$0xff]  ;;  %v20022_v48 = vld [vmem:[#allocation103_spill] sm:$0xff] }
 0x3f5   :  { %3043 = vmatprep.subr.bf16.mxu1 %v19990_v49  ;;  %v20023_v49 = vld [vmem:[#allocation104_spill] sm:$0xff] }
 0x3f7   :  { %3003 = vmatpush2.bf16.msra.mxu0 %v19991_v34  ;;  %v20024_v34 = vld [vmem:[#allocation105_spill] sm:$0xff] }
 0x3f8   :  { %3044 = vmatpush2.bf16.msra.mxu1 %v19992_v35  ;;  %3004 = vmatprep.subr.bf16.mxu0 %v19993_v12  ;;  %v20025_v35 = vld [vmem:[#allocation106_spill] sm:$0xff]  ;;  %v20026_v12 = vld [vmem:[#allocation107_spill] sm:$0xff] }
 0x3f9   :  { %3045 = vmatprep.subr.bf16.mxu1 %v19994_v36  ;;  %v20027_v36 = vld [vmem:[#allocation108_spill] sm:$0xff] }
 0x3fb   :  { %3005 = vmatpush2.bf16.msra.mxu0 %v19995_v42  ;;  %v20028_v42 = vld [vmem:[#allocation109_spill] sm:$0xff] }
 0x3fc   :  { %3046 = vmatpush2.bf16.msra.mxu1 %v19996_v51  ;;  %3006 = vmatprep.subr.bf16.mxu0 %v19997_v46  ;;  %v20029_v51 = vld [vmem:[#allocation110_spill] sm:$0xff]  ;;  %v20032_v46 = vld [vmem:[#allocation113_spill] sm:$0xff] }
 0x3fd   :  { %3047 = vmatprep.subr.bf16.mxu1 %v19998_v54  ;;  %v20033_v54 = vld [vmem:[#allocation114_spill] sm:$0xff] }
 0x3ff   :  { %3007 = vmatpush2.bf16.msra.mxu0 %v19999_v13  ;;  %v20034_v13 = vld [vmem:[#allocation115_spill] sm:$0xff] }
 0x400   :  { %3048 = vmatpush2.bf16.msra.mxu1 %v20000_v18  ;;  %3070 = vmatprep.subr.bf16.mxu0 %v20001_v29  ;;  %v20035_v18 = vld [vmem:[#allocation116_spill] sm:$0xff]  ;;  %v20036_v29 = vld [vmem:[#allocation117_spill] sm:$0xff] }
 0x401   :  { %3111 = vmatprep.subr.bf16.mxu1 %v20002_v28  ;;  %v20037_v28 = vld [vmem:[#allocation118_spill] sm:$0xff] }
 0x402   :  { %v2764_v24 = vpop.f32.mrf.mxu0  ;;  %3009 = vmatmul.mubr.bf16.vlgmr.msra.gmra.mxu0 %v13454_v55 }
 0x403   :  { %v2805_v47 = vpop.f32.mrf.mxu1  ;;  %3050 = vmatmul.mubr.bf16.vlgmr.msra.gmra.mxu1 %v13456_v25  ;;  %v2765_v58 = vadd.f32 %v2764_v24, %v20003_v57  ;;  %3071 = vmatpush1.bf16.msra.mxu0 %v20004_v60  ;;  %v20038_v24 = vld [vmem:[#allocation119_spill] sm:$0xff]  ;;  %v20041_v60 = vld [vmem:[#allocation122_spill] sm:$0xff] }
 0x404   :  { %3112 = vmatpush1.bf16.msra.mxu1 %v20005_v61  ;;  %v2766_v22 = vpop.f32.mrf.mxu0  ;;  %3072 = vmatprep.subr.bf16.mxu0 %v20006_v62  ;;  %v20042_v61 = vld [vmem:[#allocation123_spill] sm:$0xff]  ;;  %v20045_v62 = vld [vmem:[#allocation126_spill] sm:$0xff] }
 0x405   :  { %v2807_v20 = vpop.f32.mrf.mxu1  ;;  %3113 = vmatprep.subr.bf16.mxu1 %v12465_v45  ;;  %v13469_v0 = vadd.f32 %v2805_v47, %v2765_v58  ;;  %v2767_v3 = vadd.f32 %v2766_v22, %v10487_v15  ;;  %3102 = vmatprep.mubr.bf16.mxu0 %v13235_v30  ;;  %v20008_v45 = vld [vmem:[#allocation89_spill] sm:$0xff]  ;;  %v20011_v30 = vld [vmem:[#allocation92_spill] sm:$0xff] }
 0x406   :  { %3143 = vmatprep.mubr.bf16.mxu1 %v13237_v44  ;;  %v2768_v4 = vpop.f32.mrf.mxu0  ;;  %v20012_v44 = vld [vmem:[#allocation93_spill] sm:$0xff]  ;;  %v20039_v47 = vld [vmem:[#allocation120_spill] sm:$0xff] }
 0x407   :  { %v2809_v5 = vpop.f32.mrf.mxu1  ;;  %v13474_v6 = vadd.f32 %v2807_v20, %v2767_v3  ;;  %3073 = vmatpush1.bf16.msra.mxu0 %v12478_v17  ;;  %v20015_v17 = vld [vmem:[#allocation96_spill] sm:$0xff]  ;;  %v20040_v58 = vld [vmem:[#allocation121_spill] sm:$0xff]  ;;  %v20046_v3 = vld [vmem:[#allocation127_spill] sm:$0xff] }
 0x408   :  { %3114 = vmatpush1.bf16.msra.mxu1 %v12484_v23  ;;  %v2769_v7 = vpop.f32.mrf.mxu0  ;;  %3074 = vmatprep.subr.bf16.mxu0 %v20007_v9  ;;  %v20016_v23 = vld [vmem:[#allocation97_spill] sm:$0xff]  ;;  %v20043_v22 = vld [vmem:[#allocation124_spill] sm:$0xff] }
 0x409   :  { %v2810_v8 = vpop.f32.mrf.mxu1  ;;  %3115 = vmatprep.subr.bf16.mxu1 %v20008_v45  ;;  %v20044_v20 = vld [vmem:[#allocation125_spill] sm:$0xff]  ;;  %v20047_v4 = vld [vmem:[#allocation128_spill] sm:$0xff]  ;;  %v20049_v7 = vld [vmem:[#allocation130_spill] sm:$0xff] }
 0x40a   :  { %v20048_v5 = vld [vmem:[#allocation129_spill] sm:$0xff]  ;;  %v20050_v8 = vld [vmem:[#allocation131_spill] sm:$0xff]  ;;  %v20051_v9 = vld [vmem:[#allocation132_spill] sm:$0xff] }
 0x40b   :  { %3075 = vmatpush1.bf16.msra.mxu0 %v20009_v10  ;;  %v20052_v45 = vld [vmem:[#allocation133_spill] sm:$0xff]  ;;  %v20053_v10 = vld [vmem:[#allocation134_spill] sm:$0xff] }
 0x40c   :  { %3116 = vmatpush1.bf16.msra.mxu1 %v20010_v11  ;;  %3076 = vmatprep.subr.bf16.mxu0 %v20011_v30  ;;  %v20054_v11 = vld [vmem:[#allocation135_spill] sm:$0xff]  ;;  %v20055_v30 = vld [vmem:[#allocation136_spill] sm:$0xff] }
 0x40d   :  { %3117 = vmatprep.subr.bf16.mxu1 %v20012_v44  ;;  %v20056_v44 = vld [vmem:[#allocation137_spill] sm:$0xff] }
 0x40f   :  { %3077 = vmatpush1.bf16.msra.mxu0 %v20013_v41  ;;  %v20057_v41 = vld [vmem:[#allocation138_spill] sm:$0xff] }
 0x410   :  { %3118 = vmatpush1.bf16.msra.mxu1 %v20014_v14  ;;  %3078 = vmatprep.subr.bf16.mxu0 %v20015_v17  ;;  %v20058_v14 = vld [vmem:[#allocation139_spill] sm:$0xff]  ;;  %v20059_v17 = vld [vmem:[#allocation140_spill] sm:$0xff] }
 0x411   :  { %3119 = vmatprep.subr.bf16.mxu1 %v20016_v23  ;;  %v20060_v23 = vld [vmem:[#allocation141_spill] sm:$0xff] }
 0x413   :  { %3079 = vmatpush1.bf16.msra.mxu0 %v20017_v19  ;;  %v20061_v19 = vld [vmem:[#allocation142_spill] sm:$0xff] }
 0x414   :  { %3120 = vmatpush1.bf16.msra.mxu1 %v20018_v32  ;;  %3080 = vmatprep.subr.bf16.mxu0 %v20019_v26  ;;  %v20062_v32 = vld [vmem:[#allocation143_spill] sm:$0xff]  ;;  %v20063_v26 = vld [vmem:[#allocation144_spill] sm:$0xff] }
 0x415   :  { %3121 = vmatprep.subr.bf16.mxu1 %v20020_v33  ;;  %v20064_v33 = vld [vmem:[#allocation145_spill] sm:$0xff] }
 0x417   :  { %3081 = vmatpush1.bf16.msra.mxu0 %v20021_v53 }
 0x418   :  { %3122 = vmatpush1.bf16.msra.mxu1 %v20022_v48  ;;  %3082 = vmatprep.subr.bf16.mxu0 %v20023_v49 }
 0x419   :  { %3123 = vmatprep.subr.bf16.mxu1 %v20024_v34  ;;  %v20065_v34 = vld [vmem:[#allocation146_spill] sm:$0xff] }
 0x41b   :  { %3083 = vmatpush1.bf16.msra.mxu0 %v20025_v35  ;;  %v20066_v35 = vld [vmem:[#allocation147_spill] sm:$0xff] }
 0x41c   :  { %3124 = vmatpush1.bf16.msra.mxu1 %v20026_v12  ;;  %3084 = vmatprep.subr.bf16.mxu0 %v20027_v36 }
 0x41d   :  { %3125 = vmatprep.subr.bf16.mxu1 %v20028_v42  ;;  %v20067_v42 = vld [vmem:[#allocation148_spill] sm:$0xff] }
 0x41f   :  { %3085 = vmatpush1.bf16.msra.mxu0 %v20029_v51 }
 0x420   :  { %3126 = vmatpush1.bf16.msra.mxu1 %v20030_v63  ;;  %3086 = vmatprep.subr.bf16.mxu0 %v20031_v52  ;;  %v20068_v52 = vld [vmem:[#allocation149_spill] sm:$0xff] }
 0x421   :  { %3127 = vmatprep.subr.bf16.mxu1 %v20032_v46 }
 0x423   :  { %3087 = vmatpush2.bf16.msra.mxu0 %v20033_v54 }
 0x424   :  { %3128 = vmatpush2.bf16.msra.mxu1 %v20034_v13  ;;  %3088 = vmatprep.subr.bf16.mxu0 %v20035_v18  ;;  %v20069_v13 = vld [vmem:[#allocation150_spill] sm:$0xff]  ;;  %v20071_v18 = vld [vmem:[#allocation152_spill] sm:$0xff] }
 0x425   :  { %3129 = vmatprep.subr.bf16.mxu1 %v20036_v29  ;;  %v20075_v29 = vld [vmem:[#allocation156_spill] sm:$0xff] }
 0x427   :  { %3089 = vmatpush2.bf16.msra.mxu0 %v20037_v28  ;;  %v20076_v28 = vld [vmem:[#allocation157_spill] sm:$0xff] }
 0x428   :  { %3130 = vmatpush2.bf16.msra.mxu1 %v20038_v24  ;;  %3090 = vmatprep.subr.bf16.mxu0 %v20039_v47  ;;  %v20078_v24 = vld [vmem:[#allocation159_spill] sm:$0xff]  ;;  %v20079_v47 = vld [vmem:[#allocation160_spill] sm:$0xff] }
 0x429   :  { %3131 = vmatprep.subr.bf16.mxu1 %v20040_v58  ;;  %v20080_v58 = vld [vmem:[#allocation161_spill] sm:$0xff] }
 0x42b   :  { %3091 = vmatpush2.bf16.msra.mxu0 %v20041_v60  ;;  %v20081_v60 = vld [vmem:[#allocation162_spill] sm:$0xff] }
 0x42c   :  { %3132 = vmatpush2.bf16.msra.mxu1 %v20042_v61  ;;  %3092 = vmatprep.subr.bf16.mxu0 %v20043_v22  ;;  %v20082_v61 = vld [vmem:[#allocation163_spill] sm:$0xff]  ;;  %v20083_v22 = vld [vmem:[#allocation164_spill] sm:$0xff] }
 0x42d   :  { %3133 = vmatprep.subr.bf16.mxu1 %v20044_v20  ;;  %v20084_v20 = vld [vmem:[#allocation165_spill] sm:$0xff] }
 0x42f   :  { %3093 = vmatpush2.bf16.msra.mxu0 %v20045_v62  ;;  %v20085_v62 = vld [vmem:[#allocation166_spill] sm:$0xff] }
 0x430   :  { %3134 = vmatpush2.bf16.msra.mxu1 %v20046_v3  ;;  %3094 = vmatprep.subr.bf16.mxu0 %v20047_v4  ;;  %v20086_v3 = vld [vmem:[#allocation167_spill] sm:$0xff]  ;;  %v20087_v4 = vld [vmem:[#allocation168_spill] sm:$0xff] }
 0x431   :  { %3135 = vmatprep.subr.bf16.mxu1 %v20048_v5  ;;  %v20088_v5 = vld [vmem:[#allocation169_spill] sm:$0xff] }
 0x433   :  { %3095 = vmatpush2.bf16.msra.mxu0 %v20049_v7  ;;  %v20089_v7 = vld [vmem:[#allocation170_spill] sm:$0xff] }
 0x434   :  { %3136 = vmatpush2.bf16.msra.mxu1 %v20050_v8  ;;  %3096 = vmatprep.subr.bf16.mxu0 %v20051_v9  ;;  %v20090_v8 = vld [vmem:[#allocation171_spill] sm:$0xff]  ;;  %v20091_v9 = vld [vmem:[#allocation172_spill] sm:$0xff] }
 0x435   :  { %3137 = vmatprep.subr.bf16.mxu1 %v20052_v45  ;;  %v20092_v45 = vld [vmem:[#allocation173_spill] sm:$0xff] }
 0x437   :  { %3097 = vmatpush2.bf16.msra.mxu0 %v20053_v10  ;;  %v20093_v10 = vld [vmem:[#allocation174_spill] sm:$0xff] }
 0x438   :  { %3138 = vmatpush2.bf16.msra.mxu1 %v20054_v11  ;;  %3098 = vmatprep.subr.bf16.mxu0 %v20055_v30  ;;  %v20094_v11 = vld [vmem:[#allocation175_spill] sm:$0xff]  ;;  %v20095_v30 = vld [vmem:[#allocation176_spill] sm:$0xff] }
 0x439   :  { %3139 = vmatprep.subr.bf16.mxu1 %v20056_v44  ;;  %v20096_v44 = vld [vmem:[#allocation177_spill] sm:$0xff] }
 0x43b   :  { %3099 = vmatpush2.bf16.msra.mxu0 %v20057_v41  ;;  %v20097_v41 = vld [vmem:[#allocation178_spill] sm:$0xff] }
 0x43c   :  { %3140 = vmatpush2.bf16.msra.mxu1 %v20058_v14  ;;  %3100 = vmatprep.subr.bf16.mxu0 %v20059_v17  ;;  %v20098_v14 = vld [vmem:[#allocation179_spill] sm:$0xff]  ;;  %v20099_v17 = vld [vmem:[#allocation180_spill] sm:$0xff] }
 0x43d   :  { %3141 = vmatprep.subr.bf16.mxu1 %v20060_v23  ;;  %v20100_v23 = vld [vmem:[#allocation181_spill] sm:$0xff] }
 0x43f   :  { %3101 = vmatpush2.bf16.msra.mxu0 %v20061_v19  ;;  %v20101_v19 = vld [vmem:[#allocation182_spill] sm:$0xff] }
 0x440   :  { %3142 = vmatpush2.bf16.msra.mxu1 %v20062_v32  ;;  %3152 = vmatprep.subr.bf16.mxu0 %v20063_v26  ;;  %v20102_v32 = vld [vmem:[#allocation183_spill] sm:$0xff]  ;;  %v20103_v26 = vld [vmem:[#allocation184_spill] sm:$0xff] }
 0x441   :  { %3193 = vmatprep.subr.bf16.mxu1 %v20064_v33  ;;  %v20104_v33 = vld [vmem:[#allocation185_spill] sm:$0xff] }
 0x442   :  { %v2846_v53 = vpop.f32.mrf.mxu0  ;;  %3103 = vmatmul.mubr.bf16.vlgmr.msra.gmra.mxu0 %v13360_v21 }
 0x443   :  { %v2887_v48 = vpop.f32.mrf.mxu1  ;;  %3144 = vmatmul.mubr.bf16.vlgmr.msra.gmra.mxu1 %v13362_v27  ;;  %v2847_v49 = vadd.f32 %v2846_v53, %v13469_v0  ;;  %3153 = vmatpush1.bf16.msra.mxu0 %v20065_v34  ;;  %v20105_v53 = vld [vmem:[#allocation186_spill] sm:$0xff]  ;;  %v20108_v34 = vld [vmem:[#allocation189_spill] sm:$0xff] }
 0x444   :  { %3194 = vmatpush1.bf16.msra.mxu1 %v20066_v35  ;;  %v2848_v12 = vpop.f32.mrf.mxu0  ;;  %3154 = vmatprep.subr.bf16.mxu0 %v20067_v42  ;;  %v20109_v35 = vld [vmem:[#allocation190_spill] sm:$0xff]  ;;  %v20112_v42 = vld [vmem:[#allocation193_spill] sm:$0xff] }
 0x445   :  { %v2889_v36 = vpop.f32.mrf.mxu1  ;;  %3195 = vmatprep.subr.bf16.mxu1 %v12859_v56  ;;  %v13543_v51 = vadd.f32 %v2887_v48, %v2847_v49  ;;  %v2849_v63 = vadd.f32 %v2848_v12, %v13474_v6  ;;  %3184 = vmatprep.mubr.bf16.mxu0 %v13374_v1  ;;  %v20070_v56 = vld [vmem:[#allocation151_spill] sm:$0xff]  ;;  %v20072_v6 = vld [vmem:[#allocation153_spill] sm:$0xff]  ;;  %v20073_v1 = vld [vmem:[#allocation154_spill] sm:$0xff] }
 0x446   :  { %3225 = vmatprep.mubr.bf16.mxu1 %v13376_v2  ;;  %v2850_v21 = vpop.f32.mrf.mxu0  ;;  %v20074_v2 = vld [vmem:[#allocation155_spill] sm:$0xff]  ;;  %v20107_v49 = vld [vmem:[#allocation188_spill] sm:$0xff] }
 0x447   :  { %v2891_v27 = vpop.f32.mrf.mxu1  ;;  %v13548_v0 = vadd.f32 %v2889_v36, %v2849_v63  ;;  %3155 = vmatpush1.bf16.msra.mxu0 %v12872_v38  ;;  %v20077_v38 = vld [vmem:[#allocation158_spill] sm:$0xff]  ;;  %v20106_v48 = vld [vmem:[#allocation187_spill] sm:$0xff]  ;;  %v20111_v36 = vld [vmem:[#allocation192_spill] sm:$0xff] }
 0x448   :  { %3196 = vmatpush1.bf16.msra.mxu1 %v20068_v52  ;;  %v2851_v46 = vpop.f32.mrf.mxu0  ;;  %3156 = vmatprep.subr.bf16.mxu0 %v20069_v13  ;;  %v20110_v12 = vld [vmem:[#allocation191_spill] sm:$0xff]  ;;  %v20113_v63 = vld [vmem:[#allocation194_spill] sm:$0xff]  ;;  %v20115_v27 = vld [vmem:[#allocation196_spill] sm:$0xff] }
 0x449   :  { %v2892_v54 = vpop.f32.mrf.mxu1  ;;  %3197 = vmatprep.subr.bf16.mxu1 %v20070_v56  ;;  %v20114_v21 = vld [vmem:[#allocation195_spill] sm:$0xff]  ;;  %v20116_v52 = vld [vmem:[#allocation197_spill] sm:$0xff]  ;;  %v20117_v46 = vld [vmem:[#allocation198_spill] sm:$0xff] }
 0x44a   :  { %v20118_v54 = vld [vmem:[#allocation199_spill] sm:$0xff]  ;;  %v20119_v13 = vld [vmem:[#allocation200_spill] sm:$0xff]  ;;  %v20120_v56 = vld [vmem:[#allocation201_spill] sm:$0xff] }
 0x44b   :  { %3157 = vmatpush1.bf16.msra.mxu0 %v20071_v18  ;;  %v20121_v18 = vld [vmem:[#allocation202_spill] sm:$0xff] }
 0x44c   :  { %3198 = vmatpush1.bf16.msra.mxu1 %v20072_v6  ;;  %3158 = vmatprep.subr.bf16.mxu0 %v20073_v1  ;;  %v20122_v6 = vld [vmem:[#allocation203_spill] sm:$0xff] }
 0x44d   :  { %3199 = vmatprep.subr.bf16.mxu1 %v20074_v2  ;;  %v6923_v1 = vld [vmem:[%s18476_s0 + $0x148] sm:$0xff]  ;;  %v6925_v2 = vld [vmem:[%s18476_s0 + $0x158] sm:$0xff] }
 0x44f   :  { %3159 = vmatpush1.bf16.msra.mxu0 %v20075_v29  ;;  %v20123_v29 = vld [vmem:[#allocation204_spill] sm:$0xff] }
 0x450   :  { %3200 = vmatpush1.bf16.msra.mxu1 %v20076_v28  ;;  %3160 = vmatprep.subr.bf16.mxu0 %v20077_v38  ;;  %v20124_v28 = vld [vmem:[#allocation205_spill] sm:$0xff]  ;;  %v20125_v38 = vld [vmem:[#allocation206_spill] sm:$0xff] }
 0x451   :  { %3201 = vmatprep.subr.bf16.mxu1 %v20078_v24  ;;  %v20126_v24 = vld [vmem:[#allocation207_spill] sm:$0xff] }
 0x453   :  { %3161 = vmatpush1.bf16.msra.mxu0 %v20079_v47  ;;  %v13616_v47 = vpack.c.bf16 %v6923_v1, %v6923_v1  ;;  %v13864_v1 = vld [vmem:[%s18475_s1 + $0x4b4] ss:$8 sps:$4 sm:$0xff]  }
 0x454   :  { %3202 = vmatpush1.bf16.msra.mxu1 %v20080_v58  ;;  %3162 = vmatprep.subr.bf16.mxu0 %v20081_v60  ;;  %v13618_v58 = vpack.c.bf16 %v6925_v2, %v6925_v2  ;;  %v13870_v2 = vld [vmem:[%s18475_s1 + $0x5b4] ss:$8 sps:$4 sm:$0xff]  }
 0x455   :  { %3203 = vmatprep.subr.bf16.mxu1 %v20082_v61 }
 0x457   :  { %3163 = vmatpush1.bf16.msra.mxu0 %v20083_v22 }
 0x458   :  { %3204 = vmatpush1.bf16.msra.mxu1 %v20084_v20  ;;  %3164 = vmatprep.subr.bf16.mxu0 %v20085_v62  ;;  %v20127_v20 = vld [vmem:[#allocation208_spill] sm:$0xff]  ;;  %v20128_v62 = vld [vmem:[#allocation209_spill] sm:$0xff] }
 0x459   :  { %3205 = vmatprep.subr.bf16.mxu1 %v20086_v3 }
 0x45b   :  { %3165 = vmatpush1.bf16.msra.mxu0 %v20087_v4 }
 0x45c   :  { %3206 = vmatpush1.bf16.msra.mxu1 %v20088_v5  ;;  %3166 = vmatprep.subr.bf16.mxu0 %v20089_v7  ;;  %v20129_v5 = vld [vmem:[#allocation210_spill] sm:$0xff] }
 0x45d   :  { %3207 = vmatprep.subr.bf16.mxu1 %v20090_v8 }
 0x45f   :  { %3167 = vmatpush1.bf16.msra.mxu0 %v20091_v9 }
 0x460   :  { %3208 = vmatpush1.bf16.msra.mxu1 %v20092_v45  ;;  %3168 = vmatprep.subr.bf16.mxu0 %v20093_v10  ;;  %v13684_v10 = vld [vmem:[%s18475_s1 + $0x430] ss:$8 sps:$4 sm:$0xff]  }
 0x461   :  { %3209 = vmatprep.subr.bf16.mxu1 %v20094_v11  ;;  %v13690_v11 = vld [vmem:[%s18475_s1 + $0x530] ss:$8 sps:$4 sm:$0xff]  }
 0x463   :  { %3169 = vmatpush2.bf16.msra.mxu0 %v20095_v30  ;;  %v13696_v30 = vld [vmem:[%s18475_s1 + $0x424] ss:$8 sps:$4 sm:$0xff]  }
 0x464   :  { %3210 = vmatpush2.bf16.msra.mxu1 %v20096_v44  ;;  %3170 = vmatprep.subr.bf16.mxu0 %v20097_v41  ;;  %v13702_v44 = vld [vmem:[%s18475_s1 + $0x524] ss:$8 sps:$4 sm:$0xff]   ;;  %v13708_v41 = vld [vmem:[%s18475_s1 + $0x420] ss:$8 sps:$4 sm:$0xff]  }
 0x465   :  { %3211 = vmatprep.subr.bf16.mxu1 %v20098_v14  ;;  %v13714_v14 = vld [vmem:[%s18475_s1 + $0x520] ss:$8 sps:$4 sm:$0xff]  }
 0x467   :  { %3171 = vmatpush2.bf16.msra.mxu0 %v20099_v17  ;;  %v13720_v17 = vld [vmem:[%s18475_s1 + $0x414] ss:$8 sps:$4 sm:$0xff]  }
 0x468   :  { %3212 = vmatpush2.bf16.msra.mxu1 %v20100_v23  ;;  %3172 = vmatprep.subr.bf16.mxu0 %v20101_v19  ;;  %v13726_v23 = vld [vmem:[%s18475_s1 + $0x514] ss:$8 sps:$4 sm:$0xff]   ;;  %v13732_v19 = vld [vmem:[%s18475_s1 + $0x410] ss:$8 sps:$4 sm:$0xff]  }
 0x469   :  { %3213 = vmatprep.subr.bf16.mxu1 %v20102_v32  ;;  %v13738_v32 = vld [vmem:[%s18475_s1 + $0x510] ss:$8 sps:$4 sm:$0xff]  }
 0x46b   :  { %3173 = vmatpush2.bf16.msra.mxu0 %v20103_v26  ;;  %v13744_v26 = vld [vmem:[%s18475_s1 + $0x404] ss:$8 sps:$4 sm:$0xff]  }
 0x46c   :  { %3214 = vmatpush2.bf16.msra.mxu1 %v20104_v33  ;;  %3174 = vmatprep.subr.bf16.mxu0 %v20105_v53  ;;  %v13750_v33 = vld [vmem:[%s18475_s1 + $0x504] ss:$8 sps:$4 sm:$0xff]   ;;  %v13756_v53 = vld [vmem:[%s18475_s1 + $0x400] ss:$8 sps:$4 sm:$0xff]  }
 0x46d   :  { %3215 = vmatprep.subr.bf16.mxu1 %v20106_v48  ;;  %v13762_v48 = vld [vmem:[%s18475_s1 + $0x500] ss:$8 sps:$4 sm:$0xff]  }
 0x46f   :  { %3175 = vmatpush2.bf16.msra.mxu0 %v20107_v49  ;;  %v13768_v49 = vld [vmem:[%s18475_s1 + $0x4f4] ss:$8 sps:$4 sm:$0xff]  }
 0x470   :  { %3216 = vmatpush2.bf16.msra.mxu1 %v20108_v34  ;;  %3176 = vmatprep.subr.bf16.mxu0 %v20109_v35  ;;  %v13774_v34 = vld [vmem:[%s18475_s1 + $0x5f4] ss:$8 sps:$4 sm:$0xff]   ;;  %v13780_v35 = vld [vmem:[%s18475_s1 + $0x4f0] ss:$8 sps:$4 sm:$0xff]  }
 0x471   :  { %3217 = vmatprep.subr.bf16.mxu1 %v20110_v12  ;;  %v13786_v12 = vld [vmem:[%s18475_s1 + $0x5f0] ss:$8 sps:$4 sm:$0xff]  }
 0x473   :  { %3177 = vmatpush2.bf16.msra.mxu0 %v20111_v36  ;;  %v13792_v36 = vld [vmem:[%s18475_s1 + $0x4e4] ss:$8 sps:$4 sm:$0xff]  }
 0x474   :  { %3218 = vmatpush2.bf16.msra.mxu1 %v20112_v42  ;;  %3178 = vmatprep.subr.bf16.mxu0 %v20113_v63  ;;  %v13798_v42 = vld [vmem:[%s18475_s1 + $0x5e4] ss:$8 sps:$4 sm:$0xff]   ;;  %v13804_v63 = vld [vmem:[%s18475_s1 + $0x4e0] ss:$8 sps:$4 sm:$0xff]  }
 0x475   :  { %3219 = vmatprep.subr.bf16.mxu1 %v20114_v21  ;;  %v13810_v21 = vld [vmem:[%s18475_s1 + $0x5e0] ss:$8 sps:$4 sm:$0xff]  }
 0x477   :  { %3179 = vmatpush2.bf16.msra.mxu0 %v20115_v27  ;;  %v13816_v27 = vld [vmem:[%s18475_s1 + $0x4d4] ss:$8 sps:$4 sm:$0xff]  }
 0x478   :  { %3220 = vmatpush2.bf16.msra.mxu1 %v20116_v52  ;;  %3180 = vmatprep.subr.bf16.mxu0 %v20117_v46  ;;  %v13822_v52 = vld [vmem:[%s18475_s1 + $0x5d4] ss:$8 sps:$4 sm:$0xff]   ;;  %v13828_v46 = vld [vmem:[%s18475_s1 + $0x4d0] ss:$8 sps:$4 sm:$0xff]  }
 0x479   :  { %3221 = vmatprep.subr.bf16.mxu1 %v20118_v54  ;;  %v13834_v54 = vld [vmem:[%s18475_s1 + $0x5d0] ss:$8 sps:$4 sm:$0xff]  }
 0x47b   :  { %3181 = vmatpush2.bf16.msra.mxu0 %v20119_v13  ;;  %v13840_v13 = vld [vmem:[%s18475_s1 + $0x4c4] ss:$8 sps:$4 sm:$0xff]  }
 0x47c   :  { %3222 = vmatpush2.bf16.msra.mxu1 %v20120_v56  ;;  %3182 = vmatprep.subr.bf16.mxu0 %v20121_v18  ;;  %v13846_v56 = vld [vmem:[%s18475_s1 + $0x5c4] ss:$8 sps:$4 sm:$0xff]   ;;  %v13852_v18 = vld [vmem:[%s18475_s1 + $0x4c0] ss:$8 sps:$4 sm:$0xff]  }
 0x47d   :  { %3223 = vmatprep.subr.bf16.mxu1 %v20122_v6  ;;  %v13858_v6 = vld [vmem:[%s18475_s1 + $0x5c0] ss:$8 sps:$4 sm:$0xff]  }
 0x47f   :  { %3183 = vmatpush2.bf16.msra.mxu0 %v20123_v29  ;;  %v13876_v29 = vld [vmem:[%s18475_s1 + $0x4b0] ss:$8 sps:$4 sm:$0xff]  }
 0x480   :  { %3224 = vmatpush2.bf16.msra.mxu1 %v20124_v28  ;;  %3234 = vmatprep.subr.bf16.mxu0 %v20125_v38  ;;  %v13882_v28 = vld [vmem:[%s18475_s1 + $0x5b0] ss:$8 sps:$4 sm:$0xff]   ;;  %v13888_v38 = vld [vmem:[%s18475_s1 + $0x4a4] ss:$8 sps:$4 sm:$0xff]  }
 0x481   :  { %3275 = vmatprep.subr.bf16.mxu1 %v20126_v24  ;;  %v13894_v24 = vld [vmem:[%s18475_s1 + $0x5a4] ss:$8 sps:$4 sm:$0xff]  }
 0x482   :  { %v2928_v60 = vpop.f32.mrf.mxu0  ;;  %3185 = vmatmul.mubr.bf16.vlgmr.msra.gmra.mxu0 %v13454_v55 }
 0x483   :  { %v2969_v61 = vpop.f32.mrf.mxu1  ;;  %3226 = vmatmul.mubr.bf16.vlgmr.msra.gmra.mxu1 %v13456_v25  ;;  %v2929_v22 = vadd.f32 %v2928_v60, %v13543_v51  ;;  %3235 = vmatpush1.bf16.msra.mxu0 %v20127_v20  ;;  %v13900_v60 = vld [vmem:[%s18475_s1 + $0x4a0] ss:$8 sps:$4 sm:$0xff]   ;;  %v13918_v20 = vld [vmem:[%s18475_s1 + $0x594] ss:$8 sps:$4 sm:$0xff]  }
 0x484   :  { %3276 = vmatpush1.bf16.msra.mxu1 %v20128_v62  ;;  %v2930_v3 = vpop.f32.mrf.mxu0  ;;  %3236 = vmatprep.subr.bf16.mxu0 %v20129_v5  ;;  %20132 = vst [vmem:[#allocation8_spill] sm:$0xff] %v13918_v20  ;;  %v13924_v62 = vld [vmem:[%s18475_s1 + $0x490] ss:$8 sps:$4 sm:$0xff]  }
 0x485   :  { %v2971_v4 = vpop.f32.mrf.mxu1  ;;  %3277 = vmatprep.subr.bf16.mxu1 %v13263_v37  ;;  %v13627_v7 = vadd.f32 %v2969_v61, %v2929_v22  ;;  %v2931_v8 = vadd.f32 %v2930_v3, %v13548_v0  ;;  %3266 = vmatprep.mubr.bf16.mxu0 %v13616_v47  ;;  %v13642_v37 = vld [vmem:[%s18475_s1 + $0x550] ss:$8 sps:$4 sm:$0xff]   ;;  %v13678_v0 = vld [vmem:[%s18475_s1 + $0x534] ss:$8 sps:$4 sm:$0xff]   ;;  %v13906_v61 = vld [vmem:[%s18475_s1 + $0x5a0] ss:$8 sps:$4 sm:$0xff]  }
 0x486   :  { %3307 = vmatprep.mubr.bf16.mxu1 %v13618_v58  ;;  %v2932_v55 = vpop.f32.mrf.mxu0  ;;  %20130 = vst [vmem:[#allocation6_spill] sm:$0xff] %v13906_v61  ;;  %v13912_v22 = vld [vmem:[%s18475_s1 + $0x494] ss:$8 sps:$4 sm:$0xff]   ;;  %20133 = vst [vmem:[#allocation9_spill] sm:$0xff] %v13924_v62  ;;  %v13930_v3 = vld [vmem:[%s18475_s1 + $0x590] ss:$8 sps:$4 sm:$0xff]  }
 0x487   :  { %v2973_v25 = vpop.f32.mrf.mxu1  ;;  %v13632_v51 = vadd.f32 %v2971_v4, %v2931_v8  ;;  %3237 = vmatpush1.bf16.msra.mxu0 %v13276_v59  ;;  %v13648_v59 = vld [vmem:[%s18475_s1 + $0x444] ss:$8 sps:$4 sm:$0xff]   ;;  %20131 = vst [vmem:[#allocation7_spill] sm:$0xff] %v13912_v22  ;;  %20134 = vst [vmem:[#allocation10_spill] sm:$0xff] %v13930_v3  ;;  %v6924_v5 = vld [vmem:[%s18476_s0 + $0x150] sm:$0xff] }
 0x488   :  { %3278 = vmatpush1.bf16.msra.mxu1 %v13282_v50  ;;  %v2933_v9 = vpop.f32.mrf.mxu0  ;;  %3238 = vmatprep.subr.bf16.mxu0 %v13288_v43  ;;  %v13654_v50 = vld [vmem:[%s18475_s1 + $0x544] ss:$8 sps:$4 sm:$0xff]   ;;  %v13660_v43 = vld [vmem:[%s18475_s1 + $0x440] ss:$8 sps:$4 sm:$0xff]  }
 0x489   :  { %v2974_v45 = vpop.f32.mrf.mxu1  ;;  %3279 = vmatprep.subr.bf16.mxu1 %v13294_v39  ;;  %v13666_v39 = vld [vmem:[%s18475_s1 + $0x540] ss:$8 sps:$4 sm:$0xff]   ;;  %v13942_v8 = vld [vmem:[%s18475_s1 + $0x484] ss:$8 sps:$4 sm:$0xff]   ;;  %v13953_v9 = vpack.c.bf16 %v6924_v5, %v6924_v5  ;;  %v13976_v5 = vld [vmem:[%s18475_s1 + $0x674] ss:$8 sps:$4 sm:$0xff]  }
 0x48a   :  { %v6922_v4 = vld [vmem:[%s18476_s0 + $0x140] sm:$0xff]  ;;  %20135 = vst [vmem:[#allocation11_spill] sm:$0xff] %v13942_v8  ;;  %v6927_v45 = vld [vmem:[%s18476_s0 + $0x168] sm:$0xff]  ;;  %20139 = vst [vmem:[#allocation15_spill] sm:$0xff] %v13976_v5 }
 0x48b   :  { %3239 = vmatpush1.bf16.msra.mxu0 %v13300_v31  ;;  %v13672_v31 = vld [vmem:[%s18475_s1 + $0x434] ss:$8 sps:$4 sm:$0xff]   ;;  %v13948_v55 = vld [vmem:[%s18475_s1 + $0x584] ss:$8 sps:$4 sm:$0xff]   ;;  %v13951_v25 = vpack.c.bf16 %v6922_v4, %v6922_v4  ;;  %v13970_v4 = vld [vmem:[%s18475_s1 + $0x580] ss:$8 sps:$4 sm:$0xff]  }
 0x48c   :  { %3280 = vmatpush1.bf16.msra.mxu1 %v13642_v37  ;;  %3240 = vmatprep.subr.bf16.mxu0 %v13648_v59  ;;  %20136 = vst [vmem:[#allocation12_spill] sm:$0xff] %v13948_v55  ;;  %20138 = vst [vmem:[#allocation14_spill] sm:$0xff] %v13970_v4 }
 0x48d   :  { %3281 = vmatprep.subr.bf16.mxu1 %v13654_v50 }
 0x48f   :  { %3241 = vmatpush1.bf16.msra.mxu0 %v13660_v43 }
 0x490   :  { %3282 = vmatpush1.bf16.msra.mxu1 %v13666_v39  ;;  %3242 = vmatprep.subr.bf16.mxu0 %v13672_v31 }
 0x491   :  { %3283 = vmatprep.subr.bf16.mxu1 %v13678_v0 }
 0x493   :  { %3243 = vmatpush1.bf16.msra.mxu0 %v13684_v10 }
 0x494   :  { %3284 = vmatpush1.bf16.msra.mxu1 %v13690_v11  ;;  %3244 = vmatprep.subr.bf16.mxu0 %v13696_v30 }
 0x495   :  { %3285 = vmatprep.subr.bf16.mxu1 %v13702_v44 }
 0x497   :  { %3245 = vmatpush1.bf16.msra.mxu0 %v13708_v41 }
 0x498   :  { %3286 = vmatpush1.bf16.msra.mxu1 %v13714_v14  ;;  %3246 = vmatprep.subr.bf16.mxu0 %v13720_v17 }
 0x499   :  { %3287 = vmatprep.subr.bf16.mxu1 %v13726_v23 }
 0x49b   :  { %3247 = vmatpush1.bf16.msra.mxu0 %v13732_v19 }
 0x49c   :  { %3288 = vmatpush1.bf16.msra.mxu1 %v13738_v32  ;;  %3248 = vmatprep.subr.bf16.mxu0 %v13744_v26 }
 0x49d   :  { %3289 = vmatprep.subr.bf16.mxu1 %v13750_v33 }
 0x49f   :  { %3249 = vmatpush1.bf16.msra.mxu0 %v13756_v53 }
 0x4a0   :  { %3290 = vmatpush1.bf16.msra.mxu1 %v13762_v48  ;;  %3250 = vmatprep.subr.bf16.mxu0 %v13768_v49 }
 0x4a1   :  { %3291 = vmatprep.subr.bf16.mxu1 %v13774_v34 }
 0x4a3   :  { %3251 = vmatpush2.bf16.msra.mxu0 %v13780_v35 }
 0x4a4   :  { %3292 = vmatpush2.bf16.msra.mxu1 %v13786_v12  ;;  %3252 = vmatprep.subr.bf16.mxu0 %v13792_v36 }
 0x4a5   :  { %3293 = vmatprep.subr.bf16.mxu1 %v13798_v42 }
 0x4a7   :  { %3253 = vmatpush2.bf16.msra.mxu0 %v13804_v63 }
 0x4a8   :  { %3294 = vmatpush2.bf16.msra.mxu1 %v13810_v21  ;;  %3254 = vmatprep.subr.bf16.mxu0 %v13816_v27 }
 0x4a9   :  { %3295 = vmatprep.subr.bf16.mxu1 %v13822_v52 }
 0x4ab   :  { %3255 = vmatpush2.bf16.msra.mxu0 %v13828_v46 }
 0x4ac   :  { %3296 = vmatpush2.bf16.msra.mxu1 %v13834_v54  ;;  %3256 = vmatprep.subr.bf16.mxu0 %v13840_v13 }
 0x4ad   :  { %3297 = vmatprep.subr.bf16.mxu1 %v13846_v56 }
 0x4af   :  { %3257 = vmatpush2.bf16.msra.mxu0 %v13852_v18 }
 0x4b0   :  { %3298 = vmatpush2.bf16.msra.mxu1 %v13858_v6  ;;  %3258 = vmatprep.subr.bf16.mxu0 %v13864_v1 }
 0x4b1   :  { %3299 = vmatprep.subr.bf16.mxu1 %v13870_v2 }
 0x4b3   :  { %3259 = vmatpush2.bf16.msra.mxu0 %v13876_v29 }
 0x4b4   :  { %3300 = vmatpush2.bf16.msra.mxu1 %v13882_v28  ;;  %3260 = vmatprep.subr.bf16.mxu0 %v13888_v38 }
 0x4b5   :  { %3301 = vmatprep.subr.bf16.mxu1 %v13894_v24 }
 0x4b7   :  { %3261 = vmatpush2.bf16.msra.mxu0 %v13900_v60 }
 0x4b8   :  { %3302 = vmatpush2.bf16.msra.mxu1 %v13906_v61  ;;  %3262 = vmatprep.subr.bf16.mxu0 %v13912_v22 }
 0x4b9   :  { %3303 = vmatprep.subr.bf16.mxu1 %v13918_v20 }
 0x4bb   :  { %3263 = vmatpush2.bf16.msra.mxu0 %v13924_v62 }
 0x4bc   :  { %3304 = vmatpush2.bf16.msra.mxu1 %v13930_v3  ;;  %3264 = vmatprep.subr.bf16.mxu0 %v13942_v8  ;;  %v13987_v8 = vpack.c.bf16 %v6929_v40, %v6929_v40  ;;  %v14001_v40 = vld [vmem:[%s18475_s1 + $0x770] ss:$8 sps:$4 sm:$0xff]  }
 0x4bd   :  { %3305 = vmatprep.subr.bf16.mxu1 %v13948_v55  ;;  %v13982_v55 = vld [vmem:[%s18475_s1 + $0x774] ss:$8 sps:$4 sm:$0xff]   ;;  %20142 = vst [vmem:[#allocation18_spill] sm:$0xff] %v14001_v40 }
 0x4be   :  { %20140 = vst [vmem:[#allocation16_spill] sm:$0xff] %v13982_v55 }
 0x4bf   :  { %3265 = vmatpush2.bf16.msra.mxu0 %v13964_v16  ;;  %v13985_v16 = vpack.c.bf16 %v6927_v45, %v6927_v45 }
 0x4c0   :  { %3306 = vmatpush2.bf16.msra.mxu1 %v13970_v4  ;;  %3316 = vmatprep.subr.bf16.mxu0 %v13976_v5  ;;  %v13995_v5 = vld [vmem:[%s18475_s1 + $0x670] ss:$8 sps:$4 sm:$0xff]  }
 0x4c1   :  { %3357 = vmatprep.subr.bf16.mxu1 %v13982_v55  ;;  %20141 = vst [vmem:[#allocation17_spill] sm:$0xff] %v13995_v5 }
 0x4c2   :  { %v3010_v3 = vpop.f32.mrf.mxu0  ;;  %3267 = vmatmul.mubr.bf16.vlgmr.msra.gmra.mxu0 %v13951_v25 }
 0x4c3   :  { %v3051_v4 = vpop.f32.mrf.mxu1  ;;  %3308 = vmatmul.mubr.bf16.vlgmr.msra.gmra.mxu1 %v13953_v9  ;;  %v3011_v62 = vadd.f32 %v3010_v3, %v13627_v7  ;;  %3317 = vmatpush1.bf16.msra.mxu0 %v13995_v5  ;;  %v14007_v7 = vld [vmem:[%s18475_s1 + $0x664] ss:$8 sps:$4 sm:$0xff]  }
 0x4c4   :  { %3358 = vmatpush1.bf16.msra.mxu1 %v14001_v40  ;;  %v3012_v45 = vpop.f32.mrf.mxu0  ;;  %20143 = vst [vmem:[#allocation21_spill] sm:$0xff] %v14007_v7  ;;  %3318 = vmatprep.subr.bf16.mxu0 %v14007_v7  ;;  %v14013_v3 = vld [vmem:[%s18475_s1 + $0x764] ss:$8 sps:$4 sm:$0xff]   ;;  %v14026_v7 = vld [vmem:[%s18475_s1 + $0x660] ss:$8 sps:$4 sm:$0xff]  }
 0x4c5   :  { %v3053_v55 = vpop.f32.mrf.mxu1  ;;  %20144 = vst [vmem:[#allocation22_spill] sm:$0xff] %v14013_v3  ;;  %3359 = vmatprep.subr.bf16.mxu1 %v14013_v3  ;;  %v14016_v5 = vadd.f32 %v3051_v4, %v3011_v62  ;;  %v3013_v40 = vadd.f32 %v3012_v45, %v13632_v51  ;;  %3348 = vmatprep.mubr.bf16.mxu0 %v13985_v16  ;;  %20147 = vst [vmem:[#allocation25_spill] sm:$0xff] %v14026_v7  ;;  %v14032_v62 = vld [vmem:[%s18475_s1 + $0x760] ss:$8 sps:$4 sm:$0xff]   ;;  %v14062_v45 = vld [vmem:[%s18475_s1 + $0x644] ss:$8 sps:$4 sm:$0xff]  }
 0x4c6   :  { %3389 = vmatprep.mubr.bf16.mxu1 %v13987_v8  ;;  %v3014_v20 = vpop.f32.mrf.mxu0  ;;  %20148 = vst [vmem:[#allocation26_spill] sm:$0xff] %v14032_v62  ;;  %20153 = vst [vmem:[#allocation31_spill] sm:$0xff] %v14062_v45 }
 0x4c7   :  { %20145 = vst [vmem:[#allocation23_spill] sm:$0xff] %v14016_v5  ;;  %v3055_v22 = vpop.f32.mrf.mxu1  ;;  %v14021_v61 = vadd.f32 %v3053_v55, %v3013_v40  ;;  %3319 = vmatpush1.bf16.msra.mxu0 %v14026_v7  ;;  %v14044_v20 = vld [vmem:[%s18475_s1 + $0x754] ss:$8 sps:$4 sm:$0xff]   ;;  %v14050_v55 = vld [vmem:[%s18475_s1 + $0x650] ss:$8 sps:$4 sm:$0xff]  }
 0x4c8   :  { %3360 = vmatpush1.bf16.msra.mxu1 %v14032_v62  ;;  %v3015_v51 = vpop.f32.mrf.mxu0  ;;  %v14038_v22 = vld [vmem:[%s18475_s1 + $0x654] ss:$8 sps:$4 sm:$0xff]   ;;  %20150 = vst [vmem:[#allocation28_spill] sm:$0xff] %v14044_v20  ;;  %20151 = vst [vmem:[#allocation29_spill] sm:$0xff] %v14050_v55  ;;  %v14056_v40 = vld [vmem:[%s18475_s1 + $0x750] ss:$8 sps:$4 sm:$0xff]  }
 0x4c9   :  { %20146 = vst [vmem:[#allocation24_spill] sm:$0xff] %v14021_v61  ;;  %v3056_v4 = vpop.f32.mrf.mxu1  ;;  %20149 = vst [vmem:[#allocation27_spill] sm:$0xff] %v14038_v22  ;;  %3320 = vmatprep.subr.bf16.mxu0 %v14038_v22  ;;  %3361 = vmatprep.subr.bf16.mxu1 %v14044_v20  ;;  %v14068_v51 = vld [vmem:[%s18475_s1 + $0x744] ss:$8 sps:$4 sm:$0xff]   ;;  %v14080_v5 = vld [vmem:[%s18475_s1 + $0x740] ss:$8 sps:$4 sm:$0xff]  }
 0x4ca   :  { %20152 = vst [vmem:[#allocation30_spill] sm:$0xff] %v14056_v40  ;;  %20154 = vst [vmem:[#allocation32_spill] sm:$0xff] %v14068_v51  ;;  %v14074_v4 = vld [vmem:[%s18475_s1 + $0x640] ss:$8 sps:$4 sm:$0xff]   ;;  %v14086_v61 = vld [vmem:[%s18475_s1 + $0x634] ss:$8 sps:$4 sm:$0xff]  }
 0x4cb   :  { %3321 = vmatpush1.bf16.msra.mxu0 %v14050_v55  ;;  %20155 = vst [vmem:[#allocation33_spill] sm:$0xff] %v14074_v4  ;;  %20156 = vst [vmem:[#allocation34_spill] sm:$0xff] %v14080_v5  ;;  %v14372_v55 = vld [vmem:[%s18475_s1 + $0x680] ss:$8 sps:$4 sm:$0xff]   ;;  %v14399_v20 = vld [vmem:[%s18475_s1 + $0x70] ss:$8 sps:$4 sm:$0xff]  }
 0x4cc   :  { %3362 = vmatpush1.bf16.msra.mxu1 %v14056_v40  ;;  %3322 = vmatprep.subr.bf16.mxu0 %v14062_v45  ;;  %20157 = vst [vmem:[#allocation35_spill] sm:$0xff] %v14086_v61  ;;  %v14356_v45 = vld [vmem:[%s18475_s1 + $0x684] ss:$8 sps:$4 sm:$0xff]   ;;  %20203 = vst [vmem:[#allocation85_spill] sm:$0xff] %v14372_v55 }
 0x4cd   :  { %3363 = vmatprep.subr.bf16.mxu1 %v14068_v51  ;;  %v14092_v51 = vld [vmem:[%s18475_s1 + $0x734] ss:$8 sps:$4 sm:$0xff]   ;;  %20201 = vst [vmem:[#allocation83_spill] sm:$0xff] %v14356_v45  ;;  %20207 = vst [vmem:[#allocation89_spill] sm:$0xff] %v14399_v20 }
 0x4ce   :  { %20158 = vst [vmem:[#allocation36_spill] sm:$0xff] %v14092_v51 }
 0x4cf   :  { %3323 = vmatpush1.bf16.msra.mxu0 %v14074_v4  ;;  %v14098_v4 = vld [vmem:[%s18475_s1 + $0x630] ss:$8 sps:$4 sm:$0xff]  }
 0x4d0   :  { %3364 = vmatpush1.bf16.msra.mxu1 %v14080_v5  ;;  %3324 = vmatprep.subr.bf16.mxu0 %v14086_v61  ;;  %20159 = vst [vmem:[#allocation37_spill] sm:$0xff] %v14098_v4  ;;  %v14104_v5 = vld [vmem:[%s18475_s1 + $0x730] ss:$8 sps:$4 sm:$0xff]   ;;  %v14110_v61 = vld [vmem:[%s18475_s1 + $0x624] ss:$8 sps:$4 sm:$0xff]  }
 0x4d1   :  { %3365 = vmatprep.subr.bf16.mxu1 %v14092_v51  ;;  %20160 = vst [vmem:[#allocation38_spill] sm:$0xff] %v14104_v5  ;;  %20161 = vst [vmem:[#allocation39_spill] sm:$0xff] %v14110_v61  ;;  %v14116_v51 = vld [vmem:[%s18475_s1 + $0x724] ss:$8 sps:$4 sm:$0xff]  }
 0x4d2   :  { %20162 = vst [vmem:[#allocation40_spill] sm:$0xff] %v14116_v51 }
 0x4d3   :  { %3325 = vmatpush1.bf16.msra.mxu0 %v14098_v4  ;;  %v14122_v4 = vld [vmem:[%s18475_s1 + $0x620] ss:$8 sps:$4 sm:$0xff]  }
 0x4d4   :  { %3366 = vmatpush1.bf16.msra.mxu1 %v14104_v5  ;;  %3326 = vmatprep.subr.bf16.mxu0 %v14110_v61  ;;  %20163 = vst [vmem:[#allocation41_spill] sm:$0xff] %v14122_v4  ;;  %v14128_v5 = vld [vmem:[%s18475_s1 + $0x720] ss:$8 sps:$4 sm:$0xff]   ;;  %v14134_v61 = vld [vmem:[%s18475_s1 + $0x614] ss:$8 sps:$4 sm:$0xff]  }
 0x4d5   :  { %3367 = vmatprep.subr.bf16.mxu1 %v14116_v51  ;;  %20164 = vst [vmem:[#allocation42_spill] sm:$0xff] %v14128_v5  ;;  %20165 = vst [vmem:[#allocation43_spill] sm:$0xff] %v14134_v61  ;;  %v14140_v51 = vld [vmem:[%s18475_s1 + $0x714] ss:$8 sps:$4 sm:$0xff]  }
 0x4d6   :  { %20166 = vst [vmem:[#allocation44_spill] sm:$0xff] %v14140_v51 }
 0x4d7   :  { %3327 = vmatpush1.bf16.msra.mxu0 %v14122_v4  ;;  %v14146_v4 = vld [vmem:[%s18475_s1 + $0x610] ss:$8 sps:$4 sm:$0xff]  }
 0x4d8   :  { %3368 = vmatpush1.bf16.msra.mxu1 %v14128_v5  ;;  %3328 = vmatprep.subr.bf16.mxu0 %v14134_v61  ;;  %20167 = vst [vmem:[#allocation45_spill] sm:$0xff] %v14146_v4  ;;  %v14152_v5 = vld [vmem:[%s18475_s1 + $0x710] ss:$8 sps:$4 sm:$0xff]   ;;  %v14158_v61 = vld [vmem:[%s18475_s1 + $0x604] ss:$8 sps:$4 sm:$0xff]  }
 0x4d9   :  { %3369 = vmatprep.subr.bf16.mxu1 %v14140_v51  ;;  %20168 = vst [vmem:[#allocation46_spill] sm:$0xff] %v14152_v5  ;;  %20169 = vst [vmem:[#allocation47_spill] sm:$0xff] %v14158_v61  ;;  %v14164_v51 = vld [vmem:[%s18475_s1 + $0x704] ss:$8 sps:$4 sm:$0xff]  }
 0x4da   :  { %20170 = vst [vmem:[#allocation48_spill] sm:$0xff] %v14164_v51 }
 0x4db   :  { %3329 = vmatpush1.bf16.msra.mxu0 %v14146_v4  ;;  %v14170_v4 = vld [vmem:[%s18475_s1 + $0x600] ss:$8 sps:$4 sm:$0xff]  }
 0x4dc   :  { %3370 = vmatpush1.bf16.msra.mxu1 %v14152_v5  ;;  %3330 = vmatprep.subr.bf16.mxu0 %v14158_v61  ;;  %20171 = vst [vmem:[#allocation49_spill] sm:$0xff] %v14170_v4  ;;  %v14176_v5 = vld [vmem:[%s18475_s1 + $0x700] ss:$8 sps:$4 sm:$0xff]   ;;  %v14182_v61 = vld [vmem:[%s18475_s1 + $0x6f4] ss:$8 sps:$4 sm:$0xff]  }
 0x4dd   :  { %3371 = vmatprep.subr.bf16.mxu1 %v14164_v51  ;;  %20172 = vst [vmem:[#allocation50_spill] sm:$0xff] %v14176_v5  ;;  %20173 = vst [vmem:[#allocation51_spill] sm:$0xff] %v14182_v61  ;;  %v14188_v51 = vld [vmem:[%s18475_s1 + $0x7f4] ss:$8 sps:$4 sm:$0xff]  }
 0x4de   :  { %20174 = vst [vmem:[#allocation52_spill] sm:$0xff] %v14188_v51 }
 0x4df   :  { %3331 = vmatpush1.bf16.msra.mxu0 %v14170_v4  ;;  %v14194_v4 = vld [vmem:[%s18475_s1 + $0x6f0] ss:$8 sps:$4 sm:$0xff]  }
 0x4e0   :  { %3372 = vmatpush1.bf16.msra.mxu1 %v14176_v5  ;;  %3332 = vmatprep.subr.bf16.mxu0 %v14182_v61  ;;  %20175 = vst [vmem:[#allocation53_spill] sm:$0xff] %v14194_v4  ;;  %v14200_v5 = vld [vmem:[%s18475_s1 + $0x7f0] ss:$8 sps:$4 sm:$0xff]   ;;  %v14206_v61 = vld [vmem:[%s18475_s1 + $0x6e4] ss:$8 sps:$4 sm:$0xff]  }
 0x4e1   :  { %3373 = vmatprep.subr.bf16.mxu1 %v14188_v51  ;;  %20176 = vst [vmem:[#allocation54_spill] sm:$0xff] %v14200_v5  ;;  %20177 = vst [vmem:[#allocation55_spill] sm:$0xff] %v14206_v61  ;;  %v14212_v51 = vld [vmem:[%s18475_s1 + $0x7e4] ss:$8 sps:$4 sm:$0xff]  }
 0x4e2   :  { %20178 = vst [vmem:[#allocation56_spill] sm:$0xff] %v14212_v51 }
 0x4e3   :  { %3333 = vmatpush2.bf16.msra.mxu0 %v14194_v4  ;;  %v14218_v4 = vld [vmem:[%s18475_s1 + $0x6e0] ss:$8 sps:$4 sm:$0xff]  }
 0x4e4   :  { %3374 = vmatpush2.bf16.msra.mxu1 %v14200_v5  ;;  %3334 = vmatprep.subr.bf16.mxu0 %v14206_v61  ;;  %20179 = vst [vmem:[#allocation57_spill] sm:$0xff] %v14218_v4  ;;  %v14224_v5 = vld [vmem:[%s18475_s1 + $0x7e0] ss:$8 sps:$4 sm:$0xff]   ;;  %v14230_v61 = vld [vmem:[%s18475_s1 + $0x6d4] ss:$8 sps:$4 sm:$0xff]  }
 0x4e5   :  { %3375 = vmatprep.subr.bf16.mxu1 %v14212_v51  ;;  %20180 = vst [vmem:[#allocation58_spill] sm:$0xff] %v14224_v5  ;;  %20181 = vst [vmem:[#allocation59_spill] sm:$0xff] %v14230_v61  ;;  %v14236_v51 = vld [vmem:[%s18475_s1 + $0x7d4] ss:$8 sps:$4 sm:$0xff]  }
 0x4e6   :  { %20182 = vst [vmem:[#allocation60_spill] sm:$0xff] %v14236_v51 }
 0x4e7   :  { %3335 = vmatpush2.bf16.msra.mxu0 %v14218_v4  ;;  %v14242_v4 = vld [vmem:[%s18475_s1 + $0x6d0] ss:$8 sps:$4 sm:$0xff]  }
 0x4e8   :  { %3376 = vmatpush2.bf16.msra.mxu1 %v14224_v5  ;;  %3336 = vmatprep.subr.bf16.mxu0 %v14230_v61  ;;  %20183 = vst [vmem:[#allocation61_spill] sm:$0xff] %v14242_v4  ;;  %v14248_v5 = vld [vmem:[%s18475_s1 + $0x7d0] ss:$8 sps:$4 sm:$0xff]   ;;  %v14254_v61 = vld [vmem:[%s18475_s1 + $0x6c4] ss:$8 sps:$4 sm:$0xff]  }
 0x4e9   :  { %3377 = vmatprep.subr.bf16.mxu1 %v14236_v51  ;;  %20184 = vst [vmem:[#allocation62_spill] sm:$0xff] %v14248_v5  ;;  %20185 = vst [vmem:[#allocation63_spill] sm:$0xff] %v14254_v61  ;;  %v14260_v51 = vld [vmem:[%s18475_s1 + $0x7c4] ss:$8 sps:$4 sm:$0xff]  }
 0x4ea   :  { %20186 = vst [vmem:[#allocation64_spill] sm:$0xff] %v14260_v51 }
 0x4eb   :  { %3337 = vmatpush2.bf16.msra.mxu0 %v14242_v4  ;;  %v14266_v4 = vld [vmem:[%s18475_s1 + $0x6c0] ss:$8 sps:$4 sm:$0xff]  }
 0x4ec   :  { %3378 = vmatpush2.bf16.msra.mxu1 %v14248_v5  ;;  %3338 = vmatprep.subr.bf16.mxu0 %v14254_v61  ;;  %20187 = vst [vmem:[#allocation65_spill] sm:$0xff] %v14266_v4  ;;  %v14272_v5 = vld [vmem:[%s18475_s1 + $0x7c0] ss:$8 sps:$4 sm:$0xff]   ;;  %v14278_v61 = vld [vmem:[%s18475_s1 + $0x6b4] ss:$8 sps:$4 sm:$0xff]  }
 0x4ed   :  { %3379 = vmatprep.subr.bf16.mxu1 %v14260_v51  ;;  %20188 = vst [vmem:[#allocation66_spill] sm:$0xff] %v14272_v5  ;;  %20189 = vst [vmem:[#allocation67_spill] sm:$0xff] %v14278_v61  ;;  %v14284_v51 = vld [vmem:[%s18475_s1 + $0x7b4] ss:$8 sps:$4 sm:$0xff]  }
 0x4ee   :  { %20190 = vst [vmem:[#allocation68_spill] sm:$0xff] %v14284_v51 }
 0x4ef   :  { %3339 = vmatpush2.bf16.msra.mxu0 %v14266_v4  ;;  %v14290_v4 = vld [vmem:[%s18475_s1 + $0x6b0] ss:$8 sps:$4 sm:$0xff]  }
 0x4f0   :  { %3380 = vmatpush2.bf16.msra.mxu1 %v14272_v5  ;;  %3340 = vmatprep.subr.bf16.mxu0 %v14278_v61  ;;  %20191 = vst [vmem:[#allocation69_spill] sm:$0xff] %v14290_v4  ;;  %v14296_v5 = vld [vmem:[%s18475_s1 + $0x7b0] ss:$8 sps:$4 sm:$0xff]   ;;  %v14302_v61 = vld [vmem:[%s18475_s1 + $0x6a4] ss:$8 sps:$4 sm:$0xff]  }
 0x4f1   :  { %3381 = vmatprep.subr.bf16.mxu1 %v14284_v51  ;;  %20192 = vst [vmem:[#allocation70_spill] sm:$0xff] %v14296_v5  ;;  %20193 = vst [vmem:[#allocation72_spill] sm:$0xff] %v14302_v61  ;;  %v14308_v51 = vld [vmem:[%s18475_s1 + $0x7a4] ss:$8 sps:$4 sm:$0xff]  }
 0x4f2   :  { %20194 = vst [vmem:[#allocation73_spill] sm:$0xff] %v14308_v51 }
 0x4f3   :  { %3341 = vmatpush2.bf16.msra.mxu0 %v14290_v4  ;;  %v14314_v4 = vld [vmem:[%s18475_s1 + $0x6a0] ss:$8 sps:$4 sm:$0xff]  }
 0x4f4   :  { %3382 = vmatpush2.bf16.msra.mxu1 %v14296_v5  ;;  %3342 = vmatprep.subr.bf16.mxu0 %v14302_v61  ;;  %20195 = vst [vmem:[#allocation74_spill] sm:$0xff] %v14314_v4  ;;  %v14320_v5 = vld [vmem:[%s18475_s1 + $0x7a0] ss:$8 sps:$4 sm:$0xff]   ;;  %v14326_v61 = vld [vmem:[%s18475_s1 + $0x694] ss:$8 sps:$4 sm:$0xff]  }
 0x4f5   :  { %3383 = vmatprep.subr.bf16.mxu1 %v14308_v51  ;;  %20196 = vst [vmem:[#allocation75_spill] sm:$0xff] %v14320_v5  ;;  %20197 = vst [vmem:[#allocation79_spill] sm:$0xff] %v14326_v61  ;;  %v14332_v51 = vld [vmem:[%s18475_s1 + $0x794] ss:$8 sps:$4 sm:$0xff]  }
 0x4f6   :  { %20198 = vst [vmem:[#allocation80_spill] sm:$0xff] %v14332_v51 }
 0x4f7   :  { %3343 = vmatpush2.bf16.msra.mxu0 %v14314_v4  ;;  %v14338_v4 = vld [vmem:[%s18475_s1 + $0x690] ss:$8 sps:$4 sm:$0xff]  }
 0x4f8   :  { %3384 = vmatpush2.bf16.msra.mxu1 %v14320_v5  ;;  %3344 = vmatprep.subr.bf16.mxu0 %v14326_v61  ;;  %20199 = vst [vmem:[#allocation81_spill] sm:$0xff] %v14338_v4  ;;  %v14344_v5 = vld [vmem:[%s18475_s1 + $0x790] ss:$8 sps:$4 sm:$0xff]   ;;  %v6926_v61 = vld [vmem:[%s18476_s0 + $0x160] sm:$0xff] }
 0x4f9   :  { %3385 = vmatprep.subr.bf16.mxu1 %v14332_v51  ;;  %20200 = vst [vmem:[#allocation82_spill] sm:$0xff] %v14344_v5  ;;  %v6928_v51 = vld [vmem:[%s18476_s0 + $0x170] sm:$0xff] }
 0x4fa   :  { %v14367_v40 = vpack.c.bf16 %v6928_v51, %v6928_v51  ;;  %v14390_v51 = vld [vmem:[%s18475_s1 + $0x174] ss:$8 sps:$4 sm:$0xff]  }
 0x4fb   :  { %3345 = vmatpush2.bf16.msra.mxu0 %v14338_v4  ;;  %v14362_v4 = vld [vmem:[%s18475_s1 + $0x784] ss:$8 sps:$4 sm:$0xff]   ;;  %20206 = vst [vmem:[#allocation88_spill] sm:$0xff] %v14390_v51 }
 0x4fc   :  { %3386 = vmatpush2.bf16.msra.mxu1 %v14344_v5  ;;  %3346 = vmatprep.subr.bf16.mxu0 %v14356_v45  ;;  %20202 = vst [vmem:[#allocation84_spill] sm:$0xff] %v14362_v4  ;;  %v14365_v5 = vpack.c.bf16 %v6926_v61, %v6926_v61  ;;  %v14378_v45 = vld [vmem:[%s18475_s1 + $0x780] ss:$8 sps:$4 sm:$0xff]   ;;  %v14384_v61 = vld [vmem:[%s18475_s1 + $0x74] ss:$8 sps:$4 sm:$0xff]  }
 0x4fd   :  { %3387 = vmatprep.subr.bf16.mxu1 %v14362_v4  ;;  %20204 = vst [vmem:[#allocation86_spill] sm:$0xff] %v14378_v45  ;;  %20205 = vst [vmem:[#allocation87_spill] sm:$0xff] %v14384_v61 }
 0x4ff   :  { %3347 = vmatpush2.bf16.msra.mxu0 %v14372_v55 }
 0x500   :  { %3388 = vmatpush2.bf16.msra.mxu1 %v14378_v45  ;;  %3410 = vmatprep.subr.bf16.mxu0 %v14384_v61  ;;  %v14405_v61 = vld [vmem:[%s18475_s1 + $0x170] ss:$8 sps:$4 sm:$0xff]  }
 0x501   :  { %3451 = vmatprep.subr.bf16.mxu1 %v14390_v51  ;;  %20208 = vst [vmem:[#allocation90_spill] sm:$0xff] %v14405_v61 }
 0x502   :  { %v3104_v55 = vpop.f32.mrf.mxu0  ;;  %3349 = vmatmul.mubr.bf16.vlgmr.msra.gmra.mxu0 %v14365_v5 }
 0x503   :  { %v3145_v4 = vpop.f32.mrf.mxu1  ;;  %3390 = vmatmul.mubr.bf16.vlgmr.msra.gmra.mxu1 %v14367_v40  ;;  %v3105_v45 = vadd.f32 %v3104_v55, %v20003_v57  ;;  %3411 = vmatpush1.bf16.msra.mxu0 %v14399_v20  ;;  %v14411_v55 = vld [vmem:[%s18475_s1 + $0x64] ss:$8 sps:$4 sm:$0xff]  }
 0x504   :  { %3452 = vmatpush1.bf16.msra.mxu1 %v14405_v61  ;;  %v3106_v51 = vpop.f32.mrf.mxu0  ;;  %20209 = vst [vmem:[#allocation91_spill] sm:$0xff] %v14411_v55  ;;  %3412 = vmatprep.subr.bf16.mxu0 %v14411_v55  ;;  %v14417_v20 = vld [vmem:[%s18475_s1 + $0x164] ss:$8 sps:$4 sm:$0xff]   ;;  %v14430_v55 = vld [vmem:[%s18475_s1 + $0x60] ss:$8 sps:$4 sm:$0xff]  }
 0x505   :  { %v3147_v22 = vpop.f32.mrf.mxu1  ;;  %3453 = vmatprep.subr.bf16.mxu1 %v14417_v20  ;;  %v14420_v57 = vadd.f32 %v3145_v4, %v3105_v45  ;;  %v3107_v61 = vadd.f32 %v3106_v51, %v10487_v15  ;;  %3442 = vmatprep.mubr.bf16.mxu0 %v13616_v47  ;;  %v14436_v45 = vld [vmem:[%s18475_s1 + $0x160] ss:$8 sps:$4 sm:$0xff]   ;;  %v14460_v4 = vld [vmem:[%s18475_s1 + $0x150] ss:$8 sps:$4 sm:$0xff]   ;;  %v14472_v51 = vld [vmem:[%s18475_s1 + $0x144] ss:$8 sps:$4 sm:$0xff]  }
 0x506   :  { %3483 = vmatprep.mubr.bf16.mxu1 %v13618_v58  ;;  %v3108_v62 = vpop.f32.mrf.mxu0  ;;  %20213 = vst [vmem:[#allocation95_spill] sm:$0xff] %v14460_v4  ;;  %20215 = vst [vmem:[#allocation97_spill] sm:$0xff] %v14472_v51 }
 0x507   :  { %v3149_v7 = vpop.f32.mrf.mxu1  ;;  %v14425_v3 = vadd.f32 %v3147_v22, %v3107_v61  ;;  %3413 = vmatpush1.bf16.msra.mxu0 %v14430_v55  ;;  %v14448_v62 = vld [vmem:[%s18475_s1 + $0x154] ss:$8 sps:$4 sm:$0xff]   ;;  %v14454_v22 = vld [vmem:[%s18475_s1 + $0x50] ss:$8 sps:$4 sm:$0xff]   ;;  %v14466_v61 = vld [vmem:[%s18475_s1 + $0x44] ss:$8 sps:$4 sm:$0xff]  }
 0x508   :  { %3454 = vmatpush1.bf16.msra.mxu1 %v14436_v45  ;;  %v3109_v47 = vpop.f32.mrf.mxu0  ;;  %v14442_v7 = vld [vmem:[%s18475_s1 + $0x54] ss:$8 sps:$4 sm:$0xff]   ;;  %20211 = vst [vmem:[#allocation93_spill] sm:$0xff] %v14448_v62  ;;  %20212 = vst [vmem:[#allocation94_spill] sm:$0xff] %v14454_v22 }
 0x509   :  { %v3150_v58 = vpop.f32.mrf.mxu1  ;;  %20210 = vst [vmem:[#allocation92_spill] sm:$0xff] %v14442_v7  ;;  %3414 = vmatprep.subr.bf16.mxu0 %v14442_v7  ;;  %3455 = vmatprep.subr.bf16.mxu1 %v14448_v62  ;;  %20214 = vst [vmem:[#allocation96_spill] sm:$0xff] %v14466_v61  ;;  %v14478_v47 = vld [vmem:[%s18475_s1 + $0x40] ss:$8 sps:$4 sm:$0xff]  }
 0x50a   :  { %20216 = vst [vmem:[#allocation98_spill] sm:$0xff] %v14478_v47  ;;  %v14484_v58 = vld [vmem:[%s18475_s1 + $0x140] ss:$8 sps:$4 sm:$0xff]  }
 0x50b   :  { %3415 = vmatpush1.bf16.msra.mxu0 %v14454_v22  ;;  %20217 = vst [vmem:[#allocation99_spill] sm:$0xff] %v14484_v58  ;;  %v14793_v22 = vld [vmem:[%s18475_s1 + $0x270] ss:$8 sps:$4 sm:$0xff]  }
 0x50c   :  { %3456 = vmatpush1.bf16.msra.mxu1 %v14460_v4  ;;  %3416 = vmatprep.subr.bf16.mxu0 %v14466_v61  ;;  %v14490_v61 = vld [vmem:[%s18475_s1 + $0x34] ss:$8 sps:$4 sm:$0xff]   ;;  %20268 = vst [vmem:[#allocation150_spill] sm:$0xff] %v14793_v22 }
 0x50d   :  { %3457 = vmatprep.subr.bf16.mxu1 %v14472_v51  ;;  %20218 = vst [vmem:[#allocation100_spill] sm:$0xff] %v14490_v61  ;;  %v14496_v51 = vld [vmem:[%s18475_s1 + $0x134] ss:$8 sps:$4 sm:$0xff]  }
 0x50e   :  { %20219 = vst [vmem:[#allocation101_spill] sm:$0xff] %v14496_v51 }
 0x50f   :  { %3417 = vmatpush1.bf16.msra.mxu0 %v14478_v47  ;;  %v14502_v47 = vld [vmem:[%s18475_s1 + $0x30] ss:$8 sps:$4 sm:$0xff]  }
 0x510   :  { %3458 = vmatpush1.bf16.msra.mxu1 %v14484_v58  ;;  %3418 = vmatprep.subr.bf16.mxu0 %v14490_v61  ;;  %20220 = vst [vmem:[#allocation102_spill] sm:$0xff] %v14502_v47  ;;  %v14508_v58 = vld [vmem:[%s18475_s1 + $0x130] ss:$8 sps:$4 sm:$0xff]   ;;  %v14514_v61 = vld [vmem:[%s18475_s1 + $0x24] ss:$8 sps:$4 sm:$0xff]  }
 0x511   :  { %3459 = vmatprep.subr.bf16.mxu1 %v14496_v51  ;;  %20221 = vst [vmem:[#allocation103_spill] sm:$0xff] %v14508_v58  ;;  %20222 = vst [vmem:[#allocation104_spill] sm:$0xff] %v14514_v61  ;;  %v14520_v51 = vld [vmem:[%s18475_s1 + $0x124] ss:$8 sps:$4 sm:$0xff]  }
 0x512   :  { %20223 = vst [vmem:[#allocation105_spill] sm:$0xff] %v14520_v51 }
 0x513   :  { %3419 = vmatpush1.bf16.msra.mxu0 %v14502_v47  ;;  %v14526_v47 = vld [vmem:[%s18475_s1 + $0x20] ss:$8 sps:$4 sm:$0xff]  }
 0x514   :  { %3460 = vmatpush1.bf16.msra.mxu1 %v14508_v58  ;;  %3420 = vmatprep.subr.bf16.mxu0 %v14514_v61  ;;  %20224 = vst [vmem:[#allocation106_spill] sm:$0xff] %v14526_v47  ;;  %v14532_v58 = vld [vmem:[%s18475_s1 + $0x120] ss:$8 sps:$4 sm:$0xff]   ;;  %v14538_v61 = vld [vmem:[%s18475_s1 + $0x14] ss:$8 sps:$4 sm:$0xff]  }
 0x515   :  { %3461 = vmatprep.subr.bf16.mxu1 %v14520_v51  ;;  %20225 = vst [vmem:[#allocation107_spill] sm:$0xff] %v14532_v58  ;;  %20226 = vst [vmem:[#allocation108_spill] sm:$0xff] %v14538_v61  ;;  %v14544_v51 = vld [vmem:[%s18475_s1 + $0x114] ss:$8 sps:$4 sm:$0xff]  }
 0x516   :  { %20227 = vst [vmem:[#allocation109_spill] sm:$0xff] %v14544_v51 }
 0x517   :  { %3421 = vmatpush1.bf16.msra.mxu0 %v14526_v47  ;;  %v14550_v47 = vld [vmem:[%s18475_s1 + $0x10] ss:$8 sps:$4 sm:$0xff]  }
 0x518   :  { %3462 = vmatpush1.bf16.msra.mxu1 %v14532_v58  ;;  %3422 = vmatprep.subr.bf16.mxu0 %v14538_v61  ;;  %20228 = vst [vmem:[#allocation110_spill] sm:$0xff] %v14550_v47  ;;  %v14556_v58 = vld [vmem:[%s18475_s1 + $0x110] ss:$8 sps:$4 sm:$0xff]   ;;  %v14562_v61 = vld [vmem:[%s18475_s1 + $0x4] ss:$8 sps:$4 sm:$0xff]  }
 0x519   :  { %3463 = vmatprep.subr.bf16.mxu1 %v14544_v51  ;;  %20229 = vst [vmem:[#allocation111_spill] sm:$0xff] %v14556_v58  ;;  %20230 = vst [vmem:[#allocation112_spill] sm:$0xff] %v14562_v61  ;;  %v14568_v51 = vld [vmem:[%s18475_s1 + $0x104] ss:$8 sps:$4 sm:$0xff]  }
 0x51a   :  { %20231 = vst [vmem:[#allocation113_spill] sm:$0xff] %v14568_v51 }
 0x51b   :  { %3423 = vmatpush1.bf16.msra.mxu0 %v14550_v47  ;;  %v14574_v47 = vld [vmem:[%s18475_s1] ss:$8 sps:$4 sm:$0xff]  }
 0x51c   :  { %3464 = vmatpush1.bf16.msra.mxu1 %v14556_v58  ;;  %3424 = vmatprep.subr.bf16.mxu0 %v14562_v61  ;;  %20232 = vst [vmem:[#allocation114_spill] sm:$0xff] %v14574_v47  ;;  %v14580_v58 = vld [vmem:[%s18475_s1 + $0x100] ss:$8 sps:$4 sm:$0xff]   ;;  %v14586_v61 = vld [vmem:[%s18475_s1 + $0xf4] ss:$8 sps:$4 sm:$0xff]  }
 0x51d   :  { %3465 = vmatprep.subr.bf16.mxu1 %v14568_v51  ;;  %20233 = vst [vmem:[#allocation115_spill] sm:$0xff] %v14580_v58  ;;  %20234 = vst [vmem:[#allocation116_spill] sm:$0xff] %v14586_v61  ;;  %v14592_v51 = vld [vmem:[%s18475_s1 + $0x1f4] ss:$8 sps:$4 sm:$0xff]  }
 0x51e   :  { %20235 = vst [vmem:[#allocation117_spill] sm:$0xff] %v14592_v51 }
 0x51f   :  { %3425 = vmatpush1.bf16.msra.mxu0 %v14574_v47  ;;  %v14598_v47 = vld [vmem:[%s18475_s1 + $0xf0] ss:$8 sps:$4 sm:$0xff]  }
 0x520   :  { %3466 = vmatpush1.bf16.msra.mxu1 %v14580_v58  ;;  %3426 = vmatprep.subr.bf16.mxu0 %v14586_v61  ;;  %20236 = vst [vmem:[#allocation118_spill] sm:$0xff] %v14598_v47  ;;  %v14604_v58 = vld [vmem:[%s18475_s1 + $0x1f0] ss:$8 sps:$4 sm:$0xff]   ;;  %v14610_v61 = vld [vmem:[%s18475_s1 + $0xe4] ss:$8 sps:$4 sm:$0xff]  }
 0x521   :  { %3467 = vmatprep.subr.bf16.mxu1 %v14592_v51  ;;  %20237 = vst [vmem:[#allocation119_spill] sm:$0xff] %v14604_v58  ;;  %20238 = vst [vmem:[#allocation120_spill] sm:$0xff] %v14610_v61  ;;  %v14616_v51 = vld [vmem:[%s18475_s1 + $0x1e4] ss:$8 sps:$4 sm:$0xff]  }
 0x522   :  { %20239 = vst [vmem:[#allocation121_spill] sm:$0xff] %v14616_v51 }
 0x523   :  { %3427 = vmatpush2.bf16.msra.mxu0 %v14598_v47  ;;  %v14622_v47 = vld [vmem:[%s18475_s1 + $0xe0] ss:$8 sps:$4 sm:$0xff]  }
 0x524   :  { %3468 = vmatpush2.bf16.msra.mxu1 %v14604_v58  ;;  %3428 = vmatprep.subr.bf16.mxu0 %v14610_v61  ;;  %20240 = vst [vmem:[#allocation122_spill] sm:$0xff] %v14622_v47  ;;  %v14628_v58 = vld [vmem:[%s18475_s1 + $0x1e0] ss:$8 sps:$4 sm:$0xff]   ;;  %v14634_v61 = vld [vmem:[%s18475_s1 + $0xd4] ss:$8 sps:$4 sm:$0xff]  }
 0x525   :  { %3469 = vmatprep.subr.bf16.mxu1 %v14616_v51  ;;  %20241 = vst [vmem:[#allocation123_spill] sm:$0xff] %v14628_v58  ;;  %20242 = vst [vmem:[#allocation124_spill] sm:$0xff] %v14634_v61  ;;  %v14640_v51 = vld [vmem:[%s18475_s1 + $0x1d4] ss:$8 sps:$4 sm:$0xff]  }
 0x526   :  { %20243 = vst [vmem:[#allocation125_spill] sm:$0xff] %v14640_v51 }
 0x527   :  { %3429 = vmatpush2.bf16.msra.mxu0 %v14622_v47  ;;  %v14646_v47 = vld [vmem:[%s18475_s1 + $0xd0] ss:$8 sps:$4 sm:$0xff]  }
 0x528   :  { %3470 = vmatpush2.bf16.msra.mxu1 %v14628_v58  ;;  %3430 = vmatprep.subr.bf16.mxu0 %v14634_v61  ;;  %20244 = vst [vmem:[#allocation126_spill] sm:$0xff] %v14646_v47  ;;  %v14652_v58 = vld [vmem:[%s18475_s1 + $0x1d0] ss:$8 sps:$4 sm:$0xff]   ;;  %v14658_v61 = vld [vmem:[%s18475_s1 + $0xc4] ss:$8 sps:$4 sm:$0xff]  }
 0x529   :  { %3471 = vmatprep.subr.bf16.mxu1 %v14640_v51  ;;  %20245 = vst [vmem:[#allocation127_spill] sm:$0xff] %v14652_v58  ;;  %20246 = vst [vmem:[#allocation128_spill] sm:$0xff] %v14658_v61  ;;  %v14664_v51 = vld [vmem:[%s18475_s1 + $0x1c4] ss:$8 sps:$4 sm:$0xff]  }
 0x52a   :  { %20247 = vst [vmem:[#allocation129_spill] sm:$0xff] %v14664_v51 }
 0x52b   :  { %3431 = vmatpush2.bf16.msra.mxu0 %v14646_v47  ;;  %v14670_v47 = vld [vmem:[%s18475_s1 + $0xc0] ss:$8 sps:$4 sm:$0xff]  }
 0x52c   :  { %3472 = vmatpush2.bf16.msra.mxu1 %v14652_v58  ;;  %3432 = vmatprep.subr.bf16.mxu0 %v14658_v61  ;;  %20248 = vst [vmem:[#allocation130_spill] sm:$0xff] %v14670_v47  ;;  %v14676_v58 = vld [vmem:[%s18475_s1 + $0x1c0] ss:$8 sps:$4 sm:$0xff]   ;;  %v14682_v61 = vld [vmem:[%s18475_s1 + $0xb4] ss:$8 sps:$4 sm:$0xff]  }
 0x52d   :  { %3473 = vmatprep.subr.bf16.mxu1 %v14664_v51  ;;  %20249 = vst [vmem:[#allocation131_spill] sm:$0xff] %v14676_v58  ;;  %20250 = vst [vmem:[#allocation132_spill] sm:$0xff] %v14682_v61  ;;  %v14688_v51 = vld [vmem:[%s18475_s1 + $0x1b4] ss:$8 sps:$4 sm:$0xff]  }
 0x52e   :  { %20251 = vst [vmem:[#allocation133_spill] sm:$0xff] %v14688_v51 }
 0x52f   :  { %3433 = vmatpush2.bf16.msra.mxu0 %v14670_v47  ;;  %v14694_v47 = vld [vmem:[%s18475_s1 + $0xb0] ss:$8 sps:$4 sm:$0xff]  }
 0x530   :  { %3474 = vmatpush2.bf16.msra.mxu1 %v14676_v58  ;;  %3434 = vmatprep.subr.bf16.mxu0 %v14682_v61  ;;  %20252 = vst [vmem:[#allocation134_spill] sm:$0xff] %v14694_v47  ;;  %v14700_v58 = vld [vmem:[%s18475_s1 + $0x1b0] ss:$8 sps:$4 sm:$0xff]   ;;  %v14706_v61 = vld [vmem:[%s18475_s1 + $0xa4] ss:$8 sps:$4 sm:$0xff]  }
 0x531   :  { %3475 = vmatprep.subr.bf16.mxu1 %v14688_v51  ;;  %20253 = vst [vmem:[#allocation135_spill] sm:$0xff] %v14700_v58  ;;  %20254 = vst [vmem:[#allocation136_spill] sm:$0xff] %v14706_v61  ;;  %v14712_v51 = vld [vmem:[%s18475_s1 + $0x1a4] ss:$8 sps:$4 sm:$0xff]  }
 0x532   :  { %20255 = vst [vmem:[#allocation137_spill] sm:$0xff] %v14712_v51 }
 0x533   :  { %3435 = vmatpush2.bf16.msra.mxu0 %v14694_v47  ;;  %v14718_v47 = vld [vmem:[%s18475_s1 + $0xa0] ss:$8 sps:$4 sm:$0xff]  }
 0x534   :  { %3476 = vmatpush2.bf16.msra.mxu1 %v14700_v58  ;;  %3436 = vmatprep.subr.bf16.mxu0 %v14706_v61  ;;  %20256 = vst [vmem:[#allocation138_spill] sm:$0xff] %v14718_v47  ;;  %v14724_v58 = vld [vmem:[%s18475_s1 + $0x1a0] ss:$8 sps:$4 sm:$0xff]   ;;  %v14730_v61 = vld [vmem:[%s18475_s1 + $0x94] ss:$8 sps:$4 sm:$0xff]  }
 0x535   :  { %3477 = vmatprep.subr.bf16.mxu1 %v14712_v51  ;;  %20257 = vst [vmem:[#allocation139_spill] sm:$0xff] %v14724_v58  ;;  %20258 = vst [vmem:[#allocation140_spill] sm:$0xff] %v14730_v61  ;;  %v14736_v51 = vld [vmem:[%s18475_s1 + $0x194] ss:$8 sps:$4 sm:$0xff]  }
 0x536   :  { %20259 = vst [vmem:[#allocation141_spill] sm:$0xff] %v14736_v51 }
 0x537   :  { %3437 = vmatpush2.bf16.msra.mxu0 %v14718_v47  ;;  %v14742_v47 = vld [vmem:[%s18475_s1 + $0x90] ss:$8 sps:$4 sm:$0xff]  }
 0x538   :  { %3478 = vmatpush2.bf16.msra.mxu1 %v14724_v58  ;;  %3438 = vmatprep.subr.bf16.mxu0 %v14730_v61  ;;  %20260 = vst [vmem:[#allocation142_spill] sm:$0xff] %v14742_v47  ;;  %v14748_v58 = vld [vmem:[%s18475_s1 + $0x190] ss:$8 sps:$4 sm:$0xff]   ;;  %v14754_v61 = vld [vmem:[%s18475_s1 + $0x84] ss:$8 sps:$4 sm:$0xff]  }
 0x539   :  { %3479 = vmatprep.subr.bf16.mxu1 %v14736_v51  ;;  %20261 = vst [vmem:[#allocation143_spill] sm:$0xff] %v14748_v58  ;;  %20262 = vst [vmem:[#allocation144_spill] sm:$0xff] %v14754_v61  ;;  %v14760_v51 = vld [vmem:[%s18475_s1 + $0x184] ss:$8 sps:$4 sm:$0xff]  }
 0x53a   :  { %20263 = vst [vmem:[#allocation145_spill] sm:$0xff] %v14760_v51 }
 0x53b   :  { %3439 = vmatpush2.bf16.msra.mxu0 %v14742_v47  ;;  %v14766_v47 = vld [vmem:[%s18475_s1 + $0x80] ss:$8 sps:$4 sm:$0xff]  }
 0x53c   :  { %3480 = vmatpush2.bf16.msra.mxu1 %v14748_v58  ;;  %3440 = vmatprep.subr.bf16.mxu0 %v14754_v61  ;;  %20264 = vst [vmem:[#allocation146_spill] sm:$0xff] %v14766_v47  ;;  %v14772_v58 = vld [vmem:[%s18475_s1 + $0x180] ss:$8 sps:$4 sm:$0xff]   ;;  %v14778_v61 = vld [vmem:[%s18475_s1 + $0x274] ss:$8 sps:$4 sm:$0xff]  }
 0x53d   :  { %3481 = vmatprep.subr.bf16.mxu1 %v14760_v51  ;;  %20265 = vst [vmem:[#allocation147_spill] sm:$0xff] %v14772_v58  ;;  %20266 = vst [vmem:[#allocation148_spill] sm:$0xff] %v14778_v61  ;;  %v14784_v51 = vld [vmem:[%s18475_s1 + $0x374] ss:$8 sps:$4 sm:$0xff]  }
 0x53e   :  { %20267 = vst [vmem:[#allocation149_spill] sm:$0xff] %v14784_v51 }
 0x53f   :  { %3441 = vmatpush2.bf16.msra.mxu0 %v14766_v47 }
 0x540   :  { %3482 = vmatpush2.bf16.msra.mxu1 %v14772_v58  ;;  %3492 = vmatprep.subr.bf16.mxu0 %v14778_v61  ;;  %v14799_v61 = vld [vmem:[%s18475_s1 + $0x370] ss:$8 sps:$4 sm:$0xff]  }
 0x541   :  { %3533 = vmatprep.subr.bf16.mxu1 %v14784_v51  ;;  %20269 = vst [vmem:[#allocation151_spill] sm:$0xff] %v14799_v61 }
 0x542   :  { %v3186_v47 = vpop.f32.mrf.mxu0  ;;  %3443 = vmatmul.mubr.bf16.vlgmr.msra.gmra.mxu0 %v13951_v25 }
 0x543   :  { %v3227_v4 = vpop.f32.mrf.mxu1  ;;  %3484 = vmatmul.mubr.bf16.vlgmr.msra.gmra.mxu1 %v13953_v9  ;;  %v3187_v58 = vadd.f32 %v3186_v47, %v14420_v57  ;;  %3493 = vmatpush1.bf16.msra.mxu0 %v14793_v22  ;;  %v14805_v57 = vld [vmem:[%s18475_s1 + $0x264] ss:$8 sps:$4 sm:$0xff]  }
 0x544   :  { %3534 = vmatpush1.bf16.msra.mxu1 %v14799_v61  ;;  %v3188_v51 = vpop.f32.mrf.mxu0  ;;  %20270 = vst [vmem:[#allocation152_spill] sm:$0xff] %v14805_v57  ;;  %3494 = vmatprep.subr.bf16.mxu0 %v14805_v57  ;;  %v14811_v9 = vld [vmem:[%s18475_s1 + $0x364] ss:$8 sps:$4 sm:$0xff]   ;;  %v14824_v57 = vld [vmem:[%s18475_s1 + $0x260] ss:$8 sps:$4 sm:$0xff]  }
 0x545   :  { %v3229_v25 = vpop.f32.mrf.mxu1  ;;  %3535 = vmatprep.subr.bf16.mxu1 %v14811_v9  ;;  %v14814_v47 = vadd.f32 %v3227_v4, %v3187_v58  ;;  %v3189_v61 = vadd.f32 %v3188_v51, %v14425_v3  ;;  %3524 = vmatprep.mubr.bf16.mxu0 %v13985_v16  ;;  %v14830_v4 = vld [vmem:[%s18475_s1 + $0x360] ss:$8 sps:$4 sm:$0xff]   ;;  %v14836_v3 = vld [vmem:[%s18475_s1 + $0x254] ss:$8 sps:$4 sm:$0xff]   ;;  %v14860_v51 = vld [vmem:[%s18475_s1 + $0x244] ss:$8 sps:$4 sm:$0xff]  }
 0x546   :  { %3565 = vmatprep.mubr.bf16.mxu1 %v13987_v8  ;;  %v3190_v22 = vpop.f32.mrf.mxu0  ;;  %20271 = vst [vmem:[#allocation153_spill] sm:$0xff] %v14830_v4  ;;  %20272 = vst [vmem:[#allocation154_spill] sm:$0xff] %v14836_v3  ;;  %v14866_v58 = vld [vmem:[%s18475_s1 + $0x344] ss:$8 sps:$4 sm:$0xff]  }
 0x547   :  { %v3231_v62 = vpop.f32.mrf.mxu1  ;;  %v14819_v7 = vadd.f32 %v3229_v25, %v3189_v61  ;;  %3495 = vmatpush1.bf16.msra.mxu0 %v14824_v57  ;;  %v14848_v22 = vld [vmem:[%s18475_s1 + $0x250] ss:$8 sps:$4 sm:$0xff]   ;;  %20276 = vst [vmem:[#allocation158_spill] sm:$0xff] %v14860_v51  ;;  %20277 = vst [vmem:[#allocation159_spill] sm:$0xff] %v14866_v58  ;;  %v14872_v25 = vld [vmem:[%s18475_s1 + $0x240] ss:$8 sps:$4 sm:$0xff]  }
 0x548   :  { %3536 = vmatpush1.bf16.msra.mxu1 %v14830_v4  ;;  %v3191_v16 = vpop.f32.mrf.mxu0  ;;  %3496 = vmatprep.subr.bf16.mxu0 %v14836_v3  ;;  %v14842_v62 = vld [vmem:[%s18475_s1 + $0x354] ss:$8 sps:$4 sm:$0xff]   ;;  %20274 = vst [vmem:[#allocation156_spill] sm:$0xff] %v14848_v22  ;;  %v14854_v61 = vld [vmem:[%s18475_s1 + $0x350] ss:$8 sps:$4 sm:$0xff]   ;;  %20278 = vst [vmem:[#allocation160_spill] sm:$0xff] %v14872_v25 }
 0x549   :  { %v3232_v8 = vpop.f32.mrf.mxu1  ;;  %20273 = vst [vmem:[#allocation155_spill] sm:$0xff] %v14842_v62  ;;  %3537 = vmatprep.subr.bf16.mxu1 %v14842_v62  ;;  %20275 = vst [vmem:[#allocation157_spill] sm:$0xff] %v14854_v61  ;;  %v14878_v16 = vld [vmem:[%s18475_s1 + $0x340] ss:$8 sps:$4 sm:$0xff]  }
 0x54a   :  { %20279 = vst [vmem:[#allocation161_spill] sm:$0xff] %v14878_v16  ;;  %v14884_v8 = vld [vmem:[%s18475_s1 + $0x234] ss:$8 sps:$4 sm:$0xff]  }
 0x54b   :  { %3497 = vmatpush1.bf16.msra.mxu0 %v14848_v22  ;;  %20280 = vst [vmem:[#allocation162_spill] sm:$0xff] %v14884_v8 }
 0x54c   :  { %3538 = vmatpush1.bf16.msra.mxu1 %v14854_v61  ;;  %3498 = vmatprep.subr.bf16.mxu0 %v14860_v51  ;;  %v15166_v51 = vld [vmem:[%s18475_s1 + $0x280] ss:$8 sps:$4 sm:$0xff]   ;;  %v15184_v61 = vld [vmem:[%s18475_s1 + $0x574] ss:$8 sps:$4 sm:$0xff]  }
 0x54d   :  { %3539 = vmatprep.subr.bf16.mxu1 %v14866_v58  ;;  %v14890_v58 = vld [vmem:[%s18475_s1 + $0x334] ss:$8 sps:$4 sm:$0xff]   ;;  %20326 = vst [vmem:[#allocation208_spill] sm:$0xff] %v15166_v51  ;;  %20329 = vst [vmem:[#allocation211_spill] sm:$0xff] %v15184_v61 }
 0x54e   :  { %20281 = vst [vmem:[#allocation163_spill] sm:$0xff] %v14890_v58 }
 0x54f   :  { %3499 = vmatpush1.bf16.msra.mxu0 %v14872_v25  ;;  %v14896_v25 = vld [vmem:[%s18475_s1 + $0x230] ss:$8 sps:$4 sm:$0xff]  }
 0x550   :  { %3540 = vmatpush1.bf16.msra.mxu1 %v14878_v16  ;;  %3500 = vmatprep.subr.bf16.mxu0 %v14884_v8  ;;  %20282 = vst [vmem:[#allocation164_spill] sm:$0xff] %v14896_v25  ;;  %v14902_v16 = vld [vmem:[%s18475_s1 + $0x330] ss:$8 sps:$4 sm:$0xff]   ;;  %v14908_v8 = vld [vmem:[%s18475_s1 + $0x224] ss:$8 sps:$4 sm:$0xff]  }
 0x551   :  { %3541 = vmatprep.subr.bf16.mxu1 %v14890_v58  ;;  %20283 = vst [vmem:[#allocation165_spill] sm:$0xff] %v14902_v16  ;;  %20284 = vst [vmem:[#allocation166_spill] sm:$0xff] %v14908_v8  ;;  %v14914_v58 = vld [vmem:[%s18475_s1 + $0x324] ss:$8 sps:$4 sm:$0xff]  }
 0x552   :  { %20285 = vst [vmem:[#allocation167_spill] sm:$0xff] %v14914_v58 }
 0x553   :  { %3501 = vmatpush1.bf16.msra.mxu0 %v14896_v25  ;;  %v14920_v25 = vld [vmem:[%s18475_s1 + $0x220] ss:$8 sps:$4 sm:$0xff]  }
 0x554   :  { %3542 = vmatpush1.bf16.msra.mxu1 %v14902_v16  ;;  %3502 = vmatprep.subr.bf16.mxu0 %v14908_v8  ;;  %20286 = vst [vmem:[#allocation168_spill] sm:$0xff] %v14920_v25  ;;  %v14926_v16 = vld [vmem:[%s18475_s1 + $0x320] ss:$8 sps:$4 sm:$0xff]   ;;  %v14932_v8 = vld [vmem:[%s18475_s1 + $0x214] ss:$8 sps:$4 sm:$0xff]  }
 0x555   :  { %3543 = vmatprep.subr.bf16.mxu1 %v14914_v58  ;;  %20287 = vst [vmem:[#allocation169_spill] sm:$0xff] %v14926_v16  ;;  %20288 = vst [vmem:[#allocation170_spill] sm:$0xff] %v14932_v8  ;;  %v14938_v58 = vld [vmem:[%s18475_s1 + $0x314] ss:$8 sps:$4 sm:$0xff]  }
 0x556   :  { %20289 = vst [vmem:[#allocation171_spill] sm:$0xff] %v14938_v58 }
 0x557   :  { %3503 = vmatpush1.bf16.msra.mxu0 %v14920_v25  ;;  %v14944_v25 = vld [vmem:[%s18475_s1 + $0x210] ss:$8 sps:$4 sm:$0xff]  }
 0x558   :  { %3544 = vmatpush1.bf16.msra.mxu1 %v14926_v16  ;;  %3504 = vmatprep.subr.bf16.mxu0 %v14932_v8  ;;  %20290 = vst [vmem:[#allocation172_spill] sm:$0xff] %v14944_v25  ;;  %v14950_v16 = vld [vmem:[%s18475_s1 + $0x310] ss:$8 sps:$4 sm:$0xff]   ;;  %v14956_v8 = vld [vmem:[%s18475_s1 + $0x204] ss:$8 sps:$4 sm:$0xff]  }
 0x559   :  { %3545 = vmatprep.subr.bf16.mxu1 %v14938_v58  ;;  %20291 = vst [vmem:[#allocation173_spill] sm:$0xff] %v14950_v16  ;;  %20292 = vst [vmem:[#allocation174_spill] sm:$0xff] %v14956_v8  ;;  %v14962_v58 = vld [vmem:[%s18475_s1 + $0x304] ss:$8 sps:$4 sm:$0xff]  }
 0x55a   :  { %20293 = vst [vmem:[#allocation175_spill] sm:$0xff] %v14962_v58 }
 0x55b   :  { %3505 = vmatpush1.bf16.msra.mxu0 %v14944_v25  ;;  %v14968_v25 = vld [vmem:[%s18475_s1 + $0x200] ss:$8 sps:$4 sm:$0xff]  }
 0x55c   :  { %3546 = vmatpush1.bf16.msra.mxu1 %v14950_v16  ;;  %3506 = vmatprep.subr.bf16.mxu0 %v14956_v8  ;;  %20294 = vst [vmem:[#allocation176_spill] sm:$0xff] %v14968_v25  ;;  %v14974_v16 = vld [vmem:[%s18475_s1 + $0x300] ss:$8 sps:$4 sm:$0xff]   ;;  %v14980_v8 = vld [vmem:[%s18475_s1 + $0x2f4] ss:$8 sps:$4 sm:$0xff]  }
 0x55d   :  { %3547 = vmatprep.subr.bf16.mxu1 %v14962_v58  ;;  %20295 = vst [vmem:[#allocation177_spill] sm:$0xff] %v14974_v16  ;;  %20296 = vst [vmem:[#allocation178_spill] sm:$0xff] %v14980_v8  ;;  %v14986_v58 = vld [vmem:[%s18475_s1 + $0x3f4] ss:$8 sps:$4 sm:$0xff]  }
 0x55e   :  { %20297 = vst [vmem:[#allocation179_spill] sm:$0xff] %v14986_v58 }
 0x55f   :  { %3507 = vmatpush1.bf16.msra.mxu0 %v14968_v25  ;;  %v14992_v25 = vld [vmem:[%s18475_s1 + $0x2f0] ss:$8 sps:$4 sm:$0xff]  }
 0x560   :  { %3548 = vmatpush1.bf16.msra.mxu1 %v14974_v16  ;;  %3508 = vmatprep.subr.bf16.mxu0 %v14980_v8  ;;  %20298 = vst [vmem:[#allocation180_spill] sm:$0xff] %v14992_v25  ;;  %v14998_v16 = vld [vmem:[%s18475_s1 + $0x3f0] ss:$8 sps:$4 sm:$0xff]   ;;  %v15004_v8 = vld [vmem:[%s18475_s1 + $0x2e4] ss:$8 sps:$4 sm:$0xff]  }
 0x561   :  { %3549 = vmatprep.subr.bf16.mxu1 %v14986_v58  ;;  %20299 = vst [vmem:[#allocation181_spill] sm:$0xff] %v14998_v16  ;;  %20300 = vst [vmem:[#allocation182_spill] sm:$0xff] %v15004_v8  ;;  %v15010_v58 = vld [vmem:[%s18475_s1 + $0x3e4] ss:$8 sps:$4 sm:$0xff]  }
 0x562   :  { %20301 = vst [vmem:[#allocation183_spill] sm:$0xff] %v15010_v58 }
 0x563   :  { %3509 = vmatpush2.bf16.msra.mxu0 %v14992_v25  ;;  %v15016_v25 = vld [vmem:[%s18475_s1 + $0x2e0] ss:$8 sps:$4 sm:$0xff]  }
 0x564   :  { %3550 = vmatpush2.bf16.msra.mxu1 %v14998_v16  ;;  %3510 = vmatprep.subr.bf16.mxu0 %v15004_v8  ;;  %20302 = vst [vmem:[#allocation184_spill] sm:$0xff] %v15016_v25  ;;  %v15022_v16 = vld [vmem:[%s18475_s1 + $0x3e0] ss:$8 sps:$4 sm:$0xff]   ;;  %v15028_v8 = vld [vmem:[%s18475_s1 + $0x2d4] ss:$8 sps:$4 sm:$0xff]  }
 0x565   :  { %3551 = vmatprep.subr.bf16.mxu1 %v15010_v58  ;;  %20303 = vst [vmem:[#allocation185_spill] sm:$0xff] %v15022_v16  ;;  %20304 = vst [vmem:[#allocation186_spill] sm:$0xff] %v15028_v8  ;;  %v15034_v58 = vld [vmem:[%s18475_s1 + $0x3d4] ss:$8 sps:$4 sm:$0xff]  }
 0x566   :  { %20305 = vst [vmem:[#allocation187_spill] sm:$0xff] %v15034_v58 }
 0x567   :  { %3511 = vmatpush2.bf16.msra.mxu0 %v15016_v25  ;;  %v15040_v25 = vld [vmem:[%s18475_s1 + $0x2d0] ss:$8 sps:$4 sm:$0xff]  }
 0x568   :  { %3552 = vmatpush2.bf16.msra.mxu1 %v15022_v16  ;;  %3512 = vmatprep.subr.bf16.mxu0 %v15028_v8  ;;  %20306 = vst [vmem:[#allocation188_spill] sm:$0xff] %v15040_v25  ;;  %v15046_v16 = vld [vmem:[%s18475_s1 + $0x3d0] ss:$8 sps:$4 sm:$0xff]   ;;  %v15052_v8 = vld [vmem:[%s18475_s1 + $0x2c4] ss:$8 sps:$4 sm:$0xff]  }
 0x569   :  { %3553 = vmatprep.subr.bf16.mxu1 %v15034_v58  ;;  %20307 = vst [vmem:[#allocation189_spill] sm:$0xff] %v15046_v16  ;;  %20308 = vst [vmem:[#allocation190_spill] sm:$0xff] %v15052_v8  ;;  %v15058_v58 = vld [vmem:[%s18475_s1 + $0x3c4] ss:$8 sps:$4 sm:$0xff]  }
 0x56a   :  { %20309 = vst [vmem:[#allocation191_spill] sm:$0xff] %v15058_v58 }
 0x56b   :  { %3513 = vmatpush2.bf16.msra.mxu0 %v15040_v25  ;;  %v15064_v25 = vld [vmem:[%s18475_s1 + $0x2c0] ss:$8 sps:$4 sm:$0xff]  }
 0x56c   :  { %3554 = vmatpush2.bf16.msra.mxu1 %v15046_v16  ;;  %3514 = vmatprep.subr.bf16.mxu0 %v15052_v8  ;;  %20310 = vst [vmem:[#allocation192_spill] sm:$0xff] %v15064_v25  ;;  %v15070_v16 = vld [vmem:[%s18475_s1 + $0x3c0] ss:$8 sps:$4 sm:$0xff]   ;;  %v15076_v8 = vld [vmem:[%s18475_s1 + $0x2b4] ss:$8 sps:$4 sm:$0xff]  }
 0x56d   :  { %3555 = vmatprep.subr.bf16.mxu1 %v15058_v58  ;;  %20311 = vst [vmem:[#allocation193_spill] sm:$0xff] %v15070_v16  ;;  %20312 = vst [vmem:[#allocation194_spill] sm:$0xff] %v15076_v8  ;;  %v15082_v58 = vld [vmem:[%s18475_s1 + $0x3b4] ss:$8 sps:$4 sm:$0xff]  }
 0x56e   :  { %20313 = vst [vmem:[#allocation195_spill] sm:$0xff] %v15082_v58 }
 0x56f   :  { %3515 = vmatpush2.bf16.msra.mxu0 %v15064_v25  ;;  %v15088_v25 = vld [vmem:[%s18475_s1 + $0x2b0] ss:$8 sps:$4 sm:$0xff]  }
 0x570   :  { %3556 = vmatpush2.bf16.msra.mxu1 %v15070_v16  ;;  %3516 = vmatprep.subr.bf16.mxu0 %v15076_v8  ;;  %20314 = vst [vmem:[#allocation196_spill] sm:$0xff] %v15088_v25  ;;  %v15094_v16 = vld [vmem:[%s18475_s1 + $0x3b0] ss:$8 sps:$4 sm:$0xff]   ;;  %v15100_v8 = vld [vmem:[%s18475_s1 + $0x2a4] ss:$8 sps:$4 sm:$0xff]  }
 0x571   :  { %3557 = vmatprep.subr.bf16.mxu1 %v15082_v58  ;;  %20315 = vst [vmem:[#allocation197_spill] sm:$0xff] %v15094_v16  ;;  %20316 = vst [vmem:[#allocation198_spill] sm:$0xff] %v15100_v8  ;;  %v15106_v58 = vld [vmem:[%s18475_s1 + $0x3a4] ss:$8 sps:$4 sm:$0xff]  }
 0x572   :  { %20317 = vst [vmem:[#allocation199_spill] sm:$0xff] %v15106_v58 }
 0x573   :  { %3517 = vmatpush2.bf16.msra.mxu0 %v15088_v25  ;;  %v15112_v25 = vld [vmem:[%s18475_s1 + $0x2a0] ss:$8 sps:$4 sm:$0xff]  }
 0x574   :  { %3558 = vmatpush2.bf16.msra.mxu1 %v15094_v16  ;;  %3518 = vmatprep.subr.bf16.mxu0 %v15100_v8  ;;  %20318 = vst [vmem:[#allocation200_spill] sm:$0xff] %v15112_v25  ;;  %v15118_v16 = vld [vmem:[%s18475_s1 + $0x3a0] ss:$8 sps:$4 sm:$0xff]   ;;  %v15124_v8 = vld [vmem:[%s18475_s1 + $0x294] ss:$8 sps:$4 sm:$0xff]  }
 0x575   :  { %3559 = vmatprep.subr.bf16.mxu1 %v15106_v58  ;;  %20319 = vst [vmem:[#allocation201_spill] sm:$0xff] %v15118_v16  ;;  %20320 = vst [vmem:[#allocation202_spill] sm:$0xff] %v15124_v8  ;;  %v15130_v58 = vld [vmem:[%s18475_s1 + $0x394] ss:$8 sps:$4 sm:$0xff]  }
 0x576   :  { %20321 = vst [vmem:[#allocation203_spill] sm:$0xff] %v15130_v58 }
 0x577   :  { %3519 = vmatpush2.bf16.msra.mxu0 %v15112_v25  ;;  %v15136_v25 = vld [vmem:[%s18475_s1 + $0x290] ss:$8 sps:$4 sm:$0xff]  }
 0x578   :  { %3560 = vmatpush2.bf16.msra.mxu1 %v15118_v16  ;;  %3520 = vmatprep.subr.bf16.mxu0 %v15124_v8  ;;  %20322 = vst [vmem:[#allocation204_spill] sm:$0xff] %v15136_v25  ;;  %v15142_v16 = vld [vmem:[%s18475_s1 + $0x390] ss:$8 sps:$4 sm:$0xff]   ;;  %v15148_v8 = vld [vmem:[%s18475_s1 + $0x284] ss:$8 sps:$4 sm:$0xff]  }
 0x579   :  { %3561 = vmatprep.subr.bf16.mxu1 %v15130_v58  ;;  %20323 = vst [vmem:[#allocation205_spill] sm:$0xff] %v15142_v16  ;;  %20324 = vst [vmem:[#allocation206_spill] sm:$0xff] %v15148_v8  ;;  %v15154_v58 = vld [vmem:[%s18475_s1 + $0x384] ss:$8 sps:$4 sm:$0xff]  }
 0x57a   :  { %20325 = vst [vmem:[#allocation207_spill] sm:$0xff] %v15154_v58 }
 0x57b   :  { %3521 = vmatpush2.bf16.msra.mxu0 %v15136_v25  ;;  %v6931_v25 = vld [vmem:[%s18476_s0 + $0x188] sm:$0xff] }
 0x57c   :  { %3562 = vmatpush2.bf16.msra.mxu1 %v15142_v16  ;;  %3522 = vmatprep.subr.bf16.mxu0 %v15148_v8  ;;  %v6933_v16 = vld [vmem:[%s18476_s0 + $0x198] sm:$0xff]  ;;  %v15172_v8 = vld [vmem:[%s18475_s1 + $0x380] ss:$8 sps:$4 sm:$0xff]  }
 0x57d   :  { %3563 = vmatprep.subr.bf16.mxu1 %v15154_v58  ;;  %20327 = vst [vmem:[#allocation209_spill] sm:$0xff] %v15172_v8  ;;  %v15178_v58 = vld [vmem:[%s18475_s1 + $0x474] ss:$8 sps:$4 sm:$0xff]   ;;  %v15189_v22 = vpack.c.bf16 %v6933_v16, %v6933_v16 }
 0x57e   :  { %20328 = vst [vmem:[#allocation210_spill] sm:$0xff] %v15178_v58 }
 0x57f   :  { %3523 = vmatpush2.bf16.msra.mxu0 %v15166_v51  ;;  %v15187_v51 = vpack.c.bf16 %v6931_v25, %v6931_v25  ;;  %v15203_v25 = vld [vmem:[%s18475_s1 + $0x570] ss:$8 sps:$4 sm:$0xff]  }
 0x580   :  { %3564 = vmatpush2.bf16.msra.mxu1 %v15172_v8  ;;  %3574 = vmatprep.subr.bf16.mxu0 %v15178_v58  ;;  %v15197_v58 = vld [vmem:[%s18475_s1 + $0x470] ss:$8 sps:$4 sm:$0xff]   ;;  %20331 = vst [vmem:[#allocation213_spill] sm:$0xff] %v15203_v25 }
 0x581   :  { %3615 = vmatprep.subr.bf16.mxu1 %v15184_v61  ;;  %20330 = vst [vmem:[#allocation212_spill] sm:$0xff] %v15197_v58 }
 0x582   :  { %v3268_v62 = vpop.f32.mrf.mxu0  ;;  %3525 = vmatmul.mubr.bf16.vlgmr.msra.gmra.mxu0 %v14365_v5 }
 0x583   :  { %v3309_v8 = vpop.f32.mrf.mxu1  ;;  %3566 = vmatmul.mubr.bf16.vlgmr.msra.gmra.mxu1 %v14367_v40  ;;  %v3269_v3 = vadd.f32 %v3268_v62, %v14814_v47  ;;  %3575 = vmatpush1.bf16.msra.mxu0 %v15197_v58  ;;  %v15209_v40 = vld [vmem:[%s18475_s1 + $0x464] ss:$8 sps:$4 sm:$0xff]  }
 0x584   :  { %3616 = vmatpush1.bf16.msra.mxu1 %v15203_v25  ;;  %v3270_v16 = vpop.f32.mrf.mxu0  ;;  %20332 = vst [vmem:[#allocation214_spill] sm:$0xff] %v15209_v40  ;;  %3576 = vmatprep.subr.bf16.mxu0 %v15209_v40  ;;  %v15215_v47 = vld [vmem:[%s18475_s1 + $0x564] ss:$8 sps:$4 sm:$0xff]   ;;  %v15228_v40 = vld [vmem:[%s18475_s1 + $0x460] ss:$8 sps:$4 sm:$0xff]  }
 0x585   :  { %v3311_v5 = vpop.f32.mrf.mxu1  ;;  %3617 = vmatprep.subr.bf16.mxu1 %v15215_v47  ;;  %v15218_v62 = vadd.f32 %v3309_v8, %v3269_v3  ;;  %v3271_v25 = vadd.f32 %v3270_v16, %v14819_v7  ;;  %3606 = vmatprep.mubr.bf16.mxu0 %v15187_v51  ;;  %v15234_v3 = vld [vmem:[%s18475_s1 + $0x560] ss:$8 sps:$4 sm:$0xff]  }
 0x586   :  { %3647 = vmatprep.mubr.bf16.mxu1 %v15189_v22  ;;  %v3272_v58 = vpop.f32.mrf.mxu0  ;;  %v20360_v16 = vld [vmem:[#allocation35_spill] sm:$0xff] }
 0x587   :  { %v3313_v61 = vpop.f32.mrf.mxu1  ;;  %v15223_v4 = vadd.f32 %v3311_v5, %v3271_v25  ;;  %3577 = vmatpush1.bf16.msra.mxu0 %v15228_v40  ;;  %v15246_v58 = vld [vmem:[%s18475_s1 + $0x554] ss:$8 sps:$4 sm:$0xff]   ;;  %v15252_v25 = vld [vmem:[%s18475_s1 + $0x450] ss:$8 sps:$4 sm:$0xff]  }
 0x588   :  { %3618 = vmatpush1.bf16.msra.mxu1 %v15234_v3  ;;  %v3273_v7 = vpop.f32.mrf.mxu0  ;;  %v15240_v61 = vld [vmem:[%s18475_s1 + $0x454] ss:$8 sps:$4 sm:$0xff]  }
 0x589   :  { %v3314_v8 = vpop.f32.mrf.mxu1  ;;  %3578 = vmatprep.subr.bf16.mxu0 %v15240_v61  ;;  %3619 = vmatprep.subr.bf16.mxu1 %v15246_v58  ;;  %v20361_v5 = vld [vmem:[#allocation36_spill] sm:$0xff]  ;;  %v20363_v7 = vld [vmem:[#allocation38_spill] sm:$0xff] }
 0x58a   :  { %v20364_v8 = vld [vmem:[#allocation39_spill] sm:$0xff] }
 0x58b   :  { %3579 = vmatpush1.bf16.msra.mxu0 %v15252_v25 }
 0x58c   :  { %3620 = vmatpush1.bf16.msra.mxu1 %v13642_v37  ;;  %3580 = vmatprep.subr.bf16.mxu0 %v13648_v59  ;;  %v20333_v37 = vld [vmem:[#allocation6_spill] sm:$0xff]  ;;  %v20334_v59 = vld [vmem:[#allocation7_spill] sm:$0xff] }
 0x58d   :  { %3621 = vmatprep.subr.bf16.mxu1 %v13654_v50  ;;  %v20335_v50 = vld [vmem:[#allocation8_spill] sm:$0xff] }
 0x58f   :  { %3581 = vmatpush1.bf16.msra.mxu0 %v13660_v43  ;;  %v20336_v43 = vld [vmem:[#allocation9_spill] sm:$0xff] }
 0x590   :  { %3622 = vmatpush1.bf16.msra.mxu1 %v13666_v39  ;;  %3582 = vmatprep.subr.bf16.mxu0 %v13672_v31  ;;  %v20337_v39 = vld [vmem:[#allocation10_spill] sm:$0xff] }
 0x591   :  { %3623 = vmatprep.subr.bf16.mxu1 %v13678_v0  ;;  %v6930_v31 = vld [vmem:[%s18476_s0 + $0x180] sm:$0xff]  ;;  %v6932_v0 = vld [vmem:[%s18476_s0 + $0x190] sm:$0xff] }
 0x593   :  { %3583 = vmatpush1.bf16.msra.mxu0 %v13684_v10  ;;  %v20338_v10 = vld [vmem:[#allocation11_spill] sm:$0xff] }
 0x594   :  { %3624 = vmatpush1.bf16.msra.mxu1 %v13690_v11  ;;  %3584 = vmatprep.subr.bf16.mxu0 %v13696_v30  ;;  %v20339_v11 = vld [vmem:[#allocation12_spill] sm:$0xff]  ;;  %v15312_v30 = vpack.c.bf16 %v6930_v31, %v6930_v31  ;;  %v20370_v31 = vld [vmem:[#allocation45_spill] sm:$0xff] }
 0x595   :  { %3625 = vmatprep.subr.bf16.mxu1 %v13702_v44  ;;  %v15314_v44 = vpack.c.bf16 %v6932_v0, %v6932_v0  ;;  %v20371_v0 = vld [vmem:[#allocation46_spill] sm:$0xff] }
 0x597   :  { %3585 = vmatpush1.bf16.msra.mxu0 %v13708_v41  ;;  %v6935_v41 = vld [vmem:[%s18476_s0 + $0x1a8] sm:$0xff] }
 0x598   :  { %3626 = vmatpush1.bf16.msra.mxu1 %v13714_v14  ;;  %3586 = vmatprep.subr.bf16.mxu0 %v13720_v17  ;;  %v6937_v14 = vld [vmem:[%s18476_s0 + $0x1b8] sm:$0xff] }
 0x599   :  { %3627 = vmatprep.subr.bf16.mxu1 %v13726_v23  ;;  %v20340_v17 = vld [vmem:[#allocation13_spill] sm:$0xff]  ;;  %v20341_v23 = vld [vmem:[#allocation14_spill] sm:$0xff] }
 0x59b   :  { %3587 = vmatpush1.bf16.msra.mxu0 %v13732_v19  ;;  %v20342_v19 = vld [vmem:[#allocation15_spill] sm:$0xff] }
 0x59c   :  { %3628 = vmatpush1.bf16.msra.mxu1 %v13738_v32  ;;  %3588 = vmatprep.subr.bf16.mxu0 %v13744_v26  ;;  %v20343_v32 = vld [vmem:[#allocation16_spill] sm:$0xff]  ;;  %v15326_v26 = vpack.c.bf16 %v6935_v41, %v6935_v41  ;;  %v20374_v41 = vld [vmem:[#allocation49_spill] sm:$0xff] }
 0x59d   :  { %3629 = vmatprep.subr.bf16.mxu1 %v13750_v33  ;;  %v15328_v33 = vpack.c.bf16 %v6937_v14, %v6937_v14  ;;  %v20375_v14 = vld [vmem:[#allocation50_spill] sm:$0xff] }
 0x59f   :  { %3589 = vmatpush1.bf16.msra.mxu0 %v13756_v53 }
 0x5a0   :  { %3630 = vmatpush1.bf16.msra.mxu1 %v13762_v48  ;;  %3590 = vmatprep.subr.bf16.mxu0 %v13768_v49 }
 0x5a1   :  { %3631 = vmatprep.subr.bf16.mxu1 %v13774_v34  ;;  %v20344_v34 = vld [vmem:[#allocation17_spill] sm:$0xff] }
 0x5a3   :  { %3591 = vmatpush2.bf16.msra.mxu0 %v13780_v35  ;;  %v20345_v35 = vld [vmem:[#allocation18_spill] sm:$0xff] }
 0x5a4   :  { %3632 = vmatpush2.bf16.msra.mxu1 %v13786_v12  ;;  %3592 = vmatprep.subr.bf16.mxu0 %v13792_v36 }
 0x5a5   :  { %3633 = vmatprep.subr.bf16.mxu1 %v13798_v42  ;;  %v20346_v42 = vld [vmem:[#allocation21_spill] sm:$0xff] }
 0x5a7   :  { %3593 = vmatpush2.bf16.msra.mxu0 %v13804_v63  ;;  %v20347_v63 = vld [vmem:[#allocation22_spill] sm:$0xff] }
 0x5a8   :  { %3634 = vmatpush2.bf16.msra.mxu1 %v13810_v21  ;;  %3594 = vmatprep.subr.bf16.mxu0 %v13816_v27 }
 0x5a9   :  { %3635 = vmatprep.subr.bf16.mxu1 %v13822_v52 }
 0x5ab   :  { %3595 = vmatpush2.bf16.msra.mxu0 %v13828_v46 }
 0x5ac   :  { %3636 = vmatpush2.bf16.msra.mxu1 %v13834_v54  ;;  %3596 = vmatprep.subr.bf16.mxu0 %v13840_v13  ;;  %v20350_v13 = vld [vmem:[#allocation25_spill] sm:$0xff] }
 0x5ad   :  { %3637 = vmatprep.subr.bf16.mxu1 %v13846_v56  ;;  %v20351_v56 = vld [vmem:[#allocation26_spill] sm:$0xff] }
 0x5af   :  { %3597 = vmatpush2.bf16.msra.mxu0 %v13852_v18 }
 0x5b0   :  { %3638 = vmatpush2.bf16.msra.mxu1 %v13858_v6  ;;  %3598 = vmatprep.subr.bf16.mxu0 %v13864_v1  ;;  %v20352_v1 = vld [vmem:[#allocation27_spill] sm:$0xff] }
 0x5b1   :  { %3639 = vmatprep.subr.bf16.mxu1 %v13870_v2  ;;  %v20353_v2 = vld [vmem:[#allocation28_spill] sm:$0xff] }
 0x5b3   :  { %3599 = vmatpush2.bf16.msra.mxu0 %v13876_v29  ;;  %v20354_v29 = vld [vmem:[#allocation29_spill] sm:$0xff] }
 0x5b4   :  { %3640 = vmatpush2.bf16.msra.mxu1 %v13882_v28  ;;  %3600 = vmatprep.subr.bf16.mxu0 %v13888_v38  ;;  %v20355_v28 = vld [vmem:[#allocation30_spill] sm:$0xff]  ;;  %v20356_v38 = vld [vmem:[#allocation31_spill] sm:$0xff] }
 0x5b5   :  { %3641 = vmatprep.subr.bf16.mxu1 %v13894_v24  ;;  %v20357_v24 = vld [vmem:[#allocation32_spill] sm:$0xff] }
 0x5b7   :  { %3601 = vmatpush2.bf16.msra.mxu0 %v13900_v60  ;;  %v20358_v60 = vld [vmem:[#allocation33_spill] sm:$0xff] }
 0x5b8   :  { %3642 = vmatpush2.bf16.msra.mxu1 %v20333_v37  ;;  %3602 = vmatprep.subr.bf16.mxu0 %v20334_v59  ;;  %v20365_v37 = vld [vmem:[#allocation40_spill] sm:$0xff]  ;;  %v20366_v59 = vld [vmem:[#allocation41_spill] sm:$0xff] }
 0x5b9   :  { %3643 = vmatprep.subr.bf16.mxu1 %v20335_v50  ;;  %v20367_v50 = vld [vmem:[#allocation42_spill] sm:$0xff] }
 0x5bb   :  { %3603 = vmatpush2.bf16.msra.mxu0 %v20336_v43  ;;  %v20368_v43 = vld [vmem:[#allocation43_spill] sm:$0xff] }
 0x5bc   :  { %3644 = vmatpush2.bf16.msra.mxu1 %v20337_v39  ;;  %3604 = vmatprep.subr.bf16.mxu0 %v20338_v10  ;;  %v20369_v39 = vld [vmem:[#allocation44_spill] sm:$0xff]  ;;  %v20372_v10 = vld [vmem:[#allocation47_spill] sm:$0xff] }
 0x5bd   :  { %3645 = vmatprep.subr.bf16.mxu1 %v20339_v11  ;;  %v20373_v11 = vld [vmem:[#allocation48_spill] sm:$0xff] }
 0x5bf   :  { %3605 = vmatpush2.bf16.msra.mxu0 %v20340_v17  ;;  %v20376_v17 = vld [vmem:[#allocation51_spill] sm:$0xff] }
 0x5c0   :  { %3646 = vmatpush2.bf16.msra.mxu1 %v20341_v23  ;;  %3656 = vmatprep.subr.bf16.mxu0 %v20342_v19  ;;  %v20377_v23 = vld [vmem:[#allocation52_spill] sm:$0xff]  ;;  %v20378_v19 = vld [vmem:[#allocation53_spill] sm:$0xff] }
 0x5c1   :  { %3697 = vmatprep.subr.bf16.mxu1 %v20343_v32  ;;  %v20379_v32 = vld [vmem:[#allocation54_spill] sm:$0xff] }
 0x5c2   :  { %v3350_v53 = vpop.f32.mrf.mxu0  ;;  %3607 = vmatmul.mubr.bf16.vlgmr.msra.gmra.mxu0 %v15312_v30 }
 0x5c3   :  { %v3391_v48 = vpop.f32.mrf.mxu1  ;;  %3648 = vmatmul.mubr.bf16.vlgmr.msra.gmra.mxu1 %v15314_v44  ;;  %v3351_v49 = vadd.f32 %v3350_v53, %v15218_v62  ;;  %3657 = vmatpush1.bf16.msra.mxu0 %v20344_v34  ;;  %v20362_v62 = vld [vmem:[#allocation37_spill] sm:$0xff]  ;;  %v20380_v53 = vld [vmem:[#allocation55_spill] sm:$0xff]  ;;  %v20383_v34 = vld [vmem:[#allocation58_spill] sm:$0xff] }
 0x5c4   :  { %3698 = vmatpush1.bf16.msra.mxu1 %v20345_v35  ;;  %v3352_v12 = vpop.f32.mrf.mxu0  ;;  %3658 = vmatprep.subr.bf16.mxu0 %v20346_v42  ;;  %v20384_v35 = vld [vmem:[#allocation59_spill] sm:$0xff]  ;;  %v20387_v42 = vld [vmem:[#allocation62_spill] sm:$0xff] }
 0x5c5   :  { %v3393_v36 = vpop.f32.mrf.mxu1  ;;  %3699 = vmatprep.subr.bf16.mxu1 %v20347_v63  ;;  %v15337_v21 = vadd.f32 %v3391_v48, %v3351_v49  ;;  %v3353_v27 = vadd.f32 %v3352_v12, %v15223_v4  ;;  %3688 = vmatprep.mubr.bf16.mxu0 %v15326_v26  ;;  %v20359_v4 = vld [vmem:[#allocation34_spill] sm:$0xff]  ;;  %v20381_v48 = vld [vmem:[#allocation56_spill] sm:$0xff]  ;;  %v20382_v49 = vld [vmem:[#allocation57_spill] sm:$0xff] }
 0x5c6   :  { %3729 = vmatprep.mubr.bf16.mxu1 %v15328_v33  ;;  %v3354_v52 = vpop.f32.mrf.mxu0  ;;  %v20385_v12 = vld [vmem:[#allocation60_spill] sm:$0xff]  ;;  %v20388_v63 = vld [vmem:[#allocation63_spill] sm:$0xff] }
 0x5c7   :  { %20348 = vst [vmem:[#allocation6_spill] sm:$0xff] %v15337_v21  ;;  %v3395_v46 = vpop.f32.mrf.mxu1  ;;  %v15342_v54 = vadd.f32 %v3393_v36, %v3353_v27  ;;  %3659 = vmatpush1.bf16.msra.mxu0 %v20350_v13  ;;  %v20386_v36 = vld [vmem:[#allocation61_spill] sm:$0xff]  ;;  %v20389_v27 = vld [vmem:[#allocation64_spill] sm:$0xff]  ;;  %v20392_v13 = vld [vmem:[#allocation67_spill] sm:$0xff] }
 0x5c8   :  { %3700 = vmatpush1.bf16.msra.mxu1 %v20351_v56  ;;  %v3355_v18 = vpop.f32.mrf.mxu0  ;;  %3660 = vmatprep.subr.bf16.mxu0 %v20352_v1  ;;  %v20390_v52 = vld [vmem:[#allocation65_spill] sm:$0xff]  ;;  %v20391_v46 = vld [vmem:[#allocation66_spill] sm:$0xff]  ;;  %v20393_v56 = vld [vmem:[#allocation68_spill] sm:$0xff] }
 0x5c9   :  { %20349 = vst [vmem:[#allocation7_spill] sm:$0xff] %v15342_v54  ;;  %v3396_v6 = vpop.f32.mrf.mxu1  ;;  %3701 = vmatprep.subr.bf16.mxu1 %v20353_v2  ;;  %v20394_v18 = vld [vmem:[#allocation69_spill] sm:$0xff]  ;;  %v20396_v1 = vld [vmem:[#allocation72_spill] sm:$0xff]  ;;  %v15916_v54 = vld [vmem:[%s18475_s1 + $0x480] ss:$8 sps:$4 sm:$0xff]  }
 0x5ca   :  { %v20395_v6 = vld [vmem:[#allocation70_spill] sm:$0xff]  ;;  %v20397_v2 = vld [vmem:[#allocation73_spill] sm:$0xff]  ;;  %20544 = vst [vmem:[#allocation15_spill] sm:$0xff] %v15916_v54 }
 0x5cb   :  { %3661 = vmatpush1.bf16.msra.mxu0 %v20354_v29  ;;  %v20398_v29 = vld [vmem:[#allocation74_spill] sm:$0xff]  ;;  %v6945_v21 = vld [vmem:[%s18476_s0 + $0x1f8] sm:$0xff] }
 0x5cc   :  { %3702 = vmatpush1.bf16.msra.mxu1 %v20355_v28  ;;  %3662 = vmatprep.subr.bf16.mxu0 %v20356_v38  ;;  %v20399_v28 = vld [vmem:[#allocation75_spill] sm:$0xff] }
 0x5cd   :  { %3703 = vmatprep.subr.bf16.mxu1 %v20357_v24  ;;  %v20400_v38 = vld [vmem:[#allocation79_spill] sm:$0xff]  ;;  %v20401_v24 = vld [vmem:[#allocation80_spill] sm:$0xff] }
 0x5cf   :  { %3663 = vmatpush1.bf16.msra.mxu0 %v20358_v60  ;;  %v20402_v60 = vld [vmem:[#allocation81_spill] sm:$0xff] }
 0x5d0   :  { %3704 = vmatpush1.bf16.msra.mxu1 %v20359_v4  ;;  %3664 = vmatprep.subr.bf16.mxu0 %v20360_v16  ;;  %v20403_v4 = vld [vmem:[#allocation82_spill] sm:$0xff] }
 0x5d1   :  { %3705 = vmatprep.subr.bf16.mxu1 %v20361_v5  ;;  %v6934_v16 = vld [vmem:[%s18476_s0 + $0x1a0] sm:$0xff]  ;;  %v6936_v5 = vld [vmem:[%s18476_s0 + $0x1b0] sm:$0xff] }
 0x5d3   :  { %3665 = vmatpush1.bf16.msra.mxu0 %v20362_v62  ;;  %v20404_v62 = vld [vmem:[#allocation83_spill] sm:$0xff] }
 0x5d4   :  { %3706 = vmatpush1.bf16.msra.mxu1 %v20363_v7  ;;  %3666 = vmatprep.subr.bf16.mxu0 %v20364_v8  ;;  %v20405_v7 = vld [vmem:[#allocation84_spill] sm:$0xff]  ;;  %v15406_v8 = vpack.c.bf16 %v6934_v16, %v6934_v16  ;;  %v20437_v16 = vld [vmem:[#allocation115_spill] sm:$0xff] }
 0x5d5   :  { %3707 = vmatprep.subr.bf16.mxu1 %v20365_v37  ;;  %v15408_v37 = vpack.c.bf16 %v6936_v5, %v6936_v5  ;;  %v20438_v5 = vld [vmem:[#allocation116_spill] sm:$0xff] }
 0x5d7   :  { %3667 = vmatpush1.bf16.msra.mxu0 %v20366_v59  ;;  %v20406_v59 = vld [vmem:[#allocation85_spill] sm:$0xff] }
 0x5d8   :  { %3708 = vmatpush1.bf16.msra.mxu1 %v20367_v50  ;;  %3668 = vmatprep.subr.bf16.mxu0 %v20368_v43  ;;  %v20407_v50 = vld [vmem:[#allocation86_spill] sm:$0xff]  ;;  %v20408_v43 = vld [vmem:[#allocation87_spill] sm:$0xff] }
 0x5d9   :  { %3709 = vmatprep.subr.bf16.mxu1 %v20369_v39  ;;  %v20409_v39 = vld [vmem:[#allocation88_spill] sm:$0xff] }
 0x5db   :  { %3669 = vmatpush1.bf16.msra.mxu0 %v20370_v31 }
 0x5dc   :  { %3710 = vmatpush1.bf16.msra.mxu1 %v20371_v0  ;;  %3670 = vmatprep.subr.bf16.mxu0 %v20372_v10  ;;  %v20410_v10 = vld [vmem:[#allocation78_spill] sm:$0xff] }
 0x5dd   :  { %3711 = vmatprep.subr.bf16.mxu1 %v20373_v11 }
 0x5df   :  { %3671 = vmatpush1.bf16.msra.mxu0 %v20374_v41  ;;  %v20411_v41 = vld [vmem:[#allocation89_spill] sm:$0xff] }
 0x5e0   :  { %3712 = vmatpush1.bf16.msra.mxu1 %v20375_v14  ;;  %3672 = vmatprep.subr.bf16.mxu0 %v20376_v17  ;;  %v20412_v14 = vld [vmem:[#allocation90_spill] sm:$0xff] }
 0x5e1   :  { %3713 = vmatprep.subr.bf16.mxu1 %v20377_v23 }
 0x5e3   :  { %3673 = vmatpush2.bf16.msra.mxu0 %v20378_v19  ;;  %v20413_v19 = vld [vmem:[#allocation91_spill] sm:$0xff] }
 0x5e4   :  { %3714 = vmatpush2.bf16.msra.mxu1 %v20379_v32  ;;  %3674 = vmatprep.subr.bf16.mxu0 %v20380_v53 }
 0x5e5   :  { %3715 = vmatprep.subr.bf16.mxu1 %v20381_v48 }
 0x5e7   :  { %3675 = vmatpush2.bf16.msra.mxu0 %v20382_v49 }
 0x5e8   :  { %3716 = vmatpush2.bf16.msra.mxu1 %v20383_v34  ;;  %3676 = vmatprep.subr.bf16.mxu0 %v20384_v35 }
 0x5e9   :  { %3717 = vmatprep.subr.bf16.mxu1 %v20385_v12 }
 0x5eb   :  { %3677 = vmatpush2.bf16.msra.mxu0 %v20386_v36  ;;  %v20414_v36 = vld [vmem:[#allocation92_spill] sm:$0xff] }
 0x5ec   :  { %3718 = vmatpush2.bf16.msra.mxu1 %v20387_v42  ;;  %3678 = vmatprep.subr.bf16.mxu0 %v20388_v63  ;;  %v20416_v42 = vld [vmem:[#allocation94_spill] sm:$0xff]  ;;  %v20417_v63 = vld [vmem:[#allocation95_spill] sm:$0xff] }
 0x5ed   :  { %3719 = vmatprep.subr.bf16.mxu1 %v20389_v27  ;;  %v20420_v27 = vld [vmem:[#allocation98_spill] sm:$0xff] }
 0x5ef   :  { %3679 = vmatpush2.bf16.msra.mxu0 %v20390_v52  ;;  %v20421_v52 = vld [vmem:[#allocation99_spill] sm:$0xff] }
 0x5f0   :  { %3720 = vmatpush2.bf16.msra.mxu1 %v20391_v46  ;;  %3680 = vmatprep.subr.bf16.mxu0 %v20392_v13  ;;  %v20424_v46 = vld [vmem:[#allocation102_spill] sm:$0xff]  ;;  %v20425_v13 = vld [vmem:[#allocation103_spill] sm:$0xff] }
 0x5f1   :  { %3721 = vmatprep.subr.bf16.mxu1 %v20393_v56  ;;  %v20426_v56 = vld [vmem:[#allocation104_spill] sm:$0xff] }
 0x5f3   :  { %3681 = vmatpush2.bf16.msra.mxu0 %v20394_v18  ;;  %v20427_v18 = vld [vmem:[#allocation105_spill] sm:$0xff] }
 0x5f4   :  { %3722 = vmatpush2.bf16.msra.mxu1 %v20395_v6  ;;  %3682 = vmatprep.subr.bf16.mxu0 %v20396_v1  ;;  %v20428_v6 = vld [vmem:[#allocation106_spill] sm:$0xff]  ;;  %v20429_v1 = vld [vmem:[#allocation107_spill] sm:$0xff] }
 0x5f5   :  { %3723 = vmatprep.subr.bf16.mxu1 %v20397_v2  ;;  %v20430_v2 = vld [vmem:[#allocation108_spill] sm:$0xff] }
 0x5f7   :  { %3683 = vmatpush2.bf16.msra.mxu0 %v20398_v29  ;;  %v20431_v29 = vld [vmem:[#allocation109_spill] sm:$0xff] }
 0x5f8   :  { %3724 = vmatpush2.bf16.msra.mxu1 %v20399_v28  ;;  %3684 = vmatprep.subr.bf16.mxu0 %v20400_v38  ;;  %v20432_v28 = vld [vmem:[#allocation110_spill] sm:$0xff]  ;;  %v20433_v38 = vld [vmem:[#allocation111_spill] sm:$0xff] }
 0x5f9   :  { %3725 = vmatprep.subr.bf16.mxu1 %v20401_v24  ;;  %v20434_v24 = vld [vmem:[#allocation112_spill] sm:$0xff] }
 0x5fb   :  { %3685 = vmatpush2.bf16.msra.mxu0 %v20402_v60  ;;  %v20435_v60 = vld [vmem:[#allocation113_spill] sm:$0xff] }
 0x5fc   :  { %3726 = vmatpush2.bf16.msra.mxu1 %v20403_v4  ;;  %3686 = vmatprep.subr.bf16.mxu0 %v20404_v62  ;;  %v20436_v4 = vld [vmem:[#allocation114_spill] sm:$0xff]  ;;  %v20439_v62 = vld [vmem:[#allocation117_spill] sm:$0xff] }
 0x5fd   :  { %3727 = vmatprep.subr.bf16.mxu1 %v20405_v7  ;;  %v20440_v7 = vld [vmem:[#allocation118_spill] sm:$0xff] }
 0x5ff   :  { %3687 = vmatpush2.bf16.msra.mxu0 %v20406_v59  ;;  %v20441_v59 = vld [vmem:[#allocation119_spill] sm:$0xff] }
 0x600   :  { %3728 = vmatpush2.bf16.msra.mxu1 %v20407_v50  ;;  %3750 = vmatprep.subr.bf16.mxu0 %v20408_v43  ;;  %v20442_v50 = vld [vmem:[#allocation120_spill] sm:$0xff]  ;;  %v20443_v43 = vld [vmem:[#allocation121_spill] sm:$0xff] }
 0x601   :  { %3791 = vmatprep.subr.bf16.mxu1 %v20409_v39  ;;  %v20444_v39 = vld [vmem:[#allocation122_spill] sm:$0xff] }
 0x602   :  { %v3444_v31 = vpop.f32.mrf.mxu0  ;;  %3689 = vmatmul.mubr.bf16.vlgmr.msra.gmra.mxu0 %v15406_v8 }
 0x603   :  { %v3485_v0 = vpop.f32.mrf.mxu1  ;;  %3730 = vmatmul.mubr.bf16.vlgmr.msra.gmra.mxu1 %v15408_v37  ;;  %v3445_v11 = vadd.f32 %v3444_v31, %v20410_v10  ;;  %3751 = vmatpush1.bf16.msra.mxu0 %v20411_v41  ;;  %v20445_v31 = vld [vmem:[#allocation123_spill] sm:$0xff]  ;;  %v20448_v41 = vld [vmem:[#allocation126_spill] sm:$0xff] }
 0x604   :  { %3792 = vmatpush1.bf16.msra.mxu1 %v20412_v14  ;;  %v3446_v17 = vpop.f32.mrf.mxu0  ;;  %3752 = vmatprep.subr.bf16.mxu0 %v20413_v19  ;;  %v20449_v14 = vld [vmem:[#allocation127_spill] sm:$0xff]  ;;  %v20452_v19 = vld [vmem:[#allocation130_spill] sm:$0xff] }
 0x605   :  { %v3487_v23 = vpop.f32.mrf.mxu1  ;;  %3793 = vmatprep.subr.bf16.mxu1 %v14417_v20  ;;  %v15421_v32 = vadd.f32 %v3485_v0, %v3445_v11  ;;  %v3447_v53 = vadd.f32 %v3446_v17, %v10487_v15  ;;  %3782 = vmatprep.mubr.bf16.mxu0 %v15187_v51  ;;  %v20415_v20 = vld [vmem:[#allocation93_spill] sm:$0xff]  ;;  %v20418_v51 = vld [vmem:[#allocation96_spill] sm:$0xff] }
 0x606   :  { %3823 = vmatprep.mubr.bf16.mxu1 %v15189_v22  ;;  %v3448_v48 = vpop.f32.mrf.mxu0  ;;  %v20419_v22 = vld [vmem:[#allocation97_spill] sm:$0xff]  ;;  %v20446_v0 = vld [vmem:[#allocation124_spill] sm:$0xff] }
 0x607   :  { %v3489_v49 = vpop.f32.mrf.mxu1  ;;  %v15426_v34 = vadd.f32 %v3487_v23, %v3447_v53  ;;  %3753 = vmatpush1.bf16.msra.mxu0 %v14430_v55  ;;  %v20422_v55 = vld [vmem:[#allocation100_spill] sm:$0xff]  ;;  %v20447_v11 = vld [vmem:[#allocation125_spill] sm:$0xff]  ;;  %v20453_v53 = vld [vmem:[#allocation131_spill] sm:$0xff] }
 0x608   :  { %3794 = vmatpush1.bf16.msra.mxu1 %v14436_v45  ;;  %v3449_v35 = vpop.f32.mrf.mxu0  ;;  %3754 = vmatprep.subr.bf16.mxu0 %v20414_v36  ;;  %v20423_v45 = vld [vmem:[#allocation101_spill] sm:$0xff]  ;;  %v20450_v17 = vld [vmem:[#allocation128_spill] sm:$0xff] }
 0x609   :  { %v3490_v12 = vpop.f32.mrf.mxu1  ;;  %3795 = vmatprep.subr.bf16.mxu1 %v20415_v20  ;;  %v20451_v23 = vld [vmem:[#allocation129_spill] sm:$0xff]  ;;  %v20454_v48 = vld [vmem:[#allocation132_spill] sm:$0xff]  ;;  %v20456_v35 = vld [vmem:[#allocation134_spill] sm:$0xff] }
 0x60a   :  { %v20455_v49 = vld [vmem:[#allocation133_spill] sm:$0xff]  ;;  %v20457_v12 = vld [vmem:[#allocation135_spill] sm:$0xff]  ;;  %v20458_v36 = vld [vmem:[#allocation136_spill] sm:$0xff] }
 0x60b   :  { %3755 = vmatpush1.bf16.msra.mxu0 %v20416_v42  ;;  %v20459_v20 = vld [vmem:[#allocation137_spill] sm:$0xff]  ;;  %v20460_v42 = vld [vmem:[#allocation138_spill] sm:$0xff] }
 0x60c   :  { %3796 = vmatpush1.bf16.msra.mxu1 %v20417_v63  ;;  %3756 = vmatprep.subr.bf16.mxu0 %v20418_v51  ;;  %v20461_v63 = vld [vmem:[#allocation139_spill] sm:$0xff]  ;;  %v20462_v51 = vld [vmem:[#allocation140_spill] sm:$0xff] }
 0x60d   :  { %3797 = vmatprep.subr.bf16.mxu1 %v20419_v22  ;;  %v20463_v22 = vld [vmem:[#allocation141_spill] sm:$0xff] }
 0x60f   :  { %3757 = vmatpush1.bf16.msra.mxu0 %v20420_v27  ;;  %v20464_v27 = vld [vmem:[#allocation142_spill] sm:$0xff] }
 0x610   :  { %3798 = vmatpush1.bf16.msra.mxu1 %v20421_v52  ;;  %3758 = vmatprep.subr.bf16.mxu0 %v20422_v55  ;;  %v20465_v52 = vld [vmem:[#allocation143_spill] sm:$0xff]  ;;  %v20466_v55 = vld [vmem:[#allocation144_spill] sm:$0xff] }
 0x611   :  { %3799 = vmatprep.subr.bf16.mxu1 %v20423_v45  ;;  %v20467_v45 = vld [vmem:[#allocation145_spill] sm:$0xff] }
 0x613   :  { %3759 = vmatpush1.bf16.msra.mxu0 %v20424_v46  ;;  %v20468_v46 = vld [vmem:[#allocation146_spill] sm:$0xff] }
 0x614   :  { %3800 = vmatpush1.bf16.msra.mxu1 %v20425_v13  ;;  %3760 = vmatprep.subr.bf16.mxu0 %v20426_v56  ;;  %v20469_v13 = vld [vmem:[#allocation147_spill] sm:$0xff]  ;;  %v20470_v56 = vld [vmem:[#allocation148_spill] sm:$0xff] }
 0x615   :  { %3801 = vmatprep.subr.bf16.mxu1 %v20427_v18  ;;  %v20471_v18 = vld [vmem:[#allocation149_spill] sm:$0xff] }
 0x617   :  { %3761 = vmatpush1.bf16.msra.mxu0 %v20428_v6 }
 0x618   :  { %3802 = vmatpush1.bf16.msra.mxu1 %v20429_v1  ;;  %3762 = vmatprep.subr.bf16.mxu0 %v20430_v2 }
 0x619   :  { %3803 = vmatprep.subr.bf16.mxu1 %v20431_v29  ;;  %v20472_v29 = vld [vmem:[#allocation150_spill] sm:$0xff] }
 0x61b   :  { %3763 = vmatpush1.bf16.msra.mxu0 %v20432_v28  ;;  %v20473_v28 = vld [vmem:[#allocation151_spill] sm:$0xff] }
 0x61c   :  { %3804 = vmatpush1.bf16.msra.mxu1 %v20433_v38  ;;  %3764 = vmatprep.subr.bf16.mxu0 %v20434_v24 }
 0x61d   :  { %3805 = vmatprep.subr.bf16.mxu1 %v20435_v60  ;;  %v20474_v60 = vld [vmem:[#allocation152_spill] sm:$0xff] }
 0x61f   :  { %3765 = vmatpush1.bf16.msra.mxu0 %v20436_v4 }
 0x620   :  { %3806 = vmatpush1.bf16.msra.mxu1 %v20437_v16  ;;  %3766 = vmatprep.subr.bf16.mxu0 %v20438_v5  ;;  %v20475_v5 = vld [vmem:[#allocation153_spill] sm:$0xff] }
 0x621   :  { %3807 = vmatprep.subr.bf16.mxu1 %v20439_v62 }
 0x623   :  { %3767 = vmatpush2.bf16.msra.mxu0 %v20440_v7 }
 0x624   :  { %3808 = vmatpush2.bf16.msra.mxu1 %v20441_v59  ;;  %3768 = vmatprep.subr.bf16.mxu0 %v20442_v50  ;;  %v20476_v59 = vld [vmem:[#allocation154_spill] sm:$0xff]  ;;  %v20478_v50 = vld [vmem:[#allocation156_spill] sm:$0xff] }
 0x625   :  { %3809 = vmatprep.subr.bf16.mxu1 %v20443_v43  ;;  %v20482_v43 = vld [vmem:[#allocation160_spill] sm:$0xff] }
 0x627   :  { %3769 = vmatpush2.bf16.msra.mxu0 %v20444_v39  ;;  %v20483_v39 = vld [vmem:[#allocation161_spill] sm:$0xff] }
 0x628   :  { %3810 = vmatpush2.bf16.msra.mxu1 %v20445_v31  ;;  %3770 = vmatprep.subr.bf16.mxu0 %v20446_v0  ;;  %v20485_v31 = vld [vmem:[#allocation163_spill] sm:$0xff]  ;;  %v20486_v0 = vld [vmem:[#allocation164_spill] sm:$0xff] }
 0x629   :  { %3811 = vmatprep.subr.bf16.mxu1 %v20447_v11  ;;  %v20487_v11 = vld [vmem:[#allocation165_spill] sm:$0xff] }
 0x62b   :  { %3771 = vmatpush2.bf16.msra.mxu0 %v20448_v41  ;;  %v20488_v41 = vld [vmem:[#allocation166_spill] sm:$0xff] }
 0x62c   :  { %3812 = vmatpush2.bf16.msra.mxu1 %v20449_v14  ;;  %3772 = vmatprep.subr.bf16.mxu0 %v20450_v17  ;;  %v20489_v14 = vld [vmem:[#allocation167_spill] sm:$0xff]  ;;  %v20490_v17 = vld [vmem:[#allocation168_spill] sm:$0xff] }
 0x62d   :  { %3813 = vmatprep.subr.bf16.mxu1 %v20451_v23  ;;  %v20491_v23 = vld [vmem:[#allocation169_spill] sm:$0xff] }
 0x62f   :  { %3773 = vmatpush2.bf16.msra.mxu0 %v20452_v19  ;;  %v20492_v19 = vld [vmem:[#allocation170_spill] sm:$0xff] }
 0x630   :  { %3814 = vmatpush2.bf16.msra.mxu1 %v20453_v53  ;;  %3774 = vmatprep.subr.bf16.mxu0 %v20454_v48  ;;  %v20493_v53 = vld [vmem:[#allocation171_spill] sm:$0xff]  ;;  %v20494_v48 = vld [vmem:[#allocation172_spill] sm:$0xff] }
 0x631   :  { %3815 = vmatprep.subr.bf16.mxu1 %v20455_v49  ;;  %v20495_v49 = vld [vmem:[#allocation173_spill] sm:$0xff] }
 0x633   :  { %3775 = vmatpush2.bf16.msra.mxu0 %v20456_v35  ;;  %v20496_v35 = vld [vmem:[#allocation174_spill] sm:$0xff] }
 0x634   :  { %3816 = vmatpush2.bf16.msra.mxu1 %v20457_v12  ;;  %3776 = vmatprep.subr.bf16.mxu0 %v20458_v36  ;;  %v20497_v12 = vld [vmem:[#allocation175_spill] sm:$0xff]  ;;  %v20498_v36 = vld [vmem:[#allocation176_spill] sm:$0xff] }
 0x635   :  { %3817 = vmatprep.subr.bf16.mxu1 %v20459_v20  ;;  %v20499_v20 = vld [vmem:[#allocation177_spill] sm:$0xff] }
 0x637   :  { %3777 = vmatpush2.bf16.msra.mxu0 %v20460_v42  ;;  %v20500_v42 = vld [vmem:[#allocation178_spill] sm:$0xff] }
 0x638   :  { %3818 = vmatpush2.bf16.msra.mxu1 %v20461_v63  ;;  %3778 = vmatprep.subr.bf16.mxu0 %v20462_v51  ;;  %v20501_v63 = vld [vmem:[#allocation179_spill] sm:$0xff]  ;;  %v20502_v51 = vld [vmem:[#allocation180_spill] sm:$0xff] }
 0x639   :  { %3819 = vmatprep.subr.bf16.mxu1 %v20463_v22  ;;  %v20503_v22 = vld [vmem:[#allocation181_spill] sm:$0xff] }
 0x63b   :  { %3779 = vmatpush2.bf16.msra.mxu0 %v20464_v27  ;;  %v20504_v27 = vld [vmem:[#allocation182_spill] sm:$0xff] }
 0x63c   :  { %3820 = vmatpush2.bf16.msra.mxu1 %v20465_v52  ;;  %3780 = vmatprep.subr.bf16.mxu0 %v20466_v55  ;;  %v20505_v52 = vld [vmem:[#allocation183_spill] sm:$0xff]  ;;  %v20506_v55 = vld [vmem:[#allocation184_spill] sm:$0xff] }
 0x63d   :  { %3821 = vmatprep.subr.bf16.mxu1 %v20467_v45  ;;  %v20507_v45 = vld [vmem:[#allocation185_spill] sm:$0xff] }
 0x63f   :  { %3781 = vmatpush2.bf16.msra.mxu0 %v20468_v46  ;;  %v20508_v46 = vld [vmem:[#allocation186_spill] sm:$0xff] }
 0x640   :  { %3822 = vmatpush2.bf16.msra.mxu1 %v20469_v13  ;;  %3832 = vmatprep.subr.bf16.mxu0 %v20470_v56  ;;  %v20509_v13 = vld [vmem:[#allocation187_spill] sm:$0xff]  ;;  %v20510_v56 = vld [vmem:[#allocation188_spill] sm:$0xff] }
 0x641   :  { %3873 = vmatprep.subr.bf16.mxu1 %v20471_v18  ;;  %v20511_v18 = vld [vmem:[#allocation189_spill] sm:$0xff] }
 0x642   :  { %v3526_v6 = vpop.f32.mrf.mxu0  ;;  %3783 = vmatmul.mubr.bf16.vlgmr.msra.gmra.mxu0 %v15312_v30 }
 0x643   :  { %v3567_v1 = vpop.f32.mrf.mxu1  ;;  %3824 = vmatmul.mubr.bf16.vlgmr.msra.gmra.mxu1 %v15314_v44  ;;  %v3527_v2 = vadd.f32 %v3526_v6, %v15421_v32  ;;  %3833 = vmatpush1.bf16.msra.mxu0 %v20472_v29  ;;  %v20512_v6 = vld [vmem:[#allocation190_spill] sm:$0xff]  ;;  %v20515_v29 = vld [vmem:[#allocation193_spill] sm:$0xff] }
 0x644   :  { %3874 = vmatpush1.bf16.msra.mxu1 %v20473_v28  ;;  %v3528_v38 = vpop.f32.mrf.mxu0  ;;  %3834 = vmatprep.subr.bf16.mxu0 %v20474_v60  ;;  %v20516_v28 = vld [vmem:[#allocation194_spill] sm:$0xff]  ;;  %v20519_v60 = vld [vmem:[#allocation197_spill] sm:$0xff] }
 0x645   :  { %v3569_v24 = vpop.f32.mrf.mxu1  ;;  %3875 = vmatprep.subr.bf16.mxu1 %v14811_v9  ;;  %v15495_v4 = vadd.f32 %v3567_v1, %v3527_v2  ;;  %v3529_v16 = vadd.f32 %v3528_v38, %v15426_v34  ;;  %3864 = vmatprep.mubr.bf16.mxu0 %v15326_v26  ;;  %v20477_v9 = vld [vmem:[#allocation155_spill] sm:$0xff]  ;;  %v20479_v34 = vld [vmem:[#allocation157_spill] sm:$0xff]  ;;  %v20480_v26 = vld [vmem:[#allocation158_spill] sm:$0xff] }
 0x646   :  { %3905 = vmatprep.mubr.bf16.mxu1 %v15328_v33  ;;  %v3530_v30 = vpop.f32.mrf.mxu0  ;;  %v20481_v33 = vld [vmem:[#allocation159_spill] sm:$0xff]  ;;  %v20514_v2 = vld [vmem:[#allocation192_spill] sm:$0xff] }
 0x647   :  { %v3571_v44 = vpop.f32.mrf.mxu1  ;;  %v15500_v32 = vadd.f32 %v3569_v24, %v3529_v16  ;;  %3835 = vmatpush1.bf16.msra.mxu0 %v14824_v57  ;;  %v20484_v57 = vld [vmem:[#allocation162_spill] sm:$0xff]  ;;  %v20513_v1 = vld [vmem:[#allocation191_spill] sm:$0xff]  ;;  %v20518_v24 = vld [vmem:[#allocation196_spill] sm:$0xff] }
 0x648   :  { %3876 = vmatpush1.bf16.msra.mxu1 %v20475_v5  ;;  %v3531_v62 = vpop.f32.mrf.mxu0  ;;  %3836 = vmatprep.subr.bf16.mxu0 %v20476_v59  ;;  %v20517_v38 = vld [vmem:[#allocation195_spill] sm:$0xff]  ;;  %v20520_v16 = vld [vmem:[#allocation198_spill] sm:$0xff]  ;;  %v20522_v44 = vld [vmem:[#allocation200_spill] sm:$0xff] }
 0x649   :  { %v3572_v7 = vpop.f32.mrf.mxu1  ;;  %3877 = vmatprep.subr.bf16.mxu1 %v20477_v9  ;;  %v20521_v30 = vld [vmem:[#allocation199_spill] sm:$0xff]  ;;  %v20523_v5 = vld [vmem:[#allocation201_spill] sm:$0xff]  ;;  %v20524_v62 = vld [vmem:[#allocation202_spill] sm:$0xff] }
 0x64a   :  { %v20525_v7 = vld [vmem:[#allocation203_spill] sm:$0xff]  ;;  %v20526_v59 = vld [vmem:[#allocation204_spill] sm:$0xff]  ;;  %v20527_v9 = vld [vmem:[#allocation205_spill] sm:$0xff] }
 0x64b   :  { %3837 = vmatpush1.bf16.msra.mxu0 %v20478_v50  ;;  %v20528_v50 = vld [vmem:[#allocation206_spill] sm:$0xff] }
 0x64c   :  { %3878 = vmatpush1.bf16.msra.mxu1 %v20479_v34  ;;  %3838 = vmatprep.subr.bf16.mxu0 %v20480_v26  ;;  %v20529_v34 = vld [vmem:[#allocation207_spill] sm:$0xff] }
 0x64d   :  { %3879 = vmatprep.subr.bf16.mxu1 %v20481_v33  ;;  %v6939_v26 = vld [vmem:[%s18476_s0 + $0x1c8] sm:$0xff]  ;;  %v6941_v33 = vld [vmem:[%s18476_s0 + $0x1d8] sm:$0xff] }
 0x64f   :  { %3839 = vmatpush1.bf16.msra.mxu0 %v20482_v43  ;;  %v20530_v43 = vld [vmem:[#allocation208_spill] sm:$0xff] }
 0x650   :  { %3880 = vmatpush1.bf16.msra.mxu1 %v20483_v39  ;;  %3840 = vmatprep.subr.bf16.mxu0 %v20484_v57  ;;  %v20531_v39 = vld [vmem:[#allocation209_spill] sm:$0xff]  ;;  %v20532_v57 = vld [vmem:[#allocation210_spill] sm:$0xff] }
 0x651   :  { %3881 = vmatprep.subr.bf16.mxu1 %v20485_v31  ;;  %v20533_v31 = vld [vmem:[#allocation211_spill] sm:$0xff] }
 0x653   :  { %3841 = vmatpush1.bf16.msra.mxu0 %v20486_v0  ;;  %v15568_v0 = vpack.c.bf16 %v6939_v26, %v6939_v26  ;;  %v15816_v26 = vld [vmem:[%s18475_s1 + $0x4b4] ss:$8 sps:$4 sm:$0xff]  }
 0x654   :  { %3882 = vmatpush1.bf16.msra.mxu1 %v20487_v11  ;;  %3842 = vmatprep.subr.bf16.mxu0 %v20488_v41  ;;  %v15570_v11 = vpack.c.bf16 %v6941_v33, %v6941_v33  ;;  %v15822_v33 = vld [vmem:[%s18475_s1 + $0x5b4] ss:$8 sps:$4 sm:$0xff]  }
 0x655   :  { %3883 = vmatprep.subr.bf16.mxu1 %v20489_v14 }
 0x657   :  { %3843 = vmatpush1.bf16.msra.mxu0 %v20490_v17 }
 0x658   :  { %3884 = vmatpush1.bf16.msra.mxu1 %v20491_v23  ;;  %3844 = vmatprep.subr.bf16.mxu0 %v20492_v19  ;;  %v20534_v23 = vld [vmem:[#allocation212_spill] sm:$0xff]  ;;  %v20535_v19 = vld [vmem:[#allocation213_spill] sm:$0xff] }
 0x659   :  { %3885 = vmatprep.subr.bf16.mxu1 %v20493_v53 }
 0x65b   :  { %3845 = vmatpush1.bf16.msra.mxu0 %v20494_v48 }
 0x65c   :  { %3886 = vmatpush1.bf16.msra.mxu1 %v20495_v49  ;;  %3846 = vmatprep.subr.bf16.mxu0 %v20496_v35  ;;  %v20536_v49 = vld [vmem:[#allocation214_spill] sm:$0xff] }
 0x65d   :  { %3887 = vmatprep.subr.bf16.mxu1 %v20497_v12 }
 0x65f   :  { %3847 = vmatpush1.bf16.msra.mxu0 %v20498_v36 }
 0x660   :  { %3888 = vmatpush1.bf16.msra.mxu1 %v20499_v20  ;;  %3848 = vmatprep.subr.bf16.mxu0 %v20500_v42  ;;  %v15636_v42 = vld [vmem:[%s18475_s1 + $0x430] ss:$8 sps:$4 sm:$0xff]  }
 0x661   :  { %3889 = vmatprep.subr.bf16.mxu1 %v20501_v63  ;;  %v15642_v63 = vld [vmem:[%s18475_s1 + $0x530] ss:$8 sps:$4 sm:$0xff]  }
 0x663   :  { %3849 = vmatpush2.bf16.msra.mxu0 %v20502_v51  ;;  %v15648_v51 = vld [vmem:[%s18475_s1 + $0x424] ss:$8 sps:$4 sm:$0xff]  }
 0x664   :  { %3890 = vmatpush2.bf16.msra.mxu1 %v20503_v22  ;;  %3850 = vmatprep.subr.bf16.mxu0 %v20504_v27  ;;  %v15654_v22 = vld [vmem:[%s18475_s1 + $0x524] ss:$8 sps:$4 sm:$0xff]   ;;  %v15660_v27 = vld [vmem:[%s18475_s1 + $0x420] ss:$8 sps:$4 sm:$0xff]  }
 0x665   :  { %3891 = vmatprep.subr.bf16.mxu1 %v20505_v52  ;;  %v15666_v52 = vld [vmem:[%s18475_s1 + $0x520] ss:$8 sps:$4 sm:$0xff]  }
 0x667   :  { %3851 = vmatpush2.bf16.msra.mxu0 %v20506_v55  ;;  %v15672_v55 = vld [vmem:[%s18475_s1 + $0x414] ss:$8 sps:$4 sm:$0xff]  }
 0x668   :  { %3892 = vmatpush2.bf16.msra.mxu1 %v20507_v45  ;;  %3852 = vmatprep.subr.bf16.mxu0 %v20508_v46  ;;  %v15678_v45 = vld [vmem:[%s18475_s1 + $0x514] ss:$8 sps:$4 sm:$0xff]   ;;  %v15684_v46 = vld [vmem:[%s18475_s1 + $0x410] ss:$8 sps:$4 sm:$0xff]  }
 0x669   :  { %3893 = vmatprep.subr.bf16.mxu1 %v20509_v13  ;;  %v15690_v13 = vld [vmem:[%s18475_s1 + $0x510] ss:$8 sps:$4 sm:$0xff]  }
 0x66b   :  { %3853 = vmatpush2.bf16.msra.mxu0 %v20510_v56  ;;  %v15696_v56 = vld [vmem:[%s18475_s1 + $0x404] ss:$8 sps:$4 sm:$0xff]  }
 0x66c   :  { %3894 = vmatpush2.bf16.msra.mxu1 %v20511_v18  ;;  %3854 = vmatprep.subr.bf16.mxu0 %v20512_v6  ;;  %v15702_v18 = vld [vmem:[%s18475_s1 + $0x504] ss:$8 sps:$4 sm:$0xff]   ;;  %v15708_v6 = vld [vmem:[%s18475_s1 + $0x400] ss:$8 sps:$4 sm:$0xff]  }
 0x66d   :  { %3895 = vmatprep.subr.bf16.mxu1 %v20513_v1  ;;  %v15714_v1 = vld [vmem:[%s18475_s1 + $0x500] ss:$8 sps:$4 sm:$0xff]  }
 0x66f   :  { %3855 = vmatpush2.bf16.msra.mxu0 %v20514_v2  ;;  %v15720_v2 = vld [vmem:[%s18475_s1 + $0x4f4] ss:$8 sps:$4 sm:$0xff]  }
 0x670   :  { %3896 = vmatpush2.bf16.msra.mxu1 %v20515_v29  ;;  %3856 = vmatprep.subr.bf16.mxu0 %v20516_v28  ;;  %v15726_v29 = vld [vmem:[%s18475_s1 + $0x5f4] ss:$8 sps:$4 sm:$0xff]   ;;  %v15732_v28 = vld [vmem:[%s18475_s1 + $0x4f0] ss:$8 sps:$4 sm:$0xff]  }
 0x671   :  { %3897 = vmatprep.subr.bf16.mxu1 %v20517_v38  ;;  %v15738_v38 = vld [vmem:[%s18475_s1 + $0x5f0] ss:$8 sps:$4 sm:$0xff]  }
 0x673   :  { %3857 = vmatpush2.bf16.msra.mxu0 %v20518_v24  ;;  %v15744_v24 = vld [vmem:[%s18475_s1 + $0x4e4] ss:$8 sps:$4 sm:$0xff]  }
 0x674   :  { %3898 = vmatpush2.bf16.msra.mxu1 %v20519_v60  ;;  %3858 = vmatprep.subr.bf16.mxu0 %v20520_v16  ;;  %v15750_v60 = vld [vmem:[%s18475_s1 + $0x5e4] ss:$8 sps:$4 sm:$0xff]   ;;  %v15756_v16 = vld [vmem:[%s18475_s1 + $0x4e0] ss:$8 sps:$4 sm:$0xff]  }
 0x675   :  { %3899 = vmatprep.subr.bf16.mxu1 %v20521_v30  ;;  %v15762_v30 = vld [vmem:[%s18475_s1 + $0x5e0] ss:$8 sps:$4 sm:$0xff]  }
 0x677   :  { %3859 = vmatpush2.bf16.msra.mxu0 %v20522_v44  ;;  %v15768_v44 = vld [vmem:[%s18475_s1 + $0x4d4] ss:$8 sps:$4 sm:$0xff]  }
 0x678   :  { %3900 = vmatpush2.bf16.msra.mxu1 %v20523_v5  ;;  %3860 = vmatprep.subr.bf16.mxu0 %v20524_v62  ;;  %v15774_v5 = vld [vmem:[%s18475_s1 + $0x5d4] ss:$8 sps:$4 sm:$0xff]   ;;  %v15780_v62 = vld [vmem:[%s18475_s1 + $0x4d0] ss:$8 sps:$4 sm:$0xff]  }
 0x679   :  { %3901 = vmatprep.subr.bf16.mxu1 %v20525_v7  ;;  %v15786_v7 = vld [vmem:[%s18475_s1 + $0x5d0] ss:$8 sps:$4 sm:$0xff]  }
 0x67b   :  { %3861 = vmatpush2.bf16.msra.mxu0 %v20526_v59  ;;  %v15792_v59 = vld [vmem:[%s18475_s1 + $0x4c4] ss:$8 sps:$4 sm:$0xff]  }
 0x67c   :  { %3902 = vmatpush2.bf16.msra.mxu1 %v20527_v9  ;;  %3862 = vmatprep.subr.bf16.mxu0 %v20528_v50  ;;  %v15798_v9 = vld [vmem:[%s18475_s1 + $0x5c4] ss:$8 sps:$4 sm:$0xff]   ;;  %v15804_v50 = vld [vmem:[%s18475_s1 + $0x4c0] ss:$8 sps:$4 sm:$0xff]  }
 0x67d   :  { %3903 = vmatprep.subr.bf16.mxu1 %v20529_v34  ;;  %v15810_v34 = vld [vmem:[%s18475_s1 + $0x5c0] ss:$8 sps:$4 sm:$0xff]  }
 0x67f   :  { %3863 = vmatpush2.bf16.msra.mxu0 %v20530_v43  ;;  %v15828_v43 = vld [vmem:[%s18475_s1 + $0x4b0] ss:$8 sps:$4 sm:$0xff]  }
 0x680   :  { %3904 = vmatpush2.bf16.msra.mxu1 %v20531_v39  ;;  %3914 = vmatprep.subr.bf16.mxu0 %v20532_v57  ;;  %v15834_v39 = vld [vmem:[%s18475_s1 + $0x5b0] ss:$8 sps:$4 sm:$0xff]   ;;  %v15840_v57 = vld [vmem:[%s18475_s1 + $0x4a4] ss:$8 sps:$4 sm:$0xff]  }
 0x681   :  { %3955 = vmatprep.subr.bf16.mxu1 %v20533_v31  ;;  %v15846_v31 = vld [vmem:[%s18475_s1 + $0x5a4] ss:$8 sps:$4 sm:$0xff]  }
 0x682   :  { %v3608_v41 = vpop.f32.mrf.mxu0  ;;  %3865 = vmatmul.mubr.bf16.vlgmr.msra.gmra.mxu0 %v15406_v8 }
 0x683   :  { %v3649_v14 = vpop.f32.mrf.mxu1  ;;  %3906 = vmatmul.mubr.bf16.vlgmr.msra.gmra.mxu1 %v15408_v37  ;;  %v3609_v17 = vadd.f32 %v3608_v41, %v15495_v4  ;;  %3915 = vmatpush1.bf16.msra.mxu0 %v20534_v23  ;;  %v15852_v41 = vld [vmem:[%s18475_s1 + $0x4a0] ss:$8 sps:$4 sm:$0xff]   ;;  %v15870_v23 = vld [vmem:[%s18475_s1 + $0x594] ss:$8 sps:$4 sm:$0xff]  }
 0x684   :  { %3956 = vmatpush1.bf16.msra.mxu1 %v20535_v19  ;;  %v3610_v53 = vpop.f32.mrf.mxu0  ;;  %3916 = vmatprep.subr.bf16.mxu0 %v20536_v49  ;;  %20539 = vst [vmem:[#allocation10_spill] sm:$0xff] %v15870_v23  ;;  %v15876_v19 = vld [vmem:[%s18475_s1 + $0x490] ss:$8 sps:$4 sm:$0xff]  }
 0x685   :  { %v3651_v48 = vpop.f32.mrf.mxu1  ;;  %3957 = vmatprep.subr.bf16.mxu1 %v15215_v47  ;;  %v15579_v35 = vadd.f32 %v3649_v14, %v3609_v17  ;;  %v3611_v12 = vadd.f32 %v3610_v53, %v15500_v32  ;;  %3946 = vmatprep.mubr.bf16.mxu0 %v15568_v0  ;;  %v15594_v47 = vld [vmem:[%s18475_s1 + $0x550] ss:$8 sps:$4 sm:$0xff]   ;;  %v15630_v32 = vld [vmem:[%s18475_s1 + $0x534] ss:$8 sps:$4 sm:$0xff]   ;;  %v15858_v14 = vld [vmem:[%s18475_s1 + $0x5a0] ss:$8 sps:$4 sm:$0xff]  }
 0x686   :  { %3987 = vmatprep.mubr.bf16.mxu1 %v15570_v11  ;;  %v3612_v8 = vpop.f32.mrf.mxu0  ;;  %20537 = vst [vmem:[#allocation8_spill] sm:$0xff] %v15858_v14  ;;  %v15864_v17 = vld [vmem:[%s18475_s1 + $0x494] ss:$8 sps:$4 sm:$0xff]   ;;  %20540 = vst [vmem:[#allocation11_spill] sm:$0xff] %v15876_v19  ;;  %v15882_v53 = vld [vmem:[%s18475_s1 + $0x590] ss:$8 sps:$4 sm:$0xff]  }
 0x687   :  { %v3653_v37 = vpop.f32.mrf.mxu1  ;;  %v15584_v4 = vadd.f32 %v3651_v48, %v3611_v12  ;;  %3917 = vmatpush1.bf16.msra.mxu0 %v15228_v40  ;;  %v15600_v40 = vld [vmem:[%s18475_s1 + $0x444] ss:$8 sps:$4 sm:$0xff]   ;;  %20538 = vst [vmem:[#allocation9_spill] sm:$0xff] %v15864_v17  ;;  %20541 = vst [vmem:[#allocation12_spill] sm:$0xff] %v15882_v53  ;;  %v6940_v49 = vld [vmem:[%s18476_s0 + $0x1d0] sm:$0xff] }
 0x688   :  { %3958 = vmatpush1.bf16.msra.mxu1 %v15234_v3  ;;  %v3613_v36 = vpop.f32.mrf.mxu0  ;;  %3918 = vmatprep.subr.bf16.mxu0 %v15240_v61  ;;  %v15606_v3 = vld [vmem:[%s18475_s1 + $0x544] ss:$8 sps:$4 sm:$0xff]   ;;  %v15612_v61 = vld [vmem:[%s18475_s1 + $0x440] ss:$8 sps:$4 sm:$0xff]  }
 0x689   :  { %v3654_v20 = vpop.f32.mrf.mxu1  ;;  %3959 = vmatprep.subr.bf16.mxu1 %v15246_v58  ;;  %v15618_v58 = vld [vmem:[%s18475_s1 + $0x540] ss:$8 sps:$4 sm:$0xff]   ;;  %v15894_v12 = vld [vmem:[%s18475_s1 + $0x484] ss:$8 sps:$4 sm:$0xff]   ;;  %v15905_v36 = vpack.c.bf16 %v6940_v49, %v6940_v49  ;;  %v15928_v49 = vld [vmem:[%s18475_s1 + $0x674] ss:$8 sps:$4 sm:$0xff]  }
 0x68a   :  { %v6938_v48 = vld [vmem:[%s18476_s0 + $0x1c0] sm:$0xff]  ;;  %20542 = vst [vmem:[#allocation13_spill] sm:$0xff] %v15894_v12  ;;  %v6943_v20 = vld [vmem:[%s18476_s0 + $0x1e8] sm:$0xff]  ;;  %20546 = vst [vmem:[#allocation17_spill] sm:$0xff] %v15928_v49 }
 0x68b   :  { %3919 = vmatpush1.bf16.msra.mxu0 %v15252_v25  ;;  %v15624_v25 = vld [vmem:[%s18475_s1 + $0x434] ss:$8 sps:$4 sm:$0xff]   ;;  %v15900_v8 = vld [vmem:[%s18475_s1 + $0x584] ss:$8 sps:$4 sm:$0xff]   ;;  %v15903_v37 = vpack.c.bf16 %v6938_v48, %v6938_v48  ;;  %v15922_v48 = vld [vmem:[%s18475_s1 + $0x580] ss:$8 sps:$4 sm:$0xff]  }
 0x68c   :  { %3960 = vmatpush1.bf16.msra.mxu1 %v15594_v47  ;;  %3920 = vmatprep.subr.bf16.mxu0 %v15600_v40  ;;  %20543 = vst [vmem:[#allocation14_spill] sm:$0xff] %v15900_v8  ;;  %20545 = vst [vmem:[#allocation16_spill] sm:$0xff] %v15922_v48 }
 0x68d   :  { %3961 = vmatprep.subr.bf16.mxu1 %v15606_v3 }
 0x68f   :  { %3921 = vmatpush1.bf16.msra.mxu0 %v15612_v61 }
 0x690   :  { %3962 = vmatpush1.bf16.msra.mxu1 %v15618_v58  ;;  %3922 = vmatprep.subr.bf16.mxu0 %v15624_v25 }
 0x691   :  { %3963 = vmatprep.subr.bf16.mxu1 %v15630_v32 }
 0x693   :  { %3923 = vmatpush1.bf16.msra.mxu0 %v15636_v42 }
 0x694   :  { %3964 = vmatpush1.bf16.msra.mxu1 %v15642_v63  ;;  %3924 = vmatprep.subr.bf16.mxu0 %v15648_v51 }
 0x695   :  { %3965 = vmatprep.subr.bf16.mxu1 %v15654_v22 }
 0x697   :  { %3925 = vmatpush1.bf16.msra.mxu0 %v15660_v27 }
 0x698   :  { %3966 = vmatpush1.bf16.msra.mxu1 %v15666_v52  ;;  %3926 = vmatprep.subr.bf16.mxu0 %v15672_v55 }
 0x699   :  { %3967 = vmatprep.subr.bf16.mxu1 %v15678_v45 }
 0x69b   :  { %3927 = vmatpush1.bf16.msra.mxu0 %v15684_v46 }
 0x69c   :  { %3968 = vmatpush1.bf16.msra.mxu1 %v15690_v13  ;;  %3928 = vmatprep.subr.bf16.mxu0 %v15696_v56 }
 0x69d   :  { %3969 = vmatprep.subr.bf16.mxu1 %v15702_v18 }
 0x69f   :  { %3929 = vmatpush1.bf16.msra.mxu0 %v15708_v6 }
 0x6a0   :  { %3970 = vmatpush1.bf16.msra.mxu1 %v15714_v1  ;;  %3930 = vmatprep.subr.bf16.mxu0 %v15720_v2 }
 0x6a1   :  { %3971 = vmatprep.subr.bf16.mxu1 %v15726_v29 }
 0x6a3   :  { %3931 = vmatpush2.bf16.msra.mxu0 %v15732_v28 }
 0x6a4   :  { %3972 = vmatpush2.bf16.msra.mxu1 %v15738_v38  ;;  %3932 = vmatprep.subr.bf16.mxu0 %v15744_v24 }
 0x6a5   :  { %3973 = vmatprep.subr.bf16.mxu1 %v15750_v60 }
 0x6a7   :  { %3933 = vmatpush2.bf16.msra.mxu0 %v15756_v16 }
 0x6a8   :  { %3974 = vmatpush2.bf16.msra.mxu1 %v15762_v30  ;;  %3934 = vmatprep.subr.bf16.mxu0 %v15768_v44 }
 0x6a9   :  { %3975 = vmatprep.subr.bf16.mxu1 %v15774_v5 }
 0x6ab   :  { %3935 = vmatpush2.bf16.msra.mxu0 %v15780_v62 }
 0x6ac   :  { %3976 = vmatpush2.bf16.msra.mxu1 %v15786_v7  ;;  %3936 = vmatprep.subr.bf16.mxu0 %v15792_v59 }
 0x6ad   :  { %3977 = vmatprep.subr.bf16.mxu1 %v15798_v9 }
 0x6af   :  { %3937 = vmatpush2.bf16.msra.mxu0 %v15804_v50 }
 0x6b0   :  { %3978 = vmatpush2.bf16.msra.mxu1 %v15810_v34  ;;  %3938 = vmatprep.subr.bf16.mxu0 %v15816_v26 }
 0x6b1   :  { %3979 = vmatprep.subr.bf16.mxu1 %v15822_v33 }
 0x6b3   :  { %3939 = vmatpush2.bf16.msra.mxu0 %v15828_v43 }
 0x6b4   :  { %3980 = vmatpush2.bf16.msra.mxu1 %v15834_v39  ;;  %3940 = vmatprep.subr.bf16.mxu0 %v15840_v57 }
 0x6b5   :  { %3981 = vmatprep.subr.bf16.mxu1 %v15846_v31 }
 0x6b7   :  { %3941 = vmatpush2.bf16.msra.mxu0 %v15852_v41 }
 0x6b8   :  { %3982 = vmatpush2.bf16.msra.mxu1 %v15858_v14  ;;  %3942 = vmatprep.subr.bf16.mxu0 %v15864_v17 }
 0x6b9   :  { %3983 = vmatprep.subr.bf16.mxu1 %v15870_v23 }
 0x6bb   :  { %3943 = vmatpush2.bf16.msra.mxu0 %v15876_v19 }
 0x6bc   :  { %3984 = vmatpush2.bf16.msra.mxu1 %v15882_v53  ;;  %3944 = vmatprep.subr.bf16.mxu0 %v15894_v12  ;;  %v15939_v12 = vpack.c.bf16 %v6945_v21, %v6945_v21  ;;  %v15953_v21 = vld [vmem:[%s18475_s1 + $0x770] ss:$8 sps:$4 sm:$0xff]  }
 0x6bd   :  { %3985 = vmatprep.subr.bf16.mxu1 %v15900_v8  ;;  %v15934_v8 = vld [vmem:[%s18475_s1 + $0x774] ss:$8 sps:$4 sm:$0xff]   ;;  %20549 = vst [vmem:[#allocation22_spill] sm:$0xff] %v15953_v21 }
 0x6be   :  { %20547 = vst [vmem:[#allocation18_spill] sm:$0xff] %v15934_v8 }
 0x6bf   :  { %3945 = vmatpush2.bf16.msra.mxu0 %v15916_v54  ;;  %v15937_v54 = vpack.c.bf16 %v6943_v20, %v6943_v20 }
 0x6c0   :  { %3986 = vmatpush2.bf16.msra.mxu1 %v15922_v48  ;;  %3996 = vmatprep.subr.bf16.mxu0 %v15928_v49  ;;  %v15947_v49 = vld [vmem:[%s18475_s1 + $0x670] ss:$8 sps:$4 sm:$0xff]  }
 0x6c1   :  { %4037 = vmatprep.subr.bf16.mxu1 %v15934_v8  ;;  %20548 = vst [vmem:[#allocation21_spill] sm:$0xff] %v15947_v49 }
 0x6c2   :  { %v3690_v53 = vpop.f32.mrf.mxu0  ;;  %3947 = vmatmul.mubr.bf16.vlgmr.msra.gmra.mxu0 %v15903_v37 }
 0x6c3   :  { %v3731_v48 = vpop.f32.mrf.mxu1  ;;  %3988 = vmatmul.mubr.bf16.vlgmr.msra.gmra.mxu1 %v15905_v36  ;;  %v3691_v19 = vadd.f32 %v3690_v53, %v15579_v35  ;;  %3997 = vmatpush1.bf16.msra.mxu0 %v15947_v49  ;;  %v15959_v35 = vld [vmem:[%s18475_s1 + $0x664] ss:$8 sps:$4 sm:$0xff]  }
 0x6c4   :  { %4038 = vmatpush1.bf16.msra.mxu1 %v15953_v21  ;;  %v3692_v20 = vpop.f32.mrf.mxu0  ;;  %20550 = vst [vmem:[#allocation25_spill] sm:$0xff] %v15959_v35  ;;  %3998 = vmatprep.subr.bf16.mxu0 %v15959_v35  ;;  %v15965_v53 = vld [vmem:[%s18475_s1 + $0x764] ss:$8 sps:$4 sm:$0xff]   ;;  %v15978_v35 = vld [vmem:[%s18475_s1 + $0x660] ss:$8 sps:$4 sm:$0xff]  }
 0x6c5   :  { %v3733_v8 = vpop.f32.mrf.mxu1  ;;  %20551 = vst [vmem:[#allocation26_spill] sm:$0xff] %v15965_v53  ;;  %4039 = vmatprep.subr.bf16.mxu1 %v15965_v53  ;;  %v15968_v49 = vadd.f32 %v3731_v48, %v3691_v19  ;;  %v3693_v21 = vadd.f32 %v3692_v20, %v15584_v4  ;;  %4028 = vmatprep.mubr.bf16.mxu0 %v15937_v54  ;;  %20554 = vst [vmem:[#allocation29_spill] sm:$0xff] %v15978_v35  ;;  %v15984_v19 = vld [vmem:[%s18475_s1 + $0x760] ss:$8 sps:$4 sm:$0xff]   ;;  %v16014_v20 = vld [vmem:[%s18475_s1 + $0x644] ss:$8 sps:$4 sm:$0xff]  }
 0x6c6   :  { %4069 = vmatprep.mubr.bf16.mxu1 %v15939_v12  ;;  %v3694_v23 = vpop.f32.mrf.mxu0  ;;  %20555 = vst [vmem:[#allocation30_spill] sm:$0xff] %v15984_v19  ;;  %20560 = vst [vmem:[#allocation35_spill] sm:$0xff] %v16014_v20 }
 0x6c7   :  { %20552 = vst [vmem:[#allocation27_spill] sm:$0xff] %v15968_v49  ;;  %v3735_v17 = vpop.f32.mrf.mxu1  ;;  %v15973_v14 = vadd.f32 %v3733_v8, %v3693_v21  ;;  %3999 = vmatpush1.bf16.msra.mxu0 %v15978_v35  ;;  %v15996_v23 = vld [vmem:[%s18475_s1 + $0x754] ss:$8 sps:$4 sm:$0xff]   ;;  %v16002_v8 = vld [vmem:[%s18475_s1 + $0x650] ss:$8 sps:$4 sm:$0xff]  }
 0x6c8   :  { %4040 = vmatpush1.bf16.msra.mxu1 %v15984_v19  ;;  %v3695_v4 = vpop.f32.mrf.mxu0  ;;  %v15990_v17 = vld [vmem:[%s18475_s1 + $0x654] ss:$8 sps:$4 sm:$0xff]   ;;  %20557 = vst [vmem:[#allocation32_spill] sm:$0xff] %v15996_v23  ;;  %20558 = vst [vmem:[#allocation33_spill] sm:$0xff] %v16002_v8  ;;  %v16008_v21 = vld [vmem:[%s18475_s1 + $0x750] ss:$8 sps:$4 sm:$0xff]  }
 0x6c9   :  { %20553 = vst [vmem:[#allocation28_spill] sm:$0xff] %v15973_v14  ;;  %v3736_v48 = vpop.f32.mrf.mxu1  ;;  %20556 = vst [vmem:[#allocation31_spill] sm:$0xff] %v15990_v17  ;;  %4000 = vmatprep.subr.bf16.mxu0 %v15990_v17  ;;  %4041 = vmatprep.subr.bf16.mxu1 %v15996_v23  ;;  %v16020_v4 = vld [vmem:[%s18475_s1 + $0x744] ss:$8 sps:$4 sm:$0xff]   ;;  %v16032_v49 = vld [vmem:[%s18475_s1 + $0x740] ss:$8 sps:$4 sm:$0xff]  }
 0x6ca   :  { %20559 = vst [vmem:[#allocation34_spill] sm:$0xff] %v16008_v21  ;;  %20561 = vst [vmem:[#allocation36_spill] sm:$0xff] %v16020_v4  ;;  %v16026_v48 = vld [vmem:[%s18475_s1 + $0x640] ss:$8 sps:$4 sm:$0xff]   ;;  %v16038_v14 = vld [vmem:[%s18475_s1 + $0x634] ss:$8 sps:$4 sm:$0xff]  }
 0x6cb   :  { %4001 = vmatpush1.bf16.msra.mxu0 %v16002_v8  ;;  %20562 = vst [vmem:[#allocation37_spill] sm:$0xff] %v16026_v48  ;;  %20563 = vst [vmem:[#allocation38_spill] sm:$0xff] %v16032_v49  ;;  %v16324_v8 = vld [vmem:[%s18475_s1 + $0x680] ss:$8 sps:$4 sm:$0xff]   ;;  %v9041_v19 = vld [vmem:[%s18475_s1 + $0x64] ss:$8 sps:$4 sm:$0xff]  }
 0x6cc   :  { %4042 = vmatpush1.bf16.msra.mxu1 %v16008_v21  ;;  %4002 = vmatprep.subr.bf16.mxu0 %v16014_v20  ;;  %20564 = vst [vmem:[#allocation39_spill] sm:$0xff] %v16038_v14  ;;  %v16308_v20 = vld [vmem:[%s18475_s1 + $0x684] ss:$8 sps:$4 sm:$0xff]   ;;  %20610 = vst [vmem:[#allocation89_spill] sm:$0xff] %v16324_v8 }
 0x6cd   :  { %4043 = vmatprep.subr.bf16.mxu1 %v16020_v4  ;;  %v16044_v4 = vld [vmem:[%s18475_s1 + $0x734] ss:$8 sps:$4 sm:$0xff]   ;;  %20608 = vst [vmem:[#allocation87_spill] sm:$0xff] %v16308_v20 }
 0x6ce   :  { %20565 = vst [vmem:[#allocation40_spill] sm:$0xff] %v16044_v4 }
 0x6cf   :  { %4003 = vmatpush1.bf16.msra.mxu0 %v16026_v48  ;;  %v16050_v48 = vld [vmem:[%s18475_s1 + $0x630] ss:$8 sps:$4 sm:$0xff]  }
 0x6d0   :  { %4044 = vmatpush1.bf16.msra.mxu1 %v16032_v49  ;;  %4004 = vmatprep.subr.bf16.mxu0 %v16038_v14  ;;  %20566 = vst [vmem:[#allocation41_spill] sm:$0xff] %v16050_v48  ;;  %v16056_v49 = vld [vmem:[%s18475_s1 + $0x730] ss:$8 sps:$4 sm:$0xff]   ;;  %v16062_v14 = vld [vmem:[%s18475_s1 + $0x624] ss:$8 sps:$4 sm:$0xff]  }
 0x6d1   :  { %4045 = vmatprep.subr.bf16.mxu1 %v16044_v4  ;;  %20567 = vst [vmem:[#allocation42_spill] sm:$0xff] %v16056_v49  ;;  %20568 = vst [vmem:[#allocation43_spill] sm:$0xff] %v16062_v14  ;;  %v16068_v4 = vld [vmem:[%s18475_s1 + $0x724] ss:$8 sps:$4 sm:$0xff]  }
 0x6d2   :  { %20569 = vst [vmem:[#allocation44_spill] sm:$0xff] %v16068_v4 }
 0x6d3   :  { %4005 = vmatpush1.bf16.msra.mxu0 %v16050_v48  ;;  %v16074_v48 = vld [vmem:[%s18475_s1 + $0x620] ss:$8 sps:$4 sm:$0xff]  }
 0x6d4   :  { %4046 = vmatpush1.bf16.msra.mxu1 %v16056_v49  ;;  %4006 = vmatprep.subr.bf16.mxu0 %v16062_v14  ;;  %20570 = vst [vmem:[#allocation45_spill] sm:$0xff] %v16074_v48  ;;  %v16080_v49 = vld [vmem:[%s18475_s1 + $0x720] ss:$8 sps:$4 sm:$0xff]   ;;  %v16086_v14 = vld [vmem:[%s18475_s1 + $0x614] ss:$8 sps:$4 sm:$0xff]  }
 0x6d5   :  { %4047 = vmatprep.subr.bf16.mxu1 %v16068_v4  ;;  %20571 = vst [vmem:[#allocation46_spill] sm:$0xff] %v16080_v49  ;;  %20572 = vst [vmem:[#allocation47_spill] sm:$0xff] %v16086_v14  ;;  %v16092_v4 = vld [vmem:[%s18475_s1 + $0x714] ss:$8 sps:$4 sm:$0xff]  }
 0x6d6   :  { %20573 = vst [vmem:[#allocation48_spill] sm:$0xff] %v16092_v4 }
 0x6d7   :  { %4007 = vmatpush1.bf16.msra.mxu0 %v16074_v48  ;;  %v16098_v48 = vld [vmem:[%s18475_s1 + $0x610] ss:$8 sps:$4 sm:$0xff]  }
 0x6d8   :  { %4048 = vmatpush1.bf16.msra.mxu1 %v16080_v49  ;;  %4008 = vmatprep.subr.bf16.mxu0 %v16086_v14  ;;  %20574 = vst [vmem:[#allocation49_spill] sm:$0xff] %v16098_v48  ;;  %v16104_v49 = vld [vmem:[%s18475_s1 + $0x710] ss:$8 sps:$4 sm:$0xff]   ;;  %v16110_v14 = vld [vmem:[%s18475_s1 + $0x604] ss:$8 sps:$4 sm:$0xff]  }
 0x6d9   :  { %4049 = vmatprep.subr.bf16.mxu1 %v16092_v4  ;;  %20575 = vst [vmem:[#allocation50_spill] sm:$0xff] %v16104_v49  ;;  %20576 = vst [vmem:[#allocation51_spill] sm:$0xff] %v16110_v14  ;;  %v16116_v4 = vld [vmem:[%s18475_s1 + $0x704] ss:$8 sps:$4 sm:$0xff]  }
 0x6da   :  { %20577 = vst [vmem:[#allocation52_spill] sm:$0xff] %v16116_v4 }
 0x6db   :  { %4009 = vmatpush1.bf16.msra.mxu0 %v16098_v48  ;;  %v16122_v48 = vld [vmem:[%s18475_s1 + $0x600] ss:$8 sps:$4 sm:$0xff]  }
 0x6dc   :  { %4050 = vmatpush1.bf16.msra.mxu1 %v16104_v49  ;;  %4010 = vmatprep.subr.bf16.mxu0 %v16110_v14  ;;  %20578 = vst [vmem:[#allocation53_spill] sm:$0xff] %v16122_v48  ;;  %v16128_v49 = vld [vmem:[%s18475_s1 + $0x700] ss:$8 sps:$4 sm:$0xff]   ;;  %v16134_v14 = vld [vmem:[%s18475_s1 + $0x6f4] ss:$8 sps:$4 sm:$0xff]  }
 0x6dd   :  { %4051 = vmatprep.subr.bf16.mxu1 %v16116_v4  ;;  %20579 = vst [vmem:[#allocation54_spill] sm:$0xff] %v16128_v49  ;;  %20580 = vst [vmem:[#allocation55_spill] sm:$0xff] %v16134_v14  ;;  %v16140_v4 = vld [vmem:[%s18475_s1 + $0x7f4] ss:$8 sps:$4 sm:$0xff]  }
 0x6de   :  { %20581 = vst [vmem:[#allocation56_spill] sm:$0xff] %v16140_v4 }
 0x6df   :  { %4011 = vmatpush1.bf16.msra.mxu0 %v16122_v48  ;;  %v16146_v48 = vld [vmem:[%s18475_s1 + $0x6f0] ss:$8 sps:$4 sm:$0xff]  }
 0x6e0   :  { %4052 = vmatpush1.bf16.msra.mxu1 %v16128_v49  ;;  %4012 = vmatprep.subr.bf16.mxu0 %v16134_v14  ;;  %20582 = vst [vmem:[#allocation57_spill] sm:$0xff] %v16146_v48  ;;  %v16152_v49 = vld [vmem:[%s18475_s1 + $0x7f0] ss:$8 sps:$4 sm:$0xff]   ;;  %v16158_v14 = vld [vmem:[%s18475_s1 + $0x6e4] ss:$8 sps:$4 sm:$0xff]  }
 0x6e1   :  { %4053 = vmatprep.subr.bf16.mxu1 %v16140_v4  ;;  %20583 = vst [vmem:[#allocation58_spill] sm:$0xff] %v16152_v49  ;;  %20584 = vst [vmem:[#allocation59_spill] sm:$0xff] %v16158_v14  ;;  %v16164_v4 = vld [vmem:[%s18475_s1 + $0x7e4] ss:$8 sps:$4 sm:$0xff]  }
 0x6e2   :  { %20585 = vst [vmem:[#allocation60_spill] sm:$0xff] %v16164_v4 }
 0x6e3   :  { %4013 = vmatpush2.bf16.msra.mxu0 %v16146_v48  ;;  %v16170_v48 = vld [vmem:[%s18475_s1 + $0x6e0] ss:$8 sps:$4 sm:$0xff]  }
 0x6e4   :  { %4054 = vmatpush2.bf16.msra.mxu1 %v16152_v49  ;;  %4014 = vmatprep.subr.bf16.mxu0 %v16158_v14  ;;  %20586 = vst [vmem:[#allocation61_spill] sm:$0xff] %v16170_v48  ;;  %v16176_v49 = vld [vmem:[%s18475_s1 + $0x7e0] ss:$8 sps:$4 sm:$0xff]   ;;  %v16182_v14 = vld [vmem:[%s18475_s1 + $0x6d4] ss:$8 sps:$4 sm:$0xff]  }
 0x6e5   :  { %4055 = vmatprep.subr.bf16.mxu1 %v16164_v4  ;;  %20587 = vst [vmem:[#allocation62_spill] sm:$0xff] %v16176_v49  ;;  %20588 = vst [vmem:[#allocation63_spill] sm:$0xff] %v16182_v14  ;;  %v16188_v4 = vld [vmem:[%s18475_s1 + $0x7d4] ss:$8 sps:$4 sm:$0xff]  }
 0x6e6   :  { %20589 = vst [vmem:[#allocation64_spill] sm:$0xff] %v16188_v4 }
 0x6e7   :  { %4015 = vmatpush2.bf16.msra.mxu0 %v16170_v48  ;;  %v16194_v48 = vld [vmem:[%s18475_s1 + $0x6d0] ss:$8 sps:$4 sm:$0xff]  }
 0x6e8   :  { %4056 = vmatpush2.bf16.msra.mxu1 %v16176_v49  ;;  %4016 = vmatprep.subr.bf16.mxu0 %v16182_v14  ;;  %20590 = vst [vmem:[#allocation65_spill] sm:$0xff] %v16194_v48  ;;  %v16200_v49 = vld [vmem:[%s18475_s1 + $0x7d0] ss:$8 sps:$4 sm:$0xff]   ;;  %v16206_v14 = vld [vmem:[%s18475_s1 + $0x6c4] ss:$8 sps:$4 sm:$0xff]  }
 0x6e9   :  { %4057 = vmatprep.subr.bf16.mxu1 %v16188_v4  ;;  %20591 = vst [vmem:[#allocation66_spill] sm:$0xff] %v16200_v49  ;;  %20592 = vst [vmem:[#allocation67_spill] sm:$0xff] %v16206_v14  ;;  %v16212_v4 = vld [vmem:[%s18475_s1 + $0x7c4] ss:$8 sps:$4 sm:$0xff]  }
 0x6ea   :  { %20593 = vst [vmem:[#allocation68_spill] sm:$0xff] %v16212_v4 }
 0x6eb   :  { %4017 = vmatpush2.bf16.msra.mxu0 %v16194_v48  ;;  %v16218_v48 = vld [vmem:[%s18475_s1 + $0x6c0] ss:$8 sps:$4 sm:$0xff]  }
 0x6ec   :  { %4058 = vmatpush2.bf16.msra.mxu1 %v16200_v49  ;;  %4018 = vmatprep.subr.bf16.mxu0 %v16206_v14  ;;  %20594 = vst [vmem:[#allocation69_spill] sm:$0xff] %v16218_v48  ;;  %v16224_v49 = vld [vmem:[%s18475_s1 + $0x7c0] ss:$8 sps:$4 sm:$0xff]   ;;  %v16230_v14 = vld [vmem:[%s18475_s1 + $0x6b4] ss:$8 sps:$4 sm:$0xff]  }
 0x6ed   :  { %4059 = vmatprep.subr.bf16.mxu1 %v16212_v4  ;;  %20595 = vst [vmem:[#allocation70_spill] sm:$0xff] %v16224_v49  ;;  %20596 = vst [vmem:[#allocation72_spill] sm:$0xff] %v16230_v14  ;;  %v16236_v4 = vld [vmem:[%s18475_s1 + $0x7b4] ss:$8 sps:$4 sm:$0xff]  }
 0x6ee   :  { %20597 = vst [vmem:[#allocation73_spill] sm:$0xff] %v16236_v4 }
 0x6ef   :  { %4019 = vmatpush2.bf16.msra.mxu0 %v16218_v48  ;;  %v16242_v48 = vld [vmem:[%s18475_s1 + $0x6b0] ss:$8 sps:$4 sm:$0xff]  }
 0x6f0   :  { %4060 = vmatpush2.bf16.msra.mxu1 %v16224_v49  ;;  %4020 = vmatprep.subr.bf16.mxu0 %v16230_v14  ;;  %20598 = vst [vmem:[#allocation74_spill] sm:$0xff] %v16242_v48  ;;  %v16248_v49 = vld [vmem:[%s18475_s1 + $0x7b0] ss:$8 sps:$4 sm:$0xff]   ;;  %v16254_v14 = vld [vmem:[%s18475_s1 + $0x6a4] ss:$8 sps:$4 sm:$0xff]  }
 0x6f1   :  { %4061 = vmatprep.subr.bf16.mxu1 %v16236_v4  ;;  %20599 = vst [vmem:[#allocation75_spill] sm:$0xff] %v16248_v49  ;;  %20600 = vst [vmem:[#allocation79_spill] sm:$0xff] %v16254_v14  ;;  %v16260_v4 = vld [vmem:[%s18475_s1 + $0x7a4] ss:$8 sps:$4 sm:$0xff]  }
 0x6f2   :  { %20601 = vst [vmem:[#allocation80_spill] sm:$0xff] %v16260_v4 }
 0x6f3   :  { %4021 = vmatpush2.bf16.msra.mxu0 %v16242_v48  ;;  %v16266_v48 = vld [vmem:[%s18475_s1 + $0x6a0] ss:$8 sps:$4 sm:$0xff]  }
 0x6f4   :  { %4062 = vmatpush2.bf16.msra.mxu1 %v16248_v49  ;;  %4022 = vmatprep.subr.bf16.mxu0 %v16254_v14  ;;  %20602 = vst [vmem:[#allocation81_spill] sm:$0xff] %v16266_v48  ;;  %v16272_v49 = vld [vmem:[%s18475_s1 + $0x7a0] ss:$8 sps:$4 sm:$0xff]   ;;  %v16278_v14 = vld [vmem:[%s18475_s1 + $0x694] ss:$8 sps:$4 sm:$0xff]  }
 0x6f5   :  { %4063 = vmatprep.subr.bf16.mxu1 %v16260_v4  ;;  %20603 = vst [vmem:[#allocation82_spill] sm:$0xff] %v16272_v49  ;;  %20604 = vst [vmem:[#allocation83_spill] sm:$0xff] %v16278_v14  ;;  %v16284_v4 = vld [vmem:[%s18475_s1 + $0x794] ss:$8 sps:$4 sm:$0xff]  }
 0x6f6   :  { %20605 = vst [vmem:[#allocation84_spill] sm:$0xff] %v16284_v4 }
 0x6f7   :  { %4023 = vmatpush2.bf16.msra.mxu0 %v16266_v48  ;;  %v16290_v48 = vld [vmem:[%s18475_s1 + $0x690] ss:$8 sps:$4 sm:$0xff]  }
 0x6f8   :  { %4064 = vmatpush2.bf16.msra.mxu1 %v16272_v49  ;;  %4024 = vmatprep.subr.bf16.mxu0 %v16278_v14  ;;  %20606 = vst [vmem:[#allocation85_spill] sm:$0xff] %v16290_v48  ;;  %v16296_v49 = vld [vmem:[%s18475_s1 + $0x790] ss:$8 sps:$4 sm:$0xff]   ;;  %v6942_v14 = vld [vmem:[%s18476_s0 + $0x1e0] sm:$0xff] }
 0x6f9   :  { %4065 = vmatprep.subr.bf16.mxu1 %v16284_v4  ;;  %20607 = vst [vmem:[#allocation86_spill] sm:$0xff] %v16296_v49  ;;  %v6944_v4 = vld [vmem:[%s18476_s0 + $0x1f0] sm:$0xff] }
 0x6fa   :  { %v16319_v21 = vpack.c.bf16 %v6944_v4, %v6944_v4  ;;  %v9038_v4 = vld [vmem:[%s18475_s1 + $0x174] ss:$8 sps:$4 sm:$0xff]  }
 0x6fb   :  { %4025 = vmatpush2.bf16.msra.mxu0 %v16290_v48  ;;  %v16314_v48 = vld [vmem:[%s18475_s1 + $0x784] ss:$8 sps:$4 sm:$0xff]  }
 0x6fc   :  { %4066 = vmatpush2.bf16.msra.mxu1 %v16296_v49  ;;  %4026 = vmatprep.subr.bf16.mxu0 %v16308_v20  ;;  %20609 = vst [vmem:[#allocation88_spill] sm:$0xff] %v16314_v48  ;;  %v16317_v49 = vpack.c.bf16 %v6942_v14, %v6942_v14  ;;  %v16330_v20 = vld [vmem:[%s18475_s1 + $0x780] ss:$8 sps:$4 sm:$0xff]   ;;  %v9037_v14 = vld [vmem:[%s18475_s1 + $0x74] ss:$8 sps:$4 sm:$0xff]  }
 0x6fd   :  { %4067 = vmatprep.subr.bf16.mxu1 %v16314_v48  ;;  %20611 = vst [vmem:[#allocation90_spill] sm:$0xff] %v16330_v20 }
 0x6ff   :  { %4027 = vmatpush2.bf16.msra.mxu0 %v16324_v8 }
 0x700   :  { %4068 = vmatpush2.bf16.msra.mxu1 %v16330_v20  ;;  %4090 = vmatprep.subr.bf16.mxu0 %v9037_v14  ;;  %v9039_v20 = vld [vmem:[%s18475_s1 + $0x70] ss:$8 sps:$4 sm:$0xff]  }
 0x701   :  { %4131 = vmatprep.subr.bf16.mxu1 %v9038_v4  ;;  %v9040_v14 = vld [vmem:[%s18475_s1 + $0x170] ss:$8 sps:$4 sm:$0xff]  }
 0x702   :  { %v3784_v48 = vpop.f32.mrf.mxu0  ;;  %4029 = vmatmul.mubr.bf16.vlgmr.msra.gmra.mxu0 %v16317_v49 }
 0x703   :  { %v3825_v23 = vpop.f32.mrf.mxu1  ;;  %4070 = vmatmul.mubr.bf16.vlgmr.msra.gmra.mxu1 %v16319_v21  ;;  %v3785_v8 = vadd.f32 %v3784_v48, %v20410_v10  ;;  %4091 = vmatpush1.bf16.msra.mxu0 %v9039_v20  ;;  %v9042_v48 = vld [vmem:[%s18475_s1 + $0x164] ss:$8 sps:$4 sm:$0xff]  }
 0x704   :  { %4132 = vmatpush1.bf16.msra.mxu1 %v9040_v14  ;;  %v3786_v17 = vpop.f32.mrf.mxu0  ;;  %4092 = vmatprep.subr.bf16.mxu0 %v9041_v19  ;;  %v9043_v19 = vld [vmem:[%s18475_s1 + $0x60] ss:$8 sps:$4 sm:$0xff]  }
 0x705   :  { %v3827_v4 = vpop.f32.mrf.mxu1  ;;  %4133 = vmatprep.subr.bf16.mxu1 %v9042_v48  ;;  %v16354_v10 = vadd.f32 %v3825_v23, %v3785_v8  ;;  %v3787_v20 = vadd.f32 %v3786_v17, %v10487_v15  ;;  %4122 = vmatprep.mubr.bf16.mxu0 %v15568_v0  ;;  %v9044_v23 = vld [vmem:[%s18475_s1 + $0x160] ss:$8 sps:$4 sm:$0xff]   ;;  %v9045_v0 = vld [vmem:[%s18475_s1 + $0x54] ss:$8 sps:$4 sm:$0xff]   ;;  %v9049_v48 = vld [vmem:[%s18475_s1 + $0x44] ss:$8 sps:$4 sm:$0xff]  }
 0x706   :  { %4163 = vmatprep.mubr.bf16.mxu1 %v15570_v11  ;;  %v3788_v14 = vpop.f32.mrf.mxu0  ;;  %v9046_v11 = vld [vmem:[%s18475_s1 + $0x154] ss:$8 sps:$4 sm:$0xff]  }
 0x707   :  { %v3829_v35 = vpop.f32.mrf.mxu1  ;;  %v16359_v53 = vadd.f32 %v3827_v4, %v3787_v20  ;;  %4093 = vmatpush1.bf16.msra.mxu0 %v9043_v19  ;;  %v9048_v4 = vld [vmem:[%s18475_s1 + $0x150] ss:$8 sps:$4 sm:$0xff]   ;;  %v9050_v20 = vld [vmem:[%s18475_s1 + $0x144] ss:$8 sps:$4 sm:$0xff]   ;;  %v9051_v14 = vld [vmem:[%s18475_s1 + $0x40] ss:$8 sps:$4 sm:$0xff]  }
 0x708   :  { %4134 = vmatpush1.bf16.msra.mxu1 %v9044_v23  ;;  %v3789_v8 = vpop.f32.mrf.mxu0  ;;  %4094 = vmatprep.subr.bf16.mxu0 %v9045_v0  ;;  %v9047_v35 = vld [vmem:[%s18475_s1 + $0x50] ss:$8 sps:$4 sm:$0xff]   ;;  %v9052_v19 = vld [vmem:[%s18475_s1 + $0x140] ss:$8 sps:$4 sm:$0xff]   ;;  %v9053_v23 = vld [vmem:[%s18475_s1 + $0x34] ss:$8 sps:$4 sm:$0xff]  }
 0x709   :  { %v3830_v17 = vpop.f32.mrf.mxu1  ;;  %4135 = vmatprep.subr.bf16.mxu1 %v9046_v11  ;;  %v9054_v8 = vld [vmem:[%s18475_s1 + $0x134] ss:$8 sps:$4 sm:$0xff]   ;;  %v9056_v0 = vld [vmem:[%s18475_s1 + $0x130] ss:$8 sps:$4 sm:$0xff]   ;;  %v9057_v11 = vld [vmem:[%s18475_s1 + $0x24] ss:$8 sps:$4 sm:$0xff]  }
 0x70a   :  { %v9055_v17 = vld [vmem:[%s18475_s1 + $0x30] ss:$8 sps:$4 sm:$0xff]  }
 0x70b   :  { %4095 = vmatpush1.bf16.msra.mxu0 %v9047_v35  ;;  %v9058_v35 = vld [vmem:[%s18475_s1 + $0x124] ss:$8 sps:$4 sm:$0xff]  }
 0x70c   :  { %4136 = vmatpush1.bf16.msra.mxu1 %v9048_v4  ;;  %4096 = vmatprep.subr.bf16.mxu0 %v9049_v48  ;;  %v9059_v4 = vld [vmem:[%s18475_s1 + $0x20] ss:$8 sps:$4 sm:$0xff]  }
 0x70d   :  { %4137 = vmatprep.subr.bf16.mxu1 %v9050_v20  ;;  %v9060_v48 = vld [vmem:[%s18475_s1 + $0x120] ss:$8 sps:$4 sm:$0xff]   ;;  %v9061_v20 = vld [vmem:[%s18475_s1 + $0x14] ss:$8 sps:$4 sm:$0xff]  }
 0x70f   :  { %4097 = vmatpush1.bf16.msra.mxu0 %v9051_v14  ;;  %v9062_v14 = vld [vmem:[%s18475_s1 + $0x114] ss:$8 sps:$4 sm:$0xff]  }
 0x710   :  { %4138 = vmatpush1.bf16.msra.mxu1 %v9052_v19  ;;  %4098 = vmatprep.subr.bf16.mxu0 %v9053_v23  ;;  %v9063_v19 = vld [vmem:[%s18475_s1 + $0x10] ss:$8 sps:$4 sm:$0xff]  }
 0x711   :  { %4139 = vmatprep.subr.bf16.mxu1 %v9054_v8  ;;  %v9064_v23 = vld [vmem:[%s18475_s1 + $0x110] ss:$8 sps:$4 sm:$0xff]   ;;  %v9065_v8 = vld [vmem:[%s18475_s1 + $0x4] ss:$8 sps:$4 sm:$0xff]  }
 0x713   :  { %4099 = vmatpush1.bf16.msra.mxu0 %v9055_v17  ;;  %v9066_v17 = vld [vmem:[%s18475_s1 + $0x104] ss:$8 sps:$4 sm:$0xff]  }
 0x714   :  { %4140 = vmatpush1.bf16.msra.mxu1 %v9056_v0  ;;  %4100 = vmatprep.subr.bf16.mxu0 %v9057_v11  ;;  %v9067_v0 = vld [vmem:[%s18475_s1] ss:$8 sps:$4 sm:$0xff]  }
 0x715   :  { %4141 = vmatprep.subr.bf16.mxu1 %v9058_v35  ;;  %v9068_v11 = vld [vmem:[%s18475_s1 + $0x100] ss:$8 sps:$4 sm:$0xff]   ;;  %v9069_v35 = vld [vmem:[%s18475_s1 + $0xf4] ss:$8 sps:$4 sm:$0xff]  }
 0x717   :  { %4101 = vmatpush1.bf16.msra.mxu0 %v9059_v4  ;;  %v9070_v4 = vld [vmem:[%s18475_s1 + $0x1f4] ss:$8 sps:$4 sm:$0xff]  }
 0x718   :  { %4142 = vmatpush1.bf16.msra.mxu1 %v9060_v48  ;;  %4102 = vmatprep.subr.bf16.mxu0 %v9061_v20  ;;  %v9071_v48 = vld [vmem:[%s18475_s1 + $0xf0] ss:$8 sps:$4 sm:$0xff]  }
 0x719   :  { %4143 = vmatprep.subr.bf16.mxu1 %v9062_v14  ;;  %v9072_v20 = vld [vmem:[%s18475_s1 + $0x1f0] ss:$8 sps:$4 sm:$0xff]   ;;  %v9073_v14 = vld [vmem:[%s18475_s1 + $0xe4] ss:$8 sps:$4 sm:$0xff]  }
 0x71b   :  { %4103 = vmatpush1.bf16.msra.mxu0 %v9063_v19  ;;  %v9074_v19 = vld [vmem:[%s18475_s1 + $0x1e4] ss:$8 sps:$4 sm:$0xff]  }
 0x71c   :  { %4144 = vmatpush1.bf16.msra.mxu1 %v9064_v23  ;;  %4104 = vmatprep.subr.bf16.mxu0 %v9065_v8  ;;  %v9075_v23 = vld [vmem:[%s18475_s1 + $0xe0] ss:$8 sps:$4 sm:$0xff]  }
 0x71d   :  { %4145 = vmatprep.subr.bf16.mxu1 %v9066_v17  ;;  %v9076_v8 = vld [vmem:[%s18475_s1 + $0x1e0] ss:$8 sps:$4 sm:$0xff]   ;;  %v9077_v17 = vld [vmem:[%s18475_s1 + $0xd4] ss:$8 sps:$4 sm:$0xff]  }
 0x71f   :  { %4105 = vmatpush1.bf16.msra.mxu0 %v9067_v0  ;;  %v9078_v0 = vld [vmem:[%s18475_s1 + $0x1d4] ss:$8 sps:$4 sm:$0xff]  }
 0x720   :  { %4146 = vmatpush1.bf16.msra.mxu1 %v9068_v11  ;;  %4106 = vmatprep.subr.bf16.mxu0 %v9069_v35  ;;  %v9079_v11 = vld [vmem:[%s18475_s1 + $0xd0] ss:$8 sps:$4 sm:$0xff]  }
 0x721   :  { %4147 = vmatprep.subr.bf16.mxu1 %v9070_v4  ;;  %v9080_v35 = vld [vmem:[%s18475_s1 + $0x1d0] ss:$8 sps:$4 sm:$0xff]   ;;  %v9081_v4 = vld [vmem:[%s18475_s1 + $0xc4] ss:$8 sps:$4 sm:$0xff]  }
 0x723   :  { %4107 = vmatpush2.bf16.msra.mxu0 %v9071_v48  ;;  %v9082_v48 = vld [vmem:[%s18475_s1 + $0x1c4] ss:$8 sps:$4 sm:$0xff]  }
 0x724   :  { %4148 = vmatpush2.bf16.msra.mxu1 %v9072_v20  ;;  %4108 = vmatprep.subr.bf16.mxu0 %v9073_v14  ;;  %v9083_v20 = vld [vmem:[%s18475_s1 + $0xc0] ss:$8 sps:$4 sm:$0xff]  }
 0x725   :  { %4149 = vmatprep.subr.bf16.mxu1 %v9074_v19  ;;  %v9084_v14 = vld [vmem:[%s18475_s1 + $0x1c0] ss:$8 sps:$4 sm:$0xff]   ;;  %v9085_v19 = vld [vmem:[%s18475_s1 + $0xb4] ss:$8 sps:$4 sm:$0xff]  }
 0x727   :  { %4109 = vmatpush2.bf16.msra.mxu0 %v9075_v23  ;;  %v9086_v23 = vld [vmem:[%s18475_s1 + $0x1b4] ss:$8 sps:$4 sm:$0xff]  }
 0x728   :  { %4150 = vmatpush2.bf16.msra.mxu1 %v9076_v8  ;;  %4110 = vmatprep.subr.bf16.mxu0 %v9077_v17  ;;  %v9087_v8 = vld [vmem:[%s18475_s1 + $0xb0] ss:$8 sps:$4 sm:$0xff]  }
 0x729   :  { %4151 = vmatprep.subr.bf16.mxu1 %v9078_v0  ;;  %v9088_v17 = vld [vmem:[%s18475_s1 + $0x1b0] ss:$8 sps:$4 sm:$0xff]   ;;  %v9089_v0 = vld [vmem:[%s18475_s1 + $0xa4] ss:$8 sps:$4 sm:$0xff]  }
 0x72b   :  { %4111 = vmatpush2.bf16.msra.mxu0 %v9079_v11  ;;  %v9090_v11 = vld [vmem:[%s18475_s1 + $0x1a4] ss:$8 sps:$4 sm:$0xff]  }
 0x72c   :  { %4152 = vmatpush2.bf16.msra.mxu1 %v9080_v35  ;;  %4112 = vmatprep.subr.bf16.mxu0 %v9081_v4  ;;  %v9091_v35 = vld [vmem:[%s18475_s1 + $0xa0] ss:$8 sps:$4 sm:$0xff]  }
 0x72d   :  { %4153 = vmatprep.subr.bf16.mxu1 %v9082_v48  ;;  %v9092_v4 = vld [vmem:[%s18475_s1 + $0x1a0] ss:$8 sps:$4 sm:$0xff]   ;;  %v9093_v48 = vld [vmem:[%s18475_s1 + $0x94] ss:$8 sps:$4 sm:$0xff]  }
 0x72f   :  { %4113 = vmatpush2.bf16.msra.mxu0 %v9083_v20  ;;  %v9094_v20 = vld [vmem:[%s18475_s1 + $0x194] ss:$8 sps:$4 sm:$0xff]  }
 0x730   :  { %4154 = vmatpush2.bf16.msra.mxu1 %v9084_v14  ;;  %4114 = vmatprep.subr.bf16.mxu0 %v9085_v19  ;;  %v9095_v14 = vld [vmem:[%s18475_s1 + $0x90] ss:$8 sps:$4 sm:$0xff]  }
 0x731   :  { %4155 = vmatprep.subr.bf16.mxu1 %v9086_v23  ;;  %v9096_v19 = vld [vmem:[%s18475_s1 + $0x190] ss:$8 sps:$4 sm:$0xff]   ;;  %v9097_v23 = vld [vmem:[%s18475_s1 + $0x84] ss:$8 sps:$4 sm:$0xff]  }
 0x733   :  { %4115 = vmatpush2.bf16.msra.mxu0 %v9087_v8  ;;  %v9098_v8 = vld [vmem:[%s18475_s1 + $0x184] ss:$8 sps:$4 sm:$0xff]  }
 0x734   :  { %4156 = vmatpush2.bf16.msra.mxu1 %v9088_v17  ;;  %4116 = vmatprep.subr.bf16.mxu0 %v9089_v0  ;;  %v9099_v17 = vld [vmem:[%s18475_s1 + $0x80] ss:$8 sps:$4 sm:$0xff]  }
 0x735   :  { %4157 = vmatprep.subr.bf16.mxu1 %v9090_v11  ;;  %v9100_v0 = vld [vmem:[%s18475_s1 + $0x180] ss:$8 sps:$4 sm:$0xff]   ;;  %v9101_v11 = vld [vmem:[%s18475_s1 + $0x274] ss:$8 sps:$4 sm:$0xff]  }
 0x737   :  { %4117 = vmatpush2.bf16.msra.mxu0 %v9091_v35  ;;  %v9102_v35 = vld [vmem:[%s18475_s1 + $0x374] ss:$8 sps:$4 sm:$0xff]  }
 0x738   :  { %4158 = vmatpush2.bf16.msra.mxu1 %v9092_v4  ;;  %4118 = vmatprep.subr.bf16.mxu0 %v9093_v48 }
 0x739   :  { %4159 = vmatprep.subr.bf16.mxu1 %v9094_v20 }
 0x73b   :  { %4119 = vmatpush2.bf16.msra.mxu0 %v9095_v14  ;;  %v9103_v14 = vld [vmem:[%s18475_s1 + $0x270] ss:$8 sps:$4 sm:$0xff]  }
 0x73c   :  { %4160 = vmatpush2.bf16.msra.mxu1 %v9096_v19  ;;  %4120 = vmatprep.subr.bf16.mxu0 %v9097_v23  ;;  %v9104_v19 = vld [vmem:[%s18475_s1 + $0x370] ss:$8 sps:$4 sm:$0xff]  }
 0x73d   :  { %4161 = vmatprep.subr.bf16.mxu1 %v9098_v8 }
 0x73f   :  { %4121 = vmatpush2.bf16.msra.mxu0 %v9099_v17 }
 0x740   :  { %4162 = vmatpush2.bf16.msra.mxu1 %v9100_v0  ;;  %4172 = vmatprep.subr.bf16.mxu0 %v9101_v11 }
 0x741   :  { %4213 = vmatprep.subr.bf16.mxu1 %v9102_v35 }
 0x742   :  { %v3866_v4 = vpop.f32.mrf.mxu0  ;;  %4123 = vmatmul.mubr.bf16.vlgmr.msra.gmra.mxu0 %v15903_v37  ;;  %v9105_v37 = vld [vmem:[%s18475_s1 + $0x264] ss:$8 sps:$4 sm:$0xff]  }
 0x743   :  { %v3907_v48 = vpop.f32.mrf.mxu1  ;;  %4164 = vmatmul.mubr.bf16.vlgmr.msra.gmra.mxu1 %v15905_v36  ;;  %v3867_v20 = vadd.f32 %v3866_v4, %v16354_v10  ;;  %4173 = vmatpush1.bf16.msra.mxu0 %v9103_v14  ;;  %v9106_v10 = vld [vmem:[%s18475_s1 + $0x364] ss:$8 sps:$4 sm:$0xff]   ;;  %v9107_v4 = vld [vmem:[%s18475_s1 + $0x260] ss:$8 sps:$4 sm:$0xff]   ;;  %v9111_v14 = vld [vmem:[%s18475_s1 + $0x250] ss:$8 sps:$4 sm:$0xff]  }
 0x744   :  { %4214 = vmatpush1.bf16.msra.mxu1 %v9104_v19  ;;  %v3868_v23 = vpop.f32.mrf.mxu0  ;;  %4174 = vmatprep.subr.bf16.mxu0 %v9105_v37  ;;  %v9112_v19 = vld [vmem:[%s18475_s1 + $0x350] ss:$8 sps:$4 sm:$0xff]   ;;  %v9115_v37 = vld [vmem:[%s18475_s1 + $0x240] ss:$8 sps:$4 sm:$0xff]  }
 0x745   :  { %v3909_v8 = vpop.f32.mrf.mxu1  ;;  %4215 = vmatprep.subr.bf16.mxu1 %v9106_v10  ;;  %v16556_v36 = vadd.f32 %v3907_v48, %v3867_v20  ;;  %v3869_v17 = vadd.f32 %v3868_v23, %v16359_v53  ;;  %4204 = vmatprep.mubr.bf16.mxu0 %v15937_v54  ;;  %v9108_v48 = vld [vmem:[%s18475_s1 + $0x360] ss:$8 sps:$4 sm:$0xff]   ;;  %v9109_v54 = vld [vmem:[%s18475_s1 + $0x254] ss:$8 sps:$4 sm:$0xff]   ;;  %v9113_v23 = vld [vmem:[%s18475_s1 + $0x244] ss:$8 sps:$4 sm:$0xff]  }
 0x746   :  { %4245 = vmatprep.mubr.bf16.mxu1 %v15939_v12  ;;  %v3870_v0 = vpop.f32.mrf.mxu0  ;;  %v9110_v12 = vld [vmem:[%s18475_s1 + $0x354] ss:$8 sps:$4 sm:$0xff]   ;;  %v9116_v10 = vld [vmem:[%s18475_s1 + $0x340] ss:$8 sps:$4 sm:$0xff]  }
 0x747   :  { %v3911_v11 = vpop.f32.mrf.mxu1  ;;  %v16561_v35 = vadd.f32 %v3909_v8, %v3869_v17  ;;  %4175 = vmatpush1.bf16.msra.mxu0 %v9107_v4  ;;  %v9114_v8 = vld [vmem:[%s18475_s1 + $0x344] ss:$8 sps:$4 sm:$0xff]   ;;  %v9117_v17 = vld [vmem:[%s18475_s1 + $0x234] ss:$8 sps:$4 sm:$0xff]   ;;  %v9120_v4 = vld [vmem:[%s18475_s1 + $0x330] ss:$8 sps:$4 sm:$0xff]  }
 0x748   :  { %4216 = vmatpush1.bf16.msra.mxu1 %v9108_v48  ;;  %v3871_v20 = vpop.f32.mrf.mxu0  ;;  %4176 = vmatprep.subr.bf16.mxu0 %v9109_v54  ;;  %v9118_v0 = vld [vmem:[%s18475_s1 + $0x334] ss:$8 sps:$4 sm:$0xff]   ;;  %v9119_v11 = vld [vmem:[%s18475_s1 + $0x230] ss:$8 sps:$4 sm:$0xff]   ;;  %v9121_v48 = vld [vmem:[%s18475_s1 + $0x224] ss:$8 sps:$4 sm:$0xff]  }
 0x749   :  { %v3912_v53 = vpop.f32.mrf.mxu1  ;;  %4217 = vmatprep.subr.bf16.mxu1 %v9110_v12  ;;  %v9122_v20 = vld [vmem:[%s18475_s1 + $0x324] ss:$8 sps:$4 sm:$0xff]   ;;  %v9124_v54 = vld [vmem:[%s18475_s1 + $0x320] ss:$8 sps:$4 sm:$0xff]   ;;  %v9125_v12 = vld [vmem:[%s18475_s1 + $0x214] ss:$8 sps:$4 sm:$0xff]  }
 0x74a   :  { %v9123_v53 = vld [vmem:[%s18475_s1 + $0x220] ss:$8 sps:$4 sm:$0xff]  }
 0x74b   :  { %4177 = vmatpush1.bf16.msra.mxu0 %v9111_v14  ;;  %v9126_v14 = vld [vmem:[%s18475_s1 + $0x314] ss:$8 sps:$4 sm:$0xff]  }
 0x74c   :  { %4218 = vmatpush1.bf16.msra.mxu1 %v9112_v19  ;;  %4178 = vmatprep.subr.bf16.mxu0 %v9113_v23  ;;  %v9127_v19 = vld [vmem:[%s18475_s1 + $0x210] ss:$8 sps:$4 sm:$0xff]  }
 0x74d   :  { %4219 = vmatprep.subr.bf16.mxu1 %v9114_v8  ;;  %v9128_v23 = vld [vmem:[%s18475_s1 + $0x310] ss:$8 sps:$4 sm:$0xff]   ;;  %v9129_v8 = vld [vmem:[%s18475_s1 + $0x204] ss:$8 sps:$4 sm:$0xff]  }
 0x74f   :  { %4179 = vmatpush1.bf16.msra.mxu0 %v9115_v37  ;;  %v9130_v37 = vld [vmem:[%s18475_s1 + $0x304] ss:$8 sps:$4 sm:$0xff]  }
 0x750   :  { %4220 = vmatpush1.bf16.msra.mxu1 %v9116_v10  ;;  %4180 = vmatprep.subr.bf16.mxu0 %v9117_v17  ;;  %v9131_v10 = vld [vmem:[%s18475_s1 + $0x200] ss:$8 sps:$4 sm:$0xff]  }
 0x751   :  { %4221 = vmatprep.subr.bf16.mxu1 %v9118_v0  ;;  %v9132_v17 = vld [vmem:[%s18475_s1 + $0x300] ss:$8 sps:$4 sm:$0xff]   ;;  %v9133_v0 = vld [vmem:[%s18475_s1 + $0x2f4] ss:$8 sps:$4 sm:$0xff]  }
 0x753   :  { %4181 = vmatpush1.bf16.msra.mxu0 %v9119_v11  ;;  %v9134_v11 = vld [vmem:[%s18475_s1 + $0x3f4] ss:$8 sps:$4 sm:$0xff]  }
 0x754   :  { %4222 = vmatpush1.bf16.msra.mxu1 %v9120_v4  ;;  %4182 = vmatprep.subr.bf16.mxu0 %v9121_v48  ;;  %v9135_v4 = vld [vmem:[%s18475_s1 + $0x2f0] ss:$8 sps:$4 sm:$0xff]  }
 0x755   :  { %4223 = vmatprep.subr.bf16.mxu1 %v9122_v20  ;;  %v9136_v48 = vld [vmem:[%s18475_s1 + $0x3f0] ss:$8 sps:$4 sm:$0xff]   ;;  %v9137_v20 = vld [vmem:[%s18475_s1 + $0x2e4] ss:$8 sps:$4 sm:$0xff]  }
 0x757   :  { %4183 = vmatpush1.bf16.msra.mxu0 %v9123_v53  ;;  %v9138_v53 = vld [vmem:[%s18475_s1 + $0x3e4] ss:$8 sps:$4 sm:$0xff]  }
 0x758   :  { %4224 = vmatpush1.bf16.msra.mxu1 %v9124_v54  ;;  %4184 = vmatprep.subr.bf16.mxu0 %v9125_v12  ;;  %v9139_v54 = vld [vmem:[%s18475_s1 + $0x2e0] ss:$8 sps:$4 sm:$0xff]  }
 0x759   :  { %4225 = vmatprep.subr.bf16.mxu1 %v9126_v14  ;;  %v9140_v12 = vld [vmem:[%s18475_s1 + $0x3e0] ss:$8 sps:$4 sm:$0xff]   ;;  %v9141_v14 = vld [vmem:[%s18475_s1 + $0x2d4] ss:$8 sps:$4 sm:$0xff]  }
 0x75b   :  { %4185 = vmatpush1.bf16.msra.mxu0 %v9127_v19  ;;  %v9142_v19 = vld [vmem:[%s18475_s1 + $0x3d4] ss:$8 sps:$4 sm:$0xff]  }
 0x75c   :  { %4226 = vmatpush1.bf16.msra.mxu1 %v9128_v23  ;;  %4186 = vmatprep.subr.bf16.mxu0 %v9129_v8  ;;  %v9143_v23 = vld [vmem:[%s18475_s1 + $0x2d0] ss:$8 sps:$4 sm:$0xff]  }
 0x75d   :  { %4227 = vmatprep.subr.bf16.mxu1 %v9130_v37  ;;  %v9144_v8 = vld [vmem:[%s18475_s1 + $0x3d0] ss:$8 sps:$4 sm:$0xff]   ;;  %v9145_v37 = vld [vmem:[%s18475_s1 + $0x2c4] ss:$8 sps:$4 sm:$0xff]  }
 0x75f   :  { %4187 = vmatpush1.bf16.msra.mxu0 %v9131_v10  ;;  %v9146_v10 = vld [vmem:[%s18475_s1 + $0x3c4] ss:$8 sps:$4 sm:$0xff]  }
 0x760   :  { %4228 = vmatpush1.bf16.msra.mxu1 %v9132_v17  ;;  %4188 = vmatprep.subr.bf16.mxu0 %v9133_v0  ;;  %v9147_v17 = vld [vmem:[%s18475_s1 + $0x2c0] ss:$8 sps:$4 sm:$0xff]  }
 0x761   :  { %4229 = vmatprep.subr.bf16.mxu1 %v9134_v11  ;;  %v9148_v0 = vld [vmem:[%s18475_s1 + $0x3c0] ss:$8 sps:$4 sm:$0xff]   ;;  %v9149_v11 = vld [vmem:[%s18475_s1 + $0x2b4] ss:$8 sps:$4 sm:$0xff]  }
 0x763   :  { %4189 = vmatpush2.bf16.msra.mxu0 %v9135_v4  ;;  %v9150_v4 = vld [vmem:[%s18475_s1 + $0x3b4] ss:$8 sps:$4 sm:$0xff]  }
 0x764   :  { %4230 = vmatpush2.bf16.msra.mxu1 %v9136_v48  ;;  %4190 = vmatprep.subr.bf16.mxu0 %v9137_v20  ;;  %v9151_v48 = vld [vmem:[%s18475_s1 + $0x2b0] ss:$8 sps:$4 sm:$0xff]  }
 0x765   :  { %4231 = vmatprep.subr.bf16.mxu1 %v9138_v53  ;;  %v9152_v20 = vld [vmem:[%s18475_s1 + $0x3b0] ss:$8 sps:$4 sm:$0xff]   ;;  %v9153_v53 = vld [vmem:[%s18475_s1 + $0x2a4] ss:$8 sps:$4 sm:$0xff]  }
 0x767   :  { %4191 = vmatpush2.bf16.msra.mxu0 %v9139_v54  ;;  %v9154_v54 = vld [vmem:[%s18475_s1 + $0x3a4] ss:$8 sps:$4 sm:$0xff]  }
 0x768   :  { %4232 = vmatpush2.bf16.msra.mxu1 %v9140_v12  ;;  %4192 = vmatprep.subr.bf16.mxu0 %v9141_v14  ;;  %v9155_v12 = vld [vmem:[%s18475_s1 + $0x2a0] ss:$8 sps:$4 sm:$0xff]  }
 0x769   :  { %4233 = vmatprep.subr.bf16.mxu1 %v9142_v19  ;;  %v9156_v14 = vld [vmem:[%s18475_s1 + $0x3a0] ss:$8 sps:$4 sm:$0xff]   ;;  %v9157_v19 = vld [vmem:[%s18475_s1 + $0x294] ss:$8 sps:$4 sm:$0xff]  }
 0x76b   :  { %4193 = vmatpush2.bf16.msra.mxu0 %v9143_v23  ;;  %v9158_v23 = vld [vmem:[%s18475_s1 + $0x394] ss:$8 sps:$4 sm:$0xff]  }
 0x76c   :  { %4234 = vmatpush2.bf16.msra.mxu1 %v9144_v8  ;;  %4194 = vmatprep.subr.bf16.mxu0 %v9145_v37  ;;  %v9159_v8 = vld [vmem:[%s18475_s1 + $0x290] ss:$8 sps:$4 sm:$0xff]  }
 0x76d   :  { %4235 = vmatprep.subr.bf16.mxu1 %v9146_v10  ;;  %v9160_v37 = vld [vmem:[%s18475_s1 + $0x390] ss:$8 sps:$4 sm:$0xff]   ;;  %v9161_v10 = vld [vmem:[%s18475_s1 + $0x284] ss:$8 sps:$4 sm:$0xff]  }
 0x76f   :  { %4195 = vmatpush2.bf16.msra.mxu0 %v9147_v17  ;;  %v9162_v17 = vld [vmem:[%s18475_s1 + $0x384] ss:$8 sps:$4 sm:$0xff]  }
 0x770   :  { %4236 = vmatpush2.bf16.msra.mxu1 %v9148_v0  ;;  %4196 = vmatprep.subr.bf16.mxu0 %v9149_v11  ;;  %v6947_v0 = vld [vmem:[%s18476_s0 + $0x208] sm:$0xff]  ;;  %v6949_v11 = vld [vmem:[%s18476_s0 + $0x218] sm:$0xff] }
 0x771   :  { %4237 = vmatprep.subr.bf16.mxu1 %v9150_v4  ;;  %v9163_v4 = vld [vmem:[%s18475_s1 + $0x280] ss:$8 sps:$4 sm:$0xff]  }
 0x773   :  { %4197 = vmatpush2.bf16.msra.mxu0 %v9151_v48  ;;  %v9164_v48 = vld [vmem:[%s18475_s1 + $0x380] ss:$8 sps:$4 sm:$0xff]  }
 0x774   :  { %4238 = vmatpush2.bf16.msra.mxu1 %v9152_v20  ;;  %4198 = vmatprep.subr.bf16.mxu0 %v9153_v53  ;;  %v9165_v20 = vld [vmem:[%s18475_s1 + $0x474] ss:$8 sps:$4 sm:$0xff]  }
 0x775   :  { %4239 = vmatprep.subr.bf16.mxu1 %v9154_v54  ;;  %v9166_v53 = vld [vmem:[%s18475_s1 + $0x574] ss:$8 sps:$4 sm:$0xff]   ;;  %v4083_v54 = vpack.c.bf16 %v6947_v0, %v6947_v0 }
 0x777   :  { %4199 = vmatpush2.bf16.msra.mxu0 %v9155_v12  ;;  %v4085_v12 = vpack.c.bf16 %v6949_v11, %v6949_v11 }
 0x778   :  { %4240 = vmatpush2.bf16.msra.mxu1 %v9156_v14  ;;  %4200 = vmatprep.subr.bf16.mxu0 %v9157_v19 }
 0x779   :  { %4241 = vmatprep.subr.bf16.mxu1 %v9158_v23 }
 0x77b   :  { %4201 = vmatpush2.bf16.msra.mxu0 %v9159_v8  ;;  %v9167_v8 = vld [vmem:[%s18475_s1 + $0x470] ss:$8 sps:$4 sm:$0xff]  }
 0x77c   :  { %4242 = vmatpush2.bf16.msra.mxu1 %v9160_v37  ;;  %4202 = vmatprep.subr.bf16.mxu0 %v9161_v10  ;;  %v9168_v37 = vld [vmem:[%s18475_s1 + $0x570] ss:$8 sps:$4 sm:$0xff]  }
 0x77d   :  { %4243 = vmatprep.subr.bf16.mxu1 %v9162_v17 }
 0x77f   :  { %4203 = vmatpush2.bf16.msra.mxu0 %v9163_v4 }
 0x780   :  { %4244 = vmatpush2.bf16.msra.mxu1 %v9164_v48  ;;  %4254 = vmatprep.subr.bf16.mxu0 %v9165_v20  ;;  %v9171_v20 = vld [vmem:[%s18475_s1 + $0x460] ss:$8 sps:$4 sm:$0xff]  }
 0x781   :  { %4295 = vmatprep.subr.bf16.mxu1 %v9166_v53  ;;  %v9172_v53 = vld [vmem:[%s18475_s1 + $0x560] ss:$8 sps:$4 sm:$0xff]  }
 0x782   :  { %v3948_v14 = vpop.f32.mrf.mxu0  ;;  %4205 = vmatmul.mubr.bf16.vlgmr.msra.gmra.mxu0 %v16317_v49  ;;  %v9169_v49 = vld [vmem:[%s18475_s1 + $0x464] ss:$8 sps:$4 sm:$0xff]  }
 0x783   :  { %v3989_v19 = vpop.f32.mrf.mxu1  ;;  %4246 = vmatmul.mubr.bf16.vlgmr.msra.gmra.mxu1 %v16319_v21  ;;  %v3949_v23 = vadd.f32 %v3948_v14, %v16556_v36  ;;  %4255 = vmatpush1.bf16.msra.mxu0 %v9167_v8  ;;  %v9170_v21 = vld [vmem:[%s18475_s1 + $0x564] ss:$8 sps:$4 sm:$0xff]  }
 0x784   :  { %4296 = vmatpush1.bf16.msra.mxu1 %v9168_v37  ;;  %v3950_v10 = vpop.f32.mrf.mxu0  ;;  %4256 = vmatprep.subr.bf16.mxu0 %v9169_v49  ;;  %v20639_v8 = vld [vmem:[#allocation39_spill] sm:$0xff]  ;;  %v20640_v37 = vld [vmem:[#allocation40_spill] sm:$0xff] }
 0x785   :  { %v3991_v17 = vpop.f32.mrf.mxu1  ;;  %4297 = vmatprep.subr.bf16.mxu1 %v9170_v21  ;;  %v16764_v36 = vadd.f32 %v3989_v19, %v3949_v23  ;;  %v3951_v0 = vadd.f32 %v3950_v10, %v16561_v35  ;;  %4286 = vmatprep.mubr.bf16.mxu0 %v4083_v54  ;;  %v9173_v35 = vld [vmem:[%s18475_s1 + $0x454] ss:$8 sps:$4 sm:$0xff]   ;;  %v20638_v23 = vld [vmem:[#allocation38_spill] sm:$0xff]  ;;  %v20643_v49 = vld [vmem:[#allocation43_spill] sm:$0xff] }
 0x786   :  { %4327 = vmatprep.mubr.bf16.mxu1 %v4085_v12  ;;  %v3952_v11 = vpop.f32.mrf.mxu0  ;;  %v9174_v54 = vld [vmem:[%s18475_s1 + $0x554] ss:$8 sps:$4 sm:$0xff]   ;;  %v9175_v12 = vld [vmem:[%s18475_s1 + $0x450] ss:$8 sps:$4 sm:$0xff]  }
 0x787   :  { %v3993_v4 = vpop.f32.mrf.mxu1  ;;  %v16767_v48 = vadd.f32 %v3991_v17, %v3951_v0  ;;  %4257 = vmatpush1.bf16.msra.mxu0 %v9171_v20  ;;  %v20641_v10 = vld [vmem:[#allocation41_spill] sm:$0xff]  ;;  %v20642_v17 = vld [vmem:[#allocation42_spill] sm:$0xff]  ;;  %v20644_v21 = vld [vmem:[#allocation44_spill] sm:$0xff] }
 0x788   :  { %4298 = vmatpush1.bf16.msra.mxu1 %v9172_v53  ;;  %v3953_v14 = vpop.f32.mrf.mxu0  ;;  %4258 = vmatprep.subr.bf16.mxu0 %v9173_v35  ;;  %v20646_v0 = vld [vmem:[#allocation46_spill] sm:$0xff]  ;;  %v20647_v11 = vld [vmem:[#allocation47_spill] sm:$0xff]  ;;  %v20648_v4 = vld [vmem:[#allocation48_spill] sm:$0xff] }
 0x789   :  { %v3994_v19 = vpop.f32.mrf.mxu1  ;;  %4299 = vmatprep.subr.bf16.mxu1 %v9174_v54  ;;  %v20650_v20 = vld [vmem:[#allocation50_spill] sm:$0xff]  ;;  %v20651_v53 = vld [vmem:[#allocation51_spill] sm:$0xff]  ;;  %v20652_v14 = vld [vmem:[#allocation52_spill] sm:$0xff] }
 0x78a   :  { %v20653_v19 = vld [vmem:[#allocation53_spill] sm:$0xff]  ;;  %v20654_v35 = vld [vmem:[#allocation54_spill] sm:$0xff]  ;;  %v20655_v54 = vld [vmem:[#allocation55_spill] sm:$0xff] }
 0x78b   :  { %4259 = vmatpush1.bf16.msra.mxu0 %v9175_v12  ;;  %v20656_v12 = vld [vmem:[#allocation56_spill] sm:$0xff] }
 0x78c   :  { %4300 = vmatpush1.bf16.msra.mxu1 %v15594_v47  ;;  %4260 = vmatprep.subr.bf16.mxu0 %v15600_v40  ;;  %v20612_v47 = vld [vmem:[#allocation8_spill] sm:$0xff]  ;;  %v20613_v40 = vld [vmem:[#allocation9_spill] sm:$0xff] }
 0x78d   :  { %4301 = vmatprep.subr.bf16.mxu1 %v15606_v3  ;;  %v20614_v3 = vld [vmem:[#allocation10_spill] sm:$0xff] }
 0x78f   :  { %4261 = vmatpush1.bf16.msra.mxu0 %v15612_v61  ;;  %v6946_v61 = vld [vmem:[%s18476_s0 + $0x200] sm:$0xff] }
 0x790   :  { %4302 = vmatpush1.bf16.msra.mxu1 %v15618_v58  ;;  %4262 = vmatprep.subr.bf16.mxu0 %v15624_v25  ;;  %v6948_v58 = vld [vmem:[%s18476_s0 + $0x210] sm:$0xff]  ;;  %v20615_v25 = vld [vmem:[#allocation11_spill] sm:$0xff] }
 0x791   :  { %4303 = vmatprep.subr.bf16.mxu1 %v15630_v32  ;;  %v20616_v32 = vld [vmem:[#allocation12_spill] sm:$0xff] }
 0x793   :  { %4263 = vmatpush1.bf16.msra.mxu0 %v15636_v42  ;;  %v20617_v42 = vld [vmem:[#allocation13_spill] sm:$0xff] }
 0x794   :  { %4304 = vmatpush1.bf16.msra.mxu1 %v15642_v63  ;;  %4264 = vmatprep.subr.bf16.mxu0 %v15648_v51  ;;  %v20618_v63 = vld [vmem:[#allocation14_spill] sm:$0xff]  ;;  %v6951_v51 = vld [vmem:[%s18476_s0 + $0x228] sm:$0xff] }
 0x795   :  { %4305 = vmatprep.subr.bf16.mxu1 %v15654_v22  ;;  %v6953_v22 = vld [vmem:[%s18476_s0 + $0x238] sm:$0xff] }
 0x797   :  { %4265 = vmatpush1.bf16.msra.mxu0 %v15660_v27  ;;  %v4082_v27 = vpack.c.bf16 %v6946_v61, %v6946_v61  ;;  %v20660_v61 = vld [vmem:[#allocation60_spill] sm:$0xff] }
 0x798   :  { %4306 = vmatpush1.bf16.msra.mxu1 %v15666_v52  ;;  %4266 = vmatprep.subr.bf16.mxu0 %v15672_v55  ;;  %v4084_v52 = vpack.c.bf16 %v6948_v58, %v6948_v58  ;;  %v20619_v55 = vld [vmem:[#allocation15_spill] sm:$0xff]  ;;  %v20661_v58 = vld [vmem:[#allocation61_spill] sm:$0xff] }
 0x799   :  { %4307 = vmatprep.subr.bf16.mxu1 %v15678_v45  ;;  %v20620_v45 = vld [vmem:[#allocation16_spill] sm:$0xff] }
 0x79b   :  { %4267 = vmatpush1.bf16.msra.mxu0 %v15684_v46  ;;  %v20621_v46 = vld [vmem:[#allocation17_spill] sm:$0xff] }
 0x79c   :  { %4308 = vmatpush1.bf16.msra.mxu1 %v15690_v13  ;;  %4268 = vmatprep.subr.bf16.mxu0 %v15696_v56  ;;  %v20622_v13 = vld [vmem:[#allocation18_spill] sm:$0xff]  ;;  %v4087_v56 = vpack.c.bf16 %v6951_v51, %v6951_v51 }
 0x79d   :  { %4309 = vmatprep.subr.bf16.mxu1 %v15702_v18  ;;  %v4089_v18 = vpack.c.bf16 %v6953_v22, %v6953_v22  ;;  %v20666_v51 = vld [vmem:[#allocation66_spill] sm:$0xff]  ;;  %v20667_v22 = vld [vmem:[#allocation67_spill] sm:$0xff] }
 0x79f   :  { %4269 = vmatpush1.bf16.msra.mxu0 %v15708_v6 }
 0x7a0   :  { %4310 = vmatpush1.bf16.msra.mxu1 %v15714_v1  ;;  %4270 = vmatprep.subr.bf16.mxu0 %v15720_v2 }
 0x7a1   :  { %4311 = vmatprep.subr.bf16.mxu1 %v15726_v29  ;;  %v20623_v29 = vld [vmem:[#allocation21_spill] sm:$0xff] }
 0x7a3   :  { %4271 = vmatpush2.bf16.msra.mxu0 %v15732_v28  ;;  %v20624_v28 = vld [vmem:[#allocation22_spill] sm:$0xff] }
 0x7a4   :  { %4312 = vmatpush2.bf16.msra.mxu1 %v15738_v38  ;;  %4272 = vmatprep.subr.bf16.mxu0 %v15744_v24 }
 0x7a5   :  { %4313 = vmatprep.subr.bf16.mxu1 %v15750_v60  ;;  %v20625_v60 = vld [vmem:[#allocation25_spill] sm:$0xff] }
 0x7a7   :  { %4273 = vmatpush2.bf16.msra.mxu0 %v15756_v16  ;;  %v20626_v16 = vld [vmem:[#allocation26_spill] sm:$0xff] }
 0x7a8   :  { %4314 = vmatpush2.bf16.msra.mxu1 %v15762_v30  ;;  %4274 = vmatprep.subr.bf16.mxu0 %v15768_v44 }
 0x7a9   :  { %4315 = vmatprep.subr.bf16.mxu1 %v15774_v5 }
 0x7ab   :  { %4275 = vmatpush2.bf16.msra.mxu0 %v15780_v62 }
 0x7ac   :  { %4316 = vmatpush2.bf16.msra.mxu1 %v15786_v7  ;;  %4276 = vmatprep.subr.bf16.mxu0 %v15792_v59  ;;  %v20629_v59 = vld [vmem:[#allocation29_spill] sm:$0xff] }
 0x7ad   :  { %4317 = vmatprep.subr.bf16.mxu1 %v15798_v9  ;;  %v20630_v9 = vld [vmem:[#allocation30_spill] sm:$0xff] }
 0x7af   :  { %4277 = vmatpush2.bf16.msra.mxu0 %v15804_v50 }
 0x7b0   :  { %4318 = vmatpush2.bf16.msra.mxu1 %v15810_v34  ;;  %4278 = vmatprep.subr.bf16.mxu0 %v15816_v26  ;;  %v20631_v26 = vld [vmem:[#allocation31_spill] sm:$0xff] }
 0x7b1   :  { %4319 = vmatprep.subr.bf16.mxu1 %v15822_v33  ;;  %v20632_v33 = vld [vmem:[#allocation32_spill] sm:$0xff] }
 0x7b3   :  { %4279 = vmatpush2.bf16.msra.mxu0 %v15828_v43  ;;  %v20633_v43 = vld [vmem:[#allocation33_spill] sm:$0xff] }
 0x7b4   :  { %4320 = vmatpush2.bf16.msra.mxu1 %v15834_v39  ;;  %4280 = vmatprep.subr.bf16.mxu0 %v15840_v57  ;;  %v20634_v39 = vld [vmem:[#allocation34_spill] sm:$0xff]  ;;  %v20635_v57 = vld [vmem:[#allocation35_spill] sm:$0xff] }
 0x7b5   :  { %4321 = vmatprep.subr.bf16.mxu1 %v15846_v31  ;;  %v20636_v31 = vld [vmem:[#allocation36_spill] sm:$0xff] }
 0x7b7   :  { %4281 = vmatpush2.bf16.msra.mxu0 %v15852_v41  ;;  %v20637_v41 = vld [vmem:[#allocation37_spill] sm:$0xff] }
 0x7b8   :  { %4322 = vmatpush2.bf16.msra.mxu1 %v20612_v47  ;;  %4282 = vmatprep.subr.bf16.mxu0 %v20613_v40  ;;  %v20657_v47 = vld [vmem:[#allocation57_spill] sm:$0xff]  ;;  %v20658_v40 = vld [vmem:[#allocation58_spill] sm:$0xff] }
 0x7b9   :  { %4323 = vmatprep.subr.bf16.mxu1 %v20614_v3  ;;  %v20659_v3 = vld [vmem:[#allocation59_spill] sm:$0xff] }
 0x7bb   :  { %4283 = vmatpush2.bf16.msra.mxu0 %v20615_v25  ;;  %v20662_v25 = vld [vmem:[#allocation62_spill] sm:$0xff] }
 0x7bc   :  { %4324 = vmatpush2.bf16.msra.mxu1 %v20616_v32  ;;  %4284 = vmatprep.subr.bf16.mxu0 %v20617_v42  ;;  %v20663_v32 = vld [vmem:[#allocation63_spill] sm:$0xff]  ;;  %v20664_v42 = vld [vmem:[#allocation64_spill] sm:$0xff] }
 0x7bd   :  { %4325 = vmatprep.subr.bf16.mxu1 %v20618_v63  ;;  %v20665_v63 = vld [vmem:[#allocation65_spill] sm:$0xff] }
 0x7bf   :  { %4285 = vmatpush2.bf16.msra.mxu0 %v20619_v55  ;;  %v20670_v55 = vld [vmem:[#allocation70_spill] sm:$0xff] }
 0x7c0   :  { %4326 = vmatpush2.bf16.msra.mxu1 %v20620_v45  ;;  %4336 = vmatprep.subr.bf16.mxu0 %v20621_v46  ;;  %v20671_v45 = vld [vmem:[#allocation72_spill] sm:$0xff]  ;;  %v20672_v46 = vld [vmem:[#allocation73_spill] sm:$0xff] }
 0x7c1   :  { %4377 = vmatprep.subr.bf16.mxu1 %v20622_v13  ;;  %v20673_v13 = vld [vmem:[#allocation74_spill] sm:$0xff] }
 0x7c2   :  { %v4030_v6 = vpop.f32.mrf.mxu0  ;;  %4287 = vmatmul.mubr.bf16.vlgmr.msra.gmra.mxu0 %v4082_v27  ;;  %v20668_v27 = vld [vmem:[#allocation68_spill] sm:$0xff] }
 0x7c3   :  { %v4071_v1 = vpop.f32.mrf.mxu1  ;;  %4328 = vmatmul.mubr.bf16.vlgmr.msra.gmra.mxu1 %v4084_v52  ;;  %v4031_v2 = vadd.f32 %v4030_v6, %v16764_v36  ;;  %4337 = vmatpush1.bf16.msra.mxu0 %v20623_v29  ;;  %v20645_v36 = vld [vmem:[#allocation45_spill] sm:$0xff]  ;;  %v20676_v6 = vld [vmem:[#allocation80_spill] sm:$0xff]  ;;  %v20679_v29 = vld [vmem:[#allocation83_spill] sm:$0xff] }
 0x7c4   :  { %4378 = vmatpush1.bf16.msra.mxu1 %v20624_v28  ;;  %v4032_v38 = vpop.f32.mrf.mxu0  ;;  %4338 = vmatprep.subr.bf16.mxu0 %v20625_v60  ;;  %v20669_v52 = vld [vmem:[#allocation69_spill] sm:$0xff]  ;;  %v20680_v28 = vld [vmem:[#allocation84_spill] sm:$0xff]  ;;  %v6950_v60 = vld [vmem:[%s18476_s0 + $0x220] sm:$0xff] }
 0x7c5   :  { %v4073_v24 = vpop.f32.mrf.mxu1  ;;  %4379 = vmatprep.subr.bf16.mxu1 %v20626_v16  ;;  %v16856_v30 = vadd.f32 %v4071_v1, %v4031_v2  ;;  %v4033_v44 = vadd.f32 %v4032_v38, %v16767_v48  ;;  %4368 = vmatprep.mubr.bf16.mxu0 %v4087_v56  ;;  %v20649_v48 = vld [vmem:[#allocation49_spill] sm:$0xff]  ;;  %v20674_v56 = vld [vmem:[#allocation75_spill] sm:$0xff]  ;;  %v20678_v2 = vld [vmem:[#allocation82_spill] sm:$0xff] }
 0x7c6   :  { %4409 = vmatprep.mubr.bf16.mxu1 %v4089_v18  ;;  %v4034_v5 = vpop.f32.mrf.mxu0  ;;  %v20675_v18 = vld [vmem:[#allocation79_spill] sm:$0xff]  ;;  %v20677_v1 = vld [vmem:[#allocation81_spill] sm:$0xff]  ;;  %v6952_v16 = vld [vmem:[%s18476_s0 + $0x230] sm:$0xff] }
 0x7c7   :  { %20627 = vst [vmem:[#allocation91_spill] sm:$0xff] %v16856_v30  ;;  %v4075_v62 = vpop.f32.mrf.mxu1  ;;  %v16859_v7 = vadd.f32 %v4073_v24, %v4033_v44  ;;  %4339 = vmatpush1.bf16.msra.mxu0 %v20629_v59  ;;  %v20681_v38 = vld [vmem:[#allocation85_spill] sm:$0xff]  ;;  %v20682_v24 = vld [vmem:[#allocation86_spill] sm:$0xff]  ;;  %v20683_v44 = vld [vmem:[#allocation87_spill] sm:$0xff] }
 0x7c8   :  { %4380 = vmatpush1.bf16.msra.mxu1 %v20630_v9  ;;  %v4035_v50 = vpop.f32.mrf.mxu0  ;;  %4340 = vmatprep.subr.bf16.mxu0 %v20631_v26  ;;  %v20684_v5 = vld [vmem:[#allocation88_spill] sm:$0xff]  ;;  %v20687_v9 = vld [vmem:[#allocation3_spill] sm:$0xff] }
 0x7c9   :  { %20628 = vst [vmem:[#allocation92_spill] sm:$0xff] %v16859_v7  ;;  %v4076_v34 = vpop.f32.mrf.mxu1  ;;  %4381 = vmatprep.subr.bf16.mxu1 %v20632_v33  ;;  %v16926_v62 = vld [vmem:[%s18478_s3 + $0x74] ss:$8 sps:$4 sm:$0xff]   ;;  %v2039_v50 = vmax.f32 %v20687_v9, 0.0  ;;  %v4086_v33 = vpack.c.bf16 %v6950_v60, %v6950_v60  ;;  %v17144_v60 = vld [vmem:[%s18478_s3 + $0x1f0] ss:$8 sps:$4 sm:$0xff]  }
 0x7ca   :  { %20685 = vst [vmem:[#allocation93_spill] sm:$0xff] %v16926_v62  ;;  %v16931_v59 = vld [vmem:[%s18478_s3 + $0x174] ss:$8 sps:$4 sm:$0xff]   ;;  %v17168_v9 = vld [vmem:[%s18478_s3 + $0x1e0] ss:$8 sps:$4 sm:$0xff]  }
 0x7cb   :  { %4341 = vmatpush1.bf16.msra.mxu0 %v20633_v43  ;;  %20686 = vst [vmem:[#allocation94_spill] sm:$0xff] %v16931_v59  ;;  %v20688_v34 = vld [vmem:[#allocation20_spill] sm:$0xff]  ;;  %v4088_v43 = vpack.c.bf16 %v6952_v16, %v6952_v16  ;;  %v17149_v16 = vld [vmem:[%s18478_s3 + $0xe4] ss:$8 sps:$4 sm:$0xff]  }
 0x7cc   :  { %4382 = vmatpush1.bf16.msra.mxu1 %v20634_v39  ;;  %4342 = vmatprep.subr.bf16.mxu0 %v20635_v57  ;;  %v2379_v26 = vmax.f32 %v20688_v34, 0.0  ;;  %v20689_v39 = vld [vmem:[#allocation89_spill] sm:$0xff]  ;;  %v20690_v57 = vld [vmem:[#allocation90_spill] sm:$0xff] }
 0x7cd   :  { %4383 = vmatprep.subr.bf16.mxu1 %v20636_v31  ;;  %v16940_v31 = vld [vmem:[%s18478_s3 + $0x70] ss:$8 sps:$4 sm:$0xff]   ;;  %v17179_v34 = vld [vmem:[%s18478_s3 + $0x1d4] ss:$8 sps:$4 sm:$0xff]   ;;  %v17293_v30 = vld [vmem:[%s18478_s3 + $0x84] ss:$8 sps:$4 sm:$0xff]  }
 0x7ce   :  { %20707 = vst [vmem:[#allocation110_spill] sm:$0xff] %v17293_v30  ;;  %v17299_v7 = vld [vmem:[%s18478_s3 + $0x184] ss:$8 sps:$4 sm:$0xff]  }
 0x7cf   :  { %4343 = vmatpush1.bf16.msra.mxu0 %v20637_v41  ;;  %v16946_v41 = vld [vmem:[%s18478_s3 + $0x170] ss:$8 sps:$4 sm:$0xff]   ;;  %20708 = vst [vmem:[#allocation111_spill] sm:$0xff] %v17299_v7 }
 0x7d0   :  { %4384 = vmatpush1.bf16.msra.mxu1 %v20638_v23  ;;  %4344 = vmatprep.subr.bf16.mxu0 %v20639_v8  ;;  %20691 = vst [vmem:[#allocation95_spill] sm:$0xff] %v16946_v41  ;;  %v2041_v23 = vpack.c.bf16 %v2039_v50, %v2039_v50  ;;  %v16952_v8 = vld [vmem:[%s18478_s3 + $0x64] ss:$8 sps:$4 sm:$0xff]   ;;  %v17173_v50 = vld [vmem:[%s18478_s3 + $0xd4] ss:$8 sps:$4 sm:$0xff]  }
 0x7d1   :  { %4385 = vmatprep.subr.bf16.mxu1 %v20640_v37  ;;  %v16957_v37 = vld [vmem:[%s18478_s3 + $0x164] ss:$8 sps:$4 sm:$0xff]  }
 0x7d3   :  { %4345 = vmatpush1.bf16.msra.mxu0 %v20641_v10  ;;  %v2381_v10 = vpack.c.bf16 %v2379_v26, %v2379_v26  ;;  %v17185_v26 = vld [vmem:[%s18478_s3 + $0xd0] ss:$8 sps:$4 sm:$0xff]  }
 0x7d4   :  { %4386 = vmatpush1.bf16.msra.mxu1 %v20642_v17  ;;  %4346 = vmatprep.subr.bf16.mxu0 %v20643_v49 }
 0x7d5   :  { %4387 = vmatprep.subr.bf16.mxu1 %v20644_v21  ;;  %v20692_v21 = vld [vmem:[#allocation78_spill] sm:$0xff] }
 0x7d7   :  { %4347 = vmatpush1.bf16.msra.mxu0 %v20645_v36 }
 0x7d8   :  { %4388 = vmatpush1.bf16.msra.mxu1 %v20646_v0  ;;  %4348 = vmatprep.subr.bf16.mxu0 %v20647_v11  ;;  %v16964_v0 = vld [vmem:[%s18478_s3 + $0x60] ss:$8 sps:$4 sm:$0xff]  }
 0x7d9   :  { %4389 = vmatprep.subr.bf16.mxu1 %v20648_v4 }
 0x7db   :  { %4349 = vmatpush1.bf16.msra.mxu0 %v20649_v48  ;;  %v16970_v48 = vld [vmem:[%s18478_s3 + $0x160] ss:$8 sps:$4 sm:$0xff]  }
 0x7dc   :  { %4390 = vmatpush1.bf16.msra.mxu1 %v20650_v20  ;;  %4350 = vmatprep.subr.bf16.mxu0 %v20651_v53  ;;  %v16975_v20 = vld [vmem:[%s18478_s3 + $0x54] ss:$8 sps:$4 sm:$0xff]  }
 0x7dd   :  { %4391 = vmatprep.subr.bf16.mxu1 %v20652_v14 }
 0x7df   :  { %4351 = vmatpush1.bf16.msra.mxu0 %v20653_v19  ;;  %v16985_v19 = vld [vmem:[%s18478_s3 + $0x154] ss:$8 sps:$4 sm:$0xff]  }
 0x7e0   :  { %4392 = vmatpush1.bf16.msra.mxu1 %v20654_v35  ;;  %4352 = vmatprep.subr.bf16.mxu0 %v20655_v54 }
 0x7e1   :  { %4393 = vmatprep.subr.bf16.mxu1 %v20656_v12 }
 0x7e3   :  { %4353 = vmatpush2.bf16.msra.mxu0 %v20657_v47  ;;  %v16993_v47 = vld [vmem:[%s18478_s3 + $0x50] ss:$8 sps:$4 sm:$0xff]  }
 0x7e4   :  { %4394 = vmatpush2.bf16.msra.mxu1 %v20658_v40  ;;  %4354 = vmatprep.subr.bf16.mxu0 %v20659_v3  ;;  %v17000_v3 = vld [vmem:[%s18478_s3 + $0x150] ss:$8 sps:$4 sm:$0xff]  }
 0x7e5   :  { %4395 = vmatprep.subr.bf16.mxu1 %v20660_v61  ;;  %v17005_v61 = vld [vmem:[%s18478_s3 + $0x44] ss:$8 sps:$4 sm:$0xff]  }
 0x7e7   :  { %4355 = vmatpush2.bf16.msra.mxu0 %v20661_v58  ;;  %v17011_v58 = vld [vmem:[%s18478_s3 + $0x144] ss:$8 sps:$4 sm:$0xff]  }
 0x7e8   :  { %4396 = vmatpush2.bf16.msra.mxu1 %v20662_v25  ;;  %4356 = vmatprep.subr.bf16.mxu0 %v20663_v32  ;;  %v17017_v25 = vld [vmem:[%s18478_s3 + $0x40] ss:$8 sps:$4 sm:$0xff]  }
 0x7e9   :  { %4397 = vmatprep.subr.bf16.mxu1 %v20664_v42  ;;  %v17024_v32 = vld [vmem:[%s18478_s3 + $0x140] ss:$8 sps:$4 sm:$0xff]   ;;  %v17029_v42 = vld [vmem:[%s18478_s3 + $0x34] ss:$8 sps:$4 sm:$0xff]  }
 0x7eb   :  { %4357 = vmatpush2.bf16.msra.mxu0 %v20665_v63  ;;  %v17035_v63 = vld [vmem:[%s18478_s3 + $0x134] ss:$8 sps:$4 sm:$0xff]  }
 0x7ec   :  { %4398 = vmatpush2.bf16.msra.mxu1 %v20666_v51  ;;  %4358 = vmatprep.subr.bf16.mxu0 %v20667_v22  ;;  %v17041_v51 = vld [vmem:[%s18478_s3 + $0x30] ss:$8 sps:$4 sm:$0xff]  }
 0x7ed   :  { %4399 = vmatprep.subr.bf16.mxu1 %v20668_v27  ;;  %v17048_v22 = vld [vmem:[%s18478_s3 + $0x130] ss:$8 sps:$4 sm:$0xff]   ;;  %v17053_v27 = vld [vmem:[%s18478_s3 + $0x24] ss:$8 sps:$4 sm:$0xff]  }
 0x7ef   :  { %4359 = vmatpush2.bf16.msra.mxu0 %v20669_v52  ;;  %v17059_v52 = vld [vmem:[%s18478_s3 + $0x124] ss:$8 sps:$4 sm:$0xff]  }
 0x7f0   :  { %4400 = vmatpush2.bf16.msra.mxu1 %v20670_v55  ;;  %4360 = vmatprep.subr.bf16.mxu0 %v20671_v45  ;;  %v17065_v55 = vld [vmem:[%s18478_s3 + $0x20] ss:$8 sps:$4 sm:$0xff]  }
 0x7f1   :  { %4401 = vmatprep.subr.bf16.mxu1 %v20672_v46  ;;  %v17072_v45 = vld [vmem:[%s18478_s3 + $0x120] ss:$8 sps:$4 sm:$0xff]   ;;  %v17077_v46 = vld [vmem:[%s18478_s3 + $0x14] ss:$8 sps:$4 sm:$0xff]  }
 0x7f3   :  { %4361 = vmatpush2.bf16.msra.mxu0 %v20673_v13  ;;  %v17083_v13 = vld [vmem:[%s18478_s3 + $0x114] ss:$8 sps:$4 sm:$0xff]  }
 0x7f4   :  { %4402 = vmatpush2.bf16.msra.mxu1 %v20674_v56  ;;  %4362 = vmatprep.subr.bf16.mxu0 %v20675_v18  ;;  %v17089_v56 = vld [vmem:[%s18478_s3 + $0x10] ss:$8 sps:$4 sm:$0xff]  }
 0x7f5   :  { %4403 = vmatprep.subr.bf16.mxu1 %v20676_v6  ;;  %v17096_v18 = vld [vmem:[%s18478_s3 + $0x110] ss:$8 sps:$4 sm:$0xff]   ;;  %v17101_v6 = vld [vmem:[%s18478_s3 + $0x4] ss:$8 sps:$4 sm:$0xff]  }
 0x7f7   :  { %4363 = vmatpush2.bf16.msra.mxu0 %v20677_v1  ;;  %v17107_v1 = vld [vmem:[%s18478_s3 + $0x104] ss:$8 sps:$4 sm:$0xff]  }
 0x7f8   :  { %4404 = vmatpush2.bf16.msra.mxu1 %v20678_v2  ;;  %4364 = vmatprep.subr.bf16.mxu0 %v20679_v29  ;;  %v17113_v2 = vld [vmem:[%s18478_s3] ss:$8 sps:$4 sm:$0xff]  }
 0x7f9   :  { %4405 = vmatprep.subr.bf16.mxu1 %v20680_v28  ;;  %v17120_v29 = vld [vmem:[%s18478_s3 + $0x100] ss:$8 sps:$4 sm:$0xff]   ;;  %v17125_v28 = vld [vmem:[%s18478_s3 + $0xf4] ss:$8 sps:$4 sm:$0xff]  }
 0x7fb   :  { %4365 = vmatpush2.bf16.msra.mxu0 %v20681_v38  ;;  %v17131_v38 = vld [vmem:[%s18478_s3 + $0x1f4] ss:$8 sps:$4 sm:$0xff]  }
 0x7fc   :  { %4406 = vmatpush2.bf16.msra.mxu1 %v20682_v24  ;;  %4366 = vmatprep.subr.bf16.mxu0 %v20683_v44  ;;  %v17137_v24 = vld [vmem:[%s18478_s3 + $0xf0] ss:$8 sps:$4 sm:$0xff]   ;;  %v17155_v44 = vld [vmem:[%s18478_s3 + $0x1e4] ss:$8 sps:$4 sm:$0xff]  }
 0x7fd   :  { %4407 = vmatprep.subr.bf16.mxu1 %v20684_v5  ;;  %v17161_v5 = vld [vmem:[%s18478_s3 + $0xe0] ss:$8 sps:$4 sm:$0xff]  }
 0x7ff   :  { %4367 = vmatpush2.bf16.msra.mxu0 %v20689_v39  ;;  %v17203_v39 = vld [vmem:[%s18478_s3 + $0x1c4] ss:$8 sps:$4 sm:$0xff]  }
 0x800   :  { %4408 = vmatpush2.bf16.msra.mxu1 %v20690_v57  ;;  %5202 = vmatprep.subr.bf16.mxu0 %v16926_v62  ;;  %v17209_v57 = vld [vmem:[%s18478_s3 + $0xc0] ss:$8 sps:$4 sm:$0xff]  }
 0x801   :  { %5243 = vmatprep.subr.bf16.mxu1 %v16931_v59  ;;  %20693 = vst [vmem:[#allocation96_spill] sm:$0xff] %v17209_v57 }
 0x802   :  { %v4124_v17 = vpop.f32.mrf.mxu0  ;;  %4369 = vmatmul.mubr.bf16.vlgmr.msra.gmra.mxu0 %v4086_v33  ;;  %v17192_v33 = vld [vmem:[%s18478_s3 + $0x1d0] ss:$8 sps:$4 sm:$0xff]  }
 0x803   :  { %v4165_v49 = vpop.f32.mrf.mxu1  ;;  %4410 = vmatmul.mubr.bf16.vlgmr.msra.gmra.mxu1 %v4088_v43  ;;  %v4125_v36 = vadd.f32 %v4124_v17, %v20692_v21  ;;  %5203 = vmatpush1.bf16.msra.mxu0 %v16940_v31  ;;  %v17197_v43 = vld [vmem:[%s18478_s3 + $0xc4] ss:$8 sps:$4 sm:$0xff]   ;;  %v17227_v17 = vld [vmem:[%s18478_s3 + $0x1b4] ss:$8 sps:$4 sm:$0xff]   ;;  %v17240_v21 = vld [vmem:[%s18478_s3 + $0x1b0] ss:$8 sps:$4 sm:$0xff]  }
 0x804   :  { %5234 = vmatprep.mubr.bf16.mxu0 %v2041_v23  ;;  %5244 = vmatpush1.bf16.msra.mxu1 %v16946_v41  ;;  %v4126_v11 = vpop.f32.mrf.mxu0  ;;  %v17216_v23 = vld [vmem:[%s18478_s3 + $0x1c0] ss:$8 sps:$4 sm:$0xff]   ;;  %20696 = vst [vmem:[#allocation99_spill] sm:$0xff] %v17227_v17  ;;  %20698 = vst [vmem:[#allocation101_spill] sm:$0xff] %v17240_v21 }
 0x805   :  { %5275 = vmatprep.mubr.bf16.mxu1 %v2381_v10  ;;  %v4167_v4 = vpop.f32.mrf.mxu1  ;;  %v16977_v53 = vadd.f32 %v4165_v49, %v4125_v36  ;;  %v4127_v14 = vadd.f32 %v4126_v11, %v10487_v15  ;;  %5204 = vmatprep.subr.bf16.mxu0 %v16952_v8  ;;  %20694 = vst [vmem:[#allocation97_spill] sm:$0xff] %v17216_v23  ;;  %v17221_v10 = vld [vmem:[%s18478_s3 + $0xb4] ss:$8 sps:$4 sm:$0xff]   ;;  %v17233_v49 = vld [vmem:[%s18478_s3 + $0xb0] ss:$8 sps:$4 sm:$0xff]  }
 0x806   :  { %5245 = vmatprep.subr.bf16.mxu1 %v16957_v37  ;;  %v4128_v35 = vpop.f32.mrf.mxu0  ;;  %20695 = vst [vmem:[#allocation98_spill] sm:$0xff] %v17221_v10  ;;  %20697 = vst [vmem:[#allocation100_spill] sm:$0xff] %v17233_v49  ;;  %v17245_v36 = vld [vmem:[%s18478_s3 + $0xa4] ss:$8 sps:$4 sm:$0xff]  }
 0x807   :  { %v4169_v54 = vpop.f32.mrf.mxu1  ;;  %v16987_v12 = vadd.f32 %v4167_v4, %v4127_v14  ;;  %5205 = vmatpush1.bf16.msra.mxu0 %v16964_v0  ;;  %20699 = vst [vmem:[#allocation102_spill] sm:$0xff] %v17245_v36  ;;  %v17251_v11 = vld [vmem:[%s18478_s3 + $0x1a4] ss:$8 sps:$4 sm:$0xff]   ;;  %v17257_v4 = vld [vmem:[%s18478_s3 + $0xa0] ss:$8 sps:$4 sm:$0xff]  }
 0x808   :  { %5246 = vmatpush1.bf16.msra.mxu1 %v16970_v48  ;;  %v4129_v15 = vpop.f32.mrf.mxu0  ;;  %5206 = vmatprep.subr.bf16.mxu0 %v16975_v20  ;;  %20700 = vst [vmem:[#allocation103_spill] sm:$0xff] %v17251_v11  ;;  %20701 = vst [vmem:[#allocation104_spill] sm:$0xff] %v17257_v4  ;;  %v17264_v14 = vld [vmem:[%s18478_s3 + $0x1a0] ss:$8 sps:$4 sm:$0xff]   ;;  %v17269_v35 = vld [vmem:[%s18478_s3 + $0x94] ss:$8 sps:$4 sm:$0xff]  }
 0x809   :  { %v4170_v40 = vpop.f32.mrf.mxu1  ;;  %5247 = vmatprep.subr.bf16.mxu1 %v16985_v19  ;;  %20702 = vst [vmem:[#allocation105_spill] sm:$0xff] %v17264_v14  ;;  %20703 = vst [vmem:[#allocation106_spill] sm:$0xff] %v17269_v35  ;;  %v17275_v54 = vld [vmem:[%s18478_s3 + $0x194] ss:$8 sps:$4 sm:$0xff]   ;;  %v17281_v15 = vld [vmem:[%s18478_s3 + $0x90] ss:$8 sps:$4 sm:$0xff]  }
 0x80a   :  { %20704 = vst [vmem:[#allocation107_spill] sm:$0xff] %v17275_v54  ;;  %20705 = vst [vmem:[#allocation108_spill] sm:$0xff] %v17281_v15  ;;  %v17288_v40 = vld [vmem:[%s18478_s3 + $0x190] ss:$8 sps:$4 sm:$0xff]  }
 0x80b   :  { %5207 = vmatpush1.bf16.msra.mxu0 %v16993_v47  ;;  %20706 = vst [vmem:[#allocation109_spill] sm:$0xff] %v17288_v40 }
 0x80c   :  { %5248 = vmatpush1.bf16.msra.mxu1 %v17000_v3  ;;  %5208 = vmatprep.subr.bf16.mxu0 %v17005_v61 }
 0x80d   :  { %5249 = vmatprep.subr.bf16.mxu1 %v17011_v58 }
 0x80f   :  { %5209 = vmatpush1.bf16.msra.mxu0 %v17017_v25 }
 0x810   :  { %5250 = vmatpush1.bf16.msra.mxu1 %v17024_v32  ;;  %5210 = vmatprep.subr.bf16.mxu0 %v17029_v42 }
 0x811   :  { %5251 = vmatprep.subr.bf16.mxu1 %v17035_v63 }
 0x813   :  { %5211 = vmatpush1.bf16.msra.mxu0 %v17041_v51 }
 0x814   :  { %5252 = vmatpush1.bf16.msra.mxu1 %v17048_v22  ;;  %5212 = vmatprep.subr.bf16.mxu0 %v17053_v27 }
 0x815   :  { %5253 = vmatprep.subr.bf16.mxu1 %v17059_v52 }
 0x817   :  { %5213 = vmatpush1.bf16.msra.mxu0 %v17065_v55 }
 0x818   :  { %5254 = vmatpush1.bf16.msra.mxu1 %v17072_v45  ;;  %5214 = vmatprep.subr.bf16.mxu0 %v17077_v46 }
 0x819   :  { %5255 = vmatprep.subr.bf16.mxu1 %v17083_v13 }
 0x81b   :  { %5215 = vmatpush1.bf16.msra.mxu0 %v17089_v56 }
 0x81c   :  { %5256 = vmatpush1.bf16.msra.mxu1 %v17096_v18  ;;  %5216 = vmatprep.subr.bf16.mxu0 %v17101_v6 }
 0x81d   :  { %5257 = vmatprep.subr.bf16.mxu1 %v17107_v1 }
 0x81f   :  { %5217 = vmatpush1.bf16.msra.mxu0 %v17113_v2 }
 0x820   :  { %5258 = vmatpush1.bf16.msra.mxu1 %v17120_v29  ;;  %5218 = vmatprep.subr.bf16.mxu0 %v17125_v28 }
 0x821   :  { %5259 = vmatprep.subr.bf16.mxu1 %v17131_v38 }
 0x823   :  { %5219 = vmatpush2.bf16.msra.mxu0 %v17137_v24 }
 0x824   :  { %5260 = vmatpush2.bf16.msra.mxu1 %v17144_v60  ;;  %5220 = vmatprep.subr.bf16.mxu0 %v17149_v16 }
 0x825   :  { %5261 = vmatprep.subr.bf16.mxu1 %v17155_v44 }
 0x827   :  { %5221 = vmatpush2.bf16.msra.mxu0 %v17161_v5 }
 0x828   :  { %5262 = vmatpush2.bf16.msra.mxu1 %v17168_v9  ;;  %5222 = vmatprep.subr.bf16.mxu0 %v17173_v50 }
 0x829   :  { %5263 = vmatprep.subr.bf16.mxu1 %v17179_v34 }
 0x82b   :  { %5223 = vmatpush2.bf16.msra.mxu0 %v17185_v26 }
 0x82c   :  { %5264 = vmatpush2.bf16.msra.mxu1 %v17192_v33  ;;  %5224 = vmatprep.subr.bf16.mxu0 %v17197_v43 }
 0x82d   :  { %5265 = vmatprep.subr.bf16.mxu1 %v17203_v39 }
 0x82f   :  { %5225 = vmatpush2.bf16.msra.mxu0 %v17209_v57 }
 0x830   :  { %5266 = vmatpush2.bf16.msra.mxu1 %v17216_v23  ;;  %5226 = vmatprep.subr.bf16.mxu0 %v17221_v10 }
 0x831   :  { %5267 = vmatprep.subr.bf16.mxu1 %v17227_v17  ;;  %v17333_v17 = vld [vmem:[%s18478_s3 + $0x270] ss:$8 sps:$4 sm:$0xff]  }
 0x832   :  { %20717 = vst [vmem:[#allocation116_spill] sm:$0xff] %v17333_v17 }
 0x833   :  { %5227 = vmatpush2.bf16.msra.mxu0 %v17233_v49 }
 0x834   :  { %5268 = vmatpush2.bf16.msra.mxu1 %v17240_v21  ;;  %5228 = vmatprep.subr.bf16.mxu0 %v17245_v36  ;;  %v20716_v21 = vld [vmem:[#allocation24_spill] sm:$0xff] }
 0x835   :  { %5269 = vmatprep.subr.bf16.mxu1 %v17251_v11  ;;  %v20713_v11 = vld [vmem:[#allocation19_spill] sm:$0xff]  ;;  %v3059_v49 = vmax.f32 %v20716_v21, 0.0 }
 0x836   :  { %v2378_v36 = vmax.f32 %v20713_v11, 0.0  ;;  %v17340_v11 = vld [vmem:[%s18478_s3 + $0x370] ss:$8 sps:$4 sm:$0xff]   ;;  %v17346_v21 = vld [vmem:[%s18478_s3 + $0x264] ss:$8 sps:$4 sm:$0xff]  }
 0x837   :  { %5229 = vmatpush2.bf16.msra.mxu0 %v17257_v4  ;;  %20718 = vst [vmem:[#allocation117_spill] sm:$0xff] %v17340_v11 }
 0x838   :  { %5270 = vmatpush2.bf16.msra.mxu1 %v17264_v14  ;;  %5230 = vmatprep.subr.bf16.mxu0 %v17269_v35  ;;  %v17305_v35 = vld [vmem:[%s18478_s3 + $0x80] ss:$8 sps:$4 sm:$0xff]  }
 0x839   :  { %5271 = vmatprep.subr.bf16.mxu1 %v17275_v54  ;;  %20709 = vst [vmem:[#allocation112_spill] sm:$0xff] %v17305_v35  ;;  %v20710_v14 = vld [vmem:[#allocation2_spill] sm:$0xff] }
 0x83a   :  { %v2038_v4 = vmax.f32 %v20710_v14, 0.0  ;;  %v17313_v54 = vld [vmem:[%s18478_s3 + $0x180] ss:$8 sps:$4 sm:$0xff]   ;;  %v17325_v14 = vld [vmem:[%s18478_s3 + $0x374] ss:$8 sps:$4 sm:$0xff]  }
 0x83b   :  { %5231 = vmatpush2.bf16.msra.mxu0 %v17281_v15  ;;  %20711 = vst [vmem:[#allocation113_spill] sm:$0xff] %v17313_v54  ;;  %v17318_v15 = vld [vmem:[%s18478_s3 + $0x274] ss:$8 sps:$4 sm:$0xff]   ;;  %20714 = vst [vmem:[#allocation115_spill] sm:$0xff] %v17325_v14 }
 0x83c   :  { %5272 = vmatpush2.bf16.msra.mxu1 %v17288_v40  ;;  %5232 = vmatprep.subr.bf16.mxu0 %v17293_v30  ;;  %20712 = vst [vmem:[#allocation114_spill] sm:$0xff] %v17318_v15  ;;  %v20715_v30 = vld [vmem:[#allocation5_spill] sm:$0xff]  ;;  %v2040_v10 = vpack.c.bf16 %v2038_v4, %v2038_v4 }
 0x83d   :  { %5273 = vmatprep.subr.bf16.mxu1 %v17299_v7  ;;  %v2719_v40 = vmax.f32 %v20715_v30, 0.0  ;;  %v2380_v30 = vpack.c.bf16 %v2378_v36, %v2378_v36 }
 0x83f   :  { %5233 = vmatpush2.bf16.msra.mxu0 %v17305_v35  ;;  %v17348_v35 = vpack.c.bf16 %v2719_v40, %v2719_v40  ;;  %v17362_v40 = vld [vmem:[%s18478_s3 + $0x260] ss:$8 sps:$4 sm:$0xff]  }
 0x840   :  { %5274 = vmatpush2.bf16.msra.mxu1 %v17313_v54  ;;  %5284 = vmatprep.subr.bf16.mxu0 %v17318_v15  ;;  %v17353_v15 = vld [vmem:[%s18478_s3 + $0x364] ss:$8 sps:$4 sm:$0xff]   ;;  %v17355_v54 = vpack.c.bf16 %v3059_v49, %v3059_v49  ;;  %v17369_v49 = vld [vmem:[%s18478_s3 + $0x360] ss:$8 sps:$4 sm:$0xff]  }
 0x841   :  { %5325 = vmatprep.subr.bf16.mxu1 %v17325_v14 }
 0x842   :  { %v4206_v4 = vpop.f32.mrf.mxu0  ;;  %5235 = vmatmul.mubr.bf16.vlgmr.msra.gmra.mxu0 %v2040_v10 }
 0x843   :  { %v4247_v7 = vpop.f32.mrf.mxu1  ;;  %v4207_v36 = vadd.f32 %v4206_v4, %v16977_v53  ;;  %5276 = vmatmul.mubr.bf16.vlgmr.msra.gmra.mxu1 %v2380_v30  ;;  %5285 = vmatpush1.bf16.msra.mxu0 %v17333_v17  ;;  %v17374_v53 = vld [vmem:[%s18478_s3 + $0x254] ss:$8 sps:$4 sm:$0xff]  }
 0x844   :  { %5316 = vmatprep.mubr.bf16.mxu0 %v17348_v35  ;;  %5326 = vmatpush1.bf16.msra.mxu1 %v17340_v11  ;;  %v4208_v10 = vpop.f32.mrf.mxu0  ;;  %20719 = vst [vmem:[#allocation118_spill] sm:$0xff] %v17374_v53  ;;  %v17384_v11 = vld [vmem:[%s18478_s3 + $0x354] ss:$8 sps:$4 sm:$0xff]  }
 0x845   :  { %v4249_v14 = vpop.f32.mrf.mxu1  ;;  %v17376_v30 = vadd.f32 %v4247_v7, %v4207_v36  ;;  %5357 = vmatprep.mubr.bf16.mxu1 %v17355_v54  ;;  %v4209_v4 = vadd.f32 %v4208_v10, %v16987_v12  ;;  %5286 = vmatprep.subr.bf16.mxu0 %v17346_v21  ;;  %20720 = vst [vmem:[#allocation119_spill] sm:$0xff] %v17384_v11  ;;  %v17393_v7 = vld [vmem:[%s18478_s3 + $0x250] ss:$8 sps:$4 sm:$0xff]   ;;  %v17417_v10 = vld [vmem:[%s18478_s3 + $0x240] ss:$8 sps:$4 sm:$0xff]  }
 0x846   :  { %v4210_v17 = vpop.f32.mrf.mxu0  ;;  %5327 = vmatprep.subr.bf16.mxu1 %v17353_v15  ;;  %20721 = vst [vmem:[#allocation120_spill] sm:$0xff] %v17393_v7  ;;  %20725 = vst [vmem:[#allocation124_spill] sm:$0xff] %v17417_v10 }
 0x847   :  { %v4251_v23 = vpop.f32.mrf.mxu1  ;;  %v17387_v57 = vadd.f32 %v4249_v14, %v4209_v4  ;;  %5287 = vmatpush1.bf16.msra.mxu0 %v17362_v40  ;;  %v17405_v17 = vld [vmem:[%s18478_s3 + $0x244] ss:$8 sps:$4 sm:$0xff]   ;;  %v17424_v4 = vld [vmem:[%s18478_s3 + $0x340] ss:$8 sps:$4 sm:$0xff]  }
 0x848   :  { %5328 = vmatpush1.bf16.msra.mxu1 %v17369_v49  ;;  %v4211_v12 = vpop.f32.mrf.mxu0  ;;  %5288 = vmatprep.subr.bf16.mxu0 %v17374_v53  ;;  %v17400_v23 = vld [vmem:[%s18478_s3 + $0x350] ss:$8 sps:$4 sm:$0xff]   ;;  %20723 = vst [vmem:[#allocation122_spill] sm:$0xff] %v17405_v17  ;;  %v17411_v14 = vld [vmem:[%s18478_s3 + $0x344] ss:$8 sps:$4 sm:$0xff]   ;;  %20726 = vst [vmem:[#allocation125_spill] sm:$0xff] %v17424_v4 }
 0x849   :  { %v4252_v36 = vpop.f32.mrf.mxu1  ;;  %20722 = vst [vmem:[#allocation121_spill] sm:$0xff] %v17400_v23  ;;  %5329 = vmatprep.subr.bf16.mxu1 %v17384_v11  ;;  %20724 = vst [vmem:[#allocation123_spill] sm:$0xff] %v17411_v14  ;;  %v17429_v12 = vld [vmem:[%s18478_s3 + $0x234] ss:$8 sps:$4 sm:$0xff]   ;;  %v20775_v11 = vld [vmem:[#allocation23_spill] sm:$0xff] }
 0x84a   :  { %20727 = vst [vmem:[#allocation126_spill] sm:$0xff] %v17429_v12  ;;  %v17435_v36 = vld [vmem:[%s18478_s3 + $0x334] ss:$8 sps:$4 sm:$0xff]   ;;  %v3058_v53 = vmax.f32 %v20775_v11, 0.0 }
 0x84b   :  { %5289 = vmatpush1.bf16.msra.mxu0 %v17393_v7  ;;  %20728 = vst [vmem:[#allocation127_spill] sm:$0xff] %v17435_v36 }
 0x84c   :  { %5330 = vmatpush1.bf16.msra.mxu1 %v17400_v23  ;;  %5290 = vmatprep.subr.bf16.mxu0 %v17405_v17  ;;  %v17441_v17 = vld [vmem:[%s18478_s3 + $0x230] ss:$8 sps:$4 sm:$0xff]   ;;  %v17453_v23 = vld [vmem:[%s18478_s3 + $0x224] ss:$8 sps:$4 sm:$0xff]  }
 0x84d   :  { %5331 = vmatprep.subr.bf16.mxu1 %v17411_v14  ;;  %20729 = vst [vmem:[#allocation128_spill] sm:$0xff] %v17441_v17  ;;  %v17448_v14 = vld [vmem:[%s18478_s3 + $0x330] ss:$8 sps:$4 sm:$0xff]   ;;  %20731 = vst [vmem:[#allocation130_spill] sm:$0xff] %v17453_v23 }
 0x84e   :  { %20730 = vst [vmem:[#allocation129_spill] sm:$0xff] %v17448_v14 }
 0x84f   :  { %5291 = vmatpush1.bf16.msra.mxu0 %v17417_v10  ;;  %v17459_v10 = vld [vmem:[%s18478_s3 + $0x324] ss:$8 sps:$4 sm:$0xff]  }
 0x850   :  { %5332 = vmatpush1.bf16.msra.mxu1 %v17424_v4  ;;  %5292 = vmatprep.subr.bf16.mxu0 %v17429_v12  ;;  %20732 = vst [vmem:[#allocation131_spill] sm:$0xff] %v17459_v10  ;;  %v17465_v12 = vld [vmem:[%s18478_s3 + $0x220] ss:$8 sps:$4 sm:$0xff]   ;;  %v17477_v4 = vld [vmem:[%s18478_s3 + $0x214] ss:$8 sps:$4 sm:$0xff]  }
 0x851   :  { %5333 = vmatprep.subr.bf16.mxu1 %v17435_v36  ;;  %20733 = vst [vmem:[#allocation132_spill] sm:$0xff] %v17465_v12  ;;  %v17472_v36 = vld [vmem:[%s18478_s3 + $0x320] ss:$8 sps:$4 sm:$0xff]   ;;  %20735 = vst [vmem:[#allocation134_spill] sm:$0xff] %v17477_v4 }
 0x852   :  { %20734 = vst [vmem:[#allocation133_spill] sm:$0xff] %v17472_v36 }
 0x853   :  { %5293 = vmatpush1.bf16.msra.mxu0 %v17441_v17  ;;  %v17483_v17 = vld [vmem:[%s18478_s3 + $0x314] ss:$8 sps:$4 sm:$0xff]  }
 0x854   :  { %5334 = vmatpush1.bf16.msra.mxu1 %v17448_v14  ;;  %5294 = vmatprep.subr.bf16.mxu0 %v17453_v23  ;;  %20736 = vst [vmem:[#allocation135_spill] sm:$0xff] %v17483_v17  ;;  %v17489_v23 = vld [vmem:[%s18478_s3 + $0x210] ss:$8 sps:$4 sm:$0xff]   ;;  %v17501_v14 = vld [vmem:[%s18478_s3 + $0x204] ss:$8 sps:$4 sm:$0xff]  }
 0x855   :  { %5335 = vmatprep.subr.bf16.mxu1 %v17459_v10  ;;  %20737 = vst [vmem:[#allocation136_spill] sm:$0xff] %v17489_v23  ;;  %v17496_v10 = vld [vmem:[%s18478_s3 + $0x310] ss:$8 sps:$4 sm:$0xff]   ;;  %20739 = vst [vmem:[#allocation138_spill] sm:$0xff] %v17501_v14 }
 0x856   :  { %20738 = vst [vmem:[#allocation137_spill] sm:$0xff] %v17496_v10 }
 0x857   :  { %5295 = vmatpush1.bf16.msra.mxu0 %v17465_v12  ;;  %v17507_v12 = vld [vmem:[%s18478_s3 + $0x304] ss:$8 sps:$4 sm:$0xff]  }
 0x858   :  { %5336 = vmatpush1.bf16.msra.mxu1 %v17472_v36  ;;  %5296 = vmatprep.subr.bf16.mxu0 %v17477_v4  ;;  %20740 = vst [vmem:[#allocation139_spill] sm:$0xff] %v17507_v12  ;;  %v17513_v4 = vld [vmem:[%s18478_s3 + $0x200] ss:$8 sps:$4 sm:$0xff]   ;;  %v17525_v36 = vld [vmem:[%s18478_s3 + $0x2f4] ss:$8 sps:$4 sm:$0xff]  }
 0x859   :  { %5337 = vmatprep.subr.bf16.mxu1 %v17483_v17  ;;  %20741 = vst [vmem:[#allocation140_spill] sm:$0xff] %v17513_v4  ;;  %v17520_v17 = vld [vmem:[%s18478_s3 + $0x300] ss:$8 sps:$4 sm:$0xff]   ;;  %20743 = vst [vmem:[#allocation142_spill] sm:$0xff] %v17525_v36 }
 0x85a   :  { %20742 = vst [vmem:[#allocation141_spill] sm:$0xff] %v17520_v17 }
 0x85b   :  { %5297 = vmatpush1.bf16.msra.mxu0 %v17489_v23  ;;  %v17531_v23 = vld [vmem:[%s18478_s3 + $0x3f4] ss:$8 sps:$4 sm:$0xff]  }
 0x85c   :  { %5338 = vmatpush1.bf16.msra.mxu1 %v17496_v10  ;;  %5298 = vmatprep.subr.bf16.mxu0 %v17501_v14  ;;  %20744 = vst [vmem:[#allocation143_spill] sm:$0xff] %v17531_v23  ;;  %v17537_v14 = vld [vmem:[%s18478_s3 + $0x2f0] ss:$8 sps:$4 sm:$0xff]   ;;  %v17549_v10 = vld [vmem:[%s18478_s3 + $0x2e4] ss:$8 sps:$4 sm:$0xff]  }
 0x85d   :  { %5339 = vmatprep.subr.bf16.mxu1 %v17507_v12  ;;  %20745 = vst [vmem:[#allocation144_spill] sm:$0xff] %v17537_v14  ;;  %v17544_v12 = vld [vmem:[%s18478_s3 + $0x3f0] ss:$8 sps:$4 sm:$0xff]   ;;  %20747 = vst [vmem:[#allocation146_spill] sm:$0xff] %v17549_v10 }
 0x85e   :  { %20746 = vst [vmem:[#allocation145_spill] sm:$0xff] %v17544_v12 }
 0x85f   :  { %5299 = vmatpush1.bf16.msra.mxu0 %v17513_v4  ;;  %v17555_v4 = vld [vmem:[%s18478_s3 + $0x3e4] ss:$8 sps:$4 sm:$0xff]  }
 0x860   :  { %5340 = vmatpush1.bf16.msra.mxu1 %v17520_v17  ;;  %5300 = vmatprep.subr.bf16.mxu0 %v17525_v36  ;;  %20748 = vst [vmem:[#allocation147_spill] sm:$0xff] %v17555_v4  ;;  %v17561_v36 = vld [vmem:[%s18478_s3 + $0x2e0] ss:$8 sps:$4 sm:$0xff]   ;;  %v17573_v17 = vld [vmem:[%s18478_s3 + $0x2d4] ss:$8 sps:$4 sm:$0xff]  }
 0x861   :  { %5341 = vmatprep.subr.bf16.mxu1 %v17531_v23  ;;  %20749 = vst [vmem:[#allocation148_spill] sm:$0xff] %v17561_v36  ;;  %v17568_v23 = vld [vmem:[%s18478_s3 + $0x3e0] ss:$8 sps:$4 sm:$0xff]   ;;  %20751 = vst [vmem:[#allocation150_spill] sm:$0xff] %v17573_v17 }
 0x862   :  { %20750 = vst [vmem:[#allocation149_spill] sm:$0xff] %v17568_v23 }
 0x863   :  { %5301 = vmatpush2.bf16.msra.mxu0 %v17537_v14  ;;  %v17579_v14 = vld [vmem:[%s18478_s3 + $0x3d4] ss:$8 sps:$4 sm:$0xff]  }
 0x864   :  { %5342 = vmatpush2.bf16.msra.mxu1 %v17544_v12  ;;  %5302 = vmatprep.subr.bf16.mxu0 %v17549_v10  ;;  %20752 = vst [vmem:[#allocation151_spill] sm:$0xff] %v17579_v14  ;;  %v17585_v10 = vld [vmem:[%s18478_s3 + $0x2d0] ss:$8 sps:$4 sm:$0xff]   ;;  %v17597_v12 = vld [vmem:[%s18478_s3 + $0x2c4] ss:$8 sps:$4 sm:$0xff]  }
 0x865   :  { %5343 = vmatprep.subr.bf16.mxu1 %v17555_v4  ;;  %20753 = vst [vmem:[#allocation152_spill] sm:$0xff] %v17585_v10  ;;  %v17592_v4 = vld [vmem:[%s18478_s3 + $0x3d0] ss:$8 sps:$4 sm:$0xff]   ;;  %20755 = vst [vmem:[#allocation154_spill] sm:$0xff] %v17597_v12 }
 0x866   :  { %20754 = vst [vmem:[#allocation153_spill] sm:$0xff] %v17592_v4 }
 0x867   :  { %5303 = vmatpush2.bf16.msra.mxu0 %v17561_v36  ;;  %v17603_v36 = vld [vmem:[%s18478_s3 + $0x3c4] ss:$8 sps:$4 sm:$0xff]  }
 0x868   :  { %5344 = vmatpush2.bf16.msra.mxu1 %v17568_v23  ;;  %5304 = vmatprep.subr.bf16.mxu0 %v17573_v17  ;;  %20756 = vst [vmem:[#allocation155_spill] sm:$0xff] %v17603_v36  ;;  %v17609_v17 = vld [vmem:[%s18478_s3 + $0x2c0] ss:$8 sps:$4 sm:$0xff]   ;;  %v17621_v23 = vld [vmem:[%s18478_s3 + $0x2b4] ss:$8 sps:$4 sm:$0xff]  }
 0x869   :  { %5345 = vmatprep.subr.bf16.mxu1 %v17579_v14  ;;  %20757 = vst [vmem:[#allocation156_spill] sm:$0xff] %v17609_v17  ;;  %v17616_v14 = vld [vmem:[%s18478_s3 + $0x3c0] ss:$8 sps:$4 sm:$0xff]   ;;  %20759 = vst [vmem:[#allocation158_spill] sm:$0xff] %v17621_v23 }
 0x86a   :  { %20758 = vst [vmem:[#allocation157_spill] sm:$0xff] %v17616_v14 }
 0x86b   :  { %5305 = vmatpush2.bf16.msra.mxu0 %v17585_v10  ;;  %v17627_v10 = vld [vmem:[%s18478_s3 + $0x3b4] ss:$8 sps:$4 sm:$0xff]  }
 0x86c   :  { %5346 = vmatpush2.bf16.msra.mxu1 %v17592_v4  ;;  %5306 = vmatprep.subr.bf16.mxu0 %v17597_v12  ;;  %20760 = vst [vmem:[#allocation159_spill] sm:$0xff] %v17627_v10  ;;  %v17633_v12 = vld [vmem:[%s18478_s3 + $0x2b0] ss:$8 sps:$4 sm:$0xff]   ;;  %v17645_v4 = vld [vmem:[%s18478_s3 + $0x2a4] ss:$8 sps:$4 sm:$0xff]  }
 0x86d   :  { %5347 = vmatprep.subr.bf16.mxu1 %v17603_v36  ;;  %20761 = vst [vmem:[#allocation160_spill] sm:$0xff] %v17633_v12  ;;  %v17640_v36 = vld [vmem:[%s18478_s3 + $0x3b0] ss:$8 sps:$4 sm:$0xff]   ;;  %20763 = vst [vmem:[#allocation162_spill] sm:$0xff] %v17645_v4 }
 0x86e   :  { %20762 = vst [vmem:[#allocation161_spill] sm:$0xff] %v17640_v36 }
 0x86f   :  { %5307 = vmatpush2.bf16.msra.mxu0 %v17609_v17  ;;  %v17651_v17 = vld [vmem:[%s18478_s3 + $0x3a4] ss:$8 sps:$4 sm:$0xff]  }
 0x870   :  { %5348 = vmatpush2.bf16.msra.mxu1 %v17616_v14  ;;  %5308 = vmatprep.subr.bf16.mxu0 %v17621_v23  ;;  %20764 = vst [vmem:[#allocation163_spill] sm:$0xff] %v17651_v17  ;;  %v17657_v23 = vld [vmem:[%s18478_s3 + $0x2a0] ss:$8 sps:$4 sm:$0xff]   ;;  %v17669_v14 = vld [vmem:[%s18478_s3 + $0x294] ss:$8 sps:$4 sm:$0xff]  }
 0x871   :  { %5349 = vmatprep.subr.bf16.mxu1 %v17627_v10  ;;  %20765 = vst [vmem:[#allocation164_spill] sm:$0xff] %v17657_v23  ;;  %v17664_v10 = vld [vmem:[%s18478_s3 + $0x3a0] ss:$8 sps:$4 sm:$0xff]   ;;  %20767 = vst [vmem:[#allocation166_spill] sm:$0xff] %v17669_v14 }
 0x872   :  { %20766 = vst [vmem:[#allocation165_spill] sm:$0xff] %v17664_v10 }
 0x873   :  { %5309 = vmatpush2.bf16.msra.mxu0 %v17633_v12  ;;  %v17675_v12 = vld [vmem:[%s18478_s3 + $0x394] ss:$8 sps:$4 sm:$0xff]  }
 0x874   :  { %5350 = vmatpush2.bf16.msra.mxu1 %v17640_v36  ;;  %5310 = vmatprep.subr.bf16.mxu0 %v17645_v4  ;;  %20768 = vst [vmem:[#allocation167_spill] sm:$0xff] %v17675_v12  ;;  %v17681_v4 = vld [vmem:[%s18478_s3 + $0x290] ss:$8 sps:$4 sm:$0xff]   ;;  %v17693_v36 = vld [vmem:[%s18478_s3 + $0x284] ss:$8 sps:$4 sm:$0xff]  }
 0x875   :  { %5351 = vmatprep.subr.bf16.mxu1 %v17651_v17  ;;  %20769 = vst [vmem:[#allocation168_spill] sm:$0xff] %v17681_v4  ;;  %v17688_v17 = vld [vmem:[%s18478_s3 + $0x390] ss:$8 sps:$4 sm:$0xff]   ;;  %20771 = vst [vmem:[#allocation170_spill] sm:$0xff] %v17693_v36 }
 0x876   :  { %20770 = vst [vmem:[#allocation169_spill] sm:$0xff] %v17688_v17 }
 0x877   :  { %5311 = vmatpush2.bf16.msra.mxu0 %v17657_v23  ;;  %v17699_v23 = vld [vmem:[%s18478_s3 + $0x384] ss:$8 sps:$4 sm:$0xff]  }
 0x878   :  { %5352 = vmatpush2.bf16.msra.mxu1 %v17664_v10  ;;  %5312 = vmatprep.subr.bf16.mxu0 %v17669_v14  ;;  %v17705_v14 = vld [vmem:[%s18478_s3 + $0x280] ss:$8 sps:$4 sm:$0xff]   ;;  %v20773_v10 = vld [vmem:[#allocation4_spill] sm:$0xff] }
 0x879   :  { %5353 = vmatprep.subr.bf16.mxu1 %v17675_v12  ;;  %20772 = vst [vmem:[#allocation171_spill] sm:$0xff] %v17705_v14  ;;  %v2718_v7 = vmax.f32 %v20773_v10, 0.0  ;;  %v17713_v12 = vld [vmem:[%s18478_s3 + $0x380] ss:$8 sps:$4 sm:$0xff]   ;;  %v17722_v10 = vpack.c.bf16 %v3058_v53, %v3058_v53 }
 0x87a   :  { %20774 = vst [vmem:[#allocation172_spill] sm:$0xff] %v17713_v12 }
 0x87b   :  { %5313 = vmatpush2.bf16.msra.mxu0 %v17681_v4  ;;  %v17718_v4 = vpack.c.bf16 %v2718_v7, %v2718_v7 }
 0x87c   :  { %5354 = vmatpush2.bf16.msra.mxu1 %v17688_v17  ;;  %5314 = vmatprep.subr.bf16.mxu0 %v17693_v36 }
 0x87d   :  { %5355 = vmatprep.subr.bf16.mxu1 %v17699_v23 }
 0x87f   :  { %5315 = vmatpush2.bf16.msra.mxu0 %v17705_v14 }
 0x880   :  { %5356 = vmatpush2.bf16.msra.mxu1 %v17713_v12  ;;  %5370 = vmatprep.subr.bf16.mxu0 %v16926_v62 }
 0x881   :  { %5411 = vmatprep.subr.bf16.mxu1 %v16931_v59 }
 0x882   :  { %v4288_v36 = vpop.f32.mrf.mxu0  ;;  %5317 = vmatmul.mubr.bf16.vlgmr.msra.gmra.mxu0 %v17718_v4 }
 0x883   :  { %v4329_v17 = vpop.f32.mrf.mxu1  ;;  %v4289_v11 = vadd.f32 %v4288_v36, %v17376_v30  ;;  %5358 = vmatmul.mubr.bf16.vlgmr.msra.gmra.mxu1 %v17722_v10  ;;  %5371 = vmatpush1.bf16.msra.mxu0 %v16940_v31 }
 0x884   :  { %5402 = vmatprep.mubr.bf16.mxu0 %v17348_v35  ;;  %5412 = vmatpush1.bf16.msra.mxu1 %v16946_v41  ;;  %v4290_v7 = vpop.f32.mrf.mxu0 }
 0x885   :  { %v4331_v62 = vpop.f32.mrf.mxu1  ;;  %v17731_v53 = vadd.f32 %v4329_v17, %v4289_v11  ;;  %5443 = vmatprep.mubr.bf16.mxu1 %v17355_v54  ;;  %v4291_v59 = vadd.f32 %v4290_v7, %v17387_v57  ;;  %5372 = vmatprep.subr.bf16.mxu0 %v16952_v8  ;;  %v20794_v57 = vld [vmem:[#allocation112_spill] sm:$0xff]  ;;  %v20795_v54 = vld [vmem:[#allocation113_spill] sm:$0xff]  ;;  %v20796_v17 = vld [vmem:[#allocation114_spill] sm:$0xff] }
 0x886   :  { %v4292_v12 = vpop.f32.mrf.mxu0  ;;  %5413 = vmatprep.subr.bf16.mxu1 %v16957_v37 }
 0x887   :  { %v4333_v30 = vpop.f32.mrf.mxu1  ;;  %v17737_v36 = vadd.f32 %v4331_v62, %v4291_v59  ;;  %5373 = vmatpush1.bf16.msra.mxu0 %v16964_v0  ;;  %v20776_v62 = vld [vmem:[#allocation96_spill] sm:$0xff]  ;;  %v20777_v59 = vld [vmem:[#allocation97_spill] sm:$0xff]  ;;  %v20797_v12 = vld [vmem:[#allocation115_spill] sm:$0xff] }
 0x888   :  { %5414 = vmatpush1.bf16.msra.mxu1 %v16970_v48  ;;  %v4293_v35 = vpop.f32.mrf.mxu0  ;;  %5374 = vmatprep.subr.bf16.mxu0 %v16975_v20 }
 0x889   :  { %v4334_v41 = vpop.f32.mrf.mxu1  ;;  %5415 = vmatprep.subr.bf16.mxu1 %v16985_v19 }
 0x88a   :  { %v20778_v41 = vld [vmem:[#allocation98_spill] sm:$0xff] }
 0x88b   :  { %5375 = vmatpush1.bf16.msra.mxu0 %v16993_v47 }
 0x88c   :  { %5416 = vmatpush1.bf16.msra.mxu1 %v17000_v3  ;;  %5376 = vmatprep.subr.bf16.mxu0 %v17005_v61 }
 0x88d   :  { %5417 = vmatprep.subr.bf16.mxu1 %v17011_v58 }
 0x88f   :  { %5377 = vmatpush1.bf16.msra.mxu0 %v17017_v25 }
 0x890   :  { %5418 = vmatpush1.bf16.msra.mxu1 %v17024_v32  ;;  %5378 = vmatprep.subr.bf16.mxu0 %v17029_v42 }
 0x891   :  { %5419 = vmatprep.subr.bf16.mxu1 %v17035_v63 }
 0x893   :  { %5379 = vmatpush1.bf16.msra.mxu0 %v17041_v51 }
 0x894   :  { %5420 = vmatpush1.bf16.msra.mxu1 %v17048_v22  ;;  %5380 = vmatprep.subr.bf16.mxu0 %v17053_v27 }
 0x895   :  { %5421 = vmatprep.subr.bf16.mxu1 %v17059_v52 }
 0x897   :  { %5381 = vmatpush1.bf16.msra.mxu0 %v17065_v55 }
 0x898   :  { %5422 = vmatpush1.bf16.msra.mxu1 %v17072_v45  ;;  %5382 = vmatprep.subr.bf16.mxu0 %v17077_v46 }
 0x899   :  { %5423 = vmatprep.subr.bf16.mxu1 %v17083_v13 }
 0x89b   :  { %5383 = vmatpush1.bf16.msra.mxu0 %v17089_v56 }
 0x89c   :  { %5424 = vmatpush1.bf16.msra.mxu1 %v17096_v18  ;;  %5384 = vmatprep.subr.bf16.mxu0 %v17101_v6 }
 0x89d   :  { %5425 = vmatprep.subr.bf16.mxu1 %v17107_v1  ;;  %v20779_v1 = vld [vmem:[#allocation99_spill] sm:$0xff] }
 0x89f   :  { %5385 = vmatpush1.bf16.msra.mxu0 %v17113_v2  ;;  %v20780_v2 = vld [vmem:[#allocation100_spill] sm:$0xff] }
 0x8a0   :  { %5426 = vmatpush1.bf16.msra.mxu1 %v17120_v29  ;;  %5386 = vmatprep.subr.bf16.mxu0 %v17125_v28  ;;  %v20781_v29 = vld [vmem:[#allocation101_spill] sm:$0xff]  ;;  %v20782_v28 = vld [vmem:[#allocation102_spill] sm:$0xff] }
 0x8a1   :  { %5427 = vmatprep.subr.bf16.mxu1 %v17131_v38  ;;  %v20783_v38 = vld [vmem:[#allocation103_spill] sm:$0xff] }
 0x8a3   :  { %5387 = vmatpush2.bf16.msra.mxu0 %v17137_v24  ;;  %v20784_v24 = vld [vmem:[#allocation104_spill] sm:$0xff] }
 0x8a4   :  { %5428 = vmatpush2.bf16.msra.mxu1 %v17144_v60  ;;  %5388 = vmatprep.subr.bf16.mxu0 %v17149_v16  ;;  %v20785_v60 = vld [vmem:[#allocation105_spill] sm:$0xff]  ;;  %v20786_v16 = vld [vmem:[#allocation106_spill] sm:$0xff] }
 0x8a5   :  { %5429 = vmatprep.subr.bf16.mxu1 %v17155_v44  ;;  %v20787_v44 = vld [vmem:[#allocation107_spill] sm:$0xff] }
 0x8a7   :  { %5389 = vmatpush2.bf16.msra.mxu0 %v17161_v5  ;;  %v20788_v5 = vld [vmem:[#allocation108_spill] sm:$0xff] }
 0x8a8   :  { %5430 = vmatpush2.bf16.msra.mxu1 %v17168_v9  ;;  %5390 = vmatprep.subr.bf16.mxu0 %v17173_v50  ;;  %v20789_v9 = vld [vmem:[#allocation109_spill] sm:$0xff]  ;;  %v20790_v50 = vld [vmem:[#allocation110_spill] sm:$0xff] }
 0x8a9   :  { %5431 = vmatprep.subr.bf16.mxu1 %v17179_v34  ;;  %v20791_v34 = vld [vmem:[#allocation111_spill] sm:$0xff] }
 0x8ab   :  { %5391 = vmatpush2.bf16.msra.mxu0 %v17185_v26  ;;  %v20792_v26 = vld [vmem:[#allocation7_spill] sm:$0xff] }
 0x8ac   :  { %5432 = vmatpush2.bf16.msra.mxu1 %v17192_v33  ;;  %5392 = vmatprep.subr.bf16.mxu0 %v17197_v43  ;;  %v3399_v33 = vmax.f32 %v20792_v26, 0.0  ;;  %v20793_v43 = vld [vmem:[#allocation28_spill] sm:$0xff]  ;;  %v20808_v26 = vld [vmem:[#allocation125_spill] sm:$0xff] }
 0x8ad   :  { %5433 = vmatprep.subr.bf16.mxu1 %v17203_v39  ;;  %v3739_v39 = vmax.f32 %v20793_v43, 0.0  ;;  %v20810_v43 = vld [vmem:[#allocation127_spill] sm:$0xff] }
 0x8ae   :  { %v17801_v11 = vpack.c.bf16 %v3399_v33, %v3399_v33  ;;  %v20809_v33 = vld [vmem:[#allocation126_spill] sm:$0xff] }
 0x8af   :  { %5393 = vmatpush2.bf16.msra.mxu0 %v20776_v62  ;;  %v17804_v35 = vpack.c.bf16 %v3739_v39, %v3739_v39  ;;  %v20811_v39 = vld [vmem:[#allocation128_spill] sm:$0xff] }
 0x8b0   :  { %5434 = vmatpush2.bf16.msra.mxu1 %v20777_v59  ;;  %5394 = vmatprep.subr.bf16.mxu0 %v20778_v41  ;;  %v20798_v59 = vld [vmem:[#allocation116_spill] sm:$0xff]  ;;  %v20799_v41 = vld [vmem:[#allocation117_spill] sm:$0xff] }
 0x8b1   :  { %5435 = vmatprep.subr.bf16.mxu1 %v20779_v1 }
 0x8b3   :  { %5395 = vmatpush2.bf16.msra.mxu0 %v20780_v2 }
 0x8b4   :  { %5436 = vmatpush2.bf16.msra.mxu1 %v20781_v29  ;;  %5396 = vmatprep.subr.bf16.mxu0 %v20782_v28 }
 0x8b5   :  { %5437 = vmatprep.subr.bf16.mxu1 %v20783_v38 }
 0x8b7   :  { %5397 = vmatpush2.bf16.msra.mxu0 %v20784_v24 }
 0x8b8   :  { %5438 = vmatpush2.bf16.msra.mxu1 %v20785_v60  ;;  %5398 = vmatprep.subr.bf16.mxu0 %v20786_v16  ;;  %v20801_v60 = vld [vmem:[#allocation118_spill] sm:$0xff]  ;;  %v20802_v16 = vld [vmem:[#allocation119_spill] sm:$0xff] }
 0x8b9   :  { %5439 = vmatprep.subr.bf16.mxu1 %v20787_v44  ;;  %v20803_v44 = vld [vmem:[#allocation120_spill] sm:$0xff] }
 0x8bb   :  { %5399 = vmatpush2.bf16.msra.mxu0 %v20788_v5  ;;  %v20805_v5 = vld [vmem:[#allocation122_spill] sm:$0xff] }
 0x8bc   :  { %5440 = vmatpush2.bf16.msra.mxu1 %v20789_v9  ;;  %5400 = vmatprep.subr.bf16.mxu0 %v20790_v50  ;;  %v20806_v9 = vld [vmem:[#allocation123_spill] sm:$0xff]  ;;  %v20807_v50 = vld [vmem:[#allocation124_spill] sm:$0xff] }
 0x8bd   :  { %5441 = vmatprep.subr.bf16.mxu1 %v20791_v34 }
 0x8bf   :  { %5401 = vmatpush2.bf16.msra.mxu0 %v20794_v57  ;;  %v20812_v57 = vld [vmem:[#allocation129_spill] sm:$0xff] }
 0x8c0   :  { %5442 = vmatpush2.bf16.msra.mxu1 %v20795_v54  ;;  %5452 = vmatprep.subr.bf16.mxu0 %v20796_v17 }
 0x8c1   :  { %5493 = vmatprep.subr.bf16.mxu1 %v20797_v12 }
 0x8c2   :  { %v4370_v7 = vpop.f32.mrf.mxu0  ;;  %5403 = vmatmul.mubr.bf16.vlgmr.msra.gmra.mxu0 %v17718_v4 }
 0x8c3   :  { %v4411_v30 = vpop.f32.mrf.mxu1  ;;  %v4371_v62 = vadd.f32 %v4370_v7, %v17731_v53  ;;  %5444 = vmatmul.mubr.bf16.vlgmr.msra.gmra.mxu1 %v17722_v10  ;;  %5453 = vmatpush1.bf16.msra.mxu0 %v20798_v59  ;;  %v20813_v7 = vld [vmem:[#allocation130_spill] sm:$0xff] }
 0x8c4   :  { %5484 = vmatprep.mubr.bf16.mxu0 %v17801_v11  ;;  %5494 = vmatpush1.bf16.msra.mxu1 %v20799_v41  ;;  %v4372_v1 = vpop.f32.mrf.mxu0 }
 0x8c5   :  { %v4413_v2 = vpop.f32.mrf.mxu1  ;;  %v17811_v29 = vadd.f32 %v4411_v30, %v4371_v62  ;;  %5525 = vmatprep.mubr.bf16.mxu1 %v17804_v35  ;;  %v4373_v4 = vadd.f32 %v4372_v1, %v17737_v36  ;;  %5454 = vmatprep.subr.bf16.mxu0 %v17346_v21  ;;  %v20804_v36 = vld [vmem:[#allocation121_spill] sm:$0xff]  ;;  %v20814_v30 = vld [vmem:[#allocation131_spill] sm:$0xff]  ;;  %v20815_v62 = vld [vmem:[#allocation132_spill] sm:$0xff] }
 0x8c6   :  { %v4374_v28 = vpop.f32.mrf.mxu0  ;;  %5495 = vmatprep.subr.bf16.mxu1 %v17353_v15  ;;  %v20816_v1 = vld [vmem:[#allocation133_spill] sm:$0xff] }
 0x8c7   :  { %20800 = vst [vmem:[#allocation173_spill] sm:$0xff] %v17811_v29  ;;  %v4415_v53 = vpop.f32.mrf.mxu1  ;;  %v17817_v10 = vadd.f32 %v4413_v2, %v4373_v4  ;;  %5455 = vmatpush1.bf16.msra.mxu0 %v17362_v40  ;;  %v20817_v2 = vld [vmem:[#allocation134_spill] sm:$0xff]  ;;  %v20818_v4 = vld [vmem:[#allocation135_spill] sm:$0xff]  ;;  %v20819_v28 = vld [vmem:[#allocation136_spill] sm:$0xff] }
 0x8c8   :  { %5496 = vmatpush1.bf16.msra.mxu1 %v17369_v49  ;;  %v4375_v38 = vpop.f32.mrf.mxu0  ;;  %5456 = vmatprep.subr.bf16.mxu0 %v20801_v60  ;;  %v20820_v53 = vld [vmem:[#allocation137_spill] sm:$0xff]  ;;  %v20823_v29 = vld [vmem:[#allocation140_spill] sm:$0xff] }
 0x8c9   :  { %v4416_v24 = vpop.f32.mrf.mxu1  ;;  %5497 = vmatprep.subr.bf16.mxu1 %v20802_v16  ;;  %v20821_v38 = vld [vmem:[#allocation138_spill] sm:$0xff] }
 0x8ca   :  { %v20822_v24 = vld [vmem:[#allocation139_spill] sm:$0xff] }
 0x8cb   :  { %5457 = vmatpush1.bf16.msra.mxu0 %v20803_v44 }
 0x8cc   :  { %5498 = vmatpush1.bf16.msra.mxu1 %v20804_v36  ;;  %5458 = vmatprep.subr.bf16.mxu0 %v20805_v5 }
 0x8cd   :  { %5499 = vmatprep.subr.bf16.mxu1 %v20806_v9 }
 0x8cf   :  { %5459 = vmatpush1.bf16.msra.mxu0 %v20807_v50 }
 0x8d0   :  { %5500 = vmatpush1.bf16.msra.mxu1 %v20808_v26  ;;  %5460 = vmatprep.subr.bf16.mxu0 %v20809_v33 }
 0x8d1   :  { %5501 = vmatprep.subr.bf16.mxu1 %v20810_v43 }
 0x8d3   :  { %5461 = vmatpush1.bf16.msra.mxu0 %v20811_v39 }
 0x8d4   :  { %5502 = vmatpush1.bf16.msra.mxu1 %v20812_v57  ;;  %5462 = vmatprep.subr.bf16.mxu0 %v20813_v7  ;;  %v20824_v7 = vld [vmem:[#allocation141_spill] sm:$0xff] }
 0x8d5   :  { %5503 = vmatprep.subr.bf16.mxu1 %v20814_v30  ;;  %v20825_v30 = vld [vmem:[#allocation142_spill] sm:$0xff]  ;;  %v20853_v57 = vld [vmem:[#allocation169_spill] sm:$0xff] }
 0x8d7   :  { %5463 = vmatpush1.bf16.msra.mxu0 %v20815_v62  ;;  %v20826_v62 = vld [vmem:[#allocation143_spill] sm:$0xff] }
 0x8d8   :  { %5504 = vmatpush1.bf16.msra.mxu1 %v20816_v1  ;;  %5464 = vmatprep.subr.bf16.mxu0 %v20817_v2  ;;  %v20827_v1 = vld [vmem:[#allocation144_spill] sm:$0xff]  ;;  %v20828_v2 = vld [vmem:[#allocation145_spill] sm:$0xff] }
 0x8d9   :  { %5505 = vmatprep.subr.bf16.mxu1 %v20818_v4  ;;  %v20829_v4 = vld [vmem:[#allocation146_spill] sm:$0xff] }
 0x8db   :  { %5465 = vmatpush1.bf16.msra.mxu0 %v20819_v28  ;;  %v20830_v28 = vld [vmem:[#allocation147_spill] sm:$0xff] }
 0x8dc   :  { %5506 = vmatpush1.bf16.msra.mxu1 %v20820_v53  ;;  %5466 = vmatprep.subr.bf16.mxu0 %v20821_v38  ;;  %v20831_v53 = vld [vmem:[#allocation148_spill] sm:$0xff]  ;;  %v20832_v38 = vld [vmem:[#allocation149_spill] sm:$0xff] }
 0x8dd   :  { %5507 = vmatprep.subr.bf16.mxu1 %v20822_v24  ;;  %v20833_v24 = vld [vmem:[#allocation150_spill] sm:$0xff] }
 0x8df   :  { %5467 = vmatpush1.bf16.msra.mxu0 %v20823_v29  ;;  %v20834_v29 = vld [vmem:[#allocation151_spill] sm:$0xff] }
 0x8e0   :  { %5508 = vmatpush1.bf16.msra.mxu1 %v20824_v7  ;;  %5468 = vmatprep.subr.bf16.mxu0 %v20825_v30  ;;  %v20835_v7 = vld [vmem:[#allocation152_spill] sm:$0xff]  ;;  %v20836_v30 = vld [vmem:[#allocation153_spill] sm:$0xff] }
 0x8e1   :  { %5509 = vmatprep.subr.bf16.mxu1 %v20826_v62  ;;  %v20837_v62 = vld [vmem:[#allocation154_spill] sm:$0xff] }
 0x8e3   :  { %5469 = vmatpush2.bf16.msra.mxu0 %v20827_v1  ;;  %v20838_v1 = vld [vmem:[#allocation155_spill] sm:$0xff] }
 0x8e4   :  { %5510 = vmatpush2.bf16.msra.mxu1 %v20828_v2  ;;  %5470 = vmatprep.subr.bf16.mxu0 %v20829_v4  ;;  %v20839_v2 = vld [vmem:[#allocation156_spill] sm:$0xff]  ;;  %v20840_v4 = vld [vmem:[#allocation157_spill] sm:$0xff] }
 0x8e5   :  { %5511 = vmatprep.subr.bf16.mxu1 %v20830_v28  ;;  %v20841_v28 = vld [vmem:[#allocation158_spill] sm:$0xff] }
 0x8e7   :  { %5471 = vmatpush2.bf16.msra.mxu0 %v20831_v53  ;;  %v20842_v53 = vld [vmem:[#allocation159_spill] sm:$0xff] }
 0x8e8   :  { %5512 = vmatpush2.bf16.msra.mxu1 %v20832_v38  ;;  %5472 = vmatprep.subr.bf16.mxu0 %v20833_v24  ;;  %v20843_v38 = vld [vmem:[#allocation160_spill] sm:$0xff]  ;;  %v20844_v24 = vld [vmem:[#allocation161_spill] sm:$0xff] }
 0x8e9   :  { %5513 = vmatprep.subr.bf16.mxu1 %v20834_v29  ;;  %v20845_v29 = vld [vmem:[#allocation162_spill] sm:$0xff] }
 0x8eb   :  { %5473 = vmatpush2.bf16.msra.mxu0 %v20835_v7  ;;  %v20846_v7 = vld [vmem:[#allocation163_spill] sm:$0xff] }
 0x8ec   :  { %5514 = vmatpush2.bf16.msra.mxu1 %v20836_v30  ;;  %5474 = vmatprep.subr.bf16.mxu0 %v20837_v62  ;;  %v20847_v30 = vld [vmem:[#allocation164_spill] sm:$0xff]  ;;  %v20848_v62 = vld [vmem:[#allocation165_spill] sm:$0xff] }
 0x8ed   :  { %5515 = vmatprep.subr.bf16.mxu1 %v20838_v1  ;;  %v20849_v1 = vld [vmem:[#allocation166_spill] sm:$0xff] }
 0x8ef   :  { %5475 = vmatpush2.bf16.msra.mxu0 %v20839_v2  ;;  %v20850_v2 = vld [vmem:[#allocation167_spill] sm:$0xff] }
 0x8f0   :  { %5516 = vmatpush2.bf16.msra.mxu1 %v20840_v4  ;;  %5476 = vmatprep.subr.bf16.mxu0 %v20841_v28  ;;  %v20851_v4 = vld [vmem:[#allocation168_spill] sm:$0xff]  ;;  %v20852_v28 = vld [vmem:[#allocation6_spill] sm:$0xff] }
 0x8f1   :  { %5517 = vmatprep.subr.bf16.mxu1 %v20842_v53  ;;  %v3398_v53 = vmax.f32 %v20852_v28, 0.0  ;;  %v20857_v28 = vld [vmem:[#allocation172_spill] sm:$0xff] }
 0x8f3   :  { %5477 = vmatpush2.bf16.msra.mxu0 %v20843_v38  ;;  %v20854_v38 = vld [vmem:[#allocation170_spill] sm:$0xff] }
 0x8f4   :  { %5518 = vmatpush2.bf16.msra.mxu1 %v20844_v24  ;;  %5478 = vmatprep.subr.bf16.mxu0 %v20845_v29  ;;  %v20855_v29 = vld [vmem:[#allocation27_spill] sm:$0xff]  ;;  %v20860_v24 = vld [vmem:[#allocation77_spill] sm:$0xff] }
 0x8f5   :  { %5519 = vmatprep.subr.bf16.mxu1 %v20846_v7  ;;  %v4550_v7 = vld [vmem:[%s18479_s4] sm:$0x3] }
 0x8f6   :  { %v17892_v39 = vrot.slane %v4550_v7, %v20860_v24 }
 0x8f7   :  { %5479 = vmatpush2.bf16.msra.mxu0 %v20847_v30  ;;  %v3738_v30 = vmax.f32 %v20855_v29, 0.0 }
 0x8f8   :  { %5520 = vmatpush2.bf16.msra.mxu1 %v20848_v62  ;;  %5480 = vmatprep.subr.bf16.mxu0 %v20849_v1  ;;  %v20856_v1 = vld [vmem:[#allocation76_spill] sm:$0xff]  ;;  %v20859_v62 = vld [vmem:[#allocation94_spill] sm:$0xff] }
 0x8f9   :  { %5521 = vmatprep.subr.bf16.mxu1 %v20850_v2  ;;  %v17882_v2 = vrot.slane %v4550_v7, %v20856_v1 }
 0x8fb   :  { %5481 = vmatpush2.bf16.msra.mxu0 %v20851_v4  ;;  %v17884_v4 = vpack.c.bf16 %v3398_v53, %v3398_v53 }
 0x8fc   :  { %5522 = vmatpush2.bf16.msra.mxu1 %v20853_v57  ;;  %5482 = vmatprep.subr.bf16.mxu0 %v20854_v38  ;;  %v20858_v57 = vld [vmem:[#allocation93_spill] sm:$0xff]  ;;  %v17888_v38 = vpack.c.bf16 %v3738_v30, %v3738_v30 }
 0x8fd   :  { %5523 = vmatprep.subr.bf16.mxu1 %v17699_v23 }
 0x8ff   :  { %5483 = vmatpush2.bf16.msra.mxu0 %v17705_v14 }
 0x900   :  { %5524 = vmatpush2.bf16.msra.mxu1 %v20857_v28  ;;  %5538 = vmatprep.subr.bf16.mxu0 %v20858_v57  ;;  %v20861_v57 = vld [vmem:[#allocation95_spill] sm:$0xff] }
 0x901   :  { %5579 = vmatprep.subr.bf16.mxu1 %v20859_v62 }
 0x902   :  { %v5236_v29 = vpop.f32.mrf.mxu0  ;;  %5485 = vmatmul.mubr.bf16.vlgmr.msra.gmra.mxu0 %v17884_v4 }
 0x903   :  { %v5237_v14 = vadd.f32 %v5236_v29, %v17882_v2  ;;  %v5277_v1 = vpop.f32.mrf.mxu1  ;;  %5526 = vmatmul.mubr.bf16.vlgmr.msra.gmra.mxu1 %v17888_v38  ;;  %5539 = vmatpush1.bf16.msra.mxu0 %v16940_v31 }
 0x904   :  { %5570 = vmatprep.mubr.bf16.mxu0 %v17801_v11  ;;  %5580 = vmatpush1.bf16.msra.mxu1 %v20861_v57  ;;  %v5238_v30 = vpop.f32.mrf.mxu0  ;;  %v9203_v57 = vld [vmem:[%s18478_s3 + $0x94] ss:$8 sps:$4 sm:$0xff]  }
 0x905   :  { %v17900_v53 = vadd.f32 %v5277_v1, %v5237_v14  ;;  %5611 = vmatprep.mubr.bf16.mxu1 %v17804_v35  ;;  %v5239_v7 = vadd.f32 %v5238_v30, %v17892_v39  ;;  %v5279_v62 = vpop.f32.mrf.mxu1  ;;  %5540 = vmatprep.subr.bf16.mxu0 %v16952_v8  ;;  %v9176_v8 = vld [vmem:[%s18478_s3 + $0x104] ss:$8 sps:$4 sm:$0xff]   ;;  %v9201_v35 = vld [vmem:[%s18478_s3 + $0xa0] ss:$8 sps:$4 sm:$0xff]   ;;  %v9204_v30 = vld [vmem:[%s18478_s3 + $0x194] ss:$8 sps:$4 sm:$0xff]  }
 0x906   :  { %v5240_v29 = vpop.f32.mrf.mxu0  ;;  %5581 = vmatprep.subr.bf16.mxu1 %v16957_v37  ;;  %v9177_v37 = vld [vmem:[%s18478_s3] ss:$8 sps:$4 sm:$0xff]  }
 0x907   :  { %v17906_v24 = vadd.f32 %v5279_v62, %v5239_v7  ;;  %v5281_v31 = vpop.f32.mrf.mxu1  ;;  %5541 = vmatpush1.bf16.msra.mxu0 %v16964_v0  ;;  %v9178_v0 = vld [vmem:[%s18478_s3 + $0x100] ss:$8 sps:$4 sm:$0xff]   ;;  %v9205_v7 = vld [vmem:[%s18478_s3 + $0x90] ss:$8 sps:$4 sm:$0xff]   ;;  %v9207_v29 = vld [vmem:[%s18478_s3 + $0x84] ss:$8 sps:$4 sm:$0xff]  }
 0x908   :  { %5582 = vmatpush1.bf16.msra.mxu1 %v16970_v48  ;;  %v5241_v11 = vpop.f32.mrf.mxu0  ;;  %5542 = vmatprep.subr.bf16.mxu0 %v16975_v20  ;;  %v9179_v48 = vld [vmem:[%s18478_s3 + $0xf4] ss:$8 sps:$4 sm:$0xff]   ;;  %v9202_v1 = vld [vmem:[%s18478_s3 + $0x1a0] ss:$8 sps:$4 sm:$0xff]   ;;  %v9206_v62 = vld [vmem:[%s18478_s3 + $0x190] ss:$8 sps:$4 sm:$0xff]  }
 0x909   :  { %v5282_v14 = vpop.f32.mrf.mxu1  ;;  %5583 = vmatprep.subr.bf16.mxu1 %v16985_v19  ;;  %v9180_v20 = vld [vmem:[%s18478_s3 + $0x1f4] ss:$8 sps:$4 sm:$0xff]   ;;  %v9181_v19 = vld [vmem:[%s18478_s3 + $0xf0] ss:$8 sps:$4 sm:$0xff]  }
 0x90a   :  { %v20862_v31 = vld [vmem:[#allocation92_spill] sm:$0xff]  ;;  %v4419_v14 = vmax.f32 %v17817_v10, 0.0 }
 0x90b   :  { %5543 = vmatpush1.bf16.msra.mxu0 %v16993_v47  ;;  %v9182_v47 = vld [vmem:[%s18478_s3 + $0x1f0] ss:$8 sps:$4 sm:$0xff]   ;;  %v4079_v11 = vmax.f32 %v20862_v31, 0.0  ;;  %v20904_v31 = vld [vmem:[#allocation91_spill] sm:$0xff] }
 0x90c   :  { %5584 = vmatpush1.bf16.msra.mxu1 %v17000_v3  ;;  %5544 = vmatprep.subr.bf16.mxu0 %v17005_v61  ;;  %v9183_v3 = vld [vmem:[%s18478_s3 + $0xe4] ss:$8 sps:$4 sm:$0xff]  }
 0x90d   :  { %5585 = vmatprep.subr.bf16.mxu1 %v17011_v58  ;;  %v9184_v61 = vld [vmem:[%s18478_s3 + $0x1e4] ss:$8 sps:$4 sm:$0xff]   ;;  %v9185_v58 = vld [vmem:[%s18478_s3 + $0xe0] ss:$8 sps:$4 sm:$0xff]  }
 0x90f   :  { %5545 = vmatpush1.bf16.msra.mxu0 %v17017_v25  ;;  %v9186_v25 = vld [vmem:[%s18478_s3 + $0x1e0] ss:$8 sps:$4 sm:$0xff]  }
 0x910   :  { %5586 = vmatpush1.bf16.msra.mxu1 %v17024_v32  ;;  %5546 = vmatprep.subr.bf16.mxu0 %v17029_v42  ;;  %v9187_v32 = vld [vmem:[%s18478_s3 + $0xd4] ss:$8 sps:$4 sm:$0xff]  }
 0x911   :  { %5587 = vmatprep.subr.bf16.mxu1 %v17035_v63  ;;  %v9188_v42 = vld [vmem:[%s18478_s3 + $0x1d4] ss:$8 sps:$4 sm:$0xff]   ;;  %v9189_v63 = vld [vmem:[%s18478_s3 + $0xd0] ss:$8 sps:$4 sm:$0xff]  }
 0x913   :  { %5547 = vmatpush1.bf16.msra.mxu0 %v17041_v51  ;;  %v9190_v51 = vld [vmem:[%s18478_s3 + $0x1d0] ss:$8 sps:$4 sm:$0xff]  }
 0x914   :  { %5588 = vmatpush1.bf16.msra.mxu1 %v17048_v22  ;;  %5548 = vmatprep.subr.bf16.mxu0 %v17053_v27  ;;  %v9191_v22 = vld [vmem:[%s18478_s3 + $0xc4] ss:$8 sps:$4 sm:$0xff]  }
 0x915   :  { %5589 = vmatprep.subr.bf16.mxu1 %v17059_v52  ;;  %v9192_v27 = vld [vmem:[%s18478_s3 + $0x1c4] ss:$8 sps:$4 sm:$0xff]   ;;  %v9193_v52 = vld [vmem:[%s18478_s3 + $0xc0] ss:$8 sps:$4 sm:$0xff]  }
 0x917   :  { %5549 = vmatpush1.bf16.msra.mxu0 %v17065_v55  ;;  %v9194_v55 = vld [vmem:[%s18478_s3 + $0x1c0] ss:$8 sps:$4 sm:$0xff]  }
 0x918   :  { %5590 = vmatpush1.bf16.msra.mxu1 %v17072_v45  ;;  %5550 = vmatprep.subr.bf16.mxu0 %v17077_v46  ;;  %v9195_v45 = vld [vmem:[%s18478_s3 + $0xb4] ss:$8 sps:$4 sm:$0xff]  }
 0x919   :  { %5591 = vmatprep.subr.bf16.mxu1 %v17083_v13  ;;  %v9196_v46 = vld [vmem:[%s18478_s3 + $0x1b4] ss:$8 sps:$4 sm:$0xff]   ;;  %v9197_v13 = vld [vmem:[%s18478_s3 + $0xb0] ss:$8 sps:$4 sm:$0xff]  }
 0x91b   :  { %5551 = vmatpush1.bf16.msra.mxu0 %v17089_v56  ;;  %v9198_v56 = vld [vmem:[%s18478_s3 + $0x1b0] ss:$8 sps:$4 sm:$0xff]  }
 0x91c   :  { %5592 = vmatpush1.bf16.msra.mxu1 %v17096_v18  ;;  %5552 = vmatprep.subr.bf16.mxu0 %v17101_v6  ;;  %v9199_v18 = vld [vmem:[%s18478_s3 + $0xa4] ss:$8 sps:$4 sm:$0xff]  }
 0x91d   :  { %5593 = vmatprep.subr.bf16.mxu1 %v9176_v8  ;;  %v9200_v6 = vld [vmem:[%s18478_s3 + $0x1a4] ss:$8 sps:$4 sm:$0xff]   ;;  %v9208_v8 = vld [vmem:[%s18478_s3 + $0x80] ss:$8 sps:$4 sm:$0xff]  }
 0x91f   :  { %5553 = vmatpush1.bf16.msra.mxu0 %v9177_v37  ;;  %v4081_v37 = vpack.c.bf16 %v4079_v11, %v4079_v11  ;;  %v4078_v11 = vmax.f32 %v20904_v31, 0.0  ;;  %v8182_v31 = vld [vmem:[%s18480_s5 + $0x118] sm:$0xff]  }
 0x920   :  { %5594 = vmatpush1.bf16.msra.mxu1 %v9178_v0  ;;  %5554 = vmatprep.subr.bf16.mxu0 %v9179_v48 }
 0x921   :  { %5595 = vmatprep.subr.bf16.mxu1 %v9180_v20 }
 0x923   :  { %5555 = vmatpush2.bf16.msra.mxu0 %v9181_v19  ;;  %v20879_v19 = vld [vmem:[#allocation144_spill] sm:$0xff] }
 0x924   :  { %5596 = vmatpush2.bf16.msra.mxu1 %v9182_v47  ;;  %5556 = vmatprep.subr.bf16.mxu0 %v9183_v3  ;;  %v20880_v47 = vld [vmem:[#allocation145_spill] sm:$0xff]  ;;  %v20881_v3 = vld [vmem:[#allocation146_spill] sm:$0xff] }
 0x925   :  { %5597 = vmatprep.subr.bf16.mxu1 %v9184_v61  ;;  %v20882_v61 = vld [vmem:[#allocation147_spill] sm:$0xff] }
 0x927   :  { %5557 = vmatpush2.bf16.msra.mxu0 %v9185_v58  ;;  %v20883_v58 = vld [vmem:[#allocation148_spill] sm:$0xff] }
 0x928   :  { %5598 = vmatpush2.bf16.msra.mxu1 %v9186_v25  ;;  %5558 = vmatprep.subr.bf16.mxu0 %v9187_v32  ;;  %v20884_v25 = vld [vmem:[#allocation149_spill] sm:$0xff]  ;;  %v20885_v32 = vld [vmem:[#allocation150_spill] sm:$0xff] }
 0x929   :  { %5599 = vmatprep.subr.bf16.mxu1 %v9188_v42  ;;  %v20886_v42 = vld [vmem:[#allocation151_spill] sm:$0xff] }
 0x92b   :  { %5559 = vmatpush2.bf16.msra.mxu0 %v9189_v63  ;;  %v20887_v63 = vld [vmem:[#allocation152_spill] sm:$0xff] }
 0x92c   :  { %5600 = vmatpush2.bf16.msra.mxu1 %v9190_v51  ;;  %5560 = vmatprep.subr.bf16.mxu0 %v9191_v22  ;;  %v20888_v51 = vld [vmem:[#allocation153_spill] sm:$0xff]  ;;  %v20889_v22 = vld [vmem:[#allocation154_spill] sm:$0xff] }
 0x92d   :  { %5601 = vmatprep.subr.bf16.mxu1 %v9192_v27  ;;  %v20890_v27 = vld [vmem:[#allocation155_spill] sm:$0xff] }
 0x92f   :  { %5561 = vmatpush2.bf16.msra.mxu0 %v9193_v52  ;;  %v20891_v52 = vld [vmem:[#allocation156_spill] sm:$0xff] }
 0x930   :  { %5602 = vmatpush2.bf16.msra.mxu1 %v9194_v55  ;;  %5562 = vmatprep.subr.bf16.mxu0 %v9195_v45  ;;  %v20892_v55 = vld [vmem:[#allocation157_spill] sm:$0xff]  ;;  %v20893_v45 = vld [vmem:[#allocation158_spill] sm:$0xff] }
 0x931   :  { %5603 = vmatprep.subr.bf16.mxu1 %v9196_v46  ;;  %v20894_v46 = vld [vmem:[#allocation159_spill] sm:$0xff] }
 0x933   :  { %5563 = vmatpush2.bf16.msra.mxu0 %v9197_v13  ;;  %v20895_v13 = vld [vmem:[#allocation160_spill] sm:$0xff] }
 0x934   :  { %5604 = vmatpush2.bf16.msra.mxu1 %v9198_v56  ;;  %5564 = vmatprep.subr.bf16.mxu0 %v9199_v18  ;;  %v20896_v56 = vld [vmem:[#allocation161_spill] sm:$0xff]  ;;  %v20897_v18 = vld [vmem:[#allocation162_spill] sm:$0xff] }
 0x935   :  { %5605 = vmatprep.subr.bf16.mxu1 %v9200_v6  ;;  %v20898_v6 = vld [vmem:[#allocation163_spill] sm:$0xff] }
 0x937   :  { %5565 = vmatpush2.bf16.msra.mxu0 %v9201_v35 }
 0x938   :  { %5606 = vmatpush2.bf16.msra.mxu1 %v9202_v1  ;;  %5566 = vmatprep.subr.bf16.mxu0 %v9203_v57  ;;  %v20899_v1 = vld [vmem:[#allocation164_spill] sm:$0xff]  ;;  %v20900_v57 = vld [vmem:[#allocation165_spill] sm:$0xff] }
 0x939   :  { %5607 = vmatprep.subr.bf16.mxu1 %v9204_v30  ;;  %v20901_v30 = vld [vmem:[#allocation166_spill] sm:$0xff] }
 0x93b   :  { %5567 = vmatpush2.bf16.msra.mxu0 %v9205_v7  ;;  %v20902_v7 = vld [vmem:[#allocation167_spill] sm:$0xff] }
 0x93c   :  { %5608 = vmatpush2.bf16.msra.mxu1 %v9206_v62  ;;  %5568 = vmatprep.subr.bf16.mxu0 %v9207_v29  ;;  %v20903_v29 = vld [vmem:[#allocation168_spill] sm:$0xff] }
 0x93d   :  { %5609 = vmatprep.subr.bf16.mxu1 %v20791_v34  ;;  %v4421_v34 = vpack.c.bf16 %v4419_v14, %v4419_v14  ;;  %v20905_v14 = vld [vmem:[#allocation169_spill] sm:$0xff] }
 0x93f   :  { %5569 = vmatpush2.bf16.msra.mxu0 %v9208_v8  ;;  %v20906_v8 = vld [vmem:[#allocation170_spill] sm:$0xff] }
 0x940   :  { %5610 = vmatpush2.bf16.msra.mxu1 %v20795_v54  ;;  %5620 = vmatprep.subr.bf16.mxu0 %v20796_v17 }
 0x941   :  { %5661 = vmatprep.subr.bf16.mxu1 %v20797_v12 }
 0x942   :  { %v5318_v0 = vpop.f32.mrf.mxu0  ;;  %5571 = vmatmul.mubr.bf16.vlgmr.msra.gmra.mxu0 %v17884_v4 }
 0x943   :  { %v5319_v48 = vadd.f32 %v5318_v0, %v17900_v53  ;;  %v5359_v20 = vpop.f32.mrf.mxu1  ;;  %5612 = vmatmul.mubr.bf16.vlgmr.msra.gmra.mxu1 %v17888_v38  ;;  %5621 = vmatpush1.bf16.msra.mxu0 %v20798_v59  ;;  %v20878_v53 = vld [vmem:[#allocation143_spill] sm:$0xff] }
 0x944   :  { %5652 = vmatprep.mubr.bf16.mxu0 %v4081_v37  ;;  %5662 = vmatpush1.bf16.msra.mxu1 %v20799_v41  ;;  %v5320_v54 = vpop.f32.mrf.mxu0  ;;  %v20867_v41 = vld [vmem:[#allocation132_spill] sm:$0xff]  ;;  %v20907_v37 = vld [vmem:[#allocation173_spill] sm:$0xff] }
 0x945   :  { %v18041_v10 = vadd.f32 %v5359_v20, %v5319_v48  ;;  %5693 = vmatprep.mubr.bf16.mxu1 %v4421_v34  ;;  %v5361_v17 = vpop.f32.mrf.mxu1  ;;  %5622 = vmatprep.subr.bf16.mxu0 %v17346_v21  ;;  %v20864_v21 = vld [vmem:[#allocation129_spill] sm:$0xff]  ;;  %v5321_v35 = vadd.f32 %v5320_v54, %v17906_v24  ;;  %v4418_v0 = vmax.f32 %v20907_v37, 0.0  ;;  %v20908_v20 = vld [vmem:[#allocation171_spill] sm:$0xff]  ;;  %v8183_v37 = vld [vmem:[%s18480_s5 + $0x150] sm:$0xff]  }
 0x946   :  { %v5322_v12 = vpop.f32.mrf.mxu0  ;;  %5663 = vmatprep.subr.bf16.mxu1 %v17353_v15  ;;  %v20863_v15 = vld [vmem:[#allocation128_spill] sm:$0xff]  ;;  %v8141_v24 = vld [vmem:[%s18480_s5 + $0x78] sm:$0xff]  }
 0x947   :  { %v5363_v4 = vpop.f32.mrf.mxu1  ;;  %5623 = vmatpush1.bf16.msra.mxu0 %v17362_v40  ;;  %v20865_v40 = vld [vmem:[#allocation130_spill] sm:$0xff]  ;;  %v5362_v62 = vadd.f32 %v5361_v17, %v5321_v35  ;;  %v8157_v34 = vld [vmem:[%s18480_s5 + $0xf8] sm:$0xff]   ;;  %v4080_v17 = vpack.c.bf16 %v4078_v11, %v4078_v11  ;;  %v8143_v12 = vld [vmem:[%s18480_s5 + $0x70] sm:$0xff]  }
 0x948   :  { %5664 = vmatpush1.bf16.msra.mxu1 %v17369_v49  ;;  %v5323_v38 = vpop.f32.mrf.mxu0  ;;  %5624 = vmatprep.subr.bf16.mxu0 %v20801_v60  ;;  %v20866_v49 = vld [vmem:[#allocation131_spill] sm:$0xff]  ;;  %v20868_v60 = vld [vmem:[#allocation133_spill] sm:$0xff] }
 0x949   :  { %v5364_v59 = vpop.f32.mrf.mxu1  ;;  %5665 = vmatprep.subr.bf16.mxu1 %v20802_v16  ;;  %v20869_v16 = vld [vmem:[#allocation134_spill] sm:$0xff]  ;;  %v5367_v48 = vmax.f32 %v5362_v62, 0.0  ;;  %v8142_v54 = vld [vmem:[%s18480_s5 + $0x38] sm:$0xff]  }
 0x94a   :  { %v8158_v4 = vld [vmem:[%s18480_s5 + $0xb8] sm:$0xff]   ;;  %v8180_v62 = vld [vmem:[%s18480_s5 + $0x120] sm:$0xff]  }
 0x94b   :  { %5625 = vmatpush1.bf16.msra.mxu0 %v20803_v44  ;;  %v20870_v44 = vld [vmem:[#allocation135_spill] sm:$0xff]  ;;  %v5369_v38 = vpack.c.bf16 %v5367_v48, %v5367_v48 }
 0x94c   :  { %5666 = vmatpush1.bf16.msra.mxu1 %v20804_v36  ;;  %5626 = vmatprep.subr.bf16.mxu0 %v20805_v5  ;;  %v20871_v36 = vld [vmem:[#allocation136_spill] sm:$0xff]  ;;  %v20872_v5 = vld [vmem:[#allocation137_spill] sm:$0xff] }
 0x94d   :  { %5667 = vmatprep.subr.bf16.mxu1 %v20806_v9  ;;  %v20873_v9 = vld [vmem:[#allocation138_spill] sm:$0xff] }
 0x94f   :  { %5627 = vmatpush1.bf16.msra.mxu0 %v20807_v50  ;;  %v20874_v50 = vld [vmem:[#allocation139_spill] sm:$0xff] }
 0x950   :  { %5668 = vmatpush1.bf16.msra.mxu1 %v20808_v26  ;;  %5628 = vmatprep.subr.bf16.mxu0 %v20809_v33  ;;  %v20875_v26 = vld [vmem:[#allocation140_spill] sm:$0xff]  ;;  %v20876_v33 = vld [vmem:[#allocation141_spill] sm:$0xff] }
 0x951   :  { %5669 = vmatprep.subr.bf16.mxu1 %v20810_v43  ;;  %v20877_v43 = vld [vmem:[#allocation142_spill] sm:$0xff] }
 0x953   :  { %5629 = vmatpush1.bf16.msra.mxu0 %v20863_v15  ;;  %v8159_v15 = vld [vmem:[%s18480_s5 + $0xf0] sm:$0xff]  }
 0x954   :  { %5670 = vmatpush1.bf16.msra.mxu1 %v20864_v21  ;;  %5630 = vmatprep.subr.bf16.mxu0 %v20865_v40  ;;  %v8144_v21 = vld [vmem:[%s18480_s5 + $0x30] sm:$0xff]  }
 0x955   :  { %5671 = vmatprep.subr.bf16.mxu1 %v20866_v49  ;;  %v8145_v49 = vld [vmem:[%s18480_s5 + $0x68] sm:$0xff]  }
 0x957   :  { %5631 = vmatpush1.bf16.msra.mxu0 %v20867_v41 }
 0x958   :  { %5672 = vmatpush1.bf16.msra.mxu1 %v20868_v60  ;;  %5632 = vmatprep.subr.bf16.mxu0 %v20869_v16  ;;  %v8160_v60 = vld [vmem:[%s18480_s5 + $0xb0] sm:$0xff]  }
 0x959   :  { %5673 = vmatprep.subr.bf16.mxu1 %v20870_v44  ;;  %v8161_v44 = vld [vmem:[%s18480_s5 + $0xe8] sm:$0xff]  }
 0x95b   :  { %5633 = vmatpush1.bf16.msra.mxu0 %v20871_v36 }
 0x95c   :  { %5674 = vmatpush1.bf16.msra.mxu1 %v20872_v5  ;;  %5634 = vmatprep.subr.bf16.mxu0 %v20873_v9  ;;  %v8146_v5 = vld [vmem:[%s18480_s5 + $0x28] sm:$0xff]  }
 0x95d   :  { %5675 = vmatprep.subr.bf16.mxu1 %v20874_v50  ;;  %v8147_v50 = vld [vmem:[%s18480_s5 + $0x60] sm:$0xff]  }
 0x95f   :  { %5635 = vmatpush1.bf16.msra.mxu0 %v20875_v26 }
 0x960   :  { %5676 = vmatpush1.bf16.msra.mxu1 %v20876_v33  ;;  %5636 = vmatprep.subr.bf16.mxu0 %v20877_v43  ;;  %v8162_v33 = vld [vmem:[%s18480_s5 + $0xa8] sm:$0xff]   ;;  %v8163_v43 = vld [vmem:[%s18480_s5 + $0xe0] sm:$0xff]  }
 0x961   :  { %5677 = vmatprep.subr.bf16.mxu1 %v20878_v53  ;;  %v8148_v53 = vld [vmem:[%s18480_s5 + $0x20] sm:$0xff]  }
 0x963   :  { %5637 = vmatpush2.bf16.msra.mxu0 %v20879_v19  ;;  %v8149_v19 = vld [vmem:[%s18480_s5 + $0x58] sm:$0xff]  }
 0x964   :  { %5678 = vmatpush2.bf16.msra.mxu1 %v20880_v47  ;;  %5638 = vmatprep.subr.bf16.mxu0 %v20881_v3  ;;  %v8164_v47 = vld [vmem:[%s18480_s5 + $0xa0] sm:$0xff]   ;;  %v8165_v3 = vld [vmem:[%s18480_s5 + $0xd8] sm:$0xff]  }
 0x965   :  { %5679 = vmatprep.subr.bf16.mxu1 %v20882_v61  ;;  %v8150_v61 = vld [vmem:[%s18480_s5 + $0x18] sm:$0xff]  }
 0x967   :  { %5639 = vmatpush2.bf16.msra.mxu0 %v20883_v58  ;;  %v8151_v58 = vld [vmem:[%s18480_s5 + $0x50] sm:$0xff]  }
 0x968   :  { %5680 = vmatpush2.bf16.msra.mxu1 %v20884_v25  ;;  %5640 = vmatprep.subr.bf16.mxu0 %v20885_v32  ;;  %v8166_v25 = vld [vmem:[%s18480_s5 + $0x98] sm:$0xff]   ;;  %v8167_v32 = vld [vmem:[%s18480_s5 + $0xd0] sm:$0xff]  }
 0x969   :  { %5681 = vmatprep.subr.bf16.mxu1 %v20886_v42  ;;  %v8152_v42 = vld [vmem:[%s18480_s5 + $0x10] sm:$0xff]  }
 0x96b   :  { %5641 = vmatpush2.bf16.msra.mxu0 %v20887_v63  ;;  %v8153_v63 = vld [vmem:[%s18480_s5 + $0x48] sm:$0xff]  }
 0x96c   :  { %5682 = vmatpush2.bf16.msra.mxu1 %v20888_v51  ;;  %5642 = vmatprep.subr.bf16.mxu0 %v20889_v22  ;;  %v8168_v51 = vld [vmem:[%s18480_s5 + $0x90] sm:$0xff]   ;;  %v8169_v22 = vld [vmem:[%s18480_s5 + $0xc8] sm:$0xff]  }
 0x96d   :  { %5683 = vmatprep.subr.bf16.mxu1 %v20890_v27  ;;  %v8154_v27 = vld [vmem:[%s18480_s5 + $0x8] sm:$0xff]  }
 0x96f   :  { %5643 = vmatpush2.bf16.msra.mxu0 %v20891_v52  ;;  %v8155_v52 = vld [vmem:[%s18480_s5 + $0x40] sm:$0xff]  }
 0x970   :  { %5684 = vmatpush2.bf16.msra.mxu1 %v20892_v55  ;;  %5644 = vmatprep.subr.bf16.mxu0 %v20893_v45  ;;  %v8170_v55 = vld [vmem:[%s18480_s5 + $0x88] sm:$0xff]   ;;  %v8171_v45 = vld [vmem:[%s18480_s5 + $0xc0] sm:$0xff]  }
 0x971   :  { %5685 = vmatprep.subr.bf16.mxu1 %v20894_v46  ;;  %v8156_v46 = vld [vmem:[%s18480_s5] sm:$0xff]  }
 0x973   :  { %5645 = vmatpush2.bf16.msra.mxu0 %v20895_v13  ;;  %v5366_v13 = vmax.f32 %v18041_v10, 0.0  ;;  %v8175_v10 = vld [vmem:[%s18480_s5 + $0x170] sm:$0xff]  }
 0x974   :  { %5686 = vmatpush2.bf16.msra.mxu1 %v20896_v56  ;;  %5646 = vmatprep.subr.bf16.mxu0 %v20897_v18  ;;  %v8173_v56 = vld [vmem:[%s18480_s5 + $0x178] sm:$0xff]   ;;  %v8172_v18 = vld [vmem:[%s18480_s5 + $0x80] sm:$0xff]  }
 0x975   :  { %5687 = vmatprep.subr.bf16.mxu1 %v20898_v6  ;;  %v8174_v6 = vld [vmem:[%s18480_s5 + $0x138] sm:$0xff]   ;;  %v5368_v35 = vpack.c.bf16 %v5366_v13, %v5366_v13 }
 0x977   :  { %5647 = vmatpush2.bf16.msra.mxu0 %v20899_v1  ;;  %v8176_v1 = vld [vmem:[%s18480_s5 + $0x130] sm:$0xff]  }
 0x978   :  { %5688 = vmatpush2.bf16.msra.mxu1 %v20900_v57  ;;  %5648 = vmatprep.subr.bf16.mxu0 %v20901_v30  ;;  %v8177_v57 = vld [vmem:[%s18480_s5 + $0x168] sm:$0xff]  }
 0x979   :  { %5689 = vmatprep.subr.bf16.mxu1 %v20902_v7  ;;  %v8178_v30 = vld [vmem:[%s18480_s5 + $0x128] sm:$0xff]   ;;  %v8179_v7 = vld [vmem:[%s18480_s5 + $0x160] sm:$0xff]  }
 0x97b   :  { %5649 = vmatpush2.bf16.msra.mxu0 %v20903_v29  ;;  %v8181_v29 = vld [vmem:[%s18480_s5 + $0x158] sm:$0xff]  }
 0x97c   :  { %5690 = vmatpush2.bf16.msra.mxu1 %v20905_v14  ;;  %5650 = vmatprep.subr.bf16.mxu0 %v20906_v8 }
 0x97d   :  { %5691 = vmatprep.subr.bf16.mxu1 %v17699_v23  ;;  %v4420_v23 = vpack.c.bf16 %v4418_v0, %v4418_v0 }
 0x97f   :  { %5651 = vmatpush2.bf16.msra.mxu0 %v20908_v20  ;;  %v8184_v20 = vld [vmem:[%s18480_s5 + $0x110] sm:$0xff]  }
 0x980   :  { %5692 = vmatpush2.bf16.msra.mxu1 %v20857_v28  ;;  %7452 = vmatprep.subr.bf16.mxu0 %v8141_v24 }
 0x981   :  { %7474 = vmatprep.subr.bf16.mxu1 %v8157_v34 }
 0x982   :  { %v18121_v59 = vpop.f32.mrf.mxu0  ;;  %5653 = vmatmul.mubr.bf16.vlgmr.msra.gmra.mxu0 %v4080_v17 }
 0x983   :  { %v18126_v28 = vpop.f32.mrf.mxu1  ;;  %5694 = vmatmul.mubr.bf16.vlgmr.msra.gmra.mxu1 %v4420_v23  ;;  %7453 = vmatpush3.bf16.msra.mxu0 %v8142_v54  ;;  %v5405_v11 = vadd.f32 %v18121_v59, %v17882_v2 }
 0x984   :  { %6129 = vmatprep.mubr.bf16.mxu0 %v5369_v38  ;;  %v18131_v40 = vpop.f32.mrf.mxu0  ;;  %7454 = vmatprep.subr.bf16.mxu0 %v8143_v12  ;;  %v8185_v38 = vld [vmem:[%s18480_s5 + $0x148] sm:$0xff]  }
 0x985   :  { %v18136_v41 = vpop.f32.mrf.mxu1  ;;  %7475 = vmatpush3.bf16.msra.mxu1 %v8158_v4  ;;  %v5407_v14 = vadd.f32 %v18131_v40, %v17892_v39  ;;  %v5446_v8 = vadd.f32 %v18126_v28, %v5405_v11  ;;  %v8186_v28 = vld [vmem:[%s18480_s5 + $0x108] sm:$0xff]  }
 0x986   :  { %v5408_v16 = vpop.f32.mrf.mxu0  ;;  %7476 = vmatprep.subr.bf16.mxu1 %v8159_v15 }
 0x987   :  { %v5449_v36 = vpop.f32.mrf.mxu1  ;;  %7455 = vmatpush3.bf16.msra.mxu0 %v8144_v21  ;;  %v5448_v0 = vadd.f32 %v18136_v41, %v5407_v14 }
 0x988   :  { %v5409_v9 = vpop.f32.mrf.mxu0  ;;  %7456 = vmatprep.subr.bf16.mxu0 %v8145_v49 }
 0x989   :  { %v5450_v26 = vpop.f32.mrf.mxu1  ;;  %7477 = vmatpush3.bf16.msra.mxu1 %v8160_v60  ;;  %v8187_v60 = vld [vmem:[%s18480_s5 + $0x140] sm:$0xff]  }
 0x98a   :  { %7478 = vmatprep.subr.bf16.mxu1 %v8161_v44  ;;  %v8188_v44 = vld [vmem:[%s18480_s5 + $0x100] sm:$0xff]  }
 0x98b   :  { %7457 = vmatpush3.bf16.msra.mxu0 %v8146_v5 }
 0x98c   :  { %7458 = vmatprep.subr.bf16.mxu0 %v8147_v50 }
 0x98d   :  { %7479 = vmatpush3.bf16.msra.mxu1 %v8162_v33 }
 0x98e   :  { %7480 = vmatprep.subr.bf16.mxu1 %v8163_v43 }
 0x98f   :  { %7459 = vmatpush3.bf16.msra.mxu0 %v8148_v53 }
 0x990   :  { %7460 = vmatprep.subr.bf16.mxu0 %v8149_v19 }
 0x991   :  { %7481 = vmatpush3.bf16.msra.mxu1 %v8164_v47  ;;  %v8189_v47 = vld [vmem:[%s18481_s7 + $0xe0] ss:$16 sps:$4 sm:$0xff]  }
 0x992   :  { %7482 = vmatprep.subr.bf16.mxu1 %v8165_v3  ;;  %v8191_v3 = vld [vmem:[%s18481_s7 + $0xe4] ss:$16 sps:$4 sm:$0xff]  }
 0x993   :  { %7461 = vmatpush3.bf16.msra.mxu0 %v8150_v61  ;;  %v8194_v61 = vld [vmem:[%s18481_s7 + $0xec] ss:$16 sps:$4 sm:$0xff]  }
 0x994   :  { %7462 = vmatprep.subr.bf16.mxu0 %v8151_v58  ;;  %v8197_v58 = vld [vmem:[%s18481_s7 + $0xc4] ss:$16 sps:$4 sm:$0xff]  }
 0x995   :  { %7483 = vmatpush3.bf16.msra.mxu1 %v8166_v25  ;;  %v8195_v25 = vld [vmem:[%s18481_s7 + $0xc0] ss:$16 sps:$4 sm:$0xff]  }
 0x996   :  { %7484 = vmatprep.subr.bf16.mxu1 %v8167_v32  ;;  %v8203_v32 = vld [vmem:[%s18481_s7 + $0xa4] ss:$16 sps:$4 sm:$0xff]  }
 0x997   :  { %7463 = vmatpush3.bf16.msra.mxu0 %v8152_v42  ;;  %v8201_v42 = vld [vmem:[%s18481_s7 + $0xa0] ss:$16 sps:$4 sm:$0xff]  }
 0x998   :  { %7464 = vmatprep.subr.bf16.mxu0 %v8153_v63  ;;  %v8209_v63 = vld [vmem:[%s18481_s7 + $0x84] ss:$16 sps:$4 sm:$0xff]  }
 0x999   :  { %7485 = vmatpush3.bf16.msra.mxu1 %v8168_v51  ;;  %v8207_v51 = vld [vmem:[%s18481_s7 + $0x80] ss:$16 sps:$4 sm:$0xff]  }
 0x99a   :  { %7486 = vmatprep.subr.bf16.mxu1 %v8169_v22  ;;  %v8215_v22 = vld [vmem:[%s18481_s7 + $0x64] ss:$16 sps:$4 sm:$0xff]  }
 0x99b   :  { %7465 = vmatpush3.bf16.msra.mxu0 %v8154_v27  ;;  %v8213_v27 = vld [vmem:[%s18481_s7 + $0x60] ss:$16 sps:$4 sm:$0xff]  }
 0x99c   :  { %7466 = vmatprep.subr.bf16.mxu0 %v8155_v52  ;;  %v8221_v52 = vld [vmem:[%s18481_s7 + $0x44] ss:$16 sps:$4 sm:$0xff]  }
 0x99d   :  { %7487 = vmatpush3.bf16.msra.mxu1 %v8170_v55  ;;  %v8219_v55 = vld [vmem:[%s18481_s7 + $0x40] ss:$16 sps:$4 sm:$0xff]  }
 0x99e   :  { %7488 = vmatprep.subr.bf16.mxu1 %v8171_v45 }
 0x99f   :  { %7467 = vmatpush3.bf16.msra.mxu0 %v8156_v46 }
 0x9a0   :  { %7496 = vmatprep.subr.bf16.mxu0 %v8173_v56 }
 0x9a1   :  { %7489 = vmatpush3.bf16.msra.mxu1 %v8172_v18 }
 0x9a2   :  { %6130 = vmatmul.mubr.bf16.vlgmr.msra.gmra.mxu0 %v5368_v35  ;;  %6433 = vmatprep.subr.bf16.mxu1 %v8191_v3  ;;  %v9209_v3 = vmov 0  }
 0x9a3   :  { %7497 = vmatpush3.bf16.msra.mxu0 %v8174_v6 }
 0x9a4   :  { %7498 = vmatprep.subr.bf16.mxu0 %v8175_v10 }
 0x9a7   :  { %7499 = vmatpush3.bf16.msra.mxu0 %v8176_v1 }
 0x9a8   :  { %7500 = vmatprep.subr.bf16.mxu0 %v8177_v57 }
 0x9ab   :  { %7501 = vmatpush3.bf16.msra.mxu0 %v8178_v30 }
 0x9ac   :  { %7502 = vmatprep.subr.bf16.mxu0 %v8179_v7 }
 0x9af   :  { %7503 = vmatpush3.bf16.msra.mxu0 %v8180_v62 }
 0x9b0   :  { %7504 = vmatprep.subr.bf16.mxu0 %v8181_v29 }
 0x9b3   :  { %7505 = vmatpush3.bf16.msra.mxu0 %v8182_v31 }
 0x9b4   :  { %7506 = vmatprep.subr.bf16.mxu0 %v8183_v37  ;;  %v8200_v37 = vld [vmem:[%s18481_s7 + $0xcc] ss:$16 sps:$4 sm:$0xff]  }
 0x9b7   :  { %7507 = vmatpush3.bf16.msra.mxu0 %v8184_v20  ;;  %v8212_v20 = vld [vmem:[%s18481_s7 + $0x8c] ss:$16 sps:$4 sm:$0xff]  }
 0x9b8   :  { %7508 = vmatprep.subr.bf16.mxu0 %v8185_v38 }
 0x9bb   :  { %7509 = vmatpush3.bf16.msra.mxu0 %v8186_v28 }
 0x9bc   :  { %7510 = vmatprep.subr.bf16.mxu0 %v8187_v60 }
 0x9bf   :  { %7511 = vmatpush3.bf16.msra.mxu0 %v8188_v44  ;;  %v8227_v44 = vld [vmem:[%s18481_s7 + $0x24] ss:$16 sps:$4 sm:$0xff]  }
 0x9c0   :  { %6474 = vmatprep.subr.bf16.mxu0 %v8194_v61  ;;  %v8237_v61 = vld [vmem:[%s18483_s9 + $0x78] sm:$0xff]  }
 0x9c2   :  { %v5486_v24 = vpop.f32.mrf.mxu0 }
 0x9c3   :  { %v5487_v34 = vadd.f32 %v5486_v24, %v5446_v8  ;;  %v5527_v48 = vpop.f32.mrf.mxu1 }
 0x9c4   :  { %v5488_v54 = vpop.f32.mrf.mxu0 }
 0x9c5   :  { %v5528_v17 = vadd.f32 %v5527_v48, %v5487_v34  ;;  %v5489_v12 = vadd.f32 %v5488_v54, %v5448_v0  ;;  %v5529_v23 = vpop.f32.mrf.mxu1  ;;  %v8198_v0 = vld [vmem:[%s18481_s7 + $0xc8] ss:$16 sps:$4 sm:$0xff]   ;;  %v8206_v34 = vld [vmem:[%s18481_s7 + $0xac] ss:$16 sps:$4 sm:$0xff]  }
 0x9c6   :  { %v5490_v4 = vpop.f32.mrf.mxu0  ;;  %v8204_v48 = vld [vmem:[%s18481_s7 + $0xa8] ss:$16 sps:$4 sm:$0xff]  }
 0x9c7   :  { %v5530_v59 = vadd.f32 %v5529_v23, %v5489_v12  ;;  %v5531_v15 = vpop.f32.mrf.mxu1  ;;  %v5534_v21 = vmax.f32 %v5528_v17, 0.0  ;;  %v8210_v54 = vld [vmem:[%s18481_s7 + $0x88] ss:$16 sps:$4 sm:$0xff]   ;;  %v8218_v17 = vld [vmem:[%s18481_s7 + $0x6c] ss:$16 sps:$4 sm:$0xff]  }
 0x9c8   :  { %v5491_v40 = vpop.f32.mrf.mxu0  ;;  %v8216_v12 = vld [vmem:[%s18481_s7 + $0x68] ss:$16 sps:$4 sm:$0xff]   ;;  %v8224_v23 = vld [vmem:[%s18481_s7 + $0x4c] ss:$16 sps:$4 sm:$0xff]  }
 0x9c9   :  { %v5535_v49 = vmax.f32 %v5530_v59, 0.0  ;;  %v5532_v41 = vpop.f32.mrf.mxu1  ;;  %v5536_v36 = vpack.c.bf16 %v5534_v21, %v5534_v21  ;;  %v8222_v4 = vld [vmem:[%s18481_s7 + $0x48] ss:$16 sps:$4 sm:$0xff]   ;;  %v7338_v40 = vld [vmem:[%s18482_s6] ss:$0 sm:$0xff] }
 0x9cb   :  { %v5537_v16 = vpack.c.bf16 %v5535_v49, %v5535_v49 }
 0x9cd   :  { %6169 = vmatprep.mubr.bf16.mxu1 %v5537_v16 }
 0x9ce   :  { %6170 = vmatmul.mubr.bf16.vlgmr.msra.gmra.mxu1 %v5536_v36  ;;  %v8230_v36 = vld [vmem:[%s18481_s7 + $0x2c] ss:$16 sps:$4 sm:$0xff]  }
 0x9cf   :  { %6434 = vmatpush1.bf16.msra.mxu1 %v8189_v47  ;;  %v8234_v47 = vld [vmem:[%s18481_s7 + $0x8] ss:$16 sps:$4 sm:$0xff]   ;;  %6465 = vmatprep.mubr.bf16.mxu1 %v9209_v3 }
 0x9d0   :  { %6435 = vmatprep.subr.bf16.mxu1 %v8197_v58  ;;  %v8238_v58 = vld [vmem:[%s18483_s9 + $0xf8] sm:$0xff]  }
 0x9d3   :  { %6436 = vmatpush1.bf16.msra.mxu1 %v8195_v25 }
 0x9d4   :  { %6437 = vmatprep.subr.bf16.mxu1 %v8203_v32 }
 0x9d7   :  { %6438 = vmatpush1.bf16.msra.mxu1 %v8201_v42 }
 0x9d8   :  { %6439 = vmatprep.subr.bf16.mxu1 %v8209_v63 }
 0x9db   :  { %6440 = vmatpush1.bf16.msra.mxu1 %v8207_v51 }
 0x9dc   :  { %6441 = vmatprep.subr.bf16.mxu1 %v8215_v22 }
 0x9df   :  { %6442 = vmatpush1.bf16.msra.mxu1 %v8213_v27 }
 0x9e0   :  { %6443 = vmatprep.subr.bf16.mxu1 %v8221_v52  ;;  %v8239_v52 = vld [vmem:[%s18483_s9 + $0x38] sm:$0xff]  }
 0x9e3   :  { %6444 = vmatpush1.bf16.msra.mxu1 %v8219_v55  ;;  %v8240_v55 = vld [vmem:[%s18483_s9 + $0xb8] sm:$0xff]  }
 0x9e4   :  { %6445 = vmatprep.subr.bf16.mxu1 %v8227_v44 }
 0xa02   :  { %v5572_v5 = vpop.f32.mrf.mxu0 }
 0xa03   :  { %v5613_v9 = vpop.f32.mrf.mxu1  ;;  %v5573_v45 = vadd.f32 %v5572_v5, %v17882_v2 }
 0xa04   :  { %v5574_v50 = vpop.f32.mrf.mxu0 }
 0xa05   :  { %v5615_v26 = vpop.f32.mrf.mxu1  ;;  %v5575_v46 = vadd.f32 %v5574_v50, %v17892_v39  ;;  %v5614_v13 = vadd.f32 %v5613_v9, %v5573_v45  ;;  %v8192_v39 = vld [vmem:[%s18481_s7 + $0xe8] ss:$16 sps:$4 sm:$0xff]   ;;  %v8225_v9 = vld [vmem:[%s18481_s7 + $0x20] ss:$16 sps:$4 sm:$0xff]  }
 0xa06   :  { %v5576_v33 = vpop.f32.mrf.mxu0  ;;  %v8228_v50 = vld [vmem:[%s18481_s7 + $0x28] ss:$16 sps:$4 sm:$0xff]   ;;  %6446 = vmatpush1.bf16.msra.mxu1 %v8225_v9 }
 0xa07   :  { %v5617_v43 = vpop.f32.mrf.mxu1  ;;  %v5616_v18 = vadd.f32 %v5615_v26, %v5575_v46  ;;  %v8241_v46 = vld [vmem:[%s18483_s9 + $0x70] sm:$0xff]  }
 0xa08   :  { %v5577_v53 = vpop.f32.mrf.mxu0  ;;  %v8233_v43 = vld [vmem:[%s18481_s7 + $0x4] ss:$16 sps:$4 sm:$0xff]  }
 0xa09   :  { %v5618_v19 = vpop.f32.mrf.mxu1  ;;  %v8236_v53 = vld [vmem:[%s18481_s7 + $0xc] ss:$16 sps:$4 sm:$0xff]   ;;  %6447 = vmatprep.subr.bf16.mxu1 %v8233_v43 }
 0xa0a   :  { %v8231_v19 = vld [vmem:[%s18481_s7] ss:$16 sps:$4 sm:$0xff]  }
 0xa0b   :  { %6448 = vmatpush1.bf16.msra.mxu1 %v8231_v19 }
 0xa0c   :  { %7518 = vmatprep.subr.bf16.mxu1 %v8237_v61 }
 0xa42   :  { %v5654_v56 = vpop.f32.mrf.mxu0 }
 0xa43   :  { %v5655_v6 = vadd.f32 %v5654_v56, %v5614_v13  ;;  %v5695_v35 = vpop.f32.mrf.mxu1  ;;  %v8242_v13 = vld [vmem:[%s18483_s9 + $0xf0] sm:$0xff]  }
 0xa44   :  { %v5656_v10 = vpop.f32.mrf.mxu0  ;;  %v8243_v56 = vld [vmem:[%s18483_s9 + $0x30] sm:$0xff]  }
 0xa45   :  { %v5696_v1 = vadd.f32 %v5695_v35, %v5655_v6  ;;  %v5657_v57 = vadd.f32 %v5656_v10, %v5616_v18  ;;  %v5697_v30 = vpop.f32.mrf.mxu1  ;;  %v8244_v18 = vld [vmem:[%s18483_s9 + $0xb0] sm:$0xff]   ;;  %v8245_v6 = vld [vmem:[%s18483_s9 + $0x68] sm:$0xff]  }
 0xa46   :  { %v5658_v7 = vpop.f32.mrf.mxu0  ;;  %v8246_v35 = vld [vmem:[%s18483_s9 + $0xe8] sm:$0xff]  }
 0xa47   :  { %v5698_v62 = vadd.f32 %v5697_v30, %v5657_v57  ;;  %v5699_v29 = vpop.f32.mrf.mxu1  ;;  %v5702_v31 = vmax.f32 %v5696_v1, 0.0  ;;  %v8247_v10 = vld [vmem:[%s18483_s9 + $0x28] sm:$0xff]   ;;  %v8249_v57 = vld [vmem:[%s18483_s9 + $0x60] sm:$0xff]  }
 0xa48   :  { %v5659_v11 = vpop.f32.mrf.mxu0  ;;  %v8248_v1 = vld [vmem:[%s18483_s9 + $0xa8] sm:$0xff]   ;;  %v8250_v30 = vld [vmem:[%s18483_s9 + $0xe0] sm:$0xff]   ;;  %v8253_v29 = vld [vmem:[%s18483_s9 + $0x58] sm:$0xff]  }
 0xa49   :  { %v5703_v14 = vmax.f32 %v5698_v62, 0.0  ;;  %v5700_v8 = vpop.f32.mrf.mxu1  ;;  %v5704_v2 = vpack.c.bf16 %v5702_v31, %v5702_v31  ;;  %v8251_v7 = vld [vmem:[%s18483_s9 + $0x20] sm:$0xff]   ;;  %v8254_v31 = vld [vmem:[%s18483_s9 + $0xd8] sm:$0xff]  }
 0xa4a   :  { %v8252_v62 = vld [vmem:[%s18483_s9 + $0xa0] sm:$0xff]   ;;  %v8255_v11 = vld [vmem:[%s18483_s9 + $0x18] sm:$0xff]   ;;  %v8257_v8 = vld [vmem:[%s18483_s9 + $0x50] sm:$0xff]  }
 0xa4b   :  { %v5705_v24 = vpack.c.bf16 %v5703_v14, %v5703_v14  ;;  %v8256_v14 = vld [vmem:[%s18483_s9 + $0x98] sm:$0xff]  }
 0xa4d   :  { %6209 = vmatprep.mubr.bf16.mxu0 %v5705_v24  ;;  %v8258_v24 = vld [vmem:[%s18483_s9 + $0xd0] sm:$0xff]  }
 0xa4e   :  { %6210 = vmatmul.mubr.bf16.vlgmr.msra.gmra.mxu0 %v5704_v2  ;;  %v8260_v2 = vld [vmem:[%s18483_s9 + $0x90] sm:$0xff]  }
 0xa4f   :  { %6475 = vmatpush1.bf16.msra.mxu0 %v8192_v39  ;;  %6506 = vmatprep.mubr.bf16.mxu0 %v9209_v3  ;;  %v8259_v39 = vld [vmem:[%s18483_s9 + $0x10] sm:$0xff]  }
 0xa50   :  { %6476 = vmatprep.subr.bf16.mxu0 %v8200_v37  ;;  %v8261_v37 = vld [vmem:[%s18483_s9 + $0x48] sm:$0xff]  }
 0xa53   :  { %6477 = vmatpush1.bf16.msra.mxu0 %v8198_v0  ;;  %v8262_v0 = vld [vmem:[%s18483_s9 + $0xc8] sm:$0xff]  }
 0xa54   :  { %6478 = vmatprep.subr.bf16.mxu0 %v8206_v34  ;;  %v8263_v34 = vld [vmem:[%s18483_s9 + $0x8] sm:$0xff]  }
 0xa57   :  { %6479 = vmatpush1.bf16.msra.mxu0 %v8204_v48  ;;  %v8264_v48 = vld [vmem:[%s18483_s9 + $0x88] sm:$0xff]  }
 0xa58   :  { %6480 = vmatprep.subr.bf16.mxu0 %v8212_v20  ;;  %v8265_v20 = vld [vmem:[%s18483_s9 + $0x40] sm:$0xff]  }
 0xa5b   :  { %6481 = vmatpush1.bf16.msra.mxu0 %v8210_v54  ;;  %v8266_v54 = vld [vmem:[%s18483_s9 + $0xc0] sm:$0xff]  }
 0xa5c   :  { %6482 = vmatprep.subr.bf16.mxu0 %v8218_v17  ;;  %v8267_v17 = vld [vmem:[%s18483_s9] sm:$0xff]  }
 0xa5f   :  { %6483 = vmatpush1.bf16.msra.mxu0 %v8216_v12  ;;  %v8268_v12 = vld [vmem:[%s18483_s9 + $0x80] sm:$0xff]  }
 0xa60   :  { %6484 = vmatprep.subr.bf16.mxu0 %v8224_v23  ;;  %v20909_v23 = vld [vmem:[#allocation71_spill] sm:$0xff] }
 0xa62   :  { %v7468_v38 = vpop.f32.mrf.mxu0 }
 0xa63   :  { %6485 = vmatpush1.bf16.msra.mxu0 %v8222_v4  ;;  %v6263_v4 = vsub.s32 2, %v20909_v23 }
 0xa64   :  { %v7469_v59 = vpop.f32.mrf.mxu0  ;;  %6486 = vmatprep.subr.bf16.mxu0 %v8230_v36 }
 0xa65   :  { %v7470_v15 = vadd.f32 %v7469_v59, %v7468_v38  ;;  %v6251_v38 = vld [vmem:[%s18484_s8] sm:$0xf]  ;;  %v6267_v59 = vsub.s32 3, %v20909_v23 }
 0xa66   :  { %v7471_v28 = vpop.f32.mrf.mxu0 }
 0xa67   :  { %v6132_v60 = vadd.f32 %v7470_v15, %v7338_v40  ;;  %6487 = vmatpush1.bf16.msra.mxu0 %v8228_v50  ;;  %v20910_v15 = vld [vmem:[#allocation76_spill] sm:$0xff]  ;;  %v20911_v40 = vld [vmem:[#allocation77_spill] sm:$0xff] }
 0xa68   :  { %v7472_v21 = vpop.f32.mrf.mxu0  ;;  %6488 = vmatprep.subr.bf16.mxu0 %v8236_v53  ;;  %v6256_v28 = vrot.slane %v6251_v38, %v20910_v15 }
 0xa69   :  { %v6264_v21 = vrot.slane %v6251_v38, %v6263_v4 }
 0xa6b   :  { %6489 = vmatpush1.bf16.msra.mxu0 %v8234_v47 }
 0xa6c   :  { %7540 = vmatprep.subr.bf16.mxu0 %v8238_v58 }
 0xa8e   :  { %v7490_v49 = vpop.f32.mrf.mxu1 }
 0xa90   :  { %v7491_v41 = vpop.f32.mrf.mxu1 }
 0xa91   :  { %v7492_v16 = vadd.f32 %v7491_v41, %v7490_v49  ;;  %v6260_v49 = vrot.slane %v6251_v38, %v20911_v40  ;;  %v6268_v41 = vrot.slane %v6251_v38, %v6267_v59 }
 0xa92   :  { %v7493_v5 = vpop.f32.mrf.mxu1 }
 0xa93   :  { %v6172_v26 = vadd.f32 %v7492_v16, %v6132_v60 }
 0xa94   :  { %v7494_v33 = vpop.f32.mrf.mxu1 }
 0xb0e   :  { %v7512_v25 = vpop.f32.mrf.mxu0 }
 0xb10   :  { %v7513_v32 = vpop.f32.mrf.mxu0 }
 0xb11   :  { %v7514_v42 = vadd.f32 %v7513_v32, %v7512_v25 }
 0xb12   :  { %v7515_v63 = vpop.f32.mrf.mxu0 }
 0xb13   :  { %v6212_v51 = vadd.f32 %v7514_v42, %v6172_v26 }
 0xb14   :  { %v7516_v22 = vpop.f32.mrf.mxu0 }
 0xb15   :  { %v6217_v27 = vmax.f32 %v6212_v51, 0.0  ;;  %v9210_v51 = vmov 5  }
 0xb16   :  { %7564 = vset.pattern.permute.xlu0 %v9210_v51 }
 0xb17   :  { %v6218_v45 = vpack.c.bf16 %v6217_v27, %v6217_v27 }
 0xb19   :  { %6466 = vmatmul.mubr.bf16.vlgmr.msra.gmra.mxu1 %v6218_v45  ;;  %6507 = vmatmul.mubr.bf16.vlgmr.msra.gmra.mxu0 %v6218_v45 }
 0xb1a   :  { %7519 = vmatpush3.bf16.msra.mxu1 %v8239_v52  ;;  %7541 = vmatpush3.bf16.msra.mxu0 %v8240_v55  ;;  %v7419_v52 = vld [vmem:[%s18485_s10] ss:$0 sm:$0xff] }
 0xb1b   :  { %7520 = vmatprep.subr.bf16.mxu1 %v8241_v46  ;;  %7542 = vmatprep.subr.bf16.mxu0 %v8242_v13 }
 0xb1e   :  { %7521 = vmatpush3.bf16.msra.mxu1 %v8243_v56  ;;  %7543 = vmatpush3.bf16.msra.mxu0 %v8244_v18 }
 0xb1f   :  { %7522 = vmatprep.subr.bf16.mxu1 %v8245_v6  ;;  %7544 = vmatprep.subr.bf16.mxu0 %v8246_v35 }
 0xb22   :  { %7523 = vmatpush3.bf16.msra.mxu1 %v8247_v10  ;;  %7545 = vmatpush3.bf16.msra.mxu0 %v8248_v1 }
 0xb23   :  { %7524 = vmatprep.subr.bf16.mxu1 %v8249_v57  ;;  %7546 = vmatprep.subr.bf16.mxu0 %v8250_v30 }
 0xb26   :  { %7525 = vmatpush3.bf16.msra.mxu1 %v8251_v7  ;;  %7547 = vmatpush3.bf16.msra.mxu0 %v8252_v62 }
 0xb27   :  { %7526 = vmatprep.subr.bf16.mxu1 %v8253_v29  ;;  %7548 = vmatprep.subr.bf16.mxu0 %v8254_v31 }
 0xb2a   :  { %7527 = vmatpush3.bf16.msra.mxu1 %v8255_v11  ;;  %7549 = vmatpush3.bf16.msra.mxu0 %v8256_v14 }
 0xb2b   :  { %7528 = vmatprep.subr.bf16.mxu1 %v8257_v8  ;;  %7550 = vmatprep.subr.bf16.mxu0 %v8258_v24 }
 0xb2e   :  { %7529 = vmatpush3.bf16.msra.mxu1 %v8259_v39  ;;  %7551 = vmatpush3.bf16.msra.mxu0 %v8260_v2 }
 0xb2f   :  { %7530 = vmatprep.subr.bf16.mxu1 %v8261_v37  ;;  %7552 = vmatprep.subr.bf16.mxu0 %v8262_v0 }
 0xb32   :  { %7531 = vmatpush3.bf16.msra.mxu1 %v8263_v34  ;;  %7553 = vmatpush3.bf16.msra.mxu0 %v8264_v48 }
 0xb33   :  { %7532 = vmatprep.subr.bf16.mxu1 %v8265_v20  ;;  %7554 = vmatprep.subr.bf16.mxu0 %v8266_v54 }
 0xb36   :  { %7533 = vmatpush3.bf16.msra.mxu1 %v8267_v17  ;;  %7555 = vmatpush3.bf16.msra.mxu0 %v8268_v12 }
 0xbd9   :  { %v6467_v60 = vpop.f32.mrf.mxu1  ;;  %v6508_v16 = vpop.f32.mrf.mxu0 }
 0xbda   :  { %v6468_v44 = vadd.f32 %v6467_v60, %v6256_v28  ;;  %v6509_v36 = vadd.f32 %v6508_v16, %v6264_v21 }
 0xbdb   :  { %v6469_v5 = vpop.f32.mrf.mxu1  ;;  %v6510_v9 = vpop.f32.mrf.mxu0 }
 0xbdc   :  { %v6470_v50 = vadd.f32 %v6469_v5, %v6260_v49  ;;  %v6511_v26 = vadd.f32 %v6510_v9, %v6268_v41  ;;  %v6515_v33 = vmax.f32 %v6468_v44, 0.0  ;;  %v6517_v43 = vmax.f32 %v6509_v36, 0.0 }
 0xbdd   :  { %v6471_v53 = vpop.f32.mrf.mxu1  ;;  %v6512_v19 = vpop.f32.mrf.mxu0 }
 0xbde   :  { %v6516_v47 = vmax.f32 %v6470_v50, 0.0  ;;  %v6518_v3 = vmax.f32 %v6511_v26, 0.0  ;;  %v6519_v42 = vpack.c.bf16 %v6515_v33, %v6515_v33  ;;  %v6521_v63 = vpack.c.bf16 %v6517_v43, %v6517_v43 }
 0xbdf   :  { %v6472_v61 = vpop.f32.mrf.mxu1  ;;  %v6513_v58 = vpop.f32.mrf.mxu0 }
 0xbe0   :  { %v6520_v25 = vpack.c.bf16 %v6516_v47, %v6516_v47  ;;  %v6522_v32 = vpack.c.bf16 %v6518_v3, %v6518_v3 }
 0xbe2   :  { %6818 = vmatprep.mubr.bf16.mxu1 %v6520_v25  ;;  %6858 = vmatprep.mubr.bf16.mxu0 %v6522_v32 }
 0xbe3   :  { %6819 = vmatmul.mubr.bf16.vlgmr.msra.gmra.mxu1 %v6519_v42  ;;  %6859 = vmatmul.mubr.bf16.vlgmr.msra.gmra.mxu0 %v6521_v63 }
 0xca3   :  { %v7534_v22 = vpop.f32.mrf.mxu1  ;;  %v7556_v27 = vpop.f32.mrf.mxu0 }
 0xca5   :  { %v7535_v55 = vpop.f32.mrf.mxu1  ;;  %v7557_v45 = vpop.f32.mrf.mxu0 }
 0xca6   :  { %v7536_v46 = vadd.f32 %v7535_v55, %v7534_v22  ;;  %v7558_v6 = vadd.f32 %v7557_v45, %v7556_v27 }
 0xca7   :  { %v7537_v13 = vpop.f32.mrf.mxu1  ;;  %v7559_v56 = vpop.f32.mrf.mxu0 }
 0xca8   :  { %v6821_v18 = vadd.f32 %v7536_v46, %v7419_v52 }
 0xca9   :  { %v7538_v35 = vpop.f32.mrf.mxu1  ;;  %v7560_v10 = vpop.f32.mrf.mxu0 }
 0xcaa   :  { %v6861_v1 = vadd.f32 %v7558_v6, %v6821_v18 }
 0xcac   :  { %v6867_v57 = vsel %vm6866_vm0, %v6861_v1, 0.0 }
 0xcad   :  { %6868 = vadd.xlane.f32.xlu0 %v6867_v57 }
 0xcc3   :  { %6875 = vperm.xlu0 %7564, %v6861_v1  }
 0xd36   :  { %v6869_v30 = vpop.xlane.xlu0 %6868 }
 0xd37   :  { %v6871_v7 = vmul.f32 0.2, %v6869_v30 }
 0xd39   :  { %v6872_v62 = vsub.f32 %v6861_v1, %v6871_v7 }
 0xd3e   :  { %v6876_v29 = vpop.permute.xlu0 %6875 }
 0xd3f   :  { %v6878_v31 = vadd.f32 %v6876_v29, %v6872_v62 }
 0xd41   :  { %6879 = vst.msk [vmem:[%s18486_s11] sm:$0xff] %vm6866_vm0, %v6878_v31 }

</bundles_post_ra>
